<compile_context>
chip_gen: v5e
topology: v5e:2x2
jax: 0.10.0
libtpu: 0.0.40
codegen_flags: <defaults>
</compile_context>

<pallas_src>
import functools
import math

import jax
import jax.numpy as jnp
import numpy as np
from jax.experimental import pallas as pl
from jax.experimental.pallas import tpu as pltpu

EPS = 1e-5                        # torch.nn.LayerNorm default eps
_VMEM_LIMIT = 48 * 1024 * 1024    # < v7x 64 MiB physical, > v5e/v6e scoped defaults
_VMEM_BUDGET = 24 * 1024 * 1024   # working-set budget used when picking TB


# ----------------------------- in-kernel math ------------------------------
def _layernorm(x, w, b):
    # torch LayerNorm: biased variance over last dim
    mean = jnp.mean(x, axis=-1, keepdims=True)
    var = jnp.mean((x - mean) ** 2, axis=-1, keepdims=True)
    return (x - mean) * jax.lax.rsqrt(var + EPS) * w + b


def _erf_poly(x):
    # Abramowitz & Stegun 7.1.26 (|err| <= 1.5e-7): only exp/mul/add/where
    # (guaranteed Mosaic lowering, exp on EUP).
    a = jnp.where(x >= 0.0, x, -x)
    t = 1.0 / (1.0 + 0.3275911 * a)
    poly = t * (0.254829592 + t * (-0.284496736 + t * (1.421413741
               + t * (-1.453152027 + t * 1.061405429))))
    y = 1.0 - poly * jnp.exp(-a * a)
    return jnp.where(x >= 0.0, y, -y)


def _gelu_exact(x):
    return 0.5 * x * (1.0 + _erf_poly(x * (1.0 / math.sqrt(2.0))))


def _attn_block(x, ln_w, ln_b, wq_ref, wk_ref, wv_ref, wp_ref, bp,
                num_heads, seq_len, scale):
    """x <- x + proj(multi_head_attention(LayerNorm(x))).

    x: (M, D) f32, rows grouped into sequences of `seq_len` consecutive rows.
    wq/wk/wv refs: (nh, D, hd) bf16; wp ref: (nh, hd, D) bf16; bp: (1, D) f32.
    Heads are handled by indexing the WEIGHT stacks on their leading dim (no
    activation lane slicing) and by accumulating partial projections into one
    (M, D) f32 accumulator (no lane concat).
    """
    M, D = x.shape
    nseq = M // seq_len
    xn = _layernorm(x, ln_w, ln_b)
    xn_b = xn.astype(jnp.bfloat16)
    acc = jnp.zeros((M, D), jnp.float32)
    for h in range(num_heads):                                   # static unroll
        q = jnp.dot(xn_b, wq_ref[h], preferred_element_type=jnp.float32)
        k = jnp.dot(xn_b, wk_ref[h], preferred_element_type=jnp.float32)
        v = jnp.dot(xn_b, wv_ref[h], preferred_element_type=jnp.float32)
        hd = q.shape[-1]
        q3 = q.reshape(nseq, seq_len, hd).astype(jnp.bfloat16)
        k3 = k.reshape(nseq, seq_len, hd).astype(jnp.bfloat16)
        v3 = v.reshape(nseq, seq_len, hd).astype(jnp.bfloat16)
        s = jnp.einsum('bqd,bkd->bqk', q3, k3,
                       preferred_element_type=jnp.float32) * scale
        s = s - jnp.max(s, axis=-1, keepdims=True)
        p = jnp.exp(s)
        p = p * pl.reciprocal(jnp.sum(p, axis=-1, keepdims=True), approx=True)
        o = jnp.einsum('bqk,bkd->bqd', p.astype(jnp.bfloat16), v3,
                       preferred_element_type=jnp.float32)
        acc = acc + jnp.dot(o.reshape(M, hd).astype(jnp.bfloat16), wp_ref[h],
                            preferred_element_type=jnp.float32)
    return x + acc + bp


def _mlp_block(x, ln_w, ln_b, w1, b1, w2, b2):
    """x <- x + fc2(gelu(fc1(LayerNorm(x)))); w1/w2 bf16, biases f32."""
    xn = _layernorm(x, ln_w, ln_b)
    h = jnp.dot(xn.astype(jnp.bfloat16), w1,
                preferred_element_type=jnp.float32) + b1
    h = _gelu_exact(h)
    y = jnp.dot(h.astype(jnp.bfloat16), w2,
                preferred_element_type=jnp.float32) + b2
    return x + y


# ------------------------------ Pallas kernels -------------------------------
def fused_kernel(x_ref, pf_ref, pi_ref,
                 ln1w, ln1b, a_wq, a_wk, a_wv, a_wp, a_bp,
                 ln4w, ln4b, m2_w1, m2_b1, m2_w2, m2_b2,
                 ln3w, ln3b, s_wq, s_wk, s_wv, s_wp, s_bp,
                 ln2w, ln2b, m1_w1, m1_b1, m1_w2, m1_b2,
                 o_ref, *, num_heads, seq_a, seq_b, scale):
    """Entire N>1 MultiscaleBlock forward for TB whole batch elements."""
    TB, NH, D = x_ref.shape
    M = TB * NH
    x = x_ref[...].reshape(M, D).astype(jnp.float32)   # rows in (tb, n, h) order

    # ---- phase A: attention over H (sequences = (tb,n)), then mlp2 ----
    x = _attn_block(x, ln1w[...], ln1b[...], a_wq, a_wk, a_wv, a_wp, a_bp[...],
                    num_heads, seq_a, scale)
    x = _mlp_block(x, ln4w[...], ln4b[...], m2_w1[...], m2_b1[...],
                   m2_w2[...], m2_b2[...])

    # ---- (tb,n,h) -> (h,tb,n) relayout: exact f32 permutation matmul on the
    # idle MXU instead of an XLU transpose / HBM round trip ----
    x = jnp.dot(pf_ref[...], x, preferred_element_type=jnp.float32)

    # ---- phase B: multiscale attention over N (sequences = (h,tb)), then mlp
    x = _attn_block(x, ln3w[...], ln3b[...], s_wq, s_wk, s_wv, s_wp, s_bp[...],
                    num_heads, seq_b, scale)
    x = _mlp_block(x, ln2w[...], ln2b[...], m1_w1[...], m1_b1[...],
                   m1_w2[...], m1_b2[...])

    # ---- inverse relayout + store ----
    x = jnp.dot(pi_ref[...], x, preferred_element_type=jnp.float32)
    o_ref[...] = x.reshape(TB, NH, D).astype(o_ref.dtype)


def single_kernel(x_ref,
                  ln1w, ln1b, a_wq, a_wk, a_wv, a_wp, a_bp,
                  ln2w, ln2b, m_w1, m_b1, m_w2, m_b2,
                  o_ref, *, num_heads, scale):
    """N == 1 path: x = x + attn(norm1(x)); x = x + mlp(norm2(x))."""
    TB, S, D = x_ref.shape
    x = x_ref[...].reshape(TB * S, D).astype(jnp.float32)
    x = _attn_block(x, ln1w[...], ln1b[...], a_wq, a_wk, a_wv, a_wp, a_bp[...],
                    num_heads, S, scale)
    x = _mlp_block(x, ln2w[...], ln2b[...], m_w1[...], m_b1[...],
                   m_w2[...], m_b2[...])
    o_ref[...] = x.reshape(TB, S, D).astype(o_ref.dtype)


# ------------------------------ host-side helpers ----------------------------
def _const_spec(a):
    nd = a.ndim
    return pl.BlockSpec(a.shape, lambda i, _nd=nd: (0,) * _nd)


def _choose_tb(bt, n, h, w, hidden, budget=_VMEM_BUDGET):
    """Largest per-step batch TB (divisor of bt) whose working set fits VMEM.
    When the batch allows, keep >=4 grid steps so each v7x TensorCore has >=2
    steps to double-buffer; for tiny batches use the largest TB that fits
    (grid=1 saves per-step overhead on single-core v5e/v6e)."""
    def est_bytes(tb):
        m = tb * n * h
        act = 4 * m * (10 * w + 2 * hidden)            # live f32 activations
        scores = 2 * 4 * m * max(n, h)                 # (nseq, S, S) score temps
        perm = 2 * 4 * m * m                           # relayout permutation mats
        io = 2 * 2 * m * w * 4                         # double-buffered in/out
        weights = 4 * (20 * w * w + 4 * w * hidden + 16 * w)
        return act + scores + perm + io + weights
    divisors = [d for d in range(1, bt + 1) if bt % d == 0]
    fits = [d for d in divisors if est_bytes(d) <= budget] or [1]
    tb = max(fits)
    if bt >= 4:
        deep = [d for d in fits if bt // d >= 4]
        if deep:
            tb = max(deep)
    return tb


def _perm_mats(tb, n, h):
    """(tb,n,h)->(h,tb,n) row-permutation matrix and its inverse (numpy)."""
    m = tb * n * h
    idx = np.arange(m)
    hh = idx // (tb * n)
    rr = idx % (tb * n)                  # rr = tb_local * n + n_idx
    src = rr * h + hh                    # source row in (tb, n, h) order
    pf = np.zeros((m, m), np.float32)
    pf[idx, src] = 1.0
    return jnp.asarray(pf), jnp.asarray(np.ascontiguousarray(pf.T))


def _pack_attn(attn_params, num_heads):
    """Split qkv/proj weights per head (host side) and cast to bf16."""
    w_qkv, w_proj, b_proj = attn_params
    d = w_proj.shape[0]
    hd = d // num_heads
    wq = w_qkv[:, 0 * d:1 * d].reshape(d, num_heads, hd).transpose(1, 0, 2)
    wk = w_qkv[:, 1 * d:2 * d].reshape(d, num_heads, hd).transpose(1, 0, 2)
    wv = w_qkv[:, 2 * d:3 * d].reshape(d, num_heads, hd).transpose(1, 0, 2)
    wp = w_proj.reshape(num_heads, hd, d)
    b16 = jnp.bfloat16
    return (wq.astype(b16), wk.astype(b16), wv.astype(b16),
            wp.astype(b16), b_proj.astype(jnp.float32))


def _pack_mlp(mlp_params):
    w1, b1, w2, b2 = mlp_params
    return (w1.astype(jnp.bfloat16), b1.astype(jnp.float32),
            w2.astype(jnp.bfloat16), b2.astype(jnp.float32))


def _pack_norm(norm_params):
    w, b = norm_params
    return (w.astype(jnp.float32), b.astype(jnp.float32))


# ---------------------------- MultiscaleBlock forward -----------------------
def multiscale_block_forward(x, p, num_heads):
    B, N, H, W = x.shape
    hd = W // num_heads
    scale = hd ** (-0.5)
    hidden = p["mlp"][0].shape[1]
    cparams = pltpu.CompilerParams(dimension_semantics=("parallel",),
                                   vmem_limit_bytes=_VMEM_LIMIT)

    if N == 1:
        TB = _choose_tb(B, 1, H, W, hidden)
        weights = (*_pack_norm(p["norm1"]), *_pack_attn(p["attn"], num_heads),
                   *_pack_norm(p["norm2"]), *_pack_mlp(p["mlp"]))
        kernel = functools.partial(single_kernel, num_heads=num_heads, scale=scale)
        xs = x.reshape(B, H, W)
        out = pl.pallas_call(
            kernel,
            out_shape=jax.ShapeDtypeStruct((B, H, W), x.dtype),
            grid=(B // TB,),
            in_specs=[pl.BlockSpec((TB, H, W), lambda i: (i, 0, 0))]
                     + [_const_spec(w) for w in weights],
            out_specs=pl.BlockSpec((TB, H, W), lambda i: (i, 0, 0)),
            compiler_params=cparams,
        )(xs, *weights)
        return out.reshape(B, N, H, W)

    # --- fused N>1 path: one pallas_call for the entire block -------------
    TB = _choose_tb(B, N, H, W, hidden)
    p_fwd, p_inv = _perm_mats(TB, N, H)
    weights = (*_pack_norm(p["norm1"]), *_pack_attn(p["attn"], num_heads),
               *_pack_norm(p["norm4"]), *_pack_mlp(p["mlp2"]),
               *_pack_norm(p["norm3"]),
               *_pack_attn(p["attn_multiscale"], num_heads),
               *_pack_norm(p["norm2"]), *_pack_mlp(p["mlp"]))
    kernel = functools.partial(fused_kernel, num_heads=num_heads,
                               seq_a=H, seq_b=N, scale=scale)
    xs = x.reshape(B, N * H, W)
    out = pl.pallas_call(
        kernel,
        out_shape=jax.ShapeDtypeStruct((B, N * H, W), x.dtype),
        grid=(B // TB,),
        in_specs=[pl.BlockSpec((TB, N * H, W), lambda i: (i, 0, 0)),
                  _const_spec(p_fwd), _const_spec(p_inv)]
                 + [_const_spec(w) for w in weights],
        out_specs=pl.BlockSpec((TB, N * H, W), lambda i: (i, 0, 0)),
        compiler_params=cparams,
    )(xs, p_fwd, p_inv, *weights)
    return out.reshape(B, N, H, W)


# ---------------------------- pure-JAX reference ----------------------------
def ref_attn_block(x, ln_w, ln_b, w_qkv, w_proj, b_proj, num_heads):
    BT, S, D = x.shape
    hd = D // num_heads
    scale = hd ** (-0.5)
    xn = _layernorm(x, ln_w, ln_b)
    qkv = xn @ w_qkv
    qkv = qkv.reshape(BT, S, 3, num_heads, hd).transpose(2, 0, 3, 1, 4)
    q, k, v = qkv[0], qkv[1], qkv[2]
    attn = (q @ jnp.swapaxes(k, -2, -1)) * scale
    attn = jax.nn.softmax(attn, axis=-1)
    o = (attn @ v).transpose(0, 2, 1, 3).reshape(BT, S, D)
    return x + o @ w_proj + b_proj


def ref_mlp_block(x, ln_w, ln_b, w1, b1, w2, b2):
    xn = _layernorm(x, ln_w, ln_b)
    h = jax.nn.gelu(xn @ w1 + b1, approximate=False)
    return x + h @ w2 + b2


def ref_multiscale_block_forward(x, p, num_heads):
    B, N, H, W = x.shape
    if N == 1:
        t = x.reshape(B * N, H, W)
        t = ref_attn_block(t, *p["norm1"], *p["attn"], num_heads)
        t = ref_mlp_block(t, *p["norm2"], *p["mlp"])
        return t.reshape(B, N, H, W)
    t = x.reshape(B * N, H, W)
    t = ref_attn_block(t, *p["norm1"], *p["attn"], num_heads)
    t = ref_mlp_block(t, *p["norm4"], *p["mlp2"])
    t = t.reshape(B, N, H, W).transpose(0, 2, 1, 3).reshape(B * H, N, W)
    t = ref_attn_block(t, *p["norm3"], *p["attn_multiscale"], num_heads)
    t = t.reshape(B, H, N, W).transpose(0, 2, 1, 3).reshape(B * N, H, W)
    t = ref_mlp_block(t, *p["norm2"], *p["mlp"])
    return t.reshape(B, N, H, W)


# --------------------------------- params -----------------------------------
def init_params(key, dim, mlp_ratio=4.0):
    hidden = int(dim * mlp_ratio)
    ks = iter(jax.random.split(key, 32))

    def w(shape, scale=0.02):
        return jax.random.normal(next(ks), shape, jnp.float32) * scale

    def norm():
        return (1.0 + 0.1 * jax.random.normal(next(ks), (1, dim), jnp.float32),
                0.1 * jax.random.normal(next(ks), (1, dim), jnp.float32))

    def attn():
        # torch Linear weight is (out, in); these are pre-transposed (in, out)
        # so x @ W matches x @ W_torch^T.  qkv_bias=False per module default.
        return (w((dim, 3 * dim)), w((dim, dim)), w((1, dim)))

    def mlp():
        return (w((dim, hidden)), w((1, hidden)), w((hidden, dim)), w((1, dim)))

    return {
        "norm1": norm(), "norm2": norm(), "norm3": norm(), "norm4": norm(),
        "attn": attn(), "attn_multiscale": attn(),
        "mlp": mlp(), "mlp2": mlp(),
    }


# ----------------------------------- main ------------------------------------
if __name__ == "__main__":
    key = jax.random.PRNGKey(0)
    kx, kp = jax.random.split(key)

    B, N, H, W = 2, 4, 8, 32       # W == embedding dim
    num_heads = 4                  # head_dim = 8

    x = jax.random.normal(kx, (B, N, H, W), jnp.float32)
    params = init_params(kp, W, mlp_ratio=4.0)

    fwd = jax.jit(multiscale_block_forward, static_argnums=(2,))

    # N > 1 (multiscale) path — single fused pallas_call
    out = jax.block_until_ready(fwd(x, params, num_heads))
    ref = jax.block_until_ready(ref_multiscale_block_forward(x, params, num_heads))
    assert out.shape == (B, N, H, W)
    # 5e-3 tolerance accounts for bf16 MXU operands (f32 accumulation),
    # approx EUP reciprocal in the softmax, and the erf polynomial GELU.
    np.testing.assert_allclose(np.asarray(out), np.asarray(ref),
                               rtol=5e-3, atol=5e-3)

    # N == 1 path (plain attn + mlp) — also exercised
    x1 = jax.random.normal(jax.random.PRNGKey(1), (B, 1, H, W), jnp.float32)
    out1 = jax.block_until_ready(fwd(x1, params, num_heads))
    ref1 = jax.block_until_ready(
        ref_multiscale_block_forward(x1, params, num_heads))
    np.testing.assert_allclose(np.asarray(out1), np.asarray(ref1),
                               rtol=5e-3, atol=5e-3)

    print("KERNEL_OK")
</pallas_src>

<mosaic_0001>
module attributes {stable_mosaic.version = 11 : i64} {
  func.func @fused_kernel(%arg0: i32, %arg1: memref<2x32x32xf32, #tpu.memory_space<vmem>>, %arg2: memref<64x64xf32, #tpu.memory_space<vmem>>, %arg3: memref<64x64xf32, #tpu.memory_space<vmem>>, %arg4: memref<1x32xf32, #tpu.memory_space<vmem>>, %arg5: memref<1x32xf32, #tpu.memory_space<vmem>>, %arg6: memref<4x32x8xbf16, #tpu.memory_space<vmem>>, %arg7: memref<4x32x8xbf16, #tpu.memory_space<vmem>>, %arg8: memref<4x32x8xbf16, #tpu.memory_space<vmem>>, %arg9: memref<4x8x32xbf16, #tpu.memory_space<vmem>>, %arg10: memref<1x32xf32, #tpu.memory_space<vmem>>, %arg11: memref<1x32xf32, #tpu.memory_space<vmem>>, %arg12: memref<1x32xf32, #tpu.memory_space<vmem>>, %arg13: memref<32x128xbf16, #tpu.memory_space<vmem>>, %arg14: memref<1x128xf32, #tpu.memory_space<vmem>>, %arg15: memref<128x32xbf16, #tpu.memory_space<vmem>>, %arg16: memref<1x32xf32, #tpu.memory_space<vmem>>, %arg17: memref<1x32xf32, #tpu.memory_space<vmem>>, %arg18: memref<1x32xf32, #tpu.memory_space<vmem>>, %arg19: memref<4x32x8xbf16, #tpu.memory_space<vmem>>, %arg20: memref<4x32x8xbf16, #tpu.memory_space<vmem>>, %arg21: memref<4x32x8xbf16, #tpu.memory_space<vmem>>, %arg22: memref<4x8x32xbf16, #tpu.memory_space<vmem>>, %arg23: memref<1x32xf32, #tpu.memory_space<vmem>>, %arg24: memref<1x32xf32, #tpu.memory_space<vmem>>, %arg25: memref<1x32xf32, #tpu.memory_space<vmem>>, %arg26: memref<32x128xbf16, #tpu.memory_space<vmem>>, %arg27: memref<1x128xf32, #tpu.memory_space<vmem>>, %arg28: memref<128x32xbf16, #tpu.memory_space<vmem>>, %arg29: memref<1x32xf32, #tpu.memory_space<vmem>>, %arg30: memref<2x32x32xf32, #tpu.memory_space<vmem>>) attributes {dimension_semantics = [#tpu.dimension_semantics<parallel>], iteration_bounds = array<i64: 1>, scalar_prefetch = 0 : i64, scratch_operands = 0 : i64, tpu.core_type = #tpu.core_type<tc>, window_params = [{transform_indices = @transform_0, window_bounds = array<i64: 2, 32, 32>}, {pipeline_mode = #tpu.pipeline_mode<synchronous>, transform_indices = @transform_1, window_bounds = array<i64: 64, 64>}, {pipeline_mode = #tpu.pipeline_mode<synchronous>, transform_indices = @transform_2, window_bounds = array<i64: 64, 64>}, {pipeline_mode = #tpu.pipeline_mode<synchronous>, transform_indices = @transform_3, window_bounds = array<i64: 1, 32>}, {pipeline_mode = #tpu.pipeline_mode<synchronous>, transform_indices = @transform_4, window_bounds = array<i64: 1, 32>}, {pipeline_mode = #tpu.pipeline_mode<synchronous>, transform_indices = @transform_5, window_bounds = array<i64: 4, 32, 8>}, {pipeline_mode = #tpu.pipeline_mode<synchronous>, transform_indices = @transform_6, window_bounds = array<i64: 4, 32, 8>}, {pipeline_mode = #tpu.pipeline_mode<synchronous>, transform_indices = @transform_7, window_bounds = array<i64: 4, 32, 8>}, {pipeline_mode = #tpu.pipeline_mode<synchronous>, transform_indices = @transform_8, window_bounds = array<i64: 4, 8, 32>}, {pipeline_mode = #tpu.pipeline_mode<synchronous>, transform_indices = @transform_9, window_bounds = array<i64: 1, 32>}, {pipeline_mode = #tpu.pipeline_mode<synchronous>, transform_indices = @transform_10, window_bounds = array<i64: 1, 32>}, {pipeline_mode = #tpu.pipeline_mode<synchronous>, transform_indices = @transform_11, window_bounds = array<i64: 1, 32>}, {pipeline_mode = #tpu.pipeline_mode<synchronous>, transform_indices = @transform_12, window_bounds = array<i64: 32, 128>}, {pipeline_mode = #tpu.pipeline_mode<synchronous>, transform_indices = @transform_13, window_bounds = array<i64: 1, 128>}, {pipeline_mode = #tpu.pipeline_mode<synchronous>, transform_indices = @transform_14, window_bounds = array<i64: 128, 32>}, {pipeline_mode = #tpu.pipeline_mode<synchronous>, transform_indices = @transform_15, window_bounds = array<i64: 1, 32>}, {pipeline_mode = #tpu.pipeline_mode<synchronous>, transform_indices = @transform_16, window_bounds = array<i64: 1, 32>}, {pipeline_mode = #tpu.pipeline_mode<synchronous>, transform_indices = @transform_17, window_bounds = array<i64: 1, 32>}, {pipeline_mode = #tpu.pipeline_mode<synchronous>, transform_indices = @transform_18, window_bounds = array<i64: 4, 32, 8>}, {pipeline_mode = #tpu.pipeline_mode<synchronous>, transform_indices = @transform_19, window_bounds = array<i64: 4, 32, 8>}, {pipeline_mode = #tpu.pipeline_mode<synchronous>, transform_indices = @transform_20, window_bounds = array<i64: 4, 32, 8>}, {pipeline_mode = #tpu.pipeline_mode<synchronous>, transform_indices = @transform_21, window_bounds = array<i64: 4, 8, 32>}, {pipeline_mode = #tpu.pipeline_mode<synchronous>, transform_indices = @transform_22, window_bounds = array<i64: 1, 32>}, {pipeline_mode = #tpu.pipeline_mode<synchronous>, transform_indices = @transform_23, window_bounds = array<i64: 1, 32>}, {pipeline_mode = #tpu.pipeline_mode<synchronous>, transform_indices = @transform_24, window_bounds = array<i64: 1, 32>}, {pipeline_mode = #tpu.pipeline_mode<synchronous>, transform_indices = @transform_25, window_bounds = array<i64: 32, 128>}, {pipeline_mode = #tpu.pipeline_mode<synchronous>, transform_indices = @transform_26, window_bounds = array<i64: 1, 128>}, {pipeline_mode = #tpu.pipeline_mode<synchronous>, transform_indices = @transform_27, window_bounds = array<i64: 128, 32>}, {pipeline_mode = #tpu.pipeline_mode<synchronous>, transform_indices = @transform_28, window_bounds = array<i64: 1, 32>}, {transform_indices = @transform_29, window_bounds = array<i64: 2, 32, 32>}]} {
    %c0 = arith.constant 0 : index
    %c0_0 = arith.constant 0 : index
    %c0_1 = arith.constant 0 : index
    %0 = vector.load %arg1[%c0, %c0_0, %c0_1] : memref<2x32x32xf32, #tpu.memory_space<vmem>>, vector<2x32x32xf32>
    %1 = vector.shape_cast %0 : vector<2x32x32xf32> to vector<64x32xf32>
    %c0_2 = arith.constant 0 : index
    %c0_3 = arith.constant 0 : index
    %2 = vector.load %arg4[%c0_2, %c0_3] : memref<1x32xf32, #tpu.memory_space<vmem>>, vector<1x32xf32>
    %c0_4 = arith.constant 0 : index
    %c0_5 = arith.constant 0 : index
    %3 = vector.load %arg5[%c0_4, %c0_5] : memref<1x32xf32, #tpu.memory_space<vmem>>, vector<1x32xf32>
    %c0_6 = arith.constant 0 : index
    %c0_7 = arith.constant 0 : index
    %4 = vector.load %arg10[%c0_6, %c0_7] : memref<1x32xf32, #tpu.memory_space<vmem>>, vector<1x32xf32>
    %cst = arith.constant dense<0.000000e+00> : vector<64xf32>
    %5 = vector.multi_reduction <add>, %1, %cst [1] : vector<64x32xf32> to vector<64xf32>
    %6 = vector.shape_cast %5 : vector<64xf32> to vector<64x1xf32>
    %cst_8 = arith.constant 3.200000e+01 : f32
    %7 = vector.broadcast %cst_8 : f32 to vector<64x1xf32>
    %8 = arith.divf %6, %7 : vector<64x1xf32>
    %9 = vector.broadcast %8 : vector<64x1xf32> to vector<64x32xf32>
    %10 = arith.subf %1, %9 : vector<64x32xf32>
    %11 = arith.mulf %10, %10 : vector<64x32xf32>
    %cst_9 = arith.constant dense<0.000000e+00> : vector<64xf32>
    %12 = vector.multi_reduction <add>, %11, %cst_9 [1] : vector<64x32xf32> to vector<64xf32>
    %13 = vector.shape_cast %12 : vector<64xf32> to vector<64x1xf32>
    %cst_10 = arith.constant 3.200000e+01 : f32
    %14 = vector.broadcast %cst_10 : f32 to vector<64x1xf32>
    %15 = arith.divf %13, %14 : vector<64x1xf32>
    %16 = vector.broadcast %8 : vector<64x1xf32> to vector<64x32xf32>
    %17 = arith.subf %1, %16 : vector<64x32xf32>
    %cst_11 = arith.constant 9.99999974E-6 : f32
    %18 = vector.broadcast %cst_11 : f32 to vector<64x1xf32>
    %19 = arith.addf %15, %18 : vector<64x1xf32>
    %20 = math.rsqrt %19 : vector<64x1xf32>
    %21 = vector.broadcast %20 : vector<64x1xf32> to vector<64x32xf32>
    %22 = arith.mulf %17, %21 : vector<64x32xf32>
    %23 = vector.broadcast %2 : vector<1x32xf32> to vector<64x32xf32>
    %24 = arith.mulf %22, %23 : vector<64x32xf32>
    %25 = vector.broadcast %3 : vector<1x32xf32> to vector<64x32xf32>
    %26 = arith.addf %24, %25 : vector<64x32xf32>
    %27 = arith.truncf %26 : vector<64x32xf32> to vector<64x32xbf16>
    %cst_12 = arith.constant 0.000000e+00 : f32
    %28 = vector.broadcast %cst_12 : f32 to vector<64x32xf32>
    %c0_13 = arith.constant 0 : index
    %c0_14 = arith.constant 0 : index
    %c0_15 = arith.constant 0 : index
    %29 = vector.load %arg6[%c0_13, %c0_14, %c0_15] : memref<4x32x8xbf16, #tpu.memory_space<vmem>>, vector<1x32x8xbf16>
    %30 = vector.shape_cast %29 : vector<1x32x8xbf16> to vector<32x8xbf16>
    %cst_16 = arith.constant dense<0.000000e+00> : vector<64x8xf32>
    %31 = tpu.matmul %27, %30, %cst_16 {dimension_numbers = #tpu.dot_dimension_numbers<[1], [0], [0], [1], [0, 0, 1, 1], [], []>} : vector<64x32xbf16>, vector<32x8xbf16>, vector<64x8xf32> -> vector<64x8xf32>
    %c0_17 = arith.constant 0 : index
    %c0_18 = arith.constant 0 : index
    %c0_19 = arith.constant 0 : index
    %32 = vector.load %arg7[%c0_17, %c0_18, %c0_19] : memref<4x32x8xbf16, #tpu.memory_space<vmem>>, vector<1x32x8xbf16>
    %33 = vector.shape_cast %32 : vector<1x32x8xbf16> to vector<32x8xbf16>
    %cst_20 = arith.constant dense<0.000000e+00> : vector<64x8xf32>
    %34 = tpu.matmul %27, %33, %cst_20 {dimension_numbers = #tpu.dot_dimension_numbers<[1], [0], [0], [1], [0, 0, 1, 1], [], []>} : vector<64x32xbf16>, vector<32x8xbf16>, vector<64x8xf32> -> vector<64x8xf32>
    %c0_21 = arith.constant 0 : index
    %c0_22 = arith.constant 0 : index
    %c0_23 = arith.constant 0 : index
    %35 = vector.load %arg8[%c0_21, %c0_22, %c0_23] : memref<4x32x8xbf16, #tpu.memory_space<vmem>>, vector<1x32x8xbf16>
    %36 = vector.shape_cast %35 : vector<1x32x8xbf16> to vector<32x8xbf16>
    %cst_24 = arith.constant dense<0.000000e+00> : vector<64x8xf32>
    %37 = tpu.matmul %27, %36, %cst_24 {dimension_numbers = #tpu.dot_dimension_numbers<[1], [0], [0], [1], [0, 0, 1, 1], [], []>} : vector<64x32xbf16>, vector<32x8xbf16>, vector<64x8xf32> -> vector<64x8xf32>
    %38 = vector.shape_cast %31 : vector<64x8xf32> to vector<8x8x8xf32>
    %39 = arith.truncf %38 : vector<8x8x8xf32> to vector<8x8x8xbf16>
    %40 = vector.shape_cast %34 : vector<64x8xf32> to vector<8x8x8xf32>
    %41 = arith.truncf %40 : vector<8x8x8xf32> to vector<8x8x8xbf16>
    %42 = vector.shape_cast %37 : vector<64x8xf32> to vector<8x8x8xf32>
    %43 = arith.truncf %42 : vector<8x8x8xf32> to vector<8x8x8xbf16>
    "tpu.trace_start"() <{level = 10 : i32, message = "bqd,bkd->bqk"}> : () -> ()
    %cst_25 = arith.constant dense<0.000000e+00> : vector<8x8x8xf32>
    %44 = tpu.matmul %39, %41, %cst_25 {dimension_numbers = #tpu.dot_dimension_numbers<[2], [2], [1], [1], [0, 0, 0, 1, 1, 1], [0], [0]>} : vector<8x8x8xbf16>, vector<8x8x8xbf16>, vector<8x8x8xf32> -> vector<8x8x8xf32>
    "tpu.trace_stop"() : () -> ()
    %cst_26 = arith.constant 0.353553385 : f32
    %45 = vector.broadcast %cst_26 : f32 to vector<8x8x8xf32>
    %46 = arith.mulf %44, %45 : vector<8x8x8xf32>
    %cst_27 = arith.constant dense<0xFF800000> : vector<8x8xf32>
    %47 = vector.multi_reduction <maximumf>, %46, %cst_27 [2] : vector<8x8x8xf32> to vector<8x8xf32>
    %48 = vector.shape_cast %47 : vector<8x8xf32> to vector<8x8x1xf32>
    %49 = vector.broadcast %48 : vector<8x8x1xf32> to vector<8x8x8xf32>
    %50 = arith.subf %46, %49 : vector<8x8x8xf32>
    %51 = math.exp %50 : vector<8x8x8xf32>
    %cst_28 = arith.constant dense<0.000000e+00> : vector<8x8xf32>
    %52 = vector.multi_reduction <add>, %51, %cst_28 [2] : vector<8x8x8xf32> to vector<8x8xf32>
    %53 = vector.shape_cast %52 : vector<8x8xf32> to vector<8x8x1xf32>
    %54 = tpu.reciprocal %53 {approx = true} : vector<8x8x1xf32> -> vector<8x8x1xf32>
    %55 = vector.broadcast %54 : vector<8x8x1xf32> to vector<8x8x8xf32>
    %56 = arith.mulf %51, %55 : vector<8x8x8xf32>
    %57 = arith.truncf %56 : vector<8x8x8xf32> to vector<8x8x8xbf16>
    "tpu.trace_start"() <{level = 10 : i32, message = "bqk,bkd->bqd"}> : () -> ()
    %cst_29 = arith.constant dense<0.000000e+00> : vector<8x8x8xf32>
    %58 = tpu.matmul %57, %43, %cst_29 {dimension_numbers = #tpu.dot_dimension_numbers<[2], [1], [1], [2], [0, 0, 0, 1, 1, 2], [0], [0]>} : vector<8x8x8xbf16>, vector<8x8x8xbf16>, vector<8x8x8xf32> -> vector<8x8x8xf32>
    "tpu.trace_stop"() : () -> ()
    %59 = vector.shape_cast %58 : vector<8x8x8xf32> to vector<64x8xf32>
    %60 = arith.truncf %59 : vector<64x8xf32> to vector<64x8xbf16>
    %c0_30 = arith.constant 0 : index
    %c0_31 = arith.constant 0 : index
    %c0_32 = arith.constant 0 : index
    %61 = vector.load %arg9[%c0_30, %c0_31, %c0_32] : memref<4x8x32xbf16, #tpu.memory_space<vmem>>, vector<1x8x32xbf16>
    %62 = vector.shape_cast %61 : vector<1x8x32xbf16> to vector<8x32xbf16>
    %cst_33 = arith.constant dense<0.000000e+00> : vector<64x32xf32>
    %63 = tpu.matmul %60, %62, %cst_33 {dimension_numbers = #tpu.dot_dimension_numbers<[1], [0], [0], [1], [0, 0, 1, 1], [], []>} : vector<64x8xbf16>, vector<8x32xbf16>, vector<64x32xf32> -> vector<64x32xf32>
    %64 = arith.addf %28, %63 : vector<64x32xf32>
    %c1 = arith.constant 1 : index
    %c0_34 = arith.constant 0 : index
    %c0_35 = arith.constant 0 : index
    %65 = vector.load %arg6[%c1, %c0_34, %c0_35] : memref<4x32x8xbf16, #tpu.memory_space<vmem>>, vector<1x32x8xbf16>
    %66 = vector.shape_cast %65 : vector<1x32x8xbf16> to vector<32x8xbf16>
    %cst_36 = arith.constant dense<0.000000e+00> : vector<64x8xf32>
    %67 = tpu.matmul %27, %66, %cst_36 {dimension_numbers = #tpu.dot_dimension_numbers<[1], [0], [0], [1], [0, 0, 1, 1], [], []>} : vector<64x32xbf16>, vector<32x8xbf16>, vector<64x8xf32> -> vector<64x8xf32>
    %c1_37 = arith.constant 1 : index
    %c0_38 = arith.constant 0 : index
    %c0_39 = arith.constant 0 : index
    %68 = vector.load %arg7[%c1_37, %c0_38, %c0_39] : memref<4x32x8xbf16, #tpu.memory_space<vmem>>, vector<1x32x8xbf16>
    %69 = vector.shape_cast %68 : vector<1x32x8xbf16> to vector<32x8xbf16>
    %cst_40 = arith.constant dense<0.000000e+00> : vector<64x8xf32>
    %70 = tpu.matmul %27, %69, %cst_40 {dimension_numbers = #tpu.dot_dimension_numbers<[1], [0], [0], [1], [0, 0, 1, 1], [], []>} : vector<64x32xbf16>, vector<32x8xbf16>, vector<64x8xf32> -> vector<64x8xf32>
    %c1_41 = arith.constant 1 : index
    %c0_42 = arith.constant 0 : index
    %c0_43 = arith.constant 0 : index
    %71 = vector.load %arg8[%c1_41, %c0_42, %c0_43] : memref<4x32x8xbf16, #tpu.memory_space<vmem>>, vector<1x32x8xbf16>
    %72 = vector.shape_cast %71 : vector<1x32x8xbf16> to vector<32x8xbf16>
    %cst_44 = arith.constant dense<0.000000e+00> : vector<64x8xf32>
    %73 = tpu.matmul %27, %72, %cst_44 {dimension_numbers = #tpu.dot_dimension_numbers<[1], [0], [0], [1], [0, 0, 1, 1], [], []>} : vector<64x32xbf16>, vector<32x8xbf16>, vector<64x8xf32> -> vector<64x8xf32>
    %74 = vector.shape_cast %67 : vector<64x8xf32> to vector<8x8x8xf32>
    %75 = arith.truncf %74 : vector<8x8x8xf32> to vector<8x8x8xbf16>
    %76 = vector.shape_cast %70 : vector<64x8xf32> to vector<8x8x8xf32>
    %77 = arith.truncf %76 : vector<8x8x8xf32> to vector<8x8x8xbf16>
    %78 = vector.shape_cast %73 : vector<64x8xf32> to vector<8x8x8xf32>
    %79 = arith.truncf %78 : vector<8x8x8xf32> to vector<8x8x8xbf16>
    "tpu.trace_start"() <{level = 10 : i32, message = "bqd,bkd->bqk"}> : () -> ()
    %cst_45 = arith.constant dense<0.000000e+00> : vector<8x8x8xf32>
    %80 = tpu.matmul %75, %77, %cst_45 {dimension_numbers = #tpu.dot_dimension_numbers<[2], [2], [1], [1], [0, 0, 0, 1, 1, 1], [0], [0]>} : vector<8x8x8xbf16>, vector<8x8x8xbf16>, vector<8x8x8xf32> -> vector<8x8x8xf32>
    "tpu.trace_stop"() : () -> ()
    %cst_46 = arith.constant 0.353553385 : f32
    %81 = vector.broadcast %cst_46 : f32 to vector<8x8x8xf32>
    %82 = arith.mulf %80, %81 : vector<8x8x8xf32>
    %cst_47 = arith.constant dense<0xFF800000> : vector<8x8xf32>
    %83 = vector.multi_reduction <maximumf>, %82, %cst_47 [2] : vector<8x8x8xf32> to vector<8x8xf32>
    %84 = vector.shape_cast %83 : vector<8x8xf32> to vector<8x8x1xf32>
    %85 = vector.broadcast %84 : vector<8x8x1xf32> to vector<8x8x8xf32>
    %86 = arith.subf %82, %85 : vector<8x8x8xf32>
    %87 = math.exp %86 : vector<8x8x8xf32>
    %cst_48 = arith.constant dense<0.000000e+00> : vector<8x8xf32>
    %88 = vector.multi_reduction <add>, %87, %cst_48 [2] : vector<8x8x8xf32> to vector<8x8xf32>
    %89 = vector.shape_cast %88 : vector<8x8xf32> to vector<8x8x1xf32>
    %90 = tpu.reciprocal %89 {approx = true} : vector<8x8x1xf32> -> vector<8x8x1xf32>
    %91 = vector.broadcast %90 : vector<8x8x1xf32> to vector<8x8x8xf32>
    %92 = arith.mulf %87, %91 : vector<8x8x8xf32>
    %93 = arith.truncf %92 : vector<8x8x8xf32> to vector<8x8x8xbf16>
    "tpu.trace_start"() <{level = 10 : i32, message = "bqk,bkd->bqd"}> : () -> ()
    %cst_49 = arith.constant dense<0.000000e+00> : vector<8x8x8xf32>
    %94 = tpu.matmul %93, %79, %cst_49 {dimension_numbers = #tpu.dot_dimension_numbers<[2], [1], [1], [2], [0, 0, 0, 1, 1, 2], [0], [0]>} : vector<8x8x8xbf16>, vector<8x8x8xbf16>, vector<8x8x8xf32> -> vector<8x8x8xf32>
    "tpu.trace_stop"() : () -> ()
    %95 = vector.shape_cast %94 : vector<8x8x8xf32> to vector<64x8xf32>
    %96 = arith.truncf %95 : vector<64x8xf32> to vector<64x8xbf16>
    %c1_50 = arith.constant 1 : index
    %c0_51 = arith.constant 0 : index
    %c0_52 = arith.constant 0 : index
    %97 = vector.load %arg9[%c1_50, %c0_51, %c0_52] : memref<4x8x32xbf16, #tpu.memory_space<vmem>>, vector<1x8x32xbf16>
    %98 = vector.shape_cast %97 : vector<1x8x32xbf16> to vector<8x32xbf16>
    %cst_53 = arith.constant dense<0.000000e+00> : vector<64x32xf32>
    %99 = tpu.matmul %96, %98, %cst_53 {dimension_numbers = #tpu.dot_dimension_numbers<[1], [0], [0], [1], [0, 0, 1, 1], [], []>} : vector<64x8xbf16>, vector<8x32xbf16>, vector<64x32xf32> -> vector<64x32xf32>
    %100 = arith.addf %64, %99 : vector<64x32xf32>
    %c2 = arith.constant 2 : index
    %c0_54 = arith.constant 0 : index
    %c0_55 = arith.constant 0 : index
    %101 = vector.load %arg6[%c2, %c0_54, %c0_55] : memref<4x32x8xbf16, #tpu.memory_space<vmem>>, vector<1x32x8xbf16>
    %102 = vector.shape_cast %101 : vector<1x32x8xbf16> to vector<32x8xbf16>
    %cst_56 = arith.constant dense<0.000000e+00> : vector<64x8xf32>
    %103 = tpu.matmul %27, %102, %cst_56 {dimension_numbers = #tpu.dot_dimension_numbers<[1], [0], [0], [1], [0, 0, 1, 1], [], []>} : vector<64x32xbf16>, vector<32x8xbf16>, vector<64x8xf32> -> vector<64x8xf32>
    %c2_57 = arith.constant 2 : index
    %c0_58 = arith.constant 0 : index
    %c0_59 = arith.constant 0 : index
    %104 = vector.load %arg7[%c2_57, %c0_58, %c0_59] : memref<4x32x8xbf16, #tpu.memory_space<vmem>>, vector<1x32x8xbf16>
    %105 = vector.shape_cast %104 : vector<1x32x8xbf16> to vector<32x8xbf16>
    %cst_60 = arith.constant dense<0.000000e+00> : vector<64x8xf32>
    %106 = tpu.matmul %27, %105, %cst_60 {dimension_numbers = #tpu.dot_dimension_numbers<[1], [0], [0], [1], [0, 0, 1, 1], [], []>} : vector<64x32xbf16>, vector<32x8xbf16>, vector<64x8xf32> -> vector<64x8xf32>
    %c2_61 = arith.constant 2 : index
    %c0_62 = arith.constant 0 : index
    %c0_63 = arith.constant 0 : index
    %107 = vector.load %arg8[%c2_61, %c0_62, %c0_63] : memref<4x32x8xbf16, #tpu.memory_space<vmem>>, vector<1x32x8xbf16>
    %108 = vector.shape_cast %107 : vector<1x32x8xbf16> to vector<32x8xbf16>
    %cst_64 = arith.constant dense<0.000000e+00> : vector<64x8xf32>
    %109 = tpu.matmul %27, %108, %cst_64 {dimension_numbers = #tpu.dot_dimension_numbers<[1], [0], [0], [1], [0, 0, 1, 1], [], []>} : vector<64x32xbf16>, vector<32x8xbf16>, vector<64x8xf32> -> vector<64x8xf32>
    %110 = vector.shape_cast %103 : vector<64x8xf32> to vector<8x8x8xf32>
    %111 = arith.truncf %110 : vector<8x8x8xf32> to vector<8x8x8xbf16>
    %112 = vector.shape_cast %106 : vector<64x8xf32> to vector<8x8x8xf32>
    %113 = arith.truncf %112 : vector<8x8x8xf32> to vector<8x8x8xbf16>
    %114 = vector.shape_cast %109 : vector<64x8xf32> to vector<8x8x8xf32>
    %115 = arith.truncf %114 : vector<8x8x8xf32> to vector<8x8x8xbf16>
    "tpu.trace_start"() <{level = 10 : i32, message = "bqd,bkd->bqk"}> : () -> ()
    %cst_65 = arith.constant dense<0.000000e+00> : vector<8x8x8xf32>
    %116 = tpu.matmul %111, %113, %cst_65 {dimension_numbers = #tpu.dot_dimension_numbers<[2], [2], [1], [1], [0, 0, 0, 1, 1, 1], [0], [0]>} : vector<8x8x8xbf16>, vector<8x8x8xbf16>, vector<8x8x8xf32> -> vector<8x8x8xf32>
    "tpu.trace_stop"() : () -> ()
    %cst_66 = arith.constant 0.353553385 : f32
    %117 = vector.broadcast %cst_66 : f32 to vector<8x8x8xf32>
    %118 = arith.mulf %116, %117 : vector<8x8x8xf32>
    %cst_67 = arith.constant dense<0xFF800000> : vector<8x8xf32>
    %119 = vector.multi_reduction <maximumf>, %118, %cst_67 [2] : vector<8x8x8xf32> to vector<8x8xf32>
    %120 = vector.shape_cast %119 : vector<8x8xf32> to vector<8x8x1xf32>
    %121 = vector.broadcast %120 : vector<8x8x1xf32> to vector<8x8x8xf32>
    %122 = arith.subf %118, %121 : vector<8x8x8xf32>
    %123 = math.exp %122 : vector<8x8x8xf32>
    %cst_68 = arith.constant dense<0.000000e+00> : vector<8x8xf32>
    %124 = vector.multi_reduction <add>, %123, %cst_68 [2] : vector<8x8x8xf32> to vector<8x8xf32>
    %125 = vector.shape_cast %124 : vector<8x8xf32> to vector<8x8x1xf32>
    %126 = tpu.reciprocal %125 {approx = true} : vector<8x8x1xf32> -> vector<8x8x1xf32>
    %127 = vector.broadcast %126 : vector<8x8x1xf32> to vector<8x8x8xf32>
    %128 = arith.mulf %123, %127 : vector<8x8x8xf32>
    %129 = arith.truncf %128 : vector<8x8x8xf32> to vector<8x8x8xbf16>
    "tpu.trace_start"() <{level = 10 : i32, message = "bqk,bkd->bqd"}> : () -> ()
    %cst_69 = arith.constant dense<0.000000e+00> : vector<8x8x8xf32>
    %130 = tpu.matmul %129, %115, %cst_69 {dimension_numbers = #tpu.dot_dimension_numbers<[2], [1], [1], [2], [0, 0, 0, 1, 1, 2], [0], [0]>} : vector<8x8x8xbf16>, vector<8x8x8xbf16>, vector<8x8x8xf32> -> vector<8x8x8xf32>
    "tpu.trace_stop"() : () -> ()
    %131 = vector.shape_cast %130 : vector<8x8x8xf32> to vector<64x8xf32>
    %132 = arith.truncf %131 : vector<64x8xf32> to vector<64x8xbf16>
    %c2_70 = arith.constant 2 : index
    %c0_71 = arith.constant 0 : index
    %c0_72 = arith.constant 0 : index
    %133 = vector.load %arg9[%c2_70, %c0_71, %c0_72] : memref<4x8x32xbf16, #tpu.memory_space<vmem>>, vector<1x8x32xbf16>
    %134 = vector.shape_cast %133 : vector<1x8x32xbf16> to vector<8x32xbf16>
    %cst_73 = arith.constant dense<0.000000e+00> : vector<64x32xf32>
    %135 = tpu.matmul %132, %134, %cst_73 {dimension_numbers = #tpu.dot_dimension_numbers<[1], [0], [0], [1], [0, 0, 1, 1], [], []>} : vector<64x8xbf16>, vector<8x32xbf16>, vector<64x32xf32> -> vector<64x32xf32>
    %136 = arith.addf %100, %135 : vector<64x32xf32>
    %c3 = arith.constant 3 : index
    %c0_74 = arith.constant 0 : index
    %c0_75 = arith.constant 0 : index
    %137 = vector.load %arg6[%c3, %c0_74, %c0_75] : memref<4x32x8xbf16, #tpu.memory_space<vmem>>, vector<1x32x8xbf16>
    %138 = vector.shape_cast %137 : vector<1x32x8xbf16> to vector<32x8xbf16>
    %cst_76 = arith.constant dense<0.000000e+00> : vector<64x8xf32>
    %139 = tpu.matmul %27, %138, %cst_76 {dimension_numbers = #tpu.dot_dimension_numbers<[1], [0], [0], [1], [0, 0, 1, 1], [], []>} : vector<64x32xbf16>, vector<32x8xbf16>, vector<64x8xf32> -> vector<64x8xf32>
    %c3_77 = arith.constant 3 : index
    %c0_78 = arith.constant 0 : index
    %c0_79 = arith.constant 0 : index
    %140 = vector.load %arg7[%c3_77, %c0_78, %c0_79] : memref<4x32x8xbf16, #tpu.memory_space<vmem>>, vector<1x32x8xbf16>
    %141 = vector.shape_cast %140 : vector<1x32x8xbf16> to vector<32x8xbf16>
    %cst_80 = arith.constant dense<0.000000e+00> : vector<64x8xf32>
    %142 = tpu.matmul %27, %141, %cst_80 {dimension_numbers = #tpu.dot_dimension_numbers<[1], [0], [0], [1], [0, 0, 1, 1], [], []>} : vector<64x32xbf16>, vector<32x8xbf16>, vector<64x8xf32> -> vector<64x8xf32>
    %c3_81 = arith.constant 3 : index
    %c0_82 = arith.constant 0 : index
    %c0_83 = arith.constant 0 : index
    %143 = vector.load %arg8[%c3_81, %c0_82, %c0_83] : memref<4x32x8xbf16, #tpu.memory_space<vmem>>, vector<1x32x8xbf16>
    %144 = vector.shape_cast %143 : vector<1x32x8xbf16> to vector<32x8xbf16>
    %cst_84 = arith.constant dense<0.000000e+00> : vector<64x8xf32>
    %145 = tpu.matmul %27, %144, %cst_84 {dimension_numbers = #tpu.dot_dimension_numbers<[1], [0], [0], [1], [0, 0, 1, 1], [], []>} : vector<64x32xbf16>, vector<32x8xbf16>, vector<64x8xf32> -> vector<64x8xf32>
    %146 = vector.shape_cast %139 : vector<64x8xf32> to vector<8x8x8xf32>
    %147 = arith.truncf %146 : vector<8x8x8xf32> to vector<8x8x8xbf16>
    %148 = vector.shape_cast %142 : vector<64x8xf32> to vector<8x8x8xf32>
    %149 = arith.truncf %148 : vector<8x8x8xf32> to vector<8x8x8xbf16>
    %150 = vector.shape_cast %145 : vector<64x8xf32> to vector<8x8x8xf32>
    %151 = arith.truncf %150 : vector<8x8x8xf32> to vector<8x8x8xbf16>
    "tpu.trace_start"() <{level = 10 : i32, message = "bqd,bkd->bqk"}> : () -> ()
    %cst_85 = arith.constant dense<0.000000e+00> : vector<8x8x8xf32>
    %152 = tpu.matmul %147, %149, %cst_85 {dimension_numbers = #tpu.dot_dimension_numbers<[2], [2], [1], [1], [0, 0, 0, 1, 1, 1], [0], [0]>} : vector<8x8x8xbf16>, vector<8x8x8xbf16>, vector<8x8x8xf32> -> vector<8x8x8xf32>
    "tpu.trace_stop"() : () -> ()
    %cst_86 = arith.constant 0.353553385 : f32
    %153 = vector.broadcast %cst_86 : f32 to vector<8x8x8xf32>
    %154 = arith.mulf %152, %153 : vector<8x8x8xf32>
    %cst_87 = arith.constant dense<0xFF800000> : vector<8x8xf32>
    %155 = vector.multi_reduction <maximumf>, %154, %cst_87 [2] : vector<8x8x8xf32> to vector<8x8xf32>
    %156 = vector.shape_cast %155 : vector<8x8xf32> to vector<8x8x1xf32>
    %157 = vector.broadcast %156 : vector<8x8x1xf32> to vector<8x8x8xf32>
    %158 = arith.subf %154, %157 : vector<8x8x8xf32>
    %159 = math.exp %158 : vector<8x8x8xf32>
    %cst_88 = arith.constant dense<0.000000e+00> : vector<8x8xf32>
    %160 = vector.multi_reduction <add>, %159, %cst_88 [2] : vector<8x8x8xf32> to vector<8x8xf32>
    %161 = vector.shape_cast %160 : vector<8x8xf32> to vector<8x8x1xf32>
    %162 = tpu.reciprocal %161 {approx = true} : vector<8x8x1xf32> -> vector<8x8x1xf32>
    %163 = vector.broadcast %162 : vector<8x8x1xf32> to vector<8x8x8xf32>
    %164 = arith.mulf %159, %163 : vector<8x8x8xf32>
    %165 = arith.truncf %164 : vector<8x8x8xf32> to vector<8x8x8xbf16>
    "tpu.trace_start"() <{level = 10 : i32, message = "bqk,bkd->bqd"}> : () -> ()
    %cst_89 = arith.constant dense<0.000000e+00> : vector<8x8x8xf32>
    %166 = tpu.matmul %165, %151, %cst_89 {dimension_numbers = #tpu.dot_dimension_numbers<[2], [1], [1], [2], [0, 0, 0, 1, 1, 2], [0], [0]>} : vector<8x8x8xbf16>, vector<8x8x8xbf16>, vector<8x8x8xf32> -> vector<8x8x8xf32>
    "tpu.trace_stop"() : () -> ()
    %167 = vector.shape_cast %166 : vector<8x8x8xf32> to vector<64x8xf32>
    %168 = arith.truncf %167 : vector<64x8xf32> to vector<64x8xbf16>
    %c3_90 = arith.constant 3 : index
    %c0_91 = arith.constant 0 : index
    %c0_92 = arith.constant 0 : index
    %169 = vector.load %arg9[%c3_90, %c0_91, %c0_92] : memref<4x8x32xbf16, #tpu.memory_space<vmem>>, vector<1x8x32xbf16>
    %170 = vector.shape_cast %169 : vector<1x8x32xbf16> to vector<8x32xbf16>
    %cst_93 = arith.constant dense<0.000000e+00> : vector<64x32xf32>
    %171 = tpu.matmul %168, %170, %cst_93 {dimension_numbers = #tpu.dot_dimension_numbers<[1], [0], [0], [1], [0, 0, 1, 1], [], []>} : vector<64x8xbf16>, vector<8x32xbf16>, vector<64x32xf32> -> vector<64x32xf32>
    %172 = arith.addf %136, %171 : vector<64x32xf32>
    %173 = arith.addf %1, %172 : vector<64x32xf32>
    %174 = vector.broadcast %4 : vector<1x32xf32> to vector<64x32xf32>
    %175 = arith.addf %173, %174 : vector<64x32xf32>
    %c0_94 = arith.constant 0 : index
    %c0_95 = arith.constant 0 : index
    %176 = vector.load %arg11[%c0_94, %c0_95] : memref<1x32xf32, #tpu.memory_space<vmem>>, vector<1x32xf32>
    %c0_96 = arith.constant 0 : index
    %c0_97 = arith.constant 0 : index
    %177 = vector.load %arg12[%c0_96, %c0_97] : memref<1x32xf32, #tpu.memory_space<vmem>>, vector<1x32xf32>
    %c0_98 = arith.constant 0 : index
    %c0_99 = arith.constant 0 : index
    %178 = vector.load %arg13[%c0_98, %c0_99] : memref<32x128xbf16, #tpu.memory_space<vmem>>, vector<32x128xbf16>
    %c0_100 = arith.constant 0 : index
    %c0_101 = arith.constant 0 : index
    %179 = vector.load %arg14[%c0_100, %c0_101] : memref<1x128xf32, #tpu.memory_space<vmem>>, vector<1x128xf32>
    %c0_102 = arith.constant 0 : index
    %c0_103 = arith.constant 0 : index
    %180 = vector.load %arg15[%c0_102, %c0_103] : memref<128x32xbf16, #tpu.memory_space<vmem>>, vector<128x32xbf16>
    %c0_104 = arith.constant 0 : index
    %c0_105 = arith.constant 0 : index
    %181 = vector.load %arg16[%c0_104, %c0_105] : memref<1x32xf32, #tpu.memory_space<vmem>>, vector<1x32xf32>
    %cst_106 = arith.constant dense<0.000000e+00> : vector<64xf32>
    %182 = vector.multi_reduction <add>, %175, %cst_106 [1] : vector<64x32xf32> to vector<64xf32>
    %183 = vector.shape_cast %182 : vector<64xf32> to vector<64x1xf32>
    %cst_107 = arith.constant 3.200000e+01 : f32
    %184 = vector.broadcast %cst_107 : f32 to vector<64x1xf32>
    %185 = arith.divf %183, %184 : vector<64x1xf32>
    %186 = vector.broadcast %185 : vector<64x1xf32> to vector<64x32xf32>
    %187 = arith.subf %175, %186 : vector<64x32xf32>
    %188 = arith.mulf %187, %187 : vector<64x32xf32>
    %cst_108 = arith.constant dense<0.000000e+00> : vector<64xf32>
    %189 = vector.multi_reduction <add>, %188, %cst_108 [1] : vector<64x32xf32> to vector<64xf32>
    %190 = vector.shape_cast %189 : vector<64xf32> to vector<64x1xf32>
    %cst_109 = arith.constant 3.200000e+01 : f32
    %191 = vector.broadcast %cst_109 : f32 to vector<64x1xf32>
    %192 = arith.divf %190, %191 : vector<64x1xf32>
    %193 = vector.broadcast %185 : vector<64x1xf32> to vector<64x32xf32>
    %194 = arith.subf %175, %193 : vector<64x32xf32>
    %cst_110 = arith.constant 9.99999974E-6 : f32
    %195 = vector.broadcast %cst_110 : f32 to vector<64x1xf32>
    %196 = arith.addf %192, %195 : vector<64x1xf32>
    %197 = math.rsqrt %196 : vector<64x1xf32>
    %198 = vector.broadcast %197 : vector<64x1xf32> to vector<64x32xf32>
    %199 = arith.mulf %194, %198 : vector<64x32xf32>
    %200 = vector.broadcast %176 : vector<1x32xf32> to vector<64x32xf32>
    %201 = arith.mulf %199, %200 : vector<64x32xf32>
    %202 = vector.broadcast %177 : vector<1x32xf32> to vector<64x32xf32>
    %203 = arith.addf %201, %202 : vector<64x32xf32>
    %204 = arith.truncf %203 : vector<64x32xf32> to vector<64x32xbf16>
    %cst_111 = arith.constant dense<0.000000e+00> : vector<64x128xf32>
    %205 = tpu.matmul %204, %178, %cst_111 {dimension_numbers = #tpu.dot_dimension_numbers<[1], [0], [0], [1], [0, 0, 1, 1], [], []>} : vector<64x32xbf16>, vector<32x128xbf16>, vector<64x128xf32> -> vector<64x128xf32>
    %206 = vector.broadcast %179 : vector<1x128xf32> to vector<64x128xf32>
    %207 = arith.addf %205, %206 : vector<64x128xf32>
    %cst_112 = arith.constant 5.000000e-01 : f32
    %208 = vector.broadcast %cst_112 : f32 to vector<64x128xf32>
    %209 = arith.mulf %208, %207 : vector<64x128xf32>
    %cst_113 = arith.constant 0.707106769 : f32
    %210 = vector.broadcast %cst_113 : f32 to vector<64x128xf32>
    %211 = arith.mulf %207, %210 : vector<64x128xf32>
    %cst_114 = arith.constant 0.000000e+00 : f32
    %212 = vector.broadcast %cst_114 : f32 to vector<64x128xf32>
    %213 = arith.cmpf oge, %211, %212 : vector<64x128xf32>
    %cst_115 = arith.constant 0.000000e+00 : f32
    %214 = vector.broadcast %cst_115 : f32 to vector<64x128xf32>
    %215 = arith.subf %214, %211 : vector<64x128xf32>
    %216 = arith.select %213, %211, %215 : vector<64x128xi1>, vector<64x128xf32>
    %cst_116 = arith.constant 0.327591091 : f32
    %217 = vector.broadcast %cst_116 : f32 to vector<64x128xf32>
    %218 = arith.mulf %217, %216 : vector<64x128xf32>
    %cst_117 = arith.constant 1.000000e+00 : f32
    %219 = vector.broadcast %cst_117 : f32 to vector<64x128xf32>
    %220 = arith.addf %219, %218 : vector<64x128xf32>
    %cst_118 = arith.constant 1.000000e+00 : f32
    %221 = vector.broadcast %cst_118 : f32 to vector<64x128xf32>
    %222 = arith.divf %221, %220 : vector<64x128xf32>
    %cst_119 = arith.constant 1.06140542 : f32
    %223 = vector.broadcast %cst_119 : f32 to vector<64x128xf32>
    %224 = arith.mulf %222, %223 : vector<64x128xf32>
    %cst_120 = arith.constant -1.45315206 : f32
    %225 = vector.broadcast %cst_120 : f32 to vector<64x128xf32>
    %226 = arith.addf %225, %224 : vector<64x128xf32>
    %227 = arith.mulf %222, %226 : vector<64x128xf32>
    %cst_121 = arith.constant 1.42141378 : f32
    %228 = vector.broadcast %cst_121 : f32 to vector<64x128xf32>
    %229 = arith.addf %228, %227 : vector<64x128xf32>
    %230 = arith.mulf %222, %229 : vector<64x128xf32>
    %cst_122 = arith.constant -0.284496725 : f32
    %231 = vector.broadcast %cst_122 : f32 to vector<64x128xf32>
    %232 = arith.addf %231, %230 : vector<64x128xf32>
    %233 = arith.mulf %222, %232 : vector<64x128xf32>
    %cst_123 = arith.constant 0.254829586 : f32
    %234 = vector.broadcast %cst_123 : f32 to vector<64x128xf32>
    %235 = arith.addf %234, %233 : vector<64x128xf32>
    %236 = arith.mulf %222, %235 : vector<64x128xf32>
    %cst_124 = arith.constant 0.000000e+00 : f32
    %237 = vector.broadcast %cst_124 : f32 to vector<64x128xf32>
    %238 = arith.subf %237, %216 : vector<64x128xf32>
    %239 = arith.mulf %238, %216 : vector<64x128xf32>
    %240 = math.exp %239 : vector<64x128xf32>
    %241 = arith.mulf %236, %240 : vector<64x128xf32>
    %cst_125 = arith.constant 1.000000e+00 : f32
    %242 = vector.broadcast %cst_125 : f32 to vector<64x128xf32>
    %243 = arith.subf %242, %241 : vector<64x128xf32>
    %cst_126 = arith.constant 0.000000e+00 : f32
    %244 = vector.broadcast %cst_126 : f32 to vector<64x128xf32>
    %245 = arith.cmpf oge, %211, %244 : vector<64x128xf32>
    %cst_127 = arith.constant 0.000000e+00 : f32
    %246 = vector.broadcast %cst_127 : f32 to vector<64x128xf32>
    %247 = arith.subf %246, %243 : vector<64x128xf32>
    %248 = arith.select %245, %243, %247 : vector<64x128xi1>, vector<64x128xf32>
    %cst_128 = arith.constant 1.000000e+00 : f32
    %249 = vector.broadcast %cst_128 : f32 to vector<64x128xf32>
    %250 = arith.addf %249, %248 : vector<64x128xf32>
    %251 = arith.mulf %209, %250 : vector<64x128xf32>
    %252 = arith.truncf %251 : vector<64x128xf32> to vector<64x128xbf16>
    %cst_129 = arith.constant dense<0.000000e+00> : vector<64x32xf32>
    %253 = tpu.matmul %252, %180, %cst_129 {dimension_numbers = #tpu.dot_dimension_numbers<[1], [0], [0], [1], [0, 0, 1, 1], [], []>} : vector<64x128xbf16>, vector<128x32xbf16>, vector<64x32xf32> -> vector<64x32xf32>
    %254 = vector.broadcast %181 : vector<1x32xf32> to vector<64x32xf32>
    %255 = arith.addf %253, %254 : vector<64x32xf32>
    %256 = arith.addf %175, %255 : vector<64x32xf32>
    %c0_130 = arith.constant 0 : index
    %c0_131 = arith.constant 0 : index
    %257 = vector.load %arg2[%c0_130, %c0_131] : memref<64x64xf32, #tpu.memory_space<vmem>>, vector<64x64xf32>
    %cst_132 = arith.constant dense<0.000000e+00> : vector<64x32xf32>
    %258 = tpu.matmul %257, %256, %cst_132 {dimension_numbers = #tpu.dot_dimension_numbers<[1], [0], [0], [1], [0, 0, 1, 1], [], []>} : vector<64x64xf32>, vector<64x32xf32>, vector<64x32xf32> -> vector<64x32xf32>
    %c0_133 = arith.constant 0 : index
    %c0_134 = arith.constant 0 : index
    %259 = vector.load %arg17[%c0_133, %c0_134] : memref<1x32xf32, #tpu.memory_space<vmem>>, vector<1x32xf32>
    %c0_135 = arith.constant 0 : index
    %c0_136 = arith.constant 0 : index
    %260 = vector.load %arg18[%c0_135, %c0_136] : memref<1x32xf32, #tpu.memory_space<vmem>>, vector<1x32xf32>
    %c0_137 = arith.constant 0 : index
    %c0_138 = arith.constant 0 : index
    %261 = vector.load %arg23[%c0_137, %c0_138] : memref<1x32xf32, #tpu.memory_space<vmem>>, vector<1x32xf32>
    %cst_139 = arith.constant dense<0.000000e+00> : vector<64xf32>
    %262 = vector.multi_reduction <add>, %258, %cst_139 [1] : vector<64x32xf32> to vector<64xf32>
    %263 = vector.shape_cast %262 : vector<64xf32> to vector<64x1xf32>
    %cst_140 = arith.constant 3.200000e+01 : f32
    %264 = vector.broadcast %cst_140 : f32 to vector<64x1xf32>
    %265 = arith.divf %263, %264 : vector<64x1xf32>
    %266 = vector.broadcast %265 : vector<64x1xf32> to vector<64x32xf32>
    %267 = arith.subf %258, %266 : vector<64x32xf32>
    %268 = arith.mulf %267, %267 : vector<64x32xf32>
    %cst_141 = arith.constant dense<0.000000e+00> : vector<64xf32>
    %269 = vector.multi_reduction <add>, %268, %cst_141 [1] : vector<64x32xf32> to vector<64xf32>
    %270 = vector.shape_cast %269 : vector<64xf32> to vector<64x1xf32>
    %cst_142 = arith.constant 3.200000e+01 : f32
    %271 = vector.broadcast %cst_142 : f32 to vector<64x1xf32>
    %272 = arith.divf %270, %271 : vector<64x1xf32>
    %273 = vector.broadcast %265 : vector<64x1xf32> to vector<64x32xf32>
    %274 = arith.subf %258, %273 : vector<64x32xf32>
    %cst_143 = arith.constant 9.99999974E-6 : f32
    %275 = vector.broadcast %cst_143 : f32 to vector<64x1xf32>
    %276 = arith.addf %272, %275 : vector<64x1xf32>
    %277 = math.rsqrt %276 : vector<64x1xf32>
    %278 = vector.broadcast %277 : vector<64x1xf32> to vector<64x32xf32>
    %279 = arith.mulf %274, %278 : vector<64x32xf32>
    %280 = vector.broadcast %259 : vector<1x32xf32> to vector<64x32xf32>
    %281 = arith.mulf %279, %280 : vector<64x32xf32>
    %282 = vector.broadcast %260 : vector<1x32xf32> to vector<64x32xf32>
    %283 = arith.addf %281, %282 : vector<64x32xf32>
    %284 = arith.truncf %283 : vector<64x32xf32> to vector<64x32xbf16>
    %cst_144 = arith.constant 0.000000e+00 : f32
    %285 = vector.broadcast %cst_144 : f32 to vector<64x32xf32>
    %c0_145 = arith.constant 0 : index
    %c0_146 = arith.constant 0 : index
    %c0_147 = arith.constant 0 : index
    %286 = vector.load %arg19[%c0_145, %c0_146, %c0_147] : memref<4x32x8xbf16, #tpu.memory_space<vmem>>, vector<1x32x8xbf16>
    %287 = vector.shape_cast %286 : vector<1x32x8xbf16> to vector<32x8xbf16>
    %cst_148 = arith.constant dense<0.000000e+00> : vector<64x8xf32>
    %288 = tpu.matmul %284, %287, %cst_148 {dimension_numbers = #tpu.dot_dimension_numbers<[1], [0], [0], [1], [0, 0, 1, 1], [], []>} : vector<64x32xbf16>, vector<32x8xbf16>, vector<64x8xf32> -> vector<64x8xf32>
    %c0_149 = arith.constant 0 : index
    %c0_150 = arith.constant 0 : index
    %c0_151 = arith.constant 0 : index
    %289 = vector.load %arg20[%c0_149, %c0_150, %c0_151] : memref<4x32x8xbf16, #tpu.memory_space<vmem>>, vector<1x32x8xbf16>
    %290 = vector.shape_cast %289 : vector<1x32x8xbf16> to vector<32x8xbf16>
    %cst_152 = arith.constant dense<0.000000e+00> : vector<64x8xf32>
    %291 = tpu.matmul %284, %290, %cst_152 {dimension_numbers = #tpu.dot_dimension_numbers<[1], [0], [0], [1], [0, 0, 1, 1], [], []>} : vector<64x32xbf16>, vector<32x8xbf16>, vector<64x8xf32> -> vector<64x8xf32>
    %c0_153 = arith.constant 0 : index
    %c0_154 = arith.constant 0 : index
    %c0_155 = arith.constant 0 : index
    %292 = vector.load %arg21[%c0_153, %c0_154, %c0_155] : memref<4x32x8xbf16, #tpu.memory_space<vmem>>, vector<1x32x8xbf16>
    %293 = vector.shape_cast %292 : vector<1x32x8xbf16> to vector<32x8xbf16>
    %cst_156 = arith.constant dense<0.000000e+00> : vector<64x8xf32>
    %294 = tpu.matmul %284, %293, %cst_156 {dimension_numbers = #tpu.dot_dimension_numbers<[1], [0], [0], [1], [0, 0, 1, 1], [], []>} : vector<64x32xbf16>, vector<32x8xbf16>, vector<64x8xf32> -> vector<64x8xf32>
    %295 = vector.shape_cast %288 : vector<64x8xf32> to vector<16x4x8xf32>
    %296 = arith.truncf %295 : vector<16x4x8xf32> to vector<16x4x8xbf16>
    %297 = vector.shape_cast %291 : vector<64x8xf32> to vector<16x4x8xf32>
    %298 = arith.truncf %297 : vector<16x4x8xf32> to vector<16x4x8xbf16>
    %299 = vector.shape_cast %294 : vector<64x8xf32> to vector<16x4x8xf32>
    %300 = arith.truncf %299 : vector<16x4x8xf32> to vector<16x4x8xbf16>
    "tpu.trace_start"() <{level = 10 : i32, message = "bqd,bkd->bqk"}> : () -> ()
    %cst_157 = arith.constant dense<0.000000e+00> : vector<16x4x4xf32>
    %301 = tpu.matmul %296, %298, %cst_157 {dimension_numbers = #tpu.dot_dimension_numbers<[2], [2], [1], [1], [0, 0, 0, 1, 1, 1], [0], [0]>} : vector<16x4x8xbf16>, vector<16x4x8xbf16>, vector<16x4x4xf32> -> vector<16x4x4xf32>
    "tpu.trace_stop"() : () -> ()
    %cst_158 = arith.constant 0.353553385 : f32
    %302 = vector.broadcast %cst_158 : f32 to vector<16x4x4xf32>
    %303 = arith.mulf %301, %302 : vector<16x4x4xf32>
    %cst_159 = arith.constant dense<0xFF800000> : vector<16x4xf32>
    %304 = vector.multi_reduction <maximumf>, %303, %cst_159 [2] : vector<16x4x4xf32> to vector<16x4xf32>
    %305 = vector.shape_cast %304 : vector<16x4xf32> to vector<16x4x1xf32>
    %306 = vector.broadcast %305 : vector<16x4x1xf32> to vector<16x4x4xf32>
    %307 = arith.subf %303, %306 : vector<16x4x4xf32>
    %308 = math.exp %307 : vector<16x4x4xf32>
    %cst_160 = arith.constant dense<0.000000e+00> : vector<16x4xf32>
    %309 = vector.multi_reduction <add>, %308, %cst_160 [2] : vector<16x4x4xf32> to vector<16x4xf32>
    %310 = vector.shape_cast %309 : vector<16x4xf32> to vector<16x4x1xf32>
    %311 = tpu.reciprocal %310 {approx = true} : vector<16x4x1xf32> -> vector<16x4x1xf32>
    %312 = vector.broadcast %311 : vector<16x4x1xf32> to vector<16x4x4xf32>
    %313 = arith.mulf %308, %312 : vector<16x4x4xf32>
    %314 = arith.truncf %313 : vector<16x4x4xf32> to vector<16x4x4xbf16>
    "tpu.trace_start"() <{level = 10 : i32, message = "bqk,bkd->bqd"}> : () -> ()
    %cst_161 = arith.constant dense<0.000000e+00> : vector<16x4x8xf32>
    %315 = tpu.matmul %314, %300, %cst_161 {dimension_numbers = #tpu.dot_dimension_numbers<[2], [1], [1], [2], [0, 0, 0, 1, 1, 2], [0], [0]>} : vector<16x4x4xbf16>, vector<16x4x8xbf16>, vector<16x4x8xf32> -> vector<16x4x8xf32>
    "tpu.trace_stop"() : () -> ()
    %316 = vector.shape_cast %315 : vector<16x4x8xf32> to vector<64x8xf32>
    %317 = arith.truncf %316 : vector<64x8xf32> to vector<64x8xbf16>
    %c0_162 = arith.constant 0 : index
    %c0_163 = arith.constant 0 : index
    %c0_164 = arith.constant 0 : index
    %318 = vector.load %arg22[%c0_162, %c0_163, %c0_164] : memref<4x8x32xbf16, #tpu.memory_space<vmem>>, vector<1x8x32xbf16>
    %319 = vector.shape_cast %318 : vector<1x8x32xbf16> to vector<8x32xbf16>
    %cst_165 = arith.constant dense<0.000000e+00> : vector<64x32xf32>
    %320 = tpu.matmul %317, %319, %cst_165 {dimension_numbers = #tpu.dot_dimension_numbers<[1], [0], [0], [1], [0, 0, 1, 1], [], []>} : vector<64x8xbf16>, vector<8x32xbf16>, vector<64x32xf32> -> vector<64x32xf32>
    %321 = arith.addf %285, %320 : vector<64x32xf32>
    %c1_166 = arith.constant 1 : index
    %c0_167 = arith.constant 0 : index
    %c0_168 = arith.constant 0 : index
    %322 = vector.load %arg19[%c1_166, %c0_167, %c0_168] : memref<4x32x8xbf16, #tpu.memory_space<vmem>>, vector<1x32x8xbf16>
    %323 = vector.shape_cast %322 : vector<1x32x8xbf16> to vector<32x8xbf16>
    %cst_169 = arith.constant dense<0.000000e+00> : vector<64x8xf32>
    %324 = tpu.matmul %284, %323, %cst_169 {dimension_numbers = #tpu.dot_dimension_numbers<[1], [0], [0], [1], [0, 0, 1, 1], [], []>} : vector<64x32xbf16>, vector<32x8xbf16>, vector<64x8xf32> -> vector<64x8xf32>
    %c1_170 = arith.constant 1 : index
    %c0_171 = arith.constant 0 : index
    %c0_172 = arith.constant 0 : index
    %325 = vector.load %arg20[%c1_170, %c0_171, %c0_172] : memref<4x32x8xbf16, #tpu.memory_space<vmem>>, vector<1x32x8xbf16>
    %326 = vector.shape_cast %325 : vector<1x32x8xbf16> to vector<32x8xbf16>
    %cst_173 = arith.constant dense<0.000000e+00> : vector<64x8xf32>
    %327 = tpu.matmul %284, %326, %cst_173 {dimension_numbers = #tpu.dot_dimension_numbers<[1], [0], [0], [1], [0, 0, 1, 1], [], []>} : vector<64x32xbf16>, vector<32x8xbf16>, vector<64x8xf32> -> vector<64x8xf32>
    %c1_174 = arith.constant 1 : index
    %c0_175 = arith.constant 0 : index
    %c0_176 = arith.constant 0 : index
    %328 = vector.load %arg21[%c1_174, %c0_175, %c0_176] : memref<4x32x8xbf16, #tpu.memory_space<vmem>>, vector<1x32x8xbf16>
    %329 = vector.shape_cast %328 : vector<1x32x8xbf16> to vector<32x8xbf16>
    %cst_177 = arith.constant dense<0.000000e+00> : vector<64x8xf32>
    %330 = tpu.matmul %284, %329, %cst_177 {dimension_numbers = #tpu.dot_dimension_numbers<[1], [0], [0], [1], [0, 0, 1, 1], [], []>} : vector<64x32xbf16>, vector<32x8xbf16>, vector<64x8xf32> -> vector<64x8xf32>
    %331 = vector.shape_cast %324 : vector<64x8xf32> to vector<16x4x8xf32>
    %332 = arith.truncf %331 : vector<16x4x8xf32> to vector<16x4x8xbf16>
    %333 = vector.shape_cast %327 : vector<64x8xf32> to vector<16x4x8xf32>
    %334 = arith.truncf %333 : vector<16x4x8xf32> to vector<16x4x8xbf16>
    %335 = vector.shape_cast %330 : vector<64x8xf32> to vector<16x4x8xf32>
    %336 = arith.truncf %335 : vector<16x4x8xf32> to vector<16x4x8xbf16>
    "tpu.trace_start"() <{level = 10 : i32, message = "bqd,bkd->bqk"}> : () -> ()
    %cst_178 = arith.constant dense<0.000000e+00> : vector<16x4x4xf32>
    %337 = tpu.matmul %332, %334, %cst_178 {dimension_numbers = #tpu.dot_dimension_numbers<[2], [2], [1], [1], [0, 0, 0, 1, 1, 1], [0], [0]>} : vector<16x4x8xbf16>, vector<16x4x8xbf16>, vector<16x4x4xf32> -> vector<16x4x4xf32>
    "tpu.trace_stop"() : () -> ()
    %cst_179 = arith.constant 0.353553385 : f32
    %338 = vector.broadcast %cst_179 : f32 to vector<16x4x4xf32>
    %339 = arith.mulf %337, %338 : vector<16x4x4xf32>
    %cst_180 = arith.constant dense<0xFF800000> : vector<16x4xf32>
    %340 = vector.multi_reduction <maximumf>, %339, %cst_180 [2] : vector<16x4x4xf32> to vector<16x4xf32>
    %341 = vector.shape_cast %340 : vector<16x4xf32> to vector<16x4x1xf32>
    %342 = vector.broadcast %341 : vector<16x4x1xf32> to vector<16x4x4xf32>
    %343 = arith.subf %339, %342 : vector<16x4x4xf32>
    %344 = math.exp %343 : vector<16x4x4xf32>
    %cst_181 = arith.constant dense<0.000000e+00> : vector<16x4xf32>
    %345 = vector.multi_reduction <add>, %344, %cst_181 [2] : vector<16x4x4xf32> to vector<16x4xf32>
    %346 = vector.shape_cast %345 : vector<16x4xf32> to vector<16x4x1xf32>
    %347 = tpu.reciprocal %346 {approx = true} : vector<16x4x1xf32> -> vector<16x4x1xf32>
    %348 = vector.broadcast %347 : vector<16x4x1xf32> to vector<16x4x4xf32>
    %349 = arith.mulf %344, %348 : vector<16x4x4xf32>
    %350 = arith.truncf %349 : vector<16x4x4xf32> to vector<16x4x4xbf16>
    "tpu.trace_start"() <{level = 10 : i32, message = "bqk,bkd->bqd"}> : () -> ()
    %cst_182 = arith.constant dense<0.000000e+00> : vector<16x4x8xf32>
    %351 = tpu.matmul %350, %336, %cst_182 {dimension_numbers = #tpu.dot_dimension_numbers<[2], [1], [1], [2], [0, 0, 0, 1, 1, 2], [0], [0]>} : vector<16x4x4xbf16>, vector<16x4x8xbf16>, vector<16x4x8xf32> -> vector<16x4x8xf32>
    "tpu.trace_stop"() : () -> ()
    %352 = vector.shape_cast %351 : vector<16x4x8xf32> to vector<64x8xf32>
    %353 = arith.truncf %352 : vector<64x8xf32> to vector<64x8xbf16>
    %c1_183 = arith.constant 1 : index
    %c0_184 = arith.constant 0 : index
    %c0_185 = arith.constant 0 : index
    %354 = vector.load %arg22[%c1_183, %c0_184, %c0_185] : memref<4x8x32xbf16, #tpu.memory_space<vmem>>, vector<1x8x32xbf16>
    %355 = vector.shape_cast %354 : vector<1x8x32xbf16> to vector<8x32xbf16>
    %cst_186 = arith.constant dense<0.000000e+00> : vector<64x32xf32>
    %356 = tpu.matmul %353, %355, %cst_186 {dimension_numbers = #tpu.dot_dimension_numbers<[1], [0], [0], [1], [0, 0, 1, 1], [], []>} : vector<64x8xbf16>, vector<8x32xbf16>, vector<64x32xf32> -> vector<64x32xf32>
    %357 = arith.addf %321, %356 : vector<64x32xf32>
    %c2_187 = arith.constant 2 : index
    %c0_188 = arith.constant 0 : index
    %c0_189 = arith.constant 0 : index
    %358 = vector.load %arg19[%c2_187, %c0_188, %c0_189] : memref<4x32x8xbf16, #tpu.memory_space<vmem>>, vector<1x32x8xbf16>
    %359 = vector.shape_cast %358 : vector<1x32x8xbf16> to vector<32x8xbf16>
    %cst_190 = arith.constant dense<0.000000e+00> : vector<64x8xf32>
    %360 = tpu.matmul %284, %359, %cst_190 {dimension_numbers = #tpu.dot_dimension_numbers<[1], [0], [0], [1], [0, 0, 1, 1], [], []>} : vector<64x32xbf16>, vector<32x8xbf16>, vector<64x8xf32> -> vector<64x8xf32>
    %c2_191 = arith.constant 2 : index
    %c0_192 = arith.constant 0 : index
    %c0_193 = arith.constant 0 : index
    %361 = vector.load %arg20[%c2_191, %c0_192, %c0_193] : memref<4x32x8xbf16, #tpu.memory_space<vmem>>, vector<1x32x8xbf16>
    %362 = vector.shape_cast %361 : vector<1x32x8xbf16> to vector<32x8xbf16>
    %cst_194 = arith.constant dense<0.000000e+00> : vector<64x8xf32>
    %363 = tpu.matmul %284, %362, %cst_194 {dimension_numbers = #tpu.dot_dimension_numbers<[1], [0], [0], [1], [0, 0, 1, 1], [], []>} : vector<64x32xbf16>, vector<32x8xbf16>, vector<64x8xf32> -> vector<64x8xf32>
    %c2_195 = arith.constant 2 : index
    %c0_196 = arith.constant 0 : index
    %c0_197 = arith.constant 0 : index
    %364 = vector.load %arg21[%c2_195, %c0_196, %c0_197] : memref<4x32x8xbf16, #tpu.memory_space<vmem>>, vector<1x32x8xbf16>
    %365 = vector.shape_cast %364 : vector<1x32x8xbf16> to vector<32x8xbf16>
    %cst_198 = arith.constant dense<0.000000e+00> : vector<64x8xf32>
    %366 = tpu.matmul %284, %365, %cst_198 {dimension_numbers = #tpu.dot_dimension_numbers<[1], [0], [0], [1], [0, 0, 1, 1], [], []>} : vector<64x32xbf16>, vector<32x8xbf16>, vector<64x8xf32> -> vector<64x8xf32>
    %367 = vector.shape_cast %360 : vector<64x8xf32> to vector<16x4x8xf32>
    %368 = arith.truncf %367 : vector<16x4x8xf32> to vector<16x4x8xbf16>
    %369 = vector.shape_cast %363 : vector<64x8xf32> to vector<16x4x8xf32>
    %370 = arith.truncf %369 : vector<16x4x8xf32> to vector<16x4x8xbf16>
    %371 = vector.shape_cast %366 : vector<64x8xf32> to vector<16x4x8xf32>
    %372 = arith.truncf %371 : vector<16x4x8xf32> to vector<16x4x8xbf16>
    "tpu.trace_start"() <{level = 10 : i32, message = "bqd,bkd->bqk"}> : () -> ()
    %cst_199 = arith.constant dense<0.000000e+00> : vector<16x4x4xf32>
    %373 = tpu.matmul %368, %370, %cst_199 {dimension_numbers = #tpu.dot_dimension_numbers<[2], [2], [1], [1], [0, 0, 0, 1, 1, 1], [0], [0]>} : vector<16x4x8xbf16>, vector<16x4x8xbf16>, vector<16x4x4xf32> -> vector<16x4x4xf32>
    "tpu.trace_stop"() : () -> ()
    %cst_200 = arith.constant 0.353553385 : f32
    %374 = vector.broadcast %cst_200 : f32 to vector<16x4x4xf32>
    %375 = arith.mulf %373, %374 : vector<16x4x4xf32>
    %cst_201 = arith.constant dense<0xFF800000> : vector<16x4xf32>
    %376 = vector.multi_reduction <maximumf>, %375, %cst_201 [2] : vector<16x4x4xf32> to vector<16x4xf32>
    %377 = vector.shape_cast %376 : vector<16x4xf32> to vector<16x4x1xf32>
    %378 = vector.broadcast %377 : vector<16x4x1xf32> to vector<16x4x4xf32>
    %379 = arith.subf %375, %378 : vector<16x4x4xf32>
    %380 = math.exp %379 : vector<16x4x4xf32>
    %cst_202 = arith.constant dense<0.000000e+00> : vector<16x4xf32>
    %381 = vector.multi_reduction <add>, %380, %cst_202 [2] : vector<16x4x4xf32> to vector<16x4xf32>
    %382 = vector.shape_cast %381 : vector<16x4xf32> to vector<16x4x1xf32>
    %383 = tpu.reciprocal %382 {approx = true} : vector<16x4x1xf32> -> vector<16x4x1xf32>
    %384 = vector.broadcast %383 : vector<16x4x1xf32> to vector<16x4x4xf32>
    %385 = arith.mulf %380, %384 : vector<16x4x4xf32>
    %386 = arith.truncf %385 : vector<16x4x4xf32> to vector<16x4x4xbf16>
    "tpu.trace_start"() <{level = 10 : i32, message = "bqk,bkd->bqd"}> : () -> ()
    %cst_203 = arith.constant dense<0.000000e+00> : vector<16x4x8xf32>
    %387 = tpu.matmul %386, %372, %cst_203 {dimension_numbers = #tpu.dot_dimension_numbers<[2], [1], [1], [2], [0, 0, 0, 1, 1, 2], [0], [0]>} : vector<16x4x4xbf16>, vector<16x4x8xbf16>, vector<16x4x8xf32> -> vector<16x4x8xf32>
    "tpu.trace_stop"() : () -> ()
    %388 = vector.shape_cast %387 : vector<16x4x8xf32> to vector<64x8xf32>
    %389 = arith.truncf %388 : vector<64x8xf32> to vector<64x8xbf16>
    %c2_204 = arith.constant 2 : index
    %c0_205 = arith.constant 0 : index
    %c0_206 = arith.constant 0 : index
    %390 = vector.load %arg22[%c2_204, %c0_205, %c0_206] : memref<4x8x32xbf16, #tpu.memory_space<vmem>>, vector<1x8x32xbf16>
    %391 = vector.shape_cast %390 : vector<1x8x32xbf16> to vector<8x32xbf16>
    %cst_207 = arith.constant dense<0.000000e+00> : vector<64x32xf32>
    %392 = tpu.matmul %389, %391, %cst_207 {dimension_numbers = #tpu.dot_dimension_numbers<[1], [0], [0], [1], [0, 0, 1, 1], [], []>} : vector<64x8xbf16>, vector<8x32xbf16>, vector<64x32xf32> -> vector<64x32xf32>
    %393 = arith.addf %357, %392 : vector<64x32xf32>
    %c3_208 = arith.constant 3 : index
    %c0_209 = arith.constant 0 : index
    %c0_210 = arith.constant 0 : index
    %394 = vector.load %arg19[%c3_208, %c0_209, %c0_210] : memref<4x32x8xbf16, #tpu.memory_space<vmem>>, vector<1x32x8xbf16>
    %395 = vector.shape_cast %394 : vector<1x32x8xbf16> to vector<32x8xbf16>
    %cst_211 = arith.constant dense<0.000000e+00> : vector<64x8xf32>
    %396 = tpu.matmul %284, %395, %cst_211 {dimension_numbers = #tpu.dot_dimension_numbers<[1], [0], [0], [1], [0, 0, 1, 1], [], []>} : vector<64x32xbf16>, vector<32x8xbf16>, vector<64x8xf32> -> vector<64x8xf32>
    %c3_212 = arith.constant 3 : index
    %c0_213 = arith.constant 0 : index
    %c0_214 = arith.constant 0 : index
    %397 = vector.load %arg20[%c3_212, %c0_213, %c0_214] : memref<4x32x8xbf16, #tpu.memory_space<vmem>>, vector<1x32x8xbf16>
    %398 = vector.shape_cast %397 : vector<1x32x8xbf16> to vector<32x8xbf16>
    %cst_215 = arith.constant dense<0.000000e+00> : vector<64x8xf32>
    %399 = tpu.matmul %284, %398, %cst_215 {dimension_numbers = #tpu.dot_dimension_numbers<[1], [0], [0], [1], [0, 0, 1, 1], [], []>} : vector<64x32xbf16>, vector<32x8xbf16>, vector<64x8xf32> -> vector<64x8xf32>
    %c3_216 = arith.constant 3 : index
    %c0_217 = arith.constant 0 : index
    %c0_218 = arith.constant 0 : index
    %400 = vector.load %arg21[%c3_216, %c0_217, %c0_218] : memref<4x32x8xbf16, #tpu.memory_space<vmem>>, vector<1x32x8xbf16>
    %401 = vector.shape_cast %400 : vector<1x32x8xbf16> to vector<32x8xbf16>
    %cst_219 = arith.constant dense<0.000000e+00> : vector<64x8xf32>
    %402 = tpu.matmul %284, %401, %cst_219 {dimension_numbers = #tpu.dot_dimension_numbers<[1], [0], [0], [1], [0, 0, 1, 1], [], []>} : vector<64x32xbf16>, vector<32x8xbf16>, vector<64x8xf32> -> vector<64x8xf32>
    %403 = vector.shape_cast %396 : vector<64x8xf32> to vector<16x4x8xf32>
    %404 = arith.truncf %403 : vector<16x4x8xf32> to vector<16x4x8xbf16>
    %405 = vector.shape_cast %399 : vector<64x8xf32> to vector<16x4x8xf32>
    %406 = arith.truncf %405 : vector<16x4x8xf32> to vector<16x4x8xbf16>
    %407 = vector.shape_cast %402 : vector<64x8xf32> to vector<16x4x8xf32>
    %408 = arith.truncf %407 : vector<16x4x8xf32> to vector<16x4x8xbf16>
    "tpu.trace_start"() <{level = 10 : i32, message = "bqd,bkd->bqk"}> : () -> ()
    %cst_220 = arith.constant dense<0.000000e+00> : vector<16x4x4xf32>
    %409 = tpu.matmul %404, %406, %cst_220 {dimension_numbers = #tpu.dot_dimension_numbers<[2], [2], [1], [1], [0, 0, 0, 1, 1, 1], [0], [0]>} : vector<16x4x8xbf16>, vector<16x4x8xbf16>, vector<16x4x4xf32> -> vector<16x4x4xf32>
    "tpu.trace_stop"() : () -> ()
    %cst_221 = arith.constant 0.353553385 : f32
    %410 = vector.broadcast %cst_221 : f32 to vector<16x4x4xf32>
    %411 = arith.mulf %409, %410 : vector<16x4x4xf32>
    %cst_222 = arith.constant dense<0xFF800000> : vector<16x4xf32>
    %412 = vector.multi_reduction <maximumf>, %411, %cst_222 [2] : vector<16x4x4xf32> to vector<16x4xf32>
    %413 = vector.shape_cast %412 : vector<16x4xf32> to vector<16x4x1xf32>
    %414 = vector.broadcast %413 : vector<16x4x1xf32> to vector<16x4x4xf32>
    %415 = arith.subf %411, %414 : vector<16x4x4xf32>
    %416 = math.exp %415 : vector<16x4x4xf32>
    %cst_223 = arith.constant dense<0.000000e+00> : vector<16x4xf32>
    %417 = vector.multi_reduction <add>, %416, %cst_223 [2] : vector<16x4x4xf32> to vector<16x4xf32>
    %418 = vector.shape_cast %417 : vector<16x4xf32> to vector<16x4x1xf32>
    %419 = tpu.reciprocal %418 {approx = true} : vector<16x4x1xf32> -> vector<16x4x1xf32>
    %420 = vector.broadcast %419 : vector<16x4x1xf32> to vector<16x4x4xf32>
    %421 = arith.mulf %416, %420 : vector<16x4x4xf32>
    %422 = arith.truncf %421 : vector<16x4x4xf32> to vector<16x4x4xbf16>
    "tpu.trace_start"() <{level = 10 : i32, message = "bqk,bkd->bqd"}> : () -> ()
    %cst_224 = arith.constant dense<0.000000e+00> : vector<16x4x8xf32>
    %423 = tpu.matmul %422, %408, %cst_224 {dimension_numbers = #tpu.dot_dimension_numbers<[2], [1], [1], [2], [0, 0, 0, 1, 1, 2], [0], [0]>} : vector<16x4x4xbf16>, vector<16x4x8xbf16>, vector<16x4x8xf32> -> vector<16x4x8xf32>
    "tpu.trace_stop"() : () -> ()
    %424 = vector.shape_cast %423 : vector<16x4x8xf32> to vector<64x8xf32>
    %425 = arith.truncf %424 : vector<64x8xf32> to vector<64x8xbf16>
    %c3_225 = arith.constant 3 : index
    %c0_226 = arith.constant 0 : index
    %c0_227 = arith.constant 0 : index
    %426 = vector.load %arg22[%c3_225, %c0_226, %c0_227] : memref<4x8x32xbf16, #tpu.memory_space<vmem>>, vector<1x8x32xbf16>
    %427 = vector.shape_cast %426 : vector<1x8x32xbf16> to vector<8x32xbf16>
    %cst_228 = arith.constant dense<0.000000e+00> : vector<64x32xf32>
    %428 = tpu.matmul %425, %427, %cst_228 {dimension_numbers = #tpu.dot_dimension_numbers<[1], [0], [0], [1], [0, 0, 1, 1], [], []>} : vector<64x8xbf16>, vector<8x32xbf16>, vector<64x32xf32> -> vector<64x32xf32>
    %429 = arith.addf %393, %428 : vector<64x32xf32>
    %430 = arith.addf %258, %429 : vector<64x32xf32>
    %431 = vector.broadcast %261 : vector<1x32xf32> to vector<64x32xf32>
    %432 = arith.addf %430, %431 : vector<64x32xf32>
    %c0_229 = arith.constant 0 : index
    %c0_230 = arith.constant 0 : index
    %433 = vector.load %arg24[%c0_229, %c0_230] : memref<1x32xf32, #tpu.memory_space<vmem>>, vector<1x32xf32>
    %c0_231 = arith.constant 0 : index
    %c0_232 = arith.constant 0 : index
    %434 = vector.load %arg25[%c0_231, %c0_232] : memref<1x32xf32, #tpu.memory_space<vmem>>, vector<1x32xf32>
    %c0_233 = arith.constant 0 : index
    %c0_234 = arith.constant 0 : index
    %435 = vector.load %arg26[%c0_233, %c0_234] : memref<32x128xbf16, #tpu.memory_space<vmem>>, vector<32x128xbf16>
    %c0_235 = arith.constant 0 : index
    %c0_236 = arith.constant 0 : index
    %436 = vector.load %arg27[%c0_235, %c0_236] : memref<1x128xf32, #tpu.memory_space<vmem>>, vector<1x128xf32>
    %c0_237 = arith.constant 0 : index
    %c0_238 = arith.constant 0 : index
    %437 = vector.load %arg28[%c0_237, %c0_238] : memref<128x32xbf16, #tpu.memory_space<vmem>>, vector<128x32xbf16>
    %c0_239 = arith.constant 0 : index
    %c0_240 = arith.constant 0 : index
    %438 = vector.load %arg29[%c0_239, %c0_240] : memref<1x32xf32, #tpu.memory_space<vmem>>, vector<1x32xf32>
    %cst_241 = arith.constant dense<0.000000e+00> : vector<64xf32>
    %439 = vector.multi_reduction <add>, %432, %cst_241 [1] : vector<64x32xf32> to vector<64xf32>
    %440 = vector.shape_cast %439 : vector<64xf32> to vector<64x1xf32>
    %cst_242 = arith.constant 3.200000e+01 : f32
    %441 = vector.broadcast %cst_242 : f32 to vector<64x1xf32>
    %442 = arith.divf %440, %441 : vector<64x1xf32>
    %443 = vector.broadcast %442 : vector<64x1xf32> to vector<64x32xf32>
    %444 = arith.subf %432, %443 : vector<64x32xf32>
    %445 = arith.mulf %444, %444 : vector<64x32xf32>
    %cst_243 = arith.constant dense<0.000000e+00> : vector<64xf32>
    %446 = vector.multi_reduction <add>, %445, %cst_243 [1] : vector<64x32xf32> to vector<64xf32>
    %447 = vector.shape_cast %446 : vector<64xf32> to vector<64x1xf32>
    %cst_244 = arith.constant 3.200000e+01 : f32
    %448 = vector.broadcast %cst_244 : f32 to vector<64x1xf32>
    %449 = arith.divf %447, %448 : vector<64x1xf32>
    %450 = vector.broadcast %442 : vector<64x1xf32> to vector<64x32xf32>
    %451 = arith.subf %432, %450 : vector<64x32xf32>
    %cst_245 = arith.constant 9.99999974E-6 : f32
    %452 = vector.broadcast %cst_245 : f32 to vector<64x1xf32>
    %453 = arith.addf %449, %452 : vector<64x1xf32>
    %454 = math.rsqrt %453 : vector<64x1xf32>
    %455 = vector.broadcast %454 : vector<64x1xf32> to vector<64x32xf32>
    %456 = arith.mulf %451, %455 : vector<64x32xf32>
    %457 = vector.broadcast %433 : vector<1x32xf32> to vector<64x32xf32>
    %458 = arith.mulf %456, %457 : vector<64x32xf32>
    %459 = vector.broadcast %434 : vector<1x32xf32> to vector<64x32xf32>
    %460 = arith.addf %458, %459 : vector<64x32xf32>
    %461 = arith.truncf %460 : vector<64x32xf32> to vector<64x32xbf16>
    %cst_246 = arith.constant dense<0.000000e+00> : vector<64x128xf32>
    %462 = tpu.matmul %461, %435, %cst_246 {dimension_numbers = #tpu.dot_dimension_numbers<[1], [0], [0], [1], [0, 0, 1, 1], [], []>} : vector<64x32xbf16>, vector<32x128xbf16>, vector<64x128xf32> -> vector<64x128xf32>
    %463 = vector.broadcast %436 : vector<1x128xf32> to vector<64x128xf32>
    %464 = arith.addf %462, %463 : vector<64x128xf32>
    %cst_247 = arith.constant 5.000000e-01 : f32
    %465 = vector.broadcast %cst_247 : f32 to vector<64x128xf32>
    %466 = arith.mulf %465, %464 : vector<64x128xf32>
    %cst_248 = arith.constant 0.707106769 : f32
    %467 = vector.broadcast %cst_248 : f32 to vector<64x128xf32>
    %468 = arith.mulf %464, %467 : vector<64x128xf32>
    %cst_249 = arith.constant 0.000000e+00 : f32
    %469 = vector.broadcast %cst_249 : f32 to vector<64x128xf32>
    %470 = arith.cmpf oge, %468, %469 : vector<64x128xf32>
    %cst_250 = arith.constant 0.000000e+00 : f32
    %471 = vector.broadcast %cst_250 : f32 to vector<64x128xf32>
    %472 = arith.subf %471, %468 : vector<64x128xf32>
    %473 = arith.select %470, %468, %472 : vector<64x128xi1>, vector<64x128xf32>
    %cst_251 = arith.constant 0.327591091 : f32
    %474 = vector.broadcast %cst_251 : f32 to vector<64x128xf32>
    %475 = arith.mulf %474, %473 : vector<64x128xf32>
    %cst_252 = arith.constant 1.000000e+00 : f32
    %476 = vector.broadcast %cst_252 : f32 to vector<64x128xf32>
    %477 = arith.addf %476, %475 : vector<64x128xf32>
    %cst_253 = arith.constant 1.000000e+00 : f32
    %478 = vector.broadcast %cst_253 : f32 to vector<64x128xf32>
    %479 = arith.divf %478, %477 : vector<64x128xf32>
    %cst_254 = arith.constant 1.06140542 : f32
    %480 = vector.broadcast %cst_254 : f32 to vector<64x128xf32>
    %481 = arith.mulf %479, %480 : vector<64x128xf32>
    %cst_255 = arith.constant -1.45315206 : f32
    %482 = vector.broadcast %cst_255 : f32 to vector<64x128xf32>
    %483 = arith.addf %482, %481 : vector<64x128xf32>
    %484 = arith.mulf %479, %483 : vector<64x128xf32>
    %cst_256 = arith.constant 1.42141378 : f32
    %485 = vector.broadcast %cst_256 : f32 to vector<64x128xf32>
    %486 = arith.addf %485, %484 : vector<64x128xf32>
    %487 = arith.mulf %479, %486 : vector<64x128xf32>
    %cst_257 = arith.constant -0.284496725 : f32
    %488 = vector.broadcast %cst_257 : f32 to vector<64x128xf32>
    %489 = arith.addf %488, %487 : vector<64x128xf32>
    %490 = arith.mulf %479, %489 : vector<64x128xf32>
    %cst_258 = arith.constant 0.254829586 : f32
    %491 = vector.broadcast %cst_258 : f32 to vector<64x128xf32>
    %492 = arith.addf %491, %490 : vector<64x128xf32>
    %493 = arith.mulf %479, %492 : vector<64x128xf32>
    %cst_259 = arith.constant 0.000000e+00 : f32
    %494 = vector.broadcast %cst_259 : f32 to vector<64x128xf32>
    %495 = arith.subf %494, %473 : vector<64x128xf32>
    %496 = arith.mulf %495, %473 : vector<64x128xf32>
    %497 = math.exp %496 : vector<64x128xf32>
    %498 = arith.mulf %493, %497 : vector<64x128xf32>
    %cst_260 = arith.constant 1.000000e+00 : f32
    %499 = vector.broadcast %cst_260 : f32 to vector<64x128xf32>
    %500 = arith.subf %499, %498 : vector<64x128xf32>
    %cst_261 = arith.constant 0.000000e+00 : f32
    %501 = vector.broadcast %cst_261 : f32 to vector<64x128xf32>
    %502 = arith.cmpf oge, %468, %501 : vector<64x128xf32>
    %cst_262 = arith.constant 0.000000e+00 : f32
    %503 = vector.broadcast %cst_262 : f32 to vector<64x128xf32>
    %504 = arith.subf %503, %500 : vector<64x128xf32>
    %505 = arith.select %502, %500, %504 : vector<64x128xi1>, vector<64x128xf32>
    %cst_263 = arith.constant 1.000000e+00 : f32
    %506 = vector.broadcast %cst_263 : f32 to vector<64x128xf32>
    %507 = arith.addf %506, %505 : vector<64x128xf32>
    %508 = arith.mulf %466, %507 : vector<64x128xf32>
    %509 = arith.truncf %508 : vector<64x128xf32> to vector<64x128xbf16>
    %cst_264 = arith.constant dense<0.000000e+00> : vector<64x32xf32>
    %510 = tpu.matmul %509, %437, %cst_264 {dimension_numbers = #tpu.dot_dimension_numbers<[1], [0], [0], [1], [0, 0, 1, 1], [], []>} : vector<64x128xbf16>, vector<128x32xbf16>, vector<64x32xf32> -> vector<64x32xf32>
    %511 = vector.broadcast %438 : vector<1x32xf32> to vector<64x32xf32>
    %512 = arith.addf %510, %511 : vector<64x32xf32>
    %513 = arith.addf %432, %512 : vector<64x32xf32>
    %c0_265 = arith.constant 0 : index
    %c0_266 = arith.constant 0 : index
    %514 = vector.load %arg3[%c0_265, %c0_266] : memref<64x64xf32, #tpu.memory_space<vmem>>, vector<64x64xf32>
    %cst_267 = arith.constant dense<0.000000e+00> : vector<64x32xf32>
    %515 = tpu.matmul %514, %513, %cst_267 {dimension_numbers = #tpu.dot_dimension_numbers<[1], [0], [0], [1], [0, 0, 1, 1], [], []>} : vector<64x64xf32>, vector<64x32xf32>, vector<64x32xf32> -> vector<64x32xf32>
    %516 = vector.shape_cast %515 : vector<64x32xf32> to vector<2x32x32xf32>
    %c0_268 = arith.constant 0 : index
    %c0_269 = arith.constant 0 : index
    %c0_270 = arith.constant 0 : index
    %517 = vector.load %arg30[%c0_268, %c0_269, %c0_270] : memref<2x32x32xf32, #tpu.memory_space<vmem>>, vector<2x32x32xf32>
    tpu.vector_store %arg30[%c0_268, %c0_269, %c0_270], %516 {strides = array<i32>} : memref<2x32x32xf32, #tpu.memory_space<vmem>>, vector<2x32x32xf32>,
    return
  }
  func.func @transform_0(%arg0: i32) -> (i32, i32, i32) {
    %c0_i32 = arith.constant 0 : i32
    %c0_i32_0 = arith.constant 0 : i32
    %c0_i32_1 = arith.constant 0 : i32
    return %arg0, %c0_i32, %c0_i32_0 : i32, i32, i32
  }
  func.func @transform_1(%arg0: i32) -> (i32, i32) {
    %c0_i32 = arith.constant 0 : i32
    %c0_i32_0 = arith.constant 0 : i32
    %c0_i32_1 = arith.constant 0 : i32
    return %c0_i32, %c0_i32_0 : i32, i32
  }
  func.func @transform_2(%arg0: i32) -> (i32, i32) {
    %c0_i32 = arith.constant 0 : i32
    %c0_i32_0 = arith.constant 0 : i32
    %c0_i32_1 = arith.constant 0 : i32
    return %c0_i32, %c0_i32_0 : i32, i32
  }
  func.func @transform_3(%arg0: i32) -> (i32, i32) {
    %c0_i32 = arith.constant 0 : i32
    %c0_i32_0 = arith.constant 0 : i32
    %c0_i32_1 = arith.constant 0 : i32
    return %c0_i32, %c0_i32_0 : i32, i32
  }
  func.func @transform_4(%arg0: i32) -> (i32, i32) {
    %c0_i32 = arith.constant 0 : i32
    %c0_i32_0 = arith.constant 0 : i32
    %c0_i32_1 = arith.constant 0 : i32
    return %c0_i32, %c0_i32_0 : i32, i32
  }
  func.func @transform_5(%arg0: i32) -> (i32, i32, i32) {
    %c0_i32 = arith.constant 0 : i32
    %c0_i32_0 = arith.constant 0 : i32
    %c0_i32_1 = arith.constant 0 : i32
    %c0_i32_2 = arith.constant 0 : i32
    return %c0_i32, %c0_i32_0, %c0_i32_1 : i32, i32, i32
  }
  func.func @transform_6(%arg0: i32) -> (i32, i32, i32) {
    %c0_i32 = arith.constant 0 : i32
    %c0_i32_0 = arith.constant 0 : i32
    %c0_i32_1 = arith.constant 0 : i32
    %c0_i32_2 = arith.constant 0 : i32
    return %c0_i32, %c0_i32_0, %c0_i32_1 : i32, i32, i32
  }
  func.func @transform_7(%arg0: i32) -> (i32, i32, i32) {
    %c0_i32 = arith.constant 0 : i32
    %c0_i32_0 = arith.constant 0 : i32
    %c0_i32_1 = arith.constant 0 : i32
    %c0_i32_2 = arith.constant 0 : i32
    return %c0_i32, %c0_i32_0, %c0_i32_1 : i32, i32, i32
  }
  func.func @transform_8(%arg0: i32) -> (i32, i32, i32) {
    %c0_i32 = arith.constant 0 : i32
    %c0_i32_0 = arith.constant 0 : i32
    %c0_i32_1 = arith.constant 0 : i32
    %c0_i32_2 = arith.constant 0 : i32
    return %c0_i32, %c0_i32_0, %c0_i32_1 : i32, i32, i32
  }
  func.func @transform_9(%arg0: i32) -> (i32, i32) {
    %c0_i32 = arith.constant 0 : i32
    %c0_i32_0 = arith.constant 0 : i32
    %c0_i32_1 = arith.constant 0 : i32
    return %c0_i32, %c0_i32_0 : i32, i32
  }
  func.func @transform_10(%arg0: i32) -> (i32, i32) {
    %c0_i32 = arith.constant 0 : i32
    %c0_i32_0 = arith.constant 0 : i32
    %c0_i32_1 = arith.constant 0 : i32
    return %c0_i32, %c0_i32_0 : i32, i32
  }
  func.func @transform_11(%arg0: i32) -> (i32, i32) {
    %c0_i32 = arith.constant 0 : i32
    %c0_i32_0 = arith.constant 0 : i32
    %c0_i32_1 = arith.constant 0 : i32
    return %c0_i32, %c0_i32_0 : i32, i32
  }
  func.func @transform_12(%arg0: i32) -> (i32, i32) {
    %c0_i32 = arith.constant 0 : i32
    %c0_i32_0 = arith.constant 0 : i32
    %c0_i32_1 = arith.constant 0 : i32
    return %c0_i32, %c0_i32_0 : i32, i32
  }
  func.func @transform_13(%arg0: i32) -> (i32, i32) {
    %c0_i32 = arith.constant 0 : i32
    %c0_i32_0 = arith.constant 0 : i32
    %c0_i32_1 = arith.constant 0 : i32
    return %c0_i32, %c0_i32_0 : i32, i32
  }
  func.func @transform_14(%arg0: i32) -> (i32, i32) {
    %c0_i32 = arith.constant 0 : i32
    %c0_i32_0 = arith.constant 0 : i32
    %c0_i32_1 = arith.constant 0 : i32
    return %c0_i32, %c0_i32_0 : i32, i32
  }
  func.func @transform_15(%arg0: i32) -> (i32, i32) {
    %c0_i32 = arith.constant 0 : i32
    %c0_i32_0 = arith.constant 0 : i32
    %c0_i32_1 = arith.constant 0 : i32
    return %c0_i32, %c0_i32_0 : i32, i32
  }
  func.func @transform_16(%arg0: i32) -> (i32, i32) {
    %c0_i32 = arith.constant 0 : i32
    %c0_i32_0 = arith.constant 0 : i32
    %c0_i32_1 = arith.constant 0 : i32
    return %c0_i32, %c0_i32_0 : i32, i32
  }
  func.func @transform_17(%arg0: i32) -> (i32, i32) {
    %c0_i32 = arith.constant 0 : i32
    %c0_i32_0 = arith.constant 0 : i32
    %c0_i32_1 = arith.constant 0 : i32
    return %c0_i32, %c0_i32_0 : i32, i32
  }
  func.func @transform_18(%arg0: i32) -> (i32, i32, i32) {
    %c0_i32 = arith.constant 0 : i32
    %c0_i32_0 = arith.constant 0 : i32
    %c0_i32_1 = arith.constant 0 : i32
    %c0_i32_2 = arith.constant 0 : i32
    return %c0_i32, %c0_i32_0, %c0_i32_1 : i32, i32, i32
  }
  func.func @transform_19(%arg0: i32) -> (i32, i32, i32) {
    %c0_i32 = arith.constant 0 : i32
    %c0_i32_0 = arith.constant 0 : i32
    %c0_i32_1 = arith.constant 0 : i32
    %c0_i32_2 = arith.constant 0 : i32
    return %c0_i32, %c0_i32_0, %c0_i32_1 : i32, i32, i32
  }
  func.func @transform_20(%arg0: i32) -> (i32, i32, i32) {
    %c0_i32 = arith.constant 0 : i32
    %c0_i32_0 = arith.constant 0 : i32
    %c0_i32_1 = arith.constant 0 : i32
    %c0_i32_2 = arith.constant 0 : i32
    return %c0_i32, %c0_i32_0, %c0_i32_1 : i32, i32, i32
  }
  func.func @transform_21(%arg0: i32) -> (i32, i32, i32) {
    %c0_i32 = arith.constant 0 : i32
    %c0_i32_0 = arith.constant 0 : i32
    %c0_i32_1 = arith.constant 0 : i32
    %c0_i32_2 = arith.constant 0 : i32
    return %c0_i32, %c0_i32_0, %c0_i32_1 : i32, i32, i32
  }
  func.func @transform_22(%arg0: i32) -> (i32, i32) {
    %c0_i32 = arith.constant 0 : i32
    %c0_i32_0 = arith.constant 0 : i32
    %c0_i32_1 = arith.constant 0 : i32
    return %c0_i32, %c0_i32_0 : i32, i32
  }
  func.func @transform_23(%arg0: i32) -> (i32, i32) {
    %c0_i32 = arith.constant 0 : i32
    %c0_i32_0 = arith.constant 0 : i32
    %c0_i32_1 = arith.constant 0 : i32
    return %c0_i32, %c0_i32_0 : i32, i32
  }
  func.func @transform_24(%arg0: i32) -> (i32, i32) {
    %c0_i32 = arith.constant 0 : i32
    %c0_i32_0 = arith.constant 0 : i32
    %c0_i32_1 = arith.constant 0 : i32
    return %c0_i32, %c0_i32_0 : i32, i32
  }
  func.func @transform_25(%arg0: i32) -> (i32, i32) {
    %c0_i32 = arith.constant 0 : i32
    %c0_i32_0 = arith.constant 0 : i32
    %c0_i32_1 = arith.constant 0 : i32
    return %c0_i32, %c0_i32_0 : i32, i32
  }
  func.func @transform_26(%arg0: i32) -> (i32, i32) {
    %c0_i32 = arith.constant 0 : i32
    %c0_i32_0 = arith.constant 0 : i32
    %c0_i32_1 = arith.constant 0 : i32
    return %c0_i32, %c0_i32_0 : i32, i32
  }
  func.func @transform_27(%arg0: i32) -> (i32, i32) {
    %c0_i32 = arith.constant 0 : i32
    %c0_i32_0 = arith.constant 0 : i32
    %c0_i32_1 = arith.constant 0 : i32
    return %c0_i32, %c0_i32_0 : i32, i32
  }
  func.func @transform_28(%arg0: i32) -> (i32, i32) {
    %c0_i32 = arith.constant 0 : i32
    %c0_i32_0 = arith.constant 0 : i32
    %c0_i32_1 = arith.constant 0 : i32
    return %c0_i32, %c0_i32_0 : i32, i32
  }
  func.func @transform_29(%arg0: i32) -> (i32, i32, i32) {
    %c0_i32 = arith.constant 0 : i32
    %c0_i32_0 = arith.constant 0 : i32
    %c0_i32_1 = arith.constant 0 : i32
    return %arg0, %c0_i32, %c0_i32_0 : i32, i32, i32
  }
}

</mosaic_0001>

<bundles_post_ra>
// kernel: multiscale_block_forward.1
= control target key start
LH: loop header
LB: loop body
LE: loop exit
PB: predicated region body
PF: predicated region fallthrough
CT: control target
= control target key end

     0   :  { %s10816_s6 = smov 1   ;;  %s10817_s10 = smov 2   ;;  %s13813_s0 = inlined_call_operand.smem [shape: u32[30], index: -1, kind: input, shape index: {}] }
   0x1   :  { %s10857_s5 = sld [smem:[%s13813_s0]]   ;;  %s10818_s14 = smov 3  }
   0x2   :  { %s10862_s9 = sld [smem:[%s13813_s0 + %s10816_s6]]   ;;  %s10819_s18 = smov 4  }
   0x3   :  { %s10867_s13 = sld [smem:[%s13813_s0 + %s10817_s10]]   ;;  %s10820_s22 = smov 5  }
   0x4   :  { %s10872_s17 = sld [smem:[%s13813_s0 + %s10818_s14]]   ;;  %s10821_s26 = smov 6  }
   0x5   :  { %s10877_s21 = sld [smem:[%s13813_s0 + %s10819_s18]]   ;;  %s10822_s30 = smov 7  }
   0x6   :  { %s10882_s25 = sld [smem:[%s13813_s0 + %s10820_s22]]   ;;  %s10823_s4 = smov 8  }
   0x7   :  { %s10887_s29 = sld [smem:[%s13813_s0 + %s10821_s26]]   ;;  %s10824_s10 = smov 9  }
   0x8   :  { %13821 = sst [smem:[#allocation5_spill]] %s10862_s9  ;;  %s10825_s15 = smov 10  }
   0x9   :  { %13822 = sst [smem:[#allocation6_spill]] %s10867_s13  ;;  %s10826_s20 = smov 11  }
   0xa   :  { %s10892_s3 = sld [smem:[%s13813_s0 + %s10822_s30]]   ;;  %s10827_s26 = smov 12  }
   0xb   :  { %s10897_s8 = sld [smem:[%s13813_s0 + %s10823_s4]]   ;;  %s10828_s1 = smov 13  }
   0xc   :  { %s10902_s14 = sld [smem:[%s13813_s0 + %s10824_s10]]   ;;  %s10829_s7 = smov 14  }
   0xd   :  { %s10907_s19 = sld [smem:[%s13813_s0 + %s10825_s15]]   ;;  %s10830_s15 = smov 15  }
   0xe   :  { %s10912_s24 = sld [smem:[%s13813_s0 + %s10826_s20]]   ;;  %s10831_s22 = smov 16  }
   0xf   :  { %s10917_s30 = sld [smem:[%s13813_s0 + %s10827_s26]]   ;;  %s10832_s28 = smov 17  }
  0x10   :  { %s10922_s6 = sld [smem:[%s13813_s0 + %s10828_s1]]  }
  0x11   :  { %s10927_s12 = sld [smem:[%s13813_s0 + %s10829_s7]]   ;;  %s10833_s7 = smov 18  }
  0x12   :  { %s10932_s20 = sld [smem:[%s13813_s0 + %s10830_s15]]   ;;  %s10834_s15 = smov 19  }
  0x13   :  { %s10937_s27 = sld [smem:[%s13813_s0 + %s10831_s22]]   ;;  %s10835_s22 = smov 20  }
  0x14   :  { %s10942_s4 = sld [smem:[%s13813_s0 + %s10832_s28]]   ;;  %s10836_s28 = smov 21  }
  0x15   :  { %s10947_s13 = sld [smem:[%s13813_s0 + %s10833_s7]]   ;;  %s10837_s7 = smov 22  }
  0x16   :  { %s10952_s9 = sld [smem:[%s13813_s0 + %s10834_s15]]   ;;  %s10838_s15 = smov 23  }
  0x19   :  { %13823 = sst [smem:[#allocation7_spill]] %s10937_s27 }
  0x1a   :  { %13824 = sst [smem:[#allocation8_spill]] %s10942_s4 }
  0x1b   :  { %13825 = sst [smem:[#allocation9_spill]] %s10947_s13 }
  0x1c   :  { %13826 = sst [smem:[#allocation10_spill]] %s10952_s9 }
  0x1d   :  { %s10957_s27 = sld [smem:[%s13813_s0 + %s10835_s22]]   ;;  %s10839_s22 = smov 24  }
  0x1e   :  { %s10962_s4 = sld [smem:[%s13813_s0 + %s10836_s28]]   ;;  %s10840_s28 = smov 25  }
  0x1f   :  { %s10967_s13 = sld [smem:[%s13813_s0 + %s10837_s7]]   ;;  %s10841_s7 = smov 26  }
  0x20   :  { %s10972_s9 = sld [smem:[%s13813_s0 + %s10838_s15]]   ;;  %s10842_s15 = smov 27  }
  0x23   :  { %13827 = sst [smem:[#allocation11_spill]] %s10957_s27 }
  0x24   :  { %13828 = sst [smem:[#allocation12_spill]] %s10962_s4 }
  0x25   :  { %13829 = sst [smem:[#allocation13_spill]] %s10967_s13 }
  0x26   :  { %13830 = sst [smem:[#allocation14_spill]] %s10972_s9 }
  0x27   :  { %s10977_s27 = sld [smem:[%s13813_s0 + %s10839_s22]]   ;;  %s10843_s22 = smov 28  }
  0x28   :  { %s10982_s4 = sld [smem:[%s13813_s0 + %s10840_s28]]   ;;  %s10844_s28 = smov 29  }
  0x29   :  { %s10987_s13 = sld [smem:[%s13813_s0 + %s10841_s7]]  }
  0x2a   :  { %s10992_s9 = sld [smem:[%s13813_s0 + %s10842_s15]]  }
  0x2d   :  { %13831 = sst [smem:[#allocation15_spill]] %s10977_s27 }
  0x2e   :  { %13832 = sst [smem:[#allocation16_spill]] %s10982_s4 }
  0x2f   :  { %s10997_s27 = sld [smem:[%s13813_s0 + %s10843_s22]]  }
  0x30   :  { %s11002_s4 = sld [smem:[%s13813_s0 + %s10844_s28]]  }
  0x31   :  { %v128_v0 = vld [vmem:[%s10857_s5 + $0x20] sm:$0xff]  ;;  %vm135_vm0 = vcmask 261120   ;;  %v126_v1 = vld [vmem:[%s10857_s5 + $0x10] sm:$0xff]  ;;  %v129_v6 = vld [vmem:[%s10857_s5 + $0x28] sm:$0xff] }
  0x32   :  { %v124_v2 = vld [vmem:[%s10857_s5] sm:$0xff]  ;;  %v148_v3 = vsel %vm135_vm0, %v128_v0, 0.0  ;;  %v142_v4 = vsel %vm135_vm0, %v126_v1, 0.0  ;;  %v127_v7 = vld [vmem:[%s10857_s5 + $0x18] sm:$0xff]  ;;  %v125_v8 = vld [vmem:[%s10857_s5 + $0x8] sm:$0xff]  ;;  %v151_v9 = vsel %vm135_vm0, %v129_v6, 0.0 }
  0x33   :  { %v136_v5 = vsel %vm135_vm0, %v124_v2, 0.0  ;;  %149 = vadd.xlane.f32.xlu2 %v148_v3  ;;  %143 = vadd.xlane.f32.xlu1 %v142_v4  ;;  %v145_v10 = vsel %vm135_vm0, %v127_v7, 0.0 }
  0x34   :  { %137 = vadd.xlane.f32.xlu0 %v136_v5 }
  0x35   :  { %64 = vsyncpa [#allocation3], 0  ;;  %v139_v11 = vsel %vm135_vm0, %v125_v8, 0.0  ;;  %v10845_v12 = vmov 32.0   ;;  %v130_v48 = vld [vmem:[%s10857_s5 + $0x30] sm:$0xff]  ;;  %v11057_v51 = vld [vmem:[%s10857_s5 + $0x38] sm:$0xff] }
  0x36   :  { %10268 = vrcp.f32 %v10845_v12  ;;  %v154_v49 = vsel %vm135_vm0, %v130_v48, 0.0  ;;  %v157_v52 = vsel %vm135_vm0, %v11057_v51, 0.0  ;;  %v10138_v56 = vld [vmem:[%s10882_s25 + $0x8] sm:$0xff]  ;;  %v10137_v61 = vld [vmem:[%s10882_s25] sm:$0xff]  ;;  %s13833_s0 = sld [smem:[#allocation5_spill]] }
  0x37   :  { %v10140_v57 = vld [vmem:[%s10887_s29 + $0x8] sm:$0xff]  ;;  %379 = vmatpush.bf16.msra.mxu0 %v10138_v56  ;;  %v10139_v62 = vld [vmem:[%s10887_s29] sm:$0xff] }
  0x38   :  { %v10142_v58 = vld [vmem:[%s10892_s3 + $0x8] sm:$0xff]  ;;  %424 = vmatpush.bf16.msra.mxu1 %v10140_v57  ;;  %v10141_v63 = vld [vmem:[%s10892_s3] sm:$0xff] }
  0x39   :  { %469 = vmatpush.bf16.msra.mxu2 %v10142_v58  ;;  %v11112_v56 = vld [vmem:[%s10877_s21] ss:$0 sm:$0xff]  ;;  %s13836_s21 = sld [smem:[#allocation11_spill]] }
  0x3b   :  { %152 = vadd.xlane.f32.xlu2 %v151_v9  ;;  %146 = vadd.xlane.f32.xlu1 %v145_v10 }
  0x3c   :  { %140 = vadd.xlane.f32.xlu0 %v139_v11  ;;  %v10269_v13 = vpop.eup %10268  ;;  %380 = vmatpush.bf16.msra.mxu0 %v10137_v61 }
  0x3d   :  { %v161_v14 = vmul.f32 32.0, %v10269_v13  ;;  %vm165_vm1 = vweird.f32 %v10269_v13  ;;  %425 = vmatpush.bf16.msra.mxu1 %v10139_v62  ;;  %470 = vmatpush.bf16.msra.mxu2 %v10141_v63 }
  0x3f   :  { %v162_v15 = vsub.f32 1.0, %v161_v14 }
  0x41   :  { %v163_v16 = vmul.f32 %v10269_v13, %v162_v15 }
  0x43   :  { %v164_v17 = vadd.f32 %v10269_v13, %v163_v16 }
  0x45   :  { %v11016_v18 = vsel %vm165_vm1, %v10269_v13, %v164_v17 }
  0xa6   :  { %v150_v19 = vpop.xlane.xlu2 %149  ;;  %v144_v20 = vpop.xlane.xlu1 %143 }
  0xa7   :  { %v169_v21 = vmul.f32 %v11016_v18, %v144_v20  ;;  %v138_v22 = vpop.xlane.xlu0 %137  ;;  %v171_v35 = vmul.f32 %v11016_v18, %v150_v19 }
  0xa8   :  { %v167_v23 = vmul.f32 %v11016_v18, %v138_v22 }
  0xa9   :  { %v11020_v24 = vsub.f32 %v126_v1, %v169_v21  ;;  %v11044_v42 = vsub.f32 %v128_v0, %v171_v35 }
  0xaa   :  { %v11022_v25 = vsub.f32 %v124_v2, %v167_v23 }
  0xab   :  { %v185_v26 = vmul.f32 %v11020_v24, %v11020_v24  ;;  %v187_v47 = vmul.f32 %v11044_v42, %v11044_v42 }
  0xac   :  { %v183_v27 = vmul.f32 %v11022_v25, %v11022_v25 }
  0xad   :  { %v197_v28 = vsel %vm135_vm0, %v185_v26, 0.0  ;;  %v203_v50 = vsel %vm135_vm0, %v187_v47, 0.0 }
  0xae   :  { %v153_v29 = vpop.xlane.xlu2 %152  ;;  %198 = vadd.xlane.f32.xlu2 %v197_v28  ;;  %v147_v30 = vpop.xlane.xlu1 %146  ;;  %v191_v31 = vsel %vm135_vm0, %v183_v27, 0.0 }
  0xaf   :  { %v172_v32 = vmul.f32 %v11016_v18, %v153_v29  ;;  %v170_v33 = vmul.f32 %v11016_v18, %v147_v30  ;;  %192 = vadd.xlane.f32.xlu0 %v191_v31  ;;  %v141_v34 = vpop.xlane.xlu0 %140 }
  0xb0   :  { %v168_v36 = vmul.f32 %v11016_v18, %v141_v34 }
  0xb1   :  { %v11034_v37 = vsub.f32 %v129_v6, %v172_v32  ;;  %v11036_v38 = vsub.f32 %v127_v7, %v170_v33 }
  0xb2   :  { %v11038_v39 = vsub.f32 %v125_v8, %v168_v36 }
  0xb3   :  { %v188_v40 = vmul.f32 %v11034_v37, %v11034_v37  ;;  %v186_v41 = vmul.f32 %v11036_v38, %v11036_v38 }
  0xb4   :  { %v184_v43 = vmul.f32 %v11038_v39, %v11038_v39 }
  0xb5   :  { %v206_v44 = vsel %vm135_vm0, %v188_v40, 0.0  ;;  %v200_v45 = vsel %vm135_vm0, %v186_v41, 0.0 }
  0xb6   :  { %207 = vadd.xlane.f32.xlu2 %v206_v44  ;;  %v194_v46 = vsel %vm135_vm0, %v184_v43, 0.0 }
  0xb7   :  { %201 = vadd.xlane.f32.xlu0 %v200_v45  ;;  %195 = vadd.xlane.f32.xlu1 %v194_v46  ;;  %v11102_v46 = vld [vmem:[%s10872_s17] ss:$0 sm:$0xff]  ;;  %s13835_s17 = sld [smem:[#allocation10_spill]] }
  0xbf   :  { %155 = vadd.xlane.f32.xlu0 %v154_v49  ;;  %204 = vadd.xlane.f32.xlu1 %v203_v50 }
  0xc7   :  { %158 = vadd.xlane.f32.xlu1 %v157_v52 }
 0x121   :  { %v199_v53 = vpop.xlane.xlu2 %198 }
 0x122   :  { %v193_v54 = vpop.xlane.xlu0 %192  ;;  %v217_v59 = vmul.f32 %v199_v53, %v11016_v18 }
 0x123   :  { %v215_v55 = vmul.f32 %v193_v54, %v11016_v18 }
 0x124   :  { %v11069_v0 = vadd.f32 1e-05, %v217_v59 }
 0x125   :  { %v223_v60 = vadd.f32 1e-05, %v215_v55 }
 0x126   :  { %vm257_vm10 = vweird.f32 %v11069_v0 }
 0x127   :  { %10270 = vrsqrt.f32 %v223_v60  ;;  %vm237_vm3 = vweird.f32 %v223_v60 }
 0x128   :  { %10272 = vrsqrt.f32 %v11069_v0 }
 0x129   :  { %v208_v10 = vpop.xlane.xlu2 %207 }
 0x12a   :  { %v196_v1 = vpop.xlane.xlu1 %195  ;;  %v202_v2 = vpop.xlane.xlu0 %201  ;;  %v220_v21 = vmul.f32 %v208_v10, %v11016_v18 }
 0x12b   :  { %v216_v3 = vmul.f32 %v196_v1, %v11016_v18  ;;  %v218_v4 = vmul.f32 %v202_v2, %v11016_v18 }
 0x12c   :  { %v11092_v31 = vadd.f32 1e-05, %v220_v21 }
 0x12d   :  { %v10271_v5 = vpop.eup %10270  ;;  %v224_v6 = vadd.f32 1e-05, %v216_v3  ;;  %v11074_v7 = vadd.f32 1e-05, %v218_v4 }
 0x12e   :  { %v232_v8 = vmul.f32 %v10271_v5, %v223_v60  ;;  %v11077_v11 = vpop.eup %10272  ;;  %vm238_vm2 = vweird.f32 %v10271_v5  ;;  %vm287_vm1 = vweird.f32 %v11092_v31 }
 0x12f   :  { %10274 = vrsqrt.f32 %v224_v6  ;;  %v252_v20 = vmul.f32 %v11077_v11, %v11069_v0  ;;  %vm239_vm4 = vmor %vm237_vm3, %vm238_vm2  ;;  %vm247_vm6 = vweird.f32 %v224_v6  ;;  %vm267_vm8 = vweird.f32 %v11074_v7 }
 0x130   :  { %v233_v9 = vmul.f32 %v10271_v5, %v232_v8  ;;  %10276 = vrsqrt.f32 %v11074_v7  ;;  %vm258_vm11 = vweird.f32 %v11077_v11 }
 0x131   :  { %v253_v33 = vmul.f32 %v11077_v11, %v252_v20  ;;  %vm259_vm13 = vmor %vm257_vm10, %vm258_vm11 }
 0x132   :  { %v234_v12 = vmul.f32 0.5, %v233_v9  ;;  %v205_v13 = vpop.xlane.xlu1 %204  ;;  %v156_v14 = vpop.xlane.xlu0 %155 }
 0x133   :  { %v219_v15 = vmul.f32 %v205_v13, %v11016_v18  ;;  %v173_v16 = vmul.f32 %v11016_v18, %v156_v14  ;;  %v254_v49 = vmul.f32 0.5, %v253_v33 }
 0x134   :  { %v235_v17 = vsub.f32 1.5, %v234_v12 }
 0x135   :  { %v10275_v19 = vpop.eup %10274  ;;  %v11086_v27 = vsub.f32 %v130_v48, %v173_v16  ;;  %v11090_v29 = vadd.f32 1e-05, %v219_v15  ;;  %v255_v58 = vsub.f32 1.5, %v254_v49 }
 0x136   :  { %v11084_v22 = vpop.eup %10276  ;;  %v236_v23 = vmul.f32 %v10271_v5, %v235_v17  ;;  %v242_v26 = vmul.f32 %v10275_v19, %v224_v6  ;;  %vm248_vm5 = vweird.f32 %v10275_v19 }
 0x137   :  { %v262_v28 = vmul.f32 %v11084_v22, %v11074_v7  ;;  %v189_v40 = vmul.f32 %v11086_v27, %v11086_v27  ;;  %10278 = vrsqrt.f32 %v11090_v29  ;;  %vm249_vm7 = vmor %vm247_vm6, %vm248_vm5  ;;  %vm268_vm9 = vweird.f32 %v11084_v22 }
 0x138   :  { %v243_v30 = vmul.f32 %v10275_v19, %v242_v26  ;;  %v240_v34 = vsel %vm239_vm4, %v10271_v5, %v236_v23  ;;  %10280 = vrsqrt.f32 %v11092_v31  ;;  %vm269_vm12 = vmor %vm267_vm8, %vm268_vm9  ;;  %v256_v1 = vmul.f32 %v11077_v11, %v255_v58 }
 0x139   :  { %v263_v32 = vmul.f32 %v11084_v22, %v262_v28  ;;  %v209_v45 = vsel %vm135_vm0, %v189_v40, 0.0  ;;  %v311_v47 = vmul.f32 %v240_v34, %v11022_v25  ;;  %vm277_vm14 = vweird.f32 %v11090_v29 }
 0x13a   :  { %v244_v35 = vmul.f32 0.5, %v243_v30  ;;  %v159_v36 = vpop.xlane.xlu1 %158  ;;  %210 = vadd.xlane.f32.xlu2 %v209_v45  ;;  %v260_v5 = vsel %vm259_vm13, %v11077_v11, %v256_v1  ;;  %vm516_vm8 = vcmask 64512  }
 0x13b   :  { %v174_v41 = vmul.f32 %v11016_v18, %v159_v36  ;;  %v264_v44 = vmul.f32 0.5, %v263_v32  ;;  %v322_v25 = vmul.f32 %v11102_v46, %v311_v47  ;;  %v313_v9 = vmul.f32 %v260_v5, %v11020_v24 }
 0x13c   :  { %v245_v43 = vsub.f32 1.5, %v244_v35 }
 0x13d   :  { %v11107_v48 = vsub.f32 %v11057_v51, %v174_v41  ;;  %v265_v53 = vsub.f32 1.5, %v264_v44  ;;  %v10279_v55 = vpop.eup %10278  ;;  %v324_v14 = vmul.f32 %v11102_v46, %v313_v9 }
 0x13e   :  { %v246_v50 = vmul.f32 %v10275_v19, %v245_v43  ;;  %v10281_v59 = vpop.eup %10280  ;;  %v272_v62 = vmul.f32 %v10279_v55, %v11090_v29  ;;  %vm278_vm15 = vweird.f32 %v10279_v55 }
 0x13f   :  { %v190_v54 = vmul.f32 %v11107_v48, %v11107_v48  ;;  %v266_v61 = vmul.f32 %v11084_v22, %v265_v53  ;;  %v282_v2 = vmul.f32 %v10281_v59, %v11092_v31  ;;  %vm288_vm2 = vweird.f32 %v10281_v59  ;;  %vm279_vm3 = vmor %vm277_vm14, %vm278_vm15 }
 0x140   :  { %v250_v52 = vsel %vm249_vm7, %v10275_v19, %v246_v50  ;;  %v273_v4 = vmul.f32 %v10279_v55, %v272_v62  ;;  %vm289_vm4 = vmor %vm287_vm1, %vm288_vm2 }
 0x141   :  { %v312_v57 = vmul.f32 %v250_v52, %v11038_v39  ;;  %v212_v51 = vsel %vm135_vm0, %v190_v54, 0.0  ;;  %v333_v39 = vadd.f32 %v11112_v56, %v322_v25  ;;  %v270_v0 = vsel %vm269_vm12, %v11084_v22, %v266_v61 }
 0x142   :  { %213 = vadd.xlane.f32.xlu0 %v212_v51  ;;  %v283_v6 = vmul.f32 %v10281_v59, %v282_v2  ;;  %v314_v7 = vmul.f32 %v270_v0, %v11036_v38  ;;  %v274_v8 = vmul.f32 0.5, %v273_v4  ;;  %v335_v38 = vadd.f32 %v11112_v56, %v324_v14 }
 0x143   :  { %v323_v60 = vmul.f32 %v11102_v46, %v312_v57  ;;  %vm776_vm12 = vcmask 1043456  }
 0x144   :  { %v284_v10 = vmul.f32 0.5, %v283_v6  ;;  %v325_v12 = vmul.f32 %v11102_v46, %v314_v7  ;;  %v275_v13 = vsub.f32 1.5, %v274_v8 }
 0x145   :  { %v334_v63 = vadd.f32 %v11112_v56, %v323_v60 }
 0x146   :  { %v285_v15 = vsub.f32 1.5, %v284_v10  ;;  %v336_v11 = vadd.f32 %v11112_v56, %v325_v12  ;;  %v276_v16 = vmul.f32 %v10279_v55, %v275_v13 }
 0x147   :  { %v11128_v3 = vpack.c.bf16 %v334_v63, %v333_v39 }
 0x148   :  { %v286_v24 = vmul.f32 %v10281_v59, %v285_v15  ;;  %v11146_v17 = vpack.c.bf16 %v336_v11, %v335_v38  ;;  %v280_v19 = vsel %vm279_vm3, %v10279_v55, %v276_v16 }
 0x149   :  { %9451 = vmatmul.msk.bf16.vlgmr.msra.gmra.mxu0 %vm135_vm0, %v11128_v3  ;;  %9463 = vmatmul.msk.bf16.vlgmr.msra.gmra.mxu1 %vm135_vm0, %v11128_v3  ;;  %v315_v21 = vmul.f32 %v280_v19, %v11044_v42 }
 0x14a   :  { %9475 = vmatmul.msk.bf16.vlgmr.msra.gmra.mxu2 %vm135_vm0, %v11128_v3  ;;  %v290_v20 = vsel %vm289_vm4, %v10281_v59, %v286_v24 }
 0x14b   :  { %v316_v22 = vmul.f32 %v290_v20, %v11034_v37  ;;  %v326_v23 = vmul.f32 %v11102_v46, %v315_v21 }
 0x14d   :  { %v327_v26 = vmul.f32 %v11102_v46, %v316_v22  ;;  %v337_v28 = vadd.f32 %v11112_v56, %v326_v23 }
 0x14f   :  { %v338_v29 = vadd.f32 %v11112_v56, %v327_v26 }
 0x151   :  { %v11160_v30 = vpack.c.bf16 %v338_v29, %v337_v28 }
 0x159   :  { %9452 = vmatmul.msk.bf16.gmra.mxu0 %vm135_vm0, %v11146_v17  ;;  %9464 = vmatmul.msk.bf16.gmra.mxu1 %vm135_vm0, %v11146_v17 }
 0x15a   :  { %9476 = vmatmul.msk.bf16.gmra.mxu2 %vm135_vm0, %v11146_v17 }
 0x169   :  { %9453 = vmatmul.msk.bf16.gmra.mxu0 %vm135_vm0, %v11160_v30  ;;  %9465 = vmatmul.msk.bf16.gmra.mxu1 %vm135_vm0, %v11160_v30 }
 0x16a   :  { %9477 = vmatmul.msk.bf16.gmra.mxu2 %vm135_vm0, %v11160_v30 }
 0x1ad   :  { %v211_v37 = vpop.xlane.xlu2 %210 }
 0x1ae   :  { %v221_v42 = vmul.f32 %v211_v37, %v11016_v18 }
 0x1b0   :  { %v229_v31 = vadd.f32 1e-05, %v221_v42 }
 0x1b2   :  { %10282 = vrsqrt.f32 %v229_v31  ;;  %vm297_vm5 = vweird.f32 %v229_v31 }
 0x1b5   :  { %v214_v32 = vpop.xlane.xlu0 %213 }
 0x1b6   :  { %v222_v33 = vmul.f32 %v214_v32, %v11016_v18 }
 0x1b8   :  { %v230_v34 = vadd.f32 1e-05, %v222_v33  ;;  %v10283_v35 = vpop.eup %10282 }
 0x1b9   :  { %v292_v36 = vmul.f32 %v10283_v35, %v229_v31  ;;  %vm298_vm6 = vweird.f32 %v10283_v35 }
 0x1ba   :  { %10284 = vrsqrt.f32 %v230_v34  ;;  %vm299_vm7 = vmor %vm297_vm5, %vm298_vm6  ;;  %vm307_vm9 = vweird.f32 %v230_v34 }
 0x1bb   :  { %v293_v40 = vmul.f32 %v10283_v35, %v292_v36 }
 0x1bd   :  { %v294_v41 = vmul.f32 0.5, %v293_v40 }
 0x1bf   :  { %v295_v44 = vsub.f32 1.5, %v294_v41 }
 0x1c0   :  { %v10285_v43 = vpop.eup %10284 }
 0x1c1   :  { %v302_v45 = vmul.f32 %v10285_v43, %v230_v34  ;;  %v296_v47 = vmul.f32 %v10283_v35, %v295_v44  ;;  %vm308_vm10 = vweird.f32 %v10285_v43 }
 0x1c2   :  { %vm309_vm11 = vmor %vm307_vm9, %vm308_vm10 }
 0x1c3   :  { %v303_v49 = vmul.f32 %v10285_v43, %v302_v45  ;;  %v300_v50 = vsel %vm299_vm7, %v10283_v35, %v296_v47 }
 0x1c4   :  { %v317_v57 = vmul.f32 %v300_v50, %v11086_v27 }
 0x1c5   :  { %v304_v52 = vmul.f32 0.5, %v303_v49 }
 0x1c6   :  { %v382_v53 = vpop.f32.mrf.mxu0  ;;  %v427_v54 = vpop.f32.mrf.mxu1  ;;  %v328_v60 = vmul.f32 %v11102_v46, %v317_v57 }
 0x1c7   :  { %v500_v55 = vpack.c.bf16 %v427_v54, %v427_v54  ;;  %v305_v25 = vsub.f32 1.5, %v304_v52  ;;  %v492_v2 = vpack.c.bf16 %v382_v53, %v382_v53 }
 0x1c8   :  { %v339_v4 = vadd.f32 %v11112_v56, %v328_v60 }
 0x1c9   :  { %v521_v58 = vsel %vm516_vm8, %v500_v55, 0  ;;  %v306_v51 = vmul.f32 %v10285_v43, %v305_v25 }
 0x1ca   :  { %530 = vmatpush.bf16.xpose.msra.mxu3 %v521_v58 }
 0x1cb   :  { %v310_v59 = vsel %vm309_vm11, %v10285_v43, %v306_v51 }
 0x1cc   :  { %v318_v61 = vmul.f32 %v310_v59, %v11107_v48 }
 0x1cd   :  { %v472_v62 = vpop.f32.mrf.mxu2 }
 0x1ce   :  { %v384_v39 = vpop.f32.mrf.mxu0  ;;  %v429_v63 = vpop.f32.mrf.mxu1  ;;  %v329_v1 = vmul.f32 %v11102_v46, %v318_v61  ;;  %v508_v16 = vpack.c.bf16 %v472_v62, %v472_v62 }
 0x1cf   :  { %v501_v0 = vpack.c.bf16 %v429_v63, %v429_v63  ;;  %v493_v12 = vpack.c.bf16 %v384_v39, %v384_v39 }
 0x1d0   :  { %v340_v27 = vadd.f32 %v11112_v56, %v329_v1  ;;  %v778_v20 = vsel %vm776_vm12, %v508_v16, 0 }
 0x1d1   :  { %9479 = vmatmul.msk.bf16.vlgmr.msra.gmra.mxu3 %vm516_vm8, %v492_v2  ;;  %v540_v5 = vsel %vm516_vm8, %v501_v0, 0 }
 0x1d2   :  { %549 = vmatpush.bf16.xpose.msrb.mxu3 %v540_v5  ;;  %v11179_v6 = vpack.c.bf16 %v340_v27, %v339_v4 }
 0x1d4   :  { %9454 = vmatmul.msk.bf16.gmra.mxu0 %vm135_vm0, %v11179_v6  ;;  %9466 = vmatmul.msk.bf16.gmra.mxu1 %vm135_vm0, %v11179_v6 }
 0x1d5   :  { %v474_v46 = vpop.f32.mrf.mxu2  ;;  %9478 = vmatmul.msk.bf16.gmra.mxu2 %vm135_vm0, %v11179_v6 }
 0x1d6   :  { %v387_v48 = vpop.f32.mrf.mxu0  ;;  %v432_v7 = vpop.f32.mrf.mxu1  ;;  %v509_v23 = vpack.c.bf16 %v474_v46, %v474_v46 }
 0x1d7   :  { %v502_v56 = vpack.c.bf16 %v432_v7, %v432_v7  ;;  %v494_v29 = vpack.c.bf16 %v387_v48, %v387_v48 }
 0x1d8   :  { %v797_v33 = vsel %vm776_vm12, %v509_v23, 0 }
 0x1d9   :  { %v559_v8 = vsel %vm516_vm8, %v502_v56, 0 }
 0x1da   :  { %568 = vmatpush.bf16.xpose.msra.mxu3 %v559_v8 }
 0x1dd   :  { %v477_v9 = vpop.f32.mrf.mxu2 }
 0x1de   :  { %v434_v10 = vpop.f32.mrf.mxu1  ;;  %v389_v14 = vpop.f32.mrf.mxu0  ;;  %v510_v44 = vpack.c.bf16 %v477_v9, %v477_v9 }
 0x1df   :  { %v503_v13 = vpack.c.bf16 %v434_v10, %v434_v10  ;;  %v495_v43 = vpack.c.bf16 %v389_v14, %v389_v14 }
 0x1e0   :  { %v816_v53 = vsel %vm776_vm12, %v510_v44, 0 }
 0x1e1   :  { %9480 = vmatmul.msk.bf16.vlgmr.msrb.gmra.mxu3 %vm516_vm8, %v493_v12  ;;  %v578_v15 = vsel %vm516_vm8, %v503_v13, 0 }
 0x1e2   :  { %587 = vmatpush.bf16.xpose.msrb.mxu3 %v578_v15 }
 0x1e5   :  { %v479_v11 = vpop.f32.mrf.mxu2 }
 0x1e6   :  { %v437_v38 = vpop.f32.mrf.mxu1  ;;  %v392_v21 = vpop.f32.mrf.mxu0  ;;  %v511_v57 = vpack.c.bf16 %v479_v11, %v479_v11 }
 0x1e7   :  { %v504_v24 = vpack.c.bf16 %v437_v38, %v437_v38  ;;  %v496_v37 = vpack.c.bf16 %v392_v21, %v392_v21 }
 0x1e8   :  { %v835_v63 = vsel %vm776_vm12, %v511_v57, 0 }
 0x1e9   :  { %v597_v19 = vsel %vm516_vm8, %v504_v24, 0 }
 0x1ea   :  { %606 = vmatpush.bf16.xpose.msrb.mxu0 %v597_v19 }
 0x1ed   :  { %v482_v22 = vpop.f32.mrf.mxu2 }
 0x1ee   :  { %v512_v26 = vpack.c.bf16 %v482_v22, %v482_v22  ;;  %v439_v28 = vpop.f32.mrf.mxu1  ;;  %v394_v34 = vpop.f32.mrf.mxu0 }
 0x1ef   :  { %v505_v42 = vpack.c.bf16 %v439_v28, %v439_v28  ;;  %v497_v40 = vpack.c.bf16 %v394_v34, %v394_v34 }
 0x1f0   :  { %v854_v31 = vsel %vm776_vm12, %v512_v26, 0 }
 0x1f1   :  { %9481 = vmatmul.msk.bf16.vlgmr.msra.gmra.mxu3 %vm516_vm8, %v494_v29  ;;  %9483 = vmatmul.msk.bf16.vlgmr.msrb.gmra.mxu0 %vm516_vm8, %v496_v37  ;;  %v616_v32 = vsel %vm516_vm8, %v505_v42, 0 }
 0x1f2   :  { %787 = vmatpush.bf16.msra.mxu0 %v778_v20  ;;  %625 = vmatpush.bf16.xpose.msrb.mxu1 %v616_v32 }
 0x1f5   :  { %v484_v35 = vpop.f32.mrf.mxu2 }
 0x1f6   :  { %863 = vmatpush.bf16.msrb.mxu0 %v854_v31  ;;  %v513_v36 = vpack.c.bf16 %v484_v35, %v484_v35 }
 0x1f8   :  { %v873_v41 = vsel %vm776_vm12, %v513_v36, 0 }
 0x1f9   :  { %9484 = vmatmul.msk.bf16.vlgmr.msrb.gmra.mxu1 %vm516_vm8, %v497_v40 }
 0x1fa   :  { %806 = vmatpush.bf16.msra.mxu1 %v797_v33 }
 0x1fe   :  { %882 = vmatpush.bf16.msrb.mxu1 %v873_v41 }
 0x201   :  { %9482 = vmatmul.msk.bf16.vlgmr.msrb.gmra.mxu3 %vm516_vm8, %v495_v43 }
 0x251   :  { %v442_v45 = vpop.f32.mrf.mxu1  ;;  %v397_v54 = vpop.f32.mrf.mxu0 }
 0x252   :  { %v506_v47 = vpack.c.bf16 %v442_v45, %v442_v45  ;;  %v498_v59 = vpack.c.bf16 %v397_v54, %v397_v54 }
 0x254   :  { %v532_v49 = vpop.f32.mrf.mxu3  ;;  %v635_v52 = vsel %vm516_vm8, %v506_v47, 0 }
 0x255   :  { %v669_v50 = vmul.f32 0.35355338, %v532_v49  ;;  %644 = vmatpush.bf16.xpose.msrb.mxu2 %v635_v52 }
 0x257   :  { %v677_v55 = vsel %vm516_vm8, %v669_v50, -inf }
 0x258   :  { %678 = vmax.xlane.f32.xlu2 %v677_v55  ;;  %v487_v25 = vpop.f32.mrf.mxu2 }
 0x259   :  { %v514_v58 = vpack.c.bf16 %v487_v25, %v487_v25  ;;  %v444_v51 = vpop.f32.mrf.mxu1  ;;  %v399_v1 = vpop.f32.mrf.mxu0 }
 0x25a   :  { %v507_v60 = vpack.c.bf16 %v444_v51, %v444_v51  ;;  %v499_v4 = vpack.c.bf16 %v399_v1, %v399_v1 }
 0x25b   :  { %v892_v62 = vsel %vm776_vm12, %v514_v58, 0 }
 0x25c   :  { %v534_v61 = vpop.f32.mrf.mxu3  ;;  %9485 = vmatmul.msk.bf16.vlgmr.msrb.gmra.mxu2 %vm516_vm8, %v498_v59  ;;  %v654_v39 = vsel %vm516_vm8, %v507_v60, 0 }
 0x25d   :  { %825 = vmatpush.bf16.msra.mxu2 %v816_v53  ;;  %663 = vmatpush.bf16.xpose.msra.mxu3 %v654_v39 }
 0x260   :  { %v489_v2 = vpop.f32.mrf.mxu2 }
 0x261   :  { %901 = vmatpush.bf16.msrb.mxu2 %v892_v62  ;;  %v515_v0 = vpack.c.bf16 %v489_v2, %v489_v2  ;;  %v10144_v2 = vld [vmem:[%s10882_s25 + $0x18] sm:$0xff] }
 0x263   :  { %v911_v46 = vsel %vm776_vm12, %v515_v0, 0 }
 0x264   :  { %v551_v27 = vpop.f32.mrf.mxu3  ;;  %9486 = vmatmul.msk.bf16.vlgmr.msra.gmra.mxu3 %vm516_vm8, %v499_v4 }
 0x265   :  { %844 = vmatpush.bf16.msrb.mxu3 %v835_v63  ;;  %v670_v5 = vmul.f32 0.35355338, %v551_v27 }
 0x267   :  { %v680_v48 = vsel %vm516_vm8, %v670_v5, -inf }
 0x268   :  { %681 = vmax.xlane.f32.xlu1 %v680_v48 }
 0x269   :  { %920 = vmatpush.bf16.msra.mxu3 %v911_v46 }
 0x26c   :  { %v553_v7 = vpop.f32.mrf.mxu3 }
 0x26e   :  { %v608_v56 = vpop.f32.mrf.mxu0 }
 0x26f   :  { %v673_v8 = vmul.f32 0.35355338, %v608_v56 }
 0x271   :  { %v689_v9 = vsel %vm516_vm8, %v673_v8, -inf }
 0x272   :  { %690 = vmax.xlane.f32.xlu1 %v689_v9  ;;  %v10146_v9 = vld [vmem:[%s10887_s29 + $0x18] sm:$0xff] }
 0x274   :  { %v570_v10 = vpop.f32.mrf.mxu3 }
 0x275   :  { %v671_v58 = vmul.f32 0.35355338, %v570_v10 }
 0x276   :  { %v610_v12 = vpop.f32.mrf.mxu0  ;;  %v627_v13 = vpop.f32.mrf.mxu1 }
 0x277   :  { %v674_v14 = vmul.f32 0.35355338, %v627_v13  ;;  %v683_v51 = vsel %vm516_vm8, %v671_v58, -inf }
 0x279   :  { %v692_v15 = vsel %vm516_vm8, %v674_v14, -inf }
 0x27a   :  { %693 = vmax.xlane.f32.xlu0 %v692_v15  ;;  %v10145_v15 = vld [vmem:[%s10887_s29 + $0x10] sm:$0xff] }
 0x27c   :  { %v572_v11 = vpop.f32.mrf.mxu3 }
 0x27e   :  { %v629_v16 = vpop.f32.mrf.mxu1 }
 0x284   :  { %v589_v38 = vpop.f32.mrf.mxu3 }
 0x285   :  { %v672_v26 = vmul.f32 0.35355338, %v589_v38 }
 0x287   :  { %v686_v42 = vsel %vm516_vm8, %v672_v26, -inf }
 0x28c   :  { %v591_v24 = vpop.f32.mrf.mxu3 }
 0x2cb   :  { %v679_v19 = vpop.xlane.xlu2 %678 }
 0x2cc   :  { %v701_v20 = vsub.f32 %v669_v50, %v679_v19 }
 0x2ce   :  { %v709_v21 = vmul.f32 1.442695, %v701_v20 }
 0x2d0   :  { %10286 = vpow2.f32 %v709_v21 }
 0x2d6   :  { %v10287_v22 = vpop.eup %10286 }
 0x2d7   :  { %v725_v23 = vsel %vm516_vm8, %v10287_v22, 0.0 }
 0x2d8   :  { %726 = vadd.xlane.f32.xlu0 %v725_v23 }
 0x2db   :  { %v682_v28 = vpop.xlane.xlu1 %681 }
 0x2dc   :  { %v702_v29 = vsub.f32 %v670_v5, %v682_v28  ;;  %v10143_v5 = vld [vmem:[%s10882_s25 + $0x10] sm:$0xff] }
 0x2de   :  { %v711_v37 = vmul.f32 1.442695, %v702_v29 }
 0x2df   :  { %v646_v31 = vpop.f32.mrf.mxu2 }
 0x2e0   :  { %10288 = vpow2.f32 %v711_v37  ;;  %687 = vmax.xlane.f32.xlu0 %v686_v42  ;;  %v675_v32 = vmul.f32 0.35355338, %v646_v31 }
 0x2e2   :  { %v695_v40 = vsel %vm516_vm8, %v675_v32, -inf }
 0x2e5   :  { %v691_v33 = vpop.xlane.xlu1 %690 }
 0x2e6   :  { %v10289_v34 = vpop.eup %10288  ;;  %v705_v35 = vsub.f32 %v673_v8, %v691_v33 }
 0x2e7   :  { %v728_v36 = vsel %vm516_vm8, %v10289_v34, 0.0  ;;  %v648_v43 = vpop.f32.mrf.mxu2  ;;  %v665_v44 = vpop.f32.mrf.mxu3 }
 0x2e8   :  { %v717_v41 = vmul.f32 1.442695, %v705_v35  ;;  %729 = vadd.xlane.f32.xlu2 %v728_v36  ;;  %696 = vmax.xlane.f32.xlu0 %v695_v40  ;;  %v676_v54 = vmul.f32 0.35355338, %v665_v44 }
 0x2ea   :  { %10290 = vpow2.f32 %v717_v41  ;;  %v698_v57 = vsel %vm516_vm8, %v676_v54, -inf }
 0x2ed   :  { %v694_v45 = vpop.xlane.xlu0 %693 }
 0x2ee   :  { %v706_v47 = vsub.f32 %v674_v14, %v694_v45 }
 0x2ef   :  { %v667_v52 = vpop.f32.mrf.mxu3 }
 0x2f0   :  { %v10291_v49 = vpop.eup %10290  ;;  %v719_v50 = vmul.f32 1.442695, %v706_v47 }
 0x2f1   :  { %v737_v53 = vsel %vm516_vm8, %v10291_v49, 0.0 }
 0x2f2   :  { %10292 = vpow2.f32 %v719_v50  ;;  %738 = vadd.xlane.f32.xlu2 %v737_v53 }
 0x2f8   :  { %v10293_v55 = vpop.eup %10292 }
 0x2f9   :  { %v740_v25 = vsel %vm516_vm8, %v10293_v55, 0.0 }
 0x2fa   :  { %741 = vadd.xlane.f32.xlu1 %v740_v25  ;;  %699 = vmax.xlane.f32.xlu2 %v698_v57 }
 0x302   :  { %684 = vmax.xlane.f32.xlu1 %v683_v51 }
 0x34b   :  { %v727_v59 = vpop.xlane.xlu0 %726 }
 0x34c   :  { %10294 = vrcp.f32 %v727_v59 }
 0x352   :  { %v10295_v60 = vpop.eup %10294 }
 0x353   :  { %v757_v61 = vmul.f32 %v10295_v60, %v10287_v22  ;;  %v688_v62 = vpop.xlane.xlu0 %687 }
 0x354   :  { %v704_v39 = vsub.f32 %v672_v26, %v688_v62 }
 0x355   :  { %v765_v63 = vpack.c.bf16 %v757_v61, %v757_v61  ;;  %v10148_v61 = vld [vmem:[%s10892_s3 + $0x18] sm:$0xff] }
 0x356   :  { %v715_v1 = vmul.f32 1.442695, %v704_v39 }
 0x357   :  { %9487 = vmatmul.msk.bf16.vlgmr.msra.gmra.mxu0 %vm516_vm8, %v765_v63 }
 0x358   :  { %10296 = vpow2.f32 %v715_v1  ;;  %954 = vmatpush.bf16.msra.mxu0 %v10144_v2  ;;  %v10147_v1 = vld [vmem:[%s10892_s3 + $0x10] sm:$0xff] }
 0x35b   :  { %v730_v0 = vpop.xlane.xlu2 %729  ;;  %v697_v4 = vpop.xlane.xlu0 %696 }
 0x35c   :  { %10298 = vrcp.f32 %v730_v0  ;;  %v707_v27 = vsub.f32 %v675_v32, %v697_v4  ;;  %955 = vmatpush.bf16.msra.mxu0 %v10143_v5 }
 0x35e   :  { %v10297_v46 = vpop.eup %10296  ;;  %v721_v48 = vmul.f32 1.442695, %v707_v27 }
 0x35f   :  { %v734_v7 = vsel %vm516_vm8, %v10297_v46, 0.0 }
 0x360   :  { %10300 = vpow2.f32 %v721_v48  ;;  %735 = vadd.xlane.f32.xlu1 %v734_v7 }
 0x362   :  { %v10299_v56 = vpop.eup %10298 }
 0x363   :  { %v758_v8 = vmul.f32 %v10299_v56, %v10289_v34 }
 0x365   :  { %v766_v10 = vpack.c.bf16 %v758_v8, %v758_v8  ;;  %v739_v12 = vpop.xlane.xlu2 %738 }
 0x366   :  { %v11225_v13 = vpop.eup %10300  ;;  %10302 = vrcp.f32 %v739_v12 }
 0x367   :  { %9488 = vmatmul.msk.bf16.vlgmr.msra.gmra.mxu1 %vm516_vm8, %v766_v10  ;;  %v743_v14 = vsel %vm516_vm8, %v11225_v13, 0.0 }
 0x368   :  { %744 = vadd.xlane.f32.xlu1 %v743_v14  ;;  %1000 = vmatpush.bf16.msra.mxu1 %v10146_v9 }
 0x36c   :  { %v10303_v11 = vpop.eup %10302  ;;  %1001 = vmatpush.bf16.msra.mxu1 %v10145_v15 }
 0x36d   :  { %v761_v16 = vmul.f32 %v10303_v11, %v10291_v49  ;;  %v742_v38 = vpop.xlane.xlu1 %741  ;;  %v700_v24 = vpop.xlane.xlu2 %699 }
 0x36e   :  { %10304 = vrcp.f32 %v742_v38  ;;  %v708_v19 = vsub.f32 %v676_v54, %v700_v24 }
 0x36f   :  { %v769_v20 = vpack.c.bf16 %v761_v16, %v761_v16 }
 0x370   :  { %v723_v21 = vmul.f32 1.442695, %v708_v19 }
 0x371   :  { %9491 = vmatmul.msk.bf16.vlgmr.msrb.gmra.mxu0 %vm516_vm8, %v769_v20 }
 0x372   :  { %10306 = vpow2.f32 %v723_v21 }
 0x374   :  { %v10305_v22 = vpop.eup %10304 }
 0x375   :  { %v762_v23 = vmul.f32 %v10305_v22, %v10293_v55  ;;  %v685_v26 = vpop.xlane.xlu1 %684 }
 0x376   :  { %v703_v28 = vsub.f32 %v671_v58, %v685_v26 }
 0x377   :  { %v770_v29 = vpack.c.bf16 %v762_v23, %v762_v23 }
 0x378   :  { %v10307_v37 = vpop.eup %10306  ;;  %v713_v42 = vmul.f32 1.442695, %v703_v28 }
 0x379   :  { %9492 = vmatmul.msk.bf16.vlgmr.msrb.gmra.mxu1 %vm516_vm8, %v770_v29  ;;  %v746_v31 = vsel %vm516_vm8, %v10307_v37, 0.0 }
 0x37a   :  { %10308 = vpow2.f32 %v713_v42  ;;  %747 = vadd.xlane.f32.xlu0 %v746_v31 }
 0x380   :  { %v10309_v32 = vpop.eup %10308 }
 0x381   :  { %9507 = vmatmul.msk.bf16.vlgmr.msra.gmra.mxu0 %vm135_vm0, %v11128_v3  ;;  %v731_v33 = vsel %vm516_vm8, %v10309_v32, 0.0 }
 0x382   :  { %732 = vadd.xlane.f32.xlu2 %v731_v33 }
 0x389   :  { %9523 = vmatmul.msk.bf16.vlgmr.msra.gmra.mxu1 %vm135_vm0, %v11128_v3 }
 0x391   :  { %9508 = vmatmul.msk.bf16.gmra.mxu0 %vm135_vm0, %v11146_v17 }
 0x399   :  { %9524 = vmatmul.msk.bf16.gmra.mxu1 %vm135_vm0, %v11146_v17 }
 0x3a1   :  { %9509 = vmatmul.msk.bf16.gmra.mxu0 %vm135_vm0, %v11160_v30 }
 0x3a9   :  { %9525 = vmatmul.msk.bf16.gmra.mxu1 %vm135_vm0, %v11160_v30 }
 0x3b1   :  { %9510 = vmatmul.msk.bf16.gmra.mxu0 %vm135_vm0, %v11179_v6 }
 0x3b9   :  { %9526 = vmatmul.msk.bf16.gmra.mxu1 %vm135_vm0, %v11179_v6 }
 0x3d3   :  { %v736_v34 = vpop.xlane.xlu1 %735 }
 0x3d4   :  { %10310 = vrcp.f32 %v736_v34  ;;  %v11251_v35 = vpop.f32.mrf.mxu0 }
 0x3da   :  { %v10311_v36 = vpop.eup %10310 }
 0x3db   :  { %v760_v40 = vmul.f32 %v10311_v36, %v10297_v46  ;;  %v745_v62 = vpop.xlane.xlu1 %744 }
 0x3dc   :  { %v791_v41 = vpop.f32.mrf.mxu0 }
 0x3dd   :  { %v768_v43 = vpack.c.bf16 %v760_v40, %v760_v40 }
 0x3df   :  { %9490 = vmatmul.msk.bf16.vlgmr.msrb.gmra.mxu3 %vm516_vm8, %v768_v43 }
 0x3e4   :  { %v11254_v44 = vpop.f32.mrf.mxu1 }
 0x3e5   :  { %v926_v45 = vpack.c.bf16 %v11254_v44, %v11251_v35 }
 0x3ec   :  { %v810_v47 = vpop.f32.mrf.mxu1 }
 0x3ed   :  { %v748_v49 = vpop.xlane.xlu0 %747 }
 0x3ee   :  { %10312 = vrcp.f32 %v748_v49  ;;  %v11258_v50 = vpop.f32.mrf.mxu0 }
 0x3f4   :  { %v10313_v52 = vpop.eup %10312 }
 0x3f5   :  { %v764_v53 = vmul.f32 %v10313_v52, %v10307_v37  ;;  %v733_v54 = vpop.xlane.xlu2 %732 }
 0x3f6   :  { %10314 = vrcp.f32 %v733_v54  ;;  %v867_v55 = vpop.f32.mrf.mxu0  ;;  %v11260_v25 = vpop.f32.mrf.mxu1 }
 0x3f7   :  { %v772_v57 = vpack.c.bf16 %v764_v53, %v764_v53  ;;  %v928_v58 = vpack.c.bf16 %v11260_v25, %v11258_v50  ;;  %10316 = vrcp.f32 %v745_v62 }
 0x3f9   :  { %9494 = vmatmul.msk.bf16.vlgmr.msra.gmra.mxu3 %vm516_vm8, %v772_v57 }
 0x3fc   :  { %v10315_v51 = vpop.eup %10314 }
 0x3fd   :  { %v759_v59 = vmul.f32 %v10315_v51, %v10309_v32  ;;  %v10317_v4 = vpop.eup %10316 }
 0x3fe   :  { %v886_v60 = vpop.f32.mrf.mxu1  ;;  %v957_v63 = vpop.f32.mrf.mxu0  ;;  %v763_v5 = vmul.f32 %v10317_v4, %v11225_v13 }
 0x3ff   :  { %v767_v39 = vpack.c.bf16 %v759_v59, %v759_v59  ;;  %v1069_v56 = vpack.c.bf16 %v957_v63, %v957_v63 }
 0x400   :  { %v771_v7 = vpack.c.bf16 %v763_v5, %v763_v5 }
 0x401   :  { %9489 = vmatmul.msk.bf16.vlgmr.msra.gmra.mxu2 %vm516_vm8, %v767_v39 }
 0x402   :  { %1046 = vmatpush.bf16.msra.mxu2 %v10148_v61 }
 0x406   :  { %v1003_v2 = vpop.f32.mrf.mxu1  ;;  %1047 = vmatpush.bf16.msra.mxu2 %v10147_v1  ;;  %v959_v46 = vpop.f32.mrf.mxu0 }
 0x407   :  { %v1077_v0 = vpack.c.bf16 %v1003_v2, %v1003_v2  ;;  %v1070_v13 = vpack.c.bf16 %v959_v46, %v959_v46 }
 0x409   :  { %v1097_v27 = vsel %vm516_vm8, %v1077_v0, 0 }
 0x40a   :  { %1106 = vmatpush.bf16.xpose.msrb.mxu3 %v1097_v27 }
 0x40e   :  { %v1005_v48 = vpop.f32.mrf.mxu1  ;;  %v962_v10 = vpop.f32.mrf.mxu0 }
 0x40f   :  { %v1078_v8 = vpack.c.bf16 %v1005_v48, %v1005_v48  ;;  %v1071_v26 = vpack.c.bf16 %v962_v10, %v962_v10 }
 0x411   :  { %9493 = vmatmul.msk.bf16.vlgmr.msrb.gmra.mxu2 %vm516_vm8, %v771_v7  ;;  %9543 = vmatmul.msk.bf16.vlgmr.msrb.gmra.mxu3 %vm516_vm8, %v1069_v56  ;;  %v1116_v9 = vsel %vm516_vm8, %v1078_v8, 0 }
 0x412   :  { %1125 = vmatpush.bf16.xpose.msra.mxu3 %v1116_v9 }
 0x416   :  { %v1008_v12 = vpop.f32.mrf.mxu1  ;;  %v964_v38 = vpop.f32.mrf.mxu0 }
 0x417   :  { %v1079_v14 = vpack.c.bf16 %v1008_v12, %v1008_v12  ;;  %v1072_v40 = vpack.c.bf16 %v964_v38, %v964_v38 }
 0x419   :  { %v1135_v15 = vsel %vm516_vm8, %v1079_v14, 0 }
 0x41a   :  { %1144 = vmatpush.bf16.xpose.msrb.mxu3 %v1135_v15 }
 0x41e   :  { %v1010_v11 = vpop.f32.mrf.mxu1  ;;  %v967_v22 = vpop.f32.mrf.mxu0 }
 0x41f   :  { %v1080_v16 = vpack.c.bf16 %v1010_v11, %v1010_v11  ;;  %v1073_v29 = vpack.c.bf16 %v967_v22, %v967_v22 }
 0x421   :  { %9539 = vmatmul.msk.bf16.vlgmr.msra.gmra.mxu2 %vm135_vm0, %v11128_v3  ;;  %9544 = vmatmul.msk.bf16.vlgmr.msra.gmra.mxu3 %vm516_vm8, %v1070_v13  ;;  %v1154_v24 = vsel %vm516_vm8, %v1080_v16, 0 }
 0x422   :  { %1163 = vmatpush.bf16.xpose.msra.mxu3 %v1154_v24 }
 0x426   :  { %v1013_v19 = vpop.f32.mrf.mxu1  ;;  %v969_v42 = vpop.f32.mrf.mxu0 }
 0x427   :  { %v1081_v20 = vpack.c.bf16 %v1013_v19, %v1013_v19  ;;  %v1074_v32 = vpack.c.bf16 %v969_v42, %v969_v42 }
 0x429   :  { %v1173_v21 = vsel %vm516_vm8, %v1081_v20, 0 }
 0x42a   :  { %1182 = vmatpush.bf16.xpose.msrb.mxu0 %v1173_v21 }
 0x42e   :  { %v1015_v23 = vpop.f32.mrf.mxu1  ;;  %v972_v47 = vpop.f32.mrf.mxu0 }
 0x42f   :  { %v1082_v28 = vpack.c.bf16 %v1015_v23, %v1015_v23  ;;  %v1075_v53 = vpack.c.bf16 %v972_v47, %v972_v47 }
 0x431   :  { %9540 = vmatmul.msk.bf16.gmra.mxu2 %vm135_vm0, %v11146_v17  ;;  %9545 = vmatmul.msk.bf16.vlgmr.msrb.gmra.mxu3 %vm516_vm8, %v1071_v26  ;;  %v1192_v37 = vsel %vm516_vm8, %v1082_v28, 0 }
 0x432   :  { %9547 = vmatmul.msk.bf16.vlgmr.msrb.gmra.mxu0 %vm516_vm8, %v1073_v29  ;;  %1201 = vmatpush.bf16.xpose.msrb.mxu1 %v1192_v37 }
 0x436   :  { %v1018_v31 = vpop.f32.mrf.mxu1  ;;  %v974_v49 = vpop.f32.mrf.mxu0 }
 0x437   :  { %v1083_v33 = vpack.c.bf16 %v1018_v31, %v1018_v31  ;;  %v1076_v52 = vpack.c.bf16 %v974_v49, %v974_v49 }
 0x439   :  { %v1211_v34 = vsel %vm516_vm8, %v1083_v33, 0  ;;  %9548 = vmatmul.msk.bf16.vlgmr.msrb.gmra.mxu1 %vm516_vm8, %v1074_v32 }
 0x43a   :  { %1220 = vmatpush.bf16.xpose.msrb.mxu2 %v1211_v34 }
 0x43e   :  { %v1020_v36 = vpop.f32.mrf.mxu1 }
 0x43f   :  { %v1084_v41 = vpack.c.bf16 %v1020_v36, %v1020_v36 }
 0x441   :  { %9541 = vmatmul.msk.bf16.gmra.mxu2 %vm135_vm0, %v11160_v30  ;;  %9546 = vmatmul.msk.bf16.vlgmr.msra.gmra.mxu3 %vm516_vm8, %v1072_v40  ;;  %v1230_v43 = vsel %vm516_vm8, %v1084_v41, 0 }
 0x442   :  { %1239 = vmatpush.bf16.xpose.msrb.mxu3 %v1230_v43 }
 0x451   :  { %9542 = vmatmul.msk.bf16.gmra.mxu2 %vm135_vm0, %v11179_v6  ;;  %9550 = vmatmul.msk.bf16.vlgmr.msrb.gmra.mxu3 %vm516_vm8, %v1076_v52 }
 0x461   :  { %9549 = vmatmul.msk.bf16.vlgmr.msrb.gmra.mxu2 %vm516_vm8, %v1075_v53 }
 0x462   :  { %v11294_v54 = vpop.f32.mrf.mxu3 }
 0x46a   :  { %v848_v55 = vpop.f32.mrf.mxu3 }
 0x47c   :  { %v11296_v57 = vpop.f32.mrf.mxu3 }
 0x484   :  { %v11298_v51 = vpop.f32.mrf.mxu2  ;;  %v924_v59 = vpop.f32.mrf.mxu3 }
 0x485   :  { %v927_v60 = vpack.c.bf16 %v11294_v54, %v11298_v51 }
 0x48c   :  { %v829_v61 = vpop.f32.mrf.mxu2 }
 0x494   :  { %v11302_v62 = vpop.f32.mrf.mxu2  ;;  %v11304_v39 = vpop.f32.mrf.mxu3 }
 0x495   :  { %v929_v63 = vpack.c.bf16 %v11296_v57, %v11302_v62 }
 0x49c   :  { %v905_v1 = vpop.f32.mrf.mxu2  ;;  %v1110_v2 = vpop.f32.mrf.mxu3 }
 0x4a4   :  { %v1049_v0 = vpop.f32.mrf.mxu2  ;;  %v11308_v4 = vpop.f32.mrf.mxu3 }
 0x4a5   :  { %v1085_v27 = vpack.c.bf16 %v1049_v0, %v1049_v0 }
 0x4a7   :  { %v1353_v5 = vsel %vm776_vm12, %v1085_v27, 0 }
 0x4a8   :  { %1362 = vmatpush.bf16.msra.mxu0 %v1353_v5 }
 0x4ac   :  { %v1051_v46 = vpop.f32.mrf.mxu2  ;;  %v1129_v48 = vpop.f32.mrf.mxu3 }
 0x4ad   :  { %v1086_v7 = vpack.c.bf16 %v1051_v46, %v1051_v46 }
 0x4af   :  { %v11311_v56 = vpop.f32.mrf.mxu0  ;;  %v1372_v8 = vsel %vm776_vm12, %v1086_v7, 0  ;;  %v1245_v7 = vmul.f32 0.35355338, %v11304_v39 }
 0x4b0   :  { %1381 = vmatpush.bf16.msra.mxu1 %v1372_v8 }
 0x4b4   :  { %v1054_v9 = vpop.f32.mrf.mxu2  ;;  %v1146_v10 = vpop.f32.mrf.mxu3 }
 0x4b5   :  { %v1087_v12 = vpack.c.bf16 %v1054_v9, %v1054_v9  ;;  %v1247_v14 = vmul.f32 0.35355338, %v1146_v10 }
 0x4b6   :  { %v11314_v15 = vpop.f32.mrf.mxu1 }
 0x4b7   :  { %v1391_v11 = vsel %vm776_vm12, %v1087_v12, 0  ;;  %v1186_v13 = vpop.f32.mrf.mxu0  ;;  %v1259_v16 = vsel %vm516_vm8, %v1247_v14, -inf  ;;  %v1253_v12 = vsel %vm516_vm8, %v1245_v7, -inf }
 0x4b8   :  { %1400 = vmatpush.bf16.msra.mxu2 %v1391_v11  ;;  %1260 = vmax.xlane.f32.xlu0 %v1259_v16  ;;  %v1249_v11 = vmul.f32 0.35355338, %v11311_v56 }
 0x4ba   :  { %v1265_v16 = vsel %vm516_vm8, %v1249_v11, -inf }
 0x4bc   :  { %v1056_v38 = vpop.f32.mrf.mxu2  ;;  %v1148_v24 = vpop.f32.mrf.mxu3 }
 0x4bd   :  { %v1088_v19 = vpack.c.bf16 %v1056_v38, %v1056_v38 }
 0x4be   :  { %v1205_v20 = vpop.f32.mrf.mxu1 }
 0x4bf   :  { %v1410_v21 = vsel %vm776_vm12, %v1088_v19, 0 }
 0x4c0   :  { %1419 = vmatpush.bf16.msra.mxu3 %v1410_v21  ;;  %v1246_v21 = vmul.f32 0.35355338, %v11308_v4 }
 0x4c4   :  { %v1059_v22 = vpop.f32.mrf.mxu2  ;;  %v1165_v23 = vpop.f32.mrf.mxu3 }
 0x4c5   :  { %v1089_v26 = vpack.c.bf16 %v1059_v22, %v1059_v22  ;;  %v1248_v28 = vmul.f32 0.35355338, %v1165_v23 }
 0x4c7   :  { %v1429_v29 = vsel %vm776_vm12, %v1089_v26, 0  ;;  %v1262_v37 = vsel %vm516_vm8, %v1248_v28, -inf  ;;  %v1256_v26 = vsel %vm516_vm8, %v1246_v21, -inf }
 0x4c8   :  { %1438 = vmatpush.bf16.msrb.mxu0 %v1429_v29  ;;  %1263 = vmax.xlane.f32.xlu2 %v1262_v37  ;;  %v1250_v37 = vmul.f32 0.35355338, %v11314_v15 }
 0x4cc   :  { %v1061_v42 = vpop.f32.mrf.mxu2  ;;  %v1167_v31 = vpop.f32.mrf.mxu3 }
 0x4cd   :  { %v1090_v32 = vpack.c.bf16 %v1061_v42, %v1061_v42  ;;  %v1268_v42 = vsel %vm516_vm8, %v1250_v37, -inf }
 0x4cf   :  { %v1448_v33 = vsel %vm776_vm12, %v1090_v32, 0 }
 0x4d0   :  { %1457 = vmatpush.bf16.msrb.mxu1 %v1448_v33 }
 0x4d4   :  { %v1064_v34 = vpop.f32.mrf.mxu2  ;;  %v1241_v36 = vpop.f32.mrf.mxu3 }
 0x4d5   :  { %v1091_v40 = vpack.c.bf16 %v1064_v34, %v1064_v34  ;;  %v1252_v41 = vmul.f32 0.35355338, %v1241_v36 }
 0x4d7   :  { %v1467_v43 = vsel %vm776_vm12, %v1091_v40, 0  ;;  %v1274_v47 = vsel %vm516_vm8, %v1252_v41, -inf }
 0x4d8   :  { %1476 = vmatpush.bf16.msrb.mxu2 %v1467_v43  ;;  %1275 = vmax.xlane.f32.xlu1 %v1274_v47 }
 0x4dc   :  { %v1066_v49 = vpop.f32.mrf.mxu2  ;;  %v1243_v52 = vpop.f32.mrf.mxu3 }
 0x4dd   :  { %v1092_v53 = vpack.c.bf16 %v1066_v49, %v1066_v49 }
 0x4df   :  { %v1486_v55 = vsel %vm776_vm12, %v1092_v53, 0 }
 0x4e0   :  { %1495 = vmatpush.bf16.msrb.mxu3 %v1486_v55 }
 0x4e4   :  { %v1222_v59 = vpop.f32.mrf.mxu2 }
 0x4e5   :  { %v1251_v61 = vmul.f32 0.35355338, %v1222_v59  ;;  %v10152_v59 = vld [vmem:[%s10887_s29 + $0x28] sm:$0xff] }
 0x4e7   :  { %v1271_v1 = vsel %vm516_vm8, %v1251_v61, -inf }
 0x4e8   :  { %1272 = vmax.xlane.f32.xlu2 %v1271_v1 }
 0x4ec   :  { %v1224_v2 = vpop.f32.mrf.mxu2 }
 0x52b   :  { %v1261_v0 = vpop.xlane.xlu0 %1260 }
 0x52c   :  { %v1279_v27 = vsub.f32 %v1247_v14, %v1261_v0  ;;  %v10151_v0 = vld [vmem:[%s10887_s29 + $0x20] sm:$0xff] }
 0x52e   :  { %v1289_v5 = vmul.f32 1.442695, %v1279_v27 }
 0x530   :  { %10318 = vpow2.f32 %v1289_v5  ;;  %v10150_v5 = vld [vmem:[%s10882_s25 + $0x28] sm:$0xff] }
 0x536   :  { %v10319_v46 = vpop.eup %10318 }
 0x537   :  { %v1307_v48 = vsel %vm516_vm8, %v10319_v46, 0.0 }
 0x538   :  { %1308 = vadd.xlane.f32.xlu1 %v1307_v48  ;;  %v10149_v48 = vld [vmem:[%s10882_s25 + $0x20] sm:$0xff] }
 0x53b   :  { %v1264_v8 = vpop.xlane.xlu2 %1263 }
 0x53c   :  { %v1280_v9 = vsub.f32 %v1248_v28, %v1264_v8 }
 0x53e   :  { %v1291_v10 = vmul.f32 1.442695, %v1280_v9 }
 0x540   :  { %10320 = vpow2.f32 %v1291_v10  ;;  %1254 = vmax.xlane.f32.xlu1 %v1253_v12 }
 0x546   :  { %v10321_v13 = vpop.eup %10320 }
 0x547   :  { %v1310_v14 = vsel %vm516_vm8, %v10321_v13, 0.0 }
 0x548   :  { %1311 = vadd.xlane.f32.xlu0 %v1310_v14  ;;  %1266 = vmax.xlane.f32.xlu1 %v1265_v16 }
 0x54b   :  { %v1276_v38 = vpop.xlane.xlu1 %1275 }
 0x54c   :  { %v1284_v24 = vsub.f32 %v1252_v41, %v1276_v38 }
 0x54e   :  { %v1299_v19 = vmul.f32 1.442695, %v1284_v24 }
 0x550   :  { %10322 = vpow2.f32 %v1299_v19 }
 0x556   :  { %v10323_v39 = vpop.eup %10322 }
 0x557   :  { %v1322_v20 = vsel %vm516_vm8, %v10323_v39, 0.0 }
 0x558   :  { %1323 = vadd.xlane.f32.xlu2 %v1322_v20 }
 0x55b   :  { %v1273_v22 = vpop.xlane.xlu2 %1272 }
 0x55c   :  { %v1283_v23 = vsub.f32 %v1251_v61, %v1273_v22 }
 0x55e   :  { %v1297_v56 = vmul.f32 1.442695, %v1283_v23 }
 0x560   :  { %10324 = vpow2.f32 %v1297_v56  ;;  %1257 = vmax.xlane.f32.xlu2 %v1256_v26 }
 0x566   :  { %v10325_v28 = vpop.eup %10324 }
 0x567   :  { %v1319_v29 = vsel %vm516_vm8, %v10325_v28, 0.0 }
 0x568   :  { %1320 = vadd.xlane.f32.xlu0 %v1319_v29 }
 0x570   :  { %1269 = vmax.xlane.f32.xlu0 %v1268_v42 }
 0x5ab   :  { %v1309_v31 = vpop.xlane.xlu1 %1308 }
 0x5ac   :  { %10326 = vrcp.f32 %v1309_v31 }
 0x5b2   :  { %v10327_v32 = vpop.eup %10326 }
 0x5b3   :  { %v1335_v4 = vmul.f32 %v10327_v32, %v10319_v46  ;;  %v1255_v33 = vpop.xlane.xlu1 %1254 }
 0x5b4   :  { %v1277_v34 = vsub.f32 %v1245_v7, %v1255_v33 }
 0x5b5   :  { %v1343_v36 = vpack.c.bf16 %v1335_v4, %v1335_v4 }
 0x5b6   :  { %v1285_v40 = vmul.f32 1.442695, %v1277_v34 }
 0x5b7   :  { %9553 = vmatmul.msk.bf16.vlgmr.msra.gmra.mxu2 %vm516_vm8, %v1343_v36 }
 0x5b8   :  { %10328 = vpow2.f32 %v1285_v40  ;;  %1618 = vmatpush.bf16.msra.mxu2 %v10150_v5 }
 0x5bb   :  { %v1312_v41 = vpop.xlane.xlu0 %1311  ;;  %v1267_v43 = vpop.xlane.xlu1 %1266 }
 0x5bc   :  { %10330 = vrcp.f32 %v1312_v41  ;;  %v1281_v15 = vsub.f32 %v1249_v11, %v1267_v43  ;;  %1619 = vmatpush.bf16.msra.mxu2 %v10149_v48 }
 0x5be   :  { %v10329_v47 = vpop.eup %10328  ;;  %v1293_v49 = vmul.f32 1.442695, %v1281_v15  ;;  %v930_v15 = vld [vmem:[%s10897_s8] sm:$0xf] }
 0x5bf   :  { %v1301_v52 = vsel %vm516_vm8, %v10329_v47, 0.0 }
 0x5c0   :  { %10332 = vpow2.f32 %v1293_v49  ;;  %1302 = vadd.xlane.f32.xlu2 %v1301_v52  ;;  %v1564_v52 = vsel %vm776_vm12, %v930_v15, 0 }
 0x5c2   :  { %v10331_v53 = vpop.eup %10330 }
 0x5c3   :  { %v1336_v55 = vmul.f32 %v10331_v53, %v10321_v13 }
 0x5c5   :  { %v1344_v61 = vpack.c.bf16 %v1336_v55, %v1336_v55 }
 0x5c6   :  { %v10333_v1 = vpop.eup %10332 }
 0x5c7   :  { %9554 = vmatmul.msk.bf16.vlgmr.msra.gmra.mxu3 %vm516_vm8, %v1344_v61  ;;  %v1313_v2 = vsel %vm516_vm8, %v10333_v1, 0.0 }
 0x5c8   :  { %1314 = vadd.xlane.f32.xlu2 %v1313_v2  ;;  %1664 = vmatpush.bf16.msra.mxu3 %v10152_v59 }
 0x5cb   :  { %v1324_v27 = vpop.xlane.xlu2 %1323 }
 0x5cc   :  { %10334 = vrcp.f32 %v1324_v27  ;;  %1665 = vmatpush.bf16.msra.mxu3 %v10151_v0 }
 0x5d2   :  { %v10335_v46 = vpop.eup %10334 }
 0x5d3   :  { %v1340_v7 = vmul.f32 %v10335_v46, %v10323_v39  ;;  %v1258_v8 = vpop.xlane.xlu2 %1257 }
 0x5d4   :  { %v1278_v9 = vsub.f32 %v1246_v21, %v1258_v8 }
 0x5d5   :  { %v1348_v10 = vpack.c.bf16 %v1340_v7, %v1340_v7 }
 0x5d6   :  { %v1287_v12 = vmul.f32 1.442695, %v1278_v9 }
 0x5d7   :  { %9558 = vmatmul.msk.bf16.vlgmr.msrb.gmra.mxu3 %vm516_vm8, %v1348_v10 }
 0x5d8   :  { %10336 = vpow2.f32 %v1287_v12 }
 0x5db   :  { %v1321_v11 = vpop.xlane.xlu0 %1320 }
 0x5dc   :  { %10338 = vrcp.f32 %v1321_v11 }
 0x5de   :  { %v10337_v13 = vpop.eup %10336 }
 0x5df   :  { %v1304_v14 = vsel %vm516_vm8, %v10337_v13, 0.0 }
 0x5e0   :  { %1305 = vadd.xlane.f32.xlu0 %v1304_v14 }
 0x5e2   :  { %v10339_v16 = vpop.eup %10338 }
 0x5e3   :  { %v1339_v38 = vmul.f32 %v10339_v16, %v10325_v28  ;;  %v1270_v24 = vpop.xlane.xlu0 %1269 }
 0x5e4   :  { %v1282_v19 = vsub.f32 %v1250_v37, %v1270_v24 }
 0x5e5   :  { %v1347_v20 = vpack.c.bf16 %v1339_v38, %v1339_v38 }
 0x5e6   :  { %v1295_v39 = vmul.f32 1.442695, %v1282_v19 }
 0x5e7   :  { %9557 = vmatmul.msk.bf16.vlgmr.msrb.gmra.mxu2 %vm516_vm8, %v1347_v20  ;;  %9596 = vmatmul.msk.bf16.vlgmr.msra.gmra.mxu3 %vm135_vm0, %v11128_v3 }
 0x5e8   :  { %10340 = vpow2.f32 %v1295_v39 }
 0x5ee   :  { %v10341_v21 = vpop.eup %10340 }
 0x5ef   :  { %v1316_v22 = vsel %vm516_vm8, %v10341_v21, 0.0 }
 0x5f0   :  { %1317 = vadd.xlane.f32.xlu1 %v1316_v22 }
 0x5f7   :  { %9580 = vmatmul.msk.bf16.vlgmr.msra.gmra.mxu2 %vm135_vm0, %v11128_v3  ;;  %9597 = vmatmul.msk.bf16.gmra.mxu3 %vm135_vm0, %v11146_v17 }
 0x607   :  { %9581 = vmatmul.msk.bf16.gmra.mxu2 %vm135_vm0, %v11146_v17  ;;  %9598 = vmatmul.msk.bf16.gmra.mxu3 %vm135_vm0, %v11160_v30 }
 0x617   :  { %9582 = vmatmul.msk.bf16.gmra.mxu2 %vm135_vm0, %v11160_v30  ;;  %9599 = vmatmul.msk.bf16.gmra.mxu3 %vm135_vm0, %v11179_v6 }
 0x627   :  { %9583 = vmatmul.msk.bf16.gmra.mxu2 %vm135_vm0, %v11179_v6 }
 0x633   :  { %v1303_v23 = vpop.xlane.xlu2 %1302 }
 0x634   :  { %10342 = vrcp.f32 %v1303_v23 }
 0x63a   :  { %v10343_v56 = vpop.eup %10342  ;;  %v11366_v26 = vpop.f32.mrf.mxu2 }
 0x63b   :  { %v1333_v28 = vmul.f32 %v10343_v56, %v10329_v47  ;;  %v1315_v37 = vpop.xlane.xlu2 %1314 }
 0x63c   :  { %10344 = vrcp.f32 %v1315_v37 }
 0x63d   :  { %v1341_v29 = vpack.c.bf16 %v1333_v28, %v1333_v28 }
 0x63f   :  { %9551 = vmatmul.msk.bf16.vlgmr.msra.gmra.mxu0 %vm516_vm8, %v1341_v29 }
 0x642   :  { %v1404_v42 = vpop.f32.mrf.mxu2  ;;  %v10345_v31 = vpop.eup %10344 }
 0x643   :  { %v1337_v32 = vmul.f32 %v10345_v31, %v10333_v1 }
 0x645   :  { %v1345_v34 = vpack.c.bf16 %v1337_v32, %v1337_v32 }
 0x64a   :  { %v11369_v4 = vpop.f32.mrf.mxu3 }
 0x64b   :  { %v1502_v33 = vpack.c.bf16 %v11369_v4, %v11366_v26 }
 0x64f   :  { %9555 = vmatmul.msk.bf16.vlgmr.msrb.gmra.mxu0 %vm516_vm8, %v1345_v34 }
 0x652   :  { %v1423_v36 = vpop.f32.mrf.mxu3 }
 0x653   :  { %v1306_v40 = vpop.xlane.xlu0 %1305 }
 0x654   :  { %10346 = vrcp.f32 %v1306_v40  ;;  %v9559_v40 = vld [vmem:[%s10897_s8 + $0x4] sm:$0xf] }
 0x65a   :  { %v10347_v41 = vpop.eup %10346  ;;  %v11374_v43 = vpop.f32.mrf.mxu3 }
 0x65b   :  { %v1334_v47 = vmul.f32 %v10347_v41, %v10337_v13  ;;  %v1520_v41 = vsel %vm776_vm12, %v9559_v40, 0 }
 0x65c   :  { %1529 = vmatpush.bf16.msra.mxu0 %v1520_v41 }
 0x65d   :  { %v1342_v49 = vpack.c.bf16 %v1334_v47, %v1334_v47 }
 0x65f   :  { %9552 = vmatmul.msk.bf16.vlgmr.msra.gmra.mxu1 %vm516_vm8, %v1342_v49 }
 0x660   :  { %1573 = vmatpush.bf16.msra.mxu1 %v1564_v52 }
 0x662   :  { %v1499_v53 = vpop.f32.mrf.mxu3 }
 0x663   :  { %v1318_v55 = vpop.xlane.xlu1 %1317 }
 0x664   :  { %10348 = vrcp.f32 %v1318_v55 }
 0x66a   :  { %v10349_v59 = vpop.eup %10348  ;;  %v11379_v61 = vpop.f32.mrf.mxu2 }
 0x66b   :  { %v1667_v1 = vpop.f32.mrf.mxu3  ;;  %v1338_v2 = vmul.f32 %v10349_v59, %v10341_v21  ;;  %v1504_v0 = vpack.c.bf16 %v11374_v43, %v11379_v61 }
 0x66c   :  { %v1741_v27 = vpack.c.bf16 %v1667_v1, %v1667_v1 }
 0x66d   :  { %v1346_v5 = vpack.c.bf16 %v1338_v2, %v1338_v2  ;;  %v10154_v2 = vld [vmem:[%s10892_s3 + $0x28] sm:$0xff] }
 0x66e   :  { %v1761_v46 = vsel %vm516_vm8, %v1741_v27, 0  ;;  %1710 = vmatpush.bf16.msrb.mxu0 %v10154_v2 }
 0x66f   :  { %9556 = vmatmul.msk.bf16.vlgmr.msrb.gmra.mxu1 %vm516_vm8, %v1346_v5  ;;  %v10153_v5 = vld [vmem:[%s10892_s3 + $0x20] sm:$0xff] }
 0x670   :  { %1770 = vmatpush.bf16.xpose.msrb.mxu1 %v1761_v46 }
 0x672   :  { %v1480_v48 = vpop.f32.mrf.mxu2  ;;  %1711 = vmatpush.bf16.msrb.mxu0 %v10153_v5 }
 0x673   :  { %v1669_v7 = vpop.f32.mrf.mxu3 }
 0x674   :  { %v1742_v8 = vpack.c.bf16 %v1669_v7, %v1669_v7 }
 0x676   :  { %v1780_v9 = vsel %vm516_vm8, %v1742_v8, 0 }
 0x677   :  { %1789 = vmatpush.bf16.xpose.msrb.mxu2 %v1780_v9 }
 0x67a   :  { %v1621_v10 = vpop.f32.mrf.mxu2 }
 0x67b   :  { %v1672_v12 = vpop.f32.mrf.mxu3  ;;  %v1733_v36 = vpack.c.bf16 %v1621_v10, %v1621_v10 }
 0x67c   :  { %v1743_v11 = vpack.c.bf16 %v1672_v12, %v1672_v12 }
 0x67e   :  { %v1799_v13 = vsel %vm516_vm8, %v1743_v11, 0 }
 0x67f   :  { %1808 = vmatpush.bf16.xpose.msrb.mxu3 %v1799_v13  ;;  %9564 = vmatmul.msk.bf16.vlgmr.msra.gmra.mxu1 %vm516_vm8, %v926_v45 }
 0x682   :  { %v1623_v14 = vpop.f32.mrf.mxu2 }
 0x683   :  { %v1674_v16 = vpop.f32.mrf.mxu3  ;;  %v1734_v38 = vpack.c.bf16 %v1623_v14, %v1623_v14 }
 0x684   :  { %v1744_v24 = vpack.c.bf16 %v1674_v16, %v1674_v16 }
 0x685   :  { %9617 = vmatmul.msk.bf16.vlgmr.msrb.gmra.mxu2 %vm516_vm8, %v1734_v38 }
 0x686   :  { %v1818_v19 = vsel %vm516_vm8, %v1744_v24, 0 }
 0x687   :  { %1827 = vmatpush.bf16.xpose.msra.mxu1 %v1818_v19 }
 0x68a   :  { %v1626_v20 = vpop.f32.mrf.mxu2 }
 0x68b   :  { %v1677_v39 = vpop.f32.mrf.mxu3  ;;  %v1735_v21 = vpack.c.bf16 %v1626_v20, %v1626_v20 }
 0x68c   :  { %v1745_v22 = vpack.c.bf16 %v1677_v39, %v1677_v39 }
 0x68d   :  { %9618 = vmatmul.msk.bf16.vlgmr.msrb.gmra.mxu3 %vm516_vm8, %v1735_v21 }
 0x68e   :  { %v1837_v23 = vsel %vm516_vm8, %v1745_v22, 0 }
 0x68f   :  { %1846 = vmatpush.bf16.xpose.msra.mxu2 %v1837_v23  ;;  %9565 = vmatmul.msk.bf16.gmra.mxu1 %vm516_vm8, %v927_v60 }
 0x692   :  { %v1628_v35 = vpop.f32.mrf.mxu2 }
 0x693   :  { %v1679_v44 = vpop.f32.mrf.mxu3 }
 0x694   :  { %v1746_v45 = vpack.c.bf16 %v1679_v44, %v1679_v44 }
 0x696   :  { %v1856_v56 = vsel %vm516_vm8, %v1746_v45, 0 }
 0x697   :  { %1865 = vmatpush.bf16.xpose.msra.mxu3 %v1856_v56 }
 0x69a   :  { %v1631_v28 = vpop.f32.mrf.mxu2 }
 0x69b   :  { %v1682_v29 = vpop.f32.mrf.mxu3  ;;  %v1737_v37 = vpack.c.bf16 %v1631_v28, %v1631_v28 }
 0x69c   :  { %v1747_v25 = vpack.c.bf16 %v1682_v29, %v1682_v29 }
 0x69d   :  { %9620 = vmatmul.msk.bf16.vlgmr.msra.gmra.mxu2 %vm516_vm8, %v1737_v37 }
 0x69e   :  { %v1875_v15 = vsel %vm516_vm8, %v1747_v25, 0 }
 0x69f   :  { %9566 = vmatmul.msk.bf16.gmra.mxu1 %vm516_vm8, %v928_v58 }
 0x6a2   :  { %v1633_v54 = vpop.f32.mrf.mxu2 }
 0x6a3   :  { %v1684_v51 = vpop.f32.mrf.mxu3  ;;  %v1738_v60 = vpack.c.bf16 %v1633_v54, %v1633_v54 }
 0x6a4   :  { %v1748_v42 = vpack.c.bf16 %v1684_v51, %v1684_v51 }
 0x6a5   :  { %9621 = vmatmul.msk.bf16.vlgmr.msra.gmra.mxu3 %vm516_vm8, %v1738_v60 }
 0x6a6   :  { %v1894_v31 = vsel %vm516_vm8, %v1748_v42, 0 }
 0x6a7   :  { %1903 = vmatpush.bf16.xpose.msrb.mxu2 %v1894_v31 }
 0x6aa   :  { %v1636_v32 = vpop.f32.mrf.mxu2 }
 0x6ab   :  { %v1739_v52 = vpack.c.bf16 %v1636_v32, %v1636_v32 }
 0x6af   :  { %9567 = vmatmul.msk.bf16.gmra.mxu1 %vm516_vm8, %v929_v63  ;;  %v1736_v63 = vpack.c.bf16 %v1628_v35, %v1628_v35 }
 0x6b2   :  { %v1638_v34 = vpop.f32.mrf.mxu2 }
 0x6b3   :  { %v1740_v50 = vpack.c.bf16 %v1638_v34, %v1638_v34 }
 0x6b5   :  { %9623 = vmatmul.msk.bf16.vlgmr.msrb.gmra.mxu2 %vm516_vm8, %v1740_v50 }
 0x6bc   :  { %v1364_v58 = vpop.f32.mrf.mxu0 }
 0x6bf   :  { %9616 = vmatmul.msk.bf16.vlgmr.msrb.gmra.mxu1 %vm516_vm8, %v1733_v36 }
 0x6c0   :  { %1884 = vmatpush.bf16.xpose.msrb.mxu1 %v1875_v15 }
 0x6c4   :  { %v1366_v57 = vpop.f32.mrf.mxu0 }
 0x6cc   :  { %v1440_v62 = vpop.f32.mrf.mxu0 }
 0x6cf   :  { %9619 = vmatmul.msk.bf16.vlgmr.msra.gmra.mxu1 %vm516_vm8, %v1736_v63 }
 0x6d4   :  { %v1442_v47 = vpop.f32.mrf.mxu0 }
 0x6dc   :  { %v1383_v49 = vpop.f32.mrf.mxu1 }
 0x6dd   :  { %v1501_v53 = vpack.c.bf16 %v1383_v49, %v1364_v58 }
 0x6df   :  { %9560 = vmatmul.msk.bf16.vlgmr.msra.gmra.mxu0 %vm516_vm8, %v1501_v53  ;;  %9622 = vmatmul.msk.bf16.vlgmr.msrb.gmra.mxu1 %vm516_vm8, %v1739_v52 }
 0x6e4   :  { %v1385_v55 = vpop.f32.mrf.mxu1 }
 0x6ec   :  { %v1459_v59 = vpop.f32.mrf.mxu1 }
 0x6ed   :  { %v1503_v46 = vpack.c.bf16 %v1459_v59, %v1440_v62 }
 0x6ef   :  { %9561 = vmatmul.msk.bf16.gmra.mxu0 %vm516_vm8, %v1502_v33 }
 0x6f4   :  { %v1461_v1 = vpop.f32.mrf.mxu1 }
 0x6fc   :  { %v11424_v27 = vpop.f32.mrf.mxu1 }
 0x6ff   :  { %9562 = vmatmul.msk.bf16.gmra.mxu0 %vm516_vm8, %v1503_v46 }
 0x704   :  { %v11428_v48 = vpop.f32.mrf.mxu1 }
 0x708   :  { %v1791_v7 = vpop.f32.mrf.mxu2 }
 0x709   :  { %v1910_v8 = vmul.f32 0.35355338, %v1791_v7 }
 0x70b   :  { %v1920_v9 = vsel %vm516_vm8, %v1910_v8, -inf }
 0x70c   :  { %v11431_v10 = vpop.f32.mrf.mxu1  ;;  %1921 = vmax.xlane.f32.xlu2 %v1920_v9 }
 0x70f   :  { %9563 = vmatmul.msk.bf16.gmra.mxu0 %vm516_vm8, %v1504_v0 }
 0x710   :  { %v1793_v26 = vpop.f32.mrf.mxu2  ;;  %v1810_v4 = vpop.f32.mrf.mxu3 }
 0x711   :  { %v1911_v33 = vmul.f32 0.35355338, %v1810_v4 }
 0x713   :  { %v1923_v12 = vsel %vm516_vm8, %v1911_v33, -inf }
 0x714   :  { %v11438_v11 = vpop.f32.mrf.mxu1  ;;  %1924 = vmax.xlane.f32.xlu1 %v1923_v12 }
 0x718   :  { %v1812_v13 = vpop.f32.mrf.mxu3 }
 0x71c   :  { %v11440_v14 = vpop.f32.mrf.mxu1 }
 0x71f   :  { %9612 = vmatmul.msk.bf16.vlgmr.msrb.gmra.mxu0 %vm135_vm0, %v11128_v3 }
 0x720   :  { %v1848_v16 = vpop.f32.mrf.mxu2 }
 0x721   :  { %v11465_v37 = vmul.f32 0.35355338, %v1848_v16 }
 0x723   :  { %v1929_v51 = vsel %vm516_vm8, %v11465_v37, -inf }
 0x724   :  { %v11444_v38 = vpop.f32.mrf.mxu1 }
 0x728   :  { %v1850_v43 = vpop.f32.mrf.mxu2  ;;  %v1867_v61 = vpop.f32.mrf.mxu3 }
 0x729   :  { %v1914_v0 = vmul.f32 0.35355338, %v1867_v61 }
 0x72b   :  { %v1932_v24 = vsel %vm516_vm8, %v1914_v0, -inf }
 0x72c   :  { %v11447_v19 = vpop.f32.mrf.mxu1  ;;  %1933 = vmax.xlane.f32.xlu2 %v1932_v24 }
 0x72f   :  { %9613 = vmatmul.msk.bf16.gmra.mxu0 %vm135_vm0, %v11146_v17 }
 0x730   :  { %v1869_v20 = vpop.f32.mrf.mxu3 }
 0x734   :  { %v11451_v39 = vpop.f32.mrf.mxu1 }
 0x738   :  { %v1905_v21 = vpop.f32.mrf.mxu2 }
 0x739   :  { %v11475_v34 = vmul.f32 0.35355338, %v1905_v21 }
 0x73b   :  { %v1938_v58 = vsel %vm516_vm8, %v11475_v34, -inf }
 0x73c   :  { %v1772_v22 = vpop.f32.mrf.mxu1 }
 0x73d   :  { %v11453_v23 = vmul.f32 0.35355338, %v1772_v22 }
 0x73f   :  { %9614 = vmatmul.msk.bf16.gmra.mxu0 %vm135_vm0, %v11160_v30  ;;  %v1917_v35 = vsel %vm516_vm8, %v11453_v23, -inf }
 0x740   :  { %1918 = vmax.xlane.f32.xlu0 %v1917_v35  ;;  %v1907_v44 = vpop.f32.mrf.mxu2 }
 0x744   :  { %v1774_v45 = vpop.f32.mrf.mxu1 }
 0x74c   :  { %v1829_v56 = vpop.f32.mrf.mxu1 }
 0x74d   :  { %v11459_v28 = vmul.f32 0.35355338, %v1829_v56 }
 0x74f   :  { %9615 = vmatmul.msk.bf16.gmra.mxu0 %vm135_vm0, %v11179_v6  ;;  %v1926_v29 = vsel %vm516_vm8, %v11459_v28, -inf }
 0x750   :  { %1927 = vmax.xlane.f32.xlu0 %v1926_v29 }
 0x754   :  { %v1831_v54 = vpop.f32.mrf.mxu1 }
 0x758   :  { %1930 = vmax.xlane.f32.xlu0 %v1929_v51 }
 0x75c   :  { %v11469_v60 = vpop.f32.mrf.mxu0  ;;  %v1886_v42 = vpop.f32.mrf.mxu1 }
 0x75d   :  { %v11471_v31 = vmul.f32 0.35355338, %v1886_v42 }
 0x75f   :  { %v1935_v32 = vsel %vm516_vm8, %v11471_v31, -inf }
 0x760   :  { %1936 = vmax.xlane.f32.xlu1 %v1935_v32 }
 0x764   :  { %v11477_v50 = vpop.f32.mrf.mxu0  ;;  %v1888_v25 = vpop.f32.mrf.mxu1 }
 0x768   :  { %1939 = vmax.xlane.f32.xlu1 %v1938_v58 }
 0x76c   :  { %v11481_v36 = vpop.f32.mrf.mxu0 }
 0x774   :  { %v11483_v40 = vpop.f32.mrf.mxu0 }
 0x77c   :  { %v11485_v41 = vpop.f32.mrf.mxu0 }
 0x77f   :  { %v1922_v15 = vpop.xlane.xlu2 %1921 }
 0x780   :  { %v1942_v57 = vsub.f32 %v1910_v8, %v1922_v15 }
 0x782   :  { %v1951_v62 = vmul.f32 1.442695, %v1942_v57 }
 0x784   :  { %10350 = vpow2.f32 %v1951_v62  ;;  %v11487_v63 = vpop.f32.mrf.mxu0 }
 0x787   :  { %v1925_v47 = vpop.xlane.xlu1 %1924 }
 0x788   :  { %v1943_v49 = vsub.f32 %v1911_v33, %v1925_v47 }
 0x78a   :  { %v11489_v52 = vpop.eup %10350  ;;  %v1953_v53 = vmul.f32 1.442695, %v1943_v49 }
 0x78b   :  { %v1968_v55 = vsel %vm516_vm8, %v11489_v52, 0.0 }
 0x78c   :  { %10352 = vpow2.f32 %v1953_v53  ;;  %v11493_v59 = vpop.f32.mrf.mxu0  ;;  %1969 = vadd.xlane.f32.xlu1 %v1968_v55 }
 0x792   :  { %v11495_v1 = vpop.eup %10352 }
 0x793   :  { %v1971_v2 = vsel %vm516_vm8, %v11495_v1, 0.0 }
 0x794   :  { %v11499_v5 = vpop.f32.mrf.mxu0  ;;  %1972 = vadd.xlane.f32.xlu0 %v1971_v2 }
 0x79c   :  { %v1713_v46 = vpop.f32.mrf.mxu0 }
 0x79d   :  { %v1749_v7 = vpack.c.bf16 %v1713_v46, %v1713_v46 }
 0x79f   :  { %v2017_v8 = vsel %vm776_vm12, %v1749_v7, 0  ;;  %v1934_v9 = vpop.xlane.xlu2 %1933 }
 0x7a0   :  { %v1946_v26 = vsub.f32 %v1914_v0, %v1934_v9  ;;  %2026 = vmatpush.bf16.msrb.mxu3 %v2017_v8 }
 0x7a2   :  { %v1959_v4 = vmul.f32 1.442695, %v1946_v26 }
 0x7a4   :  { %10354 = vpow2.f32 %v1959_v4  ;;  %v1715_v33 = vpop.f32.mrf.mxu0 }
 0x7a5   :  { %v1750_v12 = vpack.c.bf16 %v1715_v33, %v1715_v33 }
 0x7a7   :  { %v2036_v13 = vsel %vm776_vm12, %v1750_v12, 0 }
 0x7a8   :  { %2045 = vmatpush.bf16.msra.mxu1 %v2036_v13 }
 0x7aa   :  { %v11503_v16 = vpop.eup %10354 }
 0x7ab   :  { %v1980_v43 = vsel %vm516_vm8, %v11503_v16, 0.0 }
 0x7ac   :  { %v1718_v61 = vpop.f32.mrf.mxu0  ;;  %1981 = vadd.xlane.f32.xlu1 %v1980_v43 }
 0x7ad   :  { %v1751_v24 = vpack.c.bf16 %v1718_v61, %v1718_v61 }
 0x7af   :  { %v2055_v20 = vsel %vm776_vm12, %v1751_v24, 0 }
 0x7b0   :  { %2064 = vmatpush.bf16.msra.mxu2 %v2055_v20 }
 0x7b3   :  { %v1919_v0 = vpop.xlane.xlu0 %1918 }
 0x7b4   :  { %v1941_v21 = vsub.f32 %v11453_v23, %v1919_v0  ;;  %v1720_v22 = vpop.f32.mrf.mxu0 }
 0x7b5   :  { %v1752_v35 = vpack.c.bf16 %v1720_v22, %v1720_v22 }
 0x7b6   :  { %v1949_v44 = vmul.f32 1.442695, %v1941_v21 }
 0x7b7   :  { %v2074_v45 = vsel %vm776_vm12, %v1752_v35, 0 }
 0x7b8   :  { %10356 = vpow2.f32 %v1949_v44  ;;  %2083 = vmatpush.bf16.msra.mxu3 %v2074_v45  ;;  %v10156_v45 = vld [vmem:[%s10882_s25 + $0x38] sm:$0xff] }
 0x7bc   :  { %v1723_v56 = vpop.f32.mrf.mxu0 }
 0x7bd   :  { %v1753_v29 = vpack.c.bf16 %v1723_v56, %v1723_v56  ;;  %v10155_v56 = vld [vmem:[%s10882_s25 + $0x30] sm:$0xff]  ;;  %s13837_s25 = sld [smem:[#allocation7_spill]] }
 0x7be   :  { %v11510_v54 = vpop.eup %10356 }
 0x7bf   :  { %v2093_v51 = vsel %vm776_vm12, %v1753_v29, 0  ;;  %v1965_v42 = vsel %vm516_vm8, %v11510_v54, 0.0 }
 0x7c0   :  { %2102 = vmatpush.bf16.msra.mxu0 %v2093_v51  ;;  %1966 = vadd.xlane.f32.xlu2 %v1965_v42 }
 0x7c3   :  { %v1928_v32 = vpop.xlane.xlu0 %1927 }
 0x7c4   :  { %v1944_v23 = vsub.f32 %v11459_v28, %v1928_v32  ;;  %v1725_v25 = vpop.f32.mrf.mxu0 }
 0x7c5   :  { %v1754_v58 = vpack.c.bf16 %v1725_v25, %v1725_v25 }
 0x7c6   :  { %v1955_v15 = vmul.f32 1.442695, %v1944_v23 }
 0x7c7   :  { %v2112_v57 = vsel %vm776_vm12, %v1754_v58, 0 }
 0x7c8   :  { %10358 = vpow2.f32 %v1955_v15  ;;  %2121 = vmatpush.bf16.msrb.mxu1 %v2112_v57 }
 0x7cb   :  { %v1931_v62 = vpop.xlane.xlu0 %1930 }
 0x7cc   :  { %v1945_v47 = vsub.f32 %v11465_v37, %v1931_v62  ;;  %v1728_v49 = vpop.f32.mrf.mxu0  ;;  %v10158_v62 = vld [vmem:[%s10887_s29 + $0x38] sm:$0xff] }
 0x7cd   :  { %v1755_v53 = vpack.c.bf16 %v1728_v49, %v1728_v49 }
 0x7ce   :  { %v10359_v55 = vpop.eup %10358  ;;  %v1957_v2 = vmul.f32 1.442695, %v1945_v47 }
 0x7cf   :  { %v2131_v46 = vsel %vm776_vm12, %v1755_v53, 0  ;;  %v1974_v7 = vsel %vm516_vm8, %v10359_v55, 0.0 }
 0x7d0   :  { %10360 = vpow2.f32 %v1957_v2  ;;  %1975 = vadd.xlane.f32.xlu2 %v1974_v7  ;;  %2140 = vmatpush.bf16.msrb.mxu2 %v2131_v46  ;;  %v10160_v46 = vld [vmem:[%s10892_s3 + $0x38] sm:$0xff]  ;;  %v10159_v7 = vld [vmem:[%s10892_s3 + $0x30] sm:$0xff]  ;;  %s13839_s3 = sld [smem:[#allocation12_spill]] }
 0x7d3   :  { %v1937_v28 = vpop.xlane.xlu1 %1936 }
 0x7d4   :  { %v1947_v8 = vsub.f32 %v11471_v31, %v1937_v28  ;;  %v1730_v23 = vpop.f32.mrf.mxu0 }
 0x7d5   :  { %v1756_v25 = vpack.c.bf16 %v1730_v23, %v1730_v23 }
 0x7d6   :  { %v11521_v9 = vpop.eup %10360  ;;  %v1961_v26 = vmul.f32 1.442695, %v1947_v8 }
 0x7d7   :  { %v1977_v37 = vsel %vm516_vm8, %v11521_v9, 0.0 }
 0x7d8   :  { %10362 = vpow2.f32 %v1961_v26  ;;  %1978 = vadd.xlane.f32.xlu2 %v1977_v37 }
 0x7db   :  { %v1940_v4 = vpop.xlane.xlu1 %1939 }
 0x7dc   :  { %v1948_v33 = vsub.f32 %v11475_v34, %v1940_v4 }
 0x7de   :  { %v11526_v12 = vpop.eup %10362  ;;  %v1963_v13 = vmul.f32 1.442695, %v1948_v33 }
 0x7df   :  { %v1983_v43 = vsel %vm516_vm8, %v11526_v12, 0.0 }
 0x7e0   :  { %10364 = vpow2.f32 %v1963_v13  ;;  %1984 = vadd.xlane.f32.xlu0 %v1983_v43 }
 0x7e6   :  { %v11530_v31 = vpop.eup %10364 }
 0x7e7   :  { %v1986_v61 = vsel %vm516_vm8, %v11530_v31, 0.0 }
 0x7e8   :  { %1987 = vadd.xlane.f32.xlu0 %v1986_v61 }
 0x7ff   :  { %v1970_v24 = vpop.xlane.xlu1 %1969 }
 0x800   :  { %10366 = vrcp.f32 %v1970_v24 }
 0x806   :  { %v10367_v20 = vpop.eup %10366 }
 0x807   :  { %v1998_v34 = vmul.f32 %v10367_v20, %v11489_v52  ;;  %v1973_v0 = vpop.xlane.xlu0 %1972 }
 0x808   :  { %10368 = vrcp.f32 %v1973_v0 }
 0x809   :  { %v2006_v21 = vpack.c.bf16 %v1998_v34, %v1998_v34 }
 0x80b   :  { %9625 = vmatmul.msk.bf16.vlgmr.msra.gmra.mxu1 %vm516_vm8, %v2006_v21 }
 0x80c   :  { %2246 = vmatpush.bf16.msra.mxu1 %v10156_v45 }
 0x80e   :  { %v10369_v22 = vpop.eup %10368 }
 0x80f   :  { %v1999_v35 = vmul.f32 %v10369_v22, %v11495_v1 }
 0x810   :  { %2247 = vmatpush.bf16.msra.mxu1 %v10155_v56 }
 0x811   :  { %v2007_v44 = vpack.c.bf16 %v1999_v35, %v1999_v35 }
 0x813   :  { %9626 = vmatmul.msk.bf16.vlgmr.msra.gmra.mxu2 %vm516_vm8, %v2007_v44 }
 0x814   :  { %2292 = vmatpush.bf16.msra.mxu2 %v10158_v62 }
 0x81f   :  { %v1982_v29 = vpop.xlane.xlu1 %1981 }
 0x820   :  { %10370 = vrcp.f32 %v1982_v29 }
 0x826   :  { %v10371_v51 = vpop.eup %10370 }
 0x827   :  { %v2002_v52 = vmul.f32 %v10371_v51, %v11503_v16  ;;  %v2150_v16 = vsel %vm776_vm12, %v1756_v25, 0 }
 0x829   :  { %v2010_v42 = vpack.c.bf16 %v2002_v52, %v2002_v52 }
 0x82b   :  { %9629 = vmatmul.msk.bf16.vlgmr.msrb.gmra.mxu1 %vm516_vm8, %v2010_v42 }
 0x833   :  { %v1967_v32 = vpop.xlane.xlu2 %1966 }
 0x834   :  { %10372 = vrcp.f32 %v1967_v32 }
 0x83a   :  { %v10373_v1 = vpop.eup %10372 }
 0x83b   :  { %v1997_v58 = vmul.f32 %v10373_v1, %v11510_v54  ;;  %9649 = vmatmul.msk.bf16.vlgmr.msra.gmra.mxu1 %vm135_vm0, %v11128_v3  ;;  %v10157_v54 = vld [vmem:[%s10887_s29 + $0x30] sm:$0xff]  ;;  %s13838_s29 = sld [smem:[#allocation8_spill]] }
 0x83c   :  { %2293 = vmatpush.bf16.msra.mxu2 %v10157_v54 }
 0x83d   :  { %v2005_v15 = vpack.c.bf16 %v1997_v58, %v1997_v58 }
 0x83f   :  { %9624 = vmatmul.msk.bf16.vlgmr.msrb.gmra.mxu3 %vm516_vm8, %v2005_v15 }
 0x840   :  { %2159 = vmatpush.bf16.msrb.mxu3 %v2150_v16 }
 0x843   :  { %v1976_v57 = vpop.xlane.xlu2 %1975 }
 0x844   :  { %10374 = vrcp.f32 %v1976_v57 }
 0x84a   :  { %v10375_v47 = vpop.eup %10374 }
 0x84b   :  { %v2000_v49 = vmul.f32 %v10375_v47, %v10359_v55  ;;  %v1979_v53 = vpop.xlane.xlu2 %1978  ;;  %9650 = vmatmul.msk.bf16.gmra.mxu1 %vm135_vm0, %v11146_v17 }
 0x84c   :  { %10376 = vrcp.f32 %v1979_v53 }
 0x84d   :  { %v2008_v2 = vpack.c.bf16 %v2000_v49, %v2000_v49 }
 0x84f   :  { %9627 = vmatmul.msk.bf16.vlgmr.msra.gmra.mxu3 %vm516_vm8, %v2008_v2 }
 0x850   :  { %2338 = vmatpush.bf16.msra.mxu3 %v10160_v46 }
 0x852   :  { %v10377_v28 = vpop.eup %10376 }
 0x853   :  { %v2001_v8 = vmul.f32 %v10377_v28, %v11521_v9  ;;  %v1985_v26 = vpop.xlane.xlu0 %1984 }
 0x854   :  { %10378 = vrcp.f32 %v1985_v26  ;;  %2339 = vmatpush.bf16.msra.mxu3 %v10159_v7 }
 0x855   :  { %v2009_v37 = vpack.c.bf16 %v2001_v8, %v2001_v8 }
 0x857   :  { %9628 = vmatmul.msk.bf16.vlgmr.msra.gmra.mxu0 %vm516_vm8, %v2009_v37 }
 0x85a   :  { %v10379_v55 = vpop.eup %10378 }
 0x85b   :  { %v2003_v4 = vmul.f32 %v10379_v55, %v11526_v12  ;;  %v1988_v33 = vpop.xlane.xlu0 %1987  ;;  %9651 = vmatmul.msk.bf16.gmra.mxu1 %vm135_vm0, %v11160_v30 }
 0x85c   :  { %10380 = vrcp.f32 %v1988_v33 }
 0x85d   :  { %v2011_v13 = vpack.c.bf16 %v2003_v4, %v2003_v4 }
 0x85f   :  { %9630 = vmatmul.msk.bf16.vlgmr.msrb.gmra.mxu2 %vm516_vm8, %v2011_v13 }
 0x862   :  { %v10381_v43 = vpop.eup %10380 }
 0x863   :  { %v2004_v9 = vmul.f32 %v10381_v43, %v11530_v31 }
 0x865   :  { %v2012_v61 = vpack.c.bf16 %v2004_v9, %v2004_v9 }
 0x867   :  { %9631 = vmatmul.msk.bf16.vlgmr.msrb.gmra.mxu3 %vm516_vm8, %v2012_v61 }
 0x86b   :  { %9652 = vmatmul.msk.bf16.gmra.mxu1 %vm135_vm0, %v11179_v6 }
 0x86f   :  { %9665 = vmatmul.msk.bf16.vlgmr.msra.gmra.mxu2 %vm135_vm0, %v11128_v3 }
 0x877   :  { %9681 = vmatmul.msk.bf16.vlgmr.msra.gmra.mxu3 %vm135_vm0, %v11128_v3  ;;  %v9632_v3 = vld [vmem:[%s10897_s8 + $0x8] sm:$0xf] }
 0x878   :  { %v2184_v34 = vsel %vm776_vm12, %v9632_v3, 0 }
 0x879   :  { %2193 = vmatpush.bf16.msrb.mxu0 %v2184_v34 }
 0x87f   :  { %9666 = vmatmul.msk.bf16.gmra.mxu2 %vm135_vm0, %v11146_v17 }
 0x887   :  { %9682 = vmatmul.msk.bf16.gmra.mxu3 %vm135_vm0, %v11146_v17 }
 0x888   :  { %v2047_v12 = vpop.f32.mrf.mxu1 }
 0x88f   :  { %9667 = vmatmul.msk.bf16.gmra.mxu2 %vm135_vm0, %v11160_v30 }
 0x890   :  { %v2049_v31 = vpop.f32.mrf.mxu1 }
 0x896   :  { %v2066_v24 = vpop.f32.mrf.mxu2 }
 0x897   :  { %9683 = vmatmul.msk.bf16.gmra.mxu3 %vm135_vm0, %v11160_v30 }
 0x89e   :  { %v2068_v20 = vpop.f32.mrf.mxu2 }
 0x89f   :  { %9668 = vmatmul.msk.bf16.gmra.mxu2 %vm135_vm0, %v11179_v6 }
 0x8a7   :  { %9684 = vmatmul.msk.bf16.gmra.mxu3 %vm135_vm0, %v11179_v6 }
 0x8a8   :  { %v2123_v17 = vpop.f32.mrf.mxu1 }
 0x8b0   :  { %v2125_v0 = vpop.f32.mrf.mxu1 }
 0x8b8   :  { %v2249_v42 = vpop.f32.mrf.mxu1 }
 0x8b9   :  { %v2361_v46 = vpack.c.bf16 %v2249_v42, %v2249_v42 }
 0x8c0   :  { %v2251_v25 = vpop.f32.mrf.mxu1 }
 0x8c1   :  { %v2362_v7 = vpack.c.bf16 %v2251_v25, %v2251_v25 }
 0x8c2   :  { %v2028_v21 = vpop.f32.mrf.mxu3 }
 0x8c3   :  { %v2165_v22 = vpack.c.bf16 %v2047_v12, %v2028_v21 }
 0x8c5   :  { %9633 = vmatmul.msk.bf16.vlgmr.msrb.gmra.mxu0 %vm516_vm8, %v2165_v22 }
 0x8c8   :  { %v2254_v49 = vpop.f32.mrf.mxu1 }
 0x8c9   :  { %v2363_v4 = vpack.c.bf16 %v2254_v49, %v2254_v49 }
 0x8ca   :  { %v2030_v35 = vpop.f32.mrf.mxu3 }
 0x8d0   :  { %v2256_v26 = vpop.f32.mrf.mxu1 }
 0x8d1   :  { %v2364_v31 = vpack.c.bf16 %v2256_v26, %v2256_v26 }
 0x8d2   :  { %v2085_v44 = vpop.f32.mrf.mxu3 }
 0x8d3   :  { %v2166_v30 = vpack.c.bf16 %v2085_v44, %v2066_v24 }
 0x8d4   :  { %v2104_v45 = vpop.f32.mrf.mxu0 }
 0x8d5   :  { %9634 = vmatmul.msk.bf16.gmra.mxu0 %vm516_vm8, %v2166_v30  ;;  %v2167_v52 = vpack.c.bf16 %v2123_v17, %v2104_v45 }
 0x8d8   :  { %v2259_v43 = vpop.f32.mrf.mxu1 }
 0x8d9   :  { %v2365_v21 = vpack.c.bf16 %v2259_v43, %v2259_v43 }
 0x8da   :  { %v2087_v56 = vpop.f32.mrf.mxu3 }
 0x8dc   :  { %v2106_v29 = vpop.f32.mrf.mxu0 }
 0x8e0   :  { %v2261_v44 = vpop.f32.mrf.mxu1 }
 0x8e1   :  { %v2366_v42 = vpack.c.bf16 %v2261_v44, %v2261_v44 }
 0x8e2   :  { %v2142_v51 = vpop.f32.mrf.mxu2 }
 0x8e5   :  { %9635 = vmatmul.msk.bf16.gmra.mxu0 %vm516_vm8, %v2167_v52 }
 0x8e8   :  { %v2264_v25 = vpop.f32.mrf.mxu1 }
 0x8ea   :  { %v2144_v6 = vpop.f32.mrf.mxu2  ;;  %v2161_v32 = vpop.f32.mrf.mxu3 }
 0x8eb   :  { %v2168_v58 = vpack.c.bf16 %v2161_v32, %v2142_v51 }
 0x8f2   :  { %v2163_v23 = vpop.f32.mrf.mxu3  ;;  %v2295_v1 = vpop.f32.mrf.mxu2 }
 0x8f3   :  { %v2369_v15 = vpack.c.bf16 %v2295_v1, %v2295_v1 }
 0x8f5   :  { %9636 = vmatmul.msk.bf16.gmra.mxu0 %vm516_vm8, %v2168_v58  ;;  %v2389_v16 = vsel %vm516_vm8, %v2369_v15, 0 }
 0x8f6   :  { %2398 = vmatpush.bf16.xpose.msra.mxu0 %v2389_v16 }
 0x8fa   :  { %v2297_v57 = vpop.f32.mrf.mxu2  ;;  %v2341_v62 = vpop.f32.mrf.mxu3 }
 0x8fb   :  { %v2370_v47 = vpack.c.bf16 %v2297_v57, %v2297_v57  ;;  %v2377_v9 = vpack.c.bf16 %v2341_v62, %v2341_v62  ;;  %v2367_v62 = vpack.c.bf16 %v2264_v25, %v2264_v25 }
 0x8fd   :  { %v2408_v53 = vsel %vm516_vm8, %v2370_v47, 0  ;;  %v2645_v3 = vsel %vm776_vm12, %v2377_v9, 0 }
 0x8fe   :  { %2417 = vmatpush.bf16.xpose.msrb.mxu1 %v2408_v53 }
 0x902   :  { %v2300_v54 = vpop.f32.mrf.mxu2  ;;  %v2343_v2 = vpop.f32.mrf.mxu3 }
 0x903   :  { %v2371_v28 = vpack.c.bf16 %v2300_v54, %v2300_v54  ;;  %v2378_v34 = vpack.c.bf16 %v2343_v2, %v2343_v2 }
 0x905   :  { %9685 = vmatmul.msk.bf16.vlgmr.msra.gmra.mxu0 %vm516_vm8, %v2361_v46  ;;  %9686 = vmatmul.msk.bf16.vlgmr.msrb.gmra.mxu1 %vm516_vm8, %v2362_v7  ;;  %v2427_v8 = vsel %vm516_vm8, %v2371_v28, 0  ;;  %v2664_v56 = vsel %vm776_vm12, %v2378_v34, 0  ;;  %v2266_v46 = vpop.f32.mrf.mxu1 }
 0x906   :  { %2436 = vmatpush.bf16.xpose.msrb.mxu2 %v2427_v8  ;;  %v2368_v28 = vpack.c.bf16 %v2266_v46, %v2266_v46 }
 0x90a   :  { %v2302_v37 = vpop.f32.mrf.mxu2  ;;  %v2346_v55 = vpop.f32.mrf.mxu3 }
 0x90b   :  { %v2372_v33 = vpack.c.bf16 %v2302_v37, %v2302_v37  ;;  %v2379_v29 = vpack.c.bf16 %v2346_v55, %v2346_v55  ;;  %v1576_v37 = vadd.f32 %v11424_v27, %v11469_v60  ;;  %v1591_v60 = vadd.f32 %v11447_v19, %v11493_v59 }
 0x90d   :  { %v2446_v13 = vsel %vm516_vm8, %v2372_v33, 0  ;;  %9687 = vmatmul.msk.bf16.vlgmr.msrb.gmra.mxu2 %vm516_vm8, %v2363_v4  ;;  %v2683_v58 = vsel %vm776_vm12, %v2379_v29, 0 }
 0x90e   :  { %2455 = vmatpush.bf16.xpose.msrb.mxu3 %v2446_v13  ;;  %v1581_v13 = vadd.f32 %v11431_v10, %v11481_v36 }
 0x912   :  { %v2305_v61 = vpop.f32.mrf.mxu2  ;;  %v2348_v12 = vpop.f32.mrf.mxu3 }
 0x913   :  { %v2373_v24 = vpack.c.bf16 %v2305_v61, %v2305_v61  ;;  %v2380_v15 = vpack.c.bf16 %v2348_v12, %v2348_v12  ;;  %v1586_v12 = vadd.f32 %v11440_v14, %v11485_v41 }
 0x915   :  { %9688 = vmatmul.msk.bf16.vlgmr.msrb.gmra.mxu3 %vm516_vm8, %v2364_v31  ;;  %v2465_v20 = vsel %vm516_vm8, %v2373_v24, 0  ;;  %v2702_v2 = vsel %vm776_vm12, %v2380_v15, 0 }
 0x916   :  { %2474 = vmatpush.bf16.xpose.msrb.mxu0 %v2465_v20 }
 0x91a   :  { %v2307_v17 = vpop.f32.mrf.mxu2  ;;  %v2351_v0 = vpop.f32.mrf.mxu3 }
 0x91b   :  { %v2374_v22 = vpack.c.bf16 %v2307_v17, %v2307_v17  ;;  %v2381_v35 = vpack.c.bf16 %v2351_v0, %v2351_v0 }
 0x91d   :  { %v2484_v30 = vsel %vm516_vm8, %v2374_v22, 0  ;;  %9689 = vmatmul.msk.bf16.vlgmr.msrb.gmra.mxu0 %vm516_vm8, %v2365_v21  ;;  %v2721_v45 = vsel %vm776_vm12, %v2381_v35, 0 }
 0x91e   :  { %2654 = vmatpush.bf16.msra.mxu0 %v2645_v3  ;;  %2493 = vmatpush.bf16.xpose.msra.mxu1 %v2484_v30 }
 0x922   :  { %2730 = vmatpush.bf16.msrb.mxu0 %v2721_v45  ;;  %v2310_v51 = vpop.f32.mrf.mxu2  ;;  %v2353_v52 = vpop.f32.mrf.mxu3 }
 0x923   :  { %v2375_v6 = vpack.c.bf16 %v2310_v51, %v2310_v51  ;;  %v2382_v32 = vpack.c.bf16 %v2353_v52, %v2353_v52 }
 0x925   :  { %v2740_v23 = vsel %vm776_vm12, %v2382_v32, 0  ;;  %9690 = vmatmul.msk.bf16.vlgmr.msra.gmra.mxu1 %vm516_vm8, %v2366_v42  ;;  %v2503_v1 = vsel %vm516_vm8, %v2375_v6, 0 }
 0x926   :  { %2673 = vmatpush.bf16.msrb.mxu1 %v2664_v56  ;;  %2512 = vmatpush.bf16.xpose.msra.mxu2 %v2503_v1 }
 0x92a   :  { %2749 = vmatpush.bf16.msra.mxu1 %v2740_v23  ;;  %v2312_v16 = vpop.f32.mrf.mxu2  ;;  %v2356_v57 = vpop.f32.mrf.mxu3 }
 0x92b   :  { %v2376_v47 = vpack.c.bf16 %v2312_v16, %v2312_v16  ;;  %v2383_v49 = vpack.c.bf16 %v2356_v57, %v2356_v57 }
 0x92d   :  { %v2522_v53 = vsel %vm516_vm8, %v2376_v47, 0  ;;  %9691 = vmatmul.msk.bf16.vlgmr.msra.gmra.mxu2 %vm516_vm8, %v2367_v62  ;;  %v2759_v54 = vsel %vm776_vm12, %v2383_v49, 0 }
 0x92e   :  { %2692 = vmatpush.bf16.msrb.mxu2 %v2683_v58  ;;  %2531 = vmatpush.bf16.xpose.msra.mxu3 %v2522_v53 }
 0x932   :  { %2768 = vmatpush.bf16.msra.mxu2 %v2759_v54  ;;  %v2358_v7 = vpop.f32.mrf.mxu3 }
 0x933   :  { %v2384_v8 = vpack.c.bf16 %v2358_v7, %v2358_v7 }
 0x935   :  { %v2778_v26 = vsel %vm776_vm12, %v2384_v8, 0  ;;  %9692 = vmatmul.msk.bf16.vlgmr.msra.gmra.mxu3 %vm516_vm8, %v2368_v28 }
 0x936   :  { %2711 = vmatpush.bf16.msrb.mxu3 %v2702_v2 }
 0x93a   :  { %2787 = vmatpush.bf16.msra.mxu3 %v2778_v26 }
 0x942   :  { %v2195_v55 = vpop.f32.mrf.mxu0 }
 0x943   :  { %v11612_v4 = vadd.f32 %v2195_v55, %v1576_v37 }
 0x94a   :  { %v11614_v33 = vpop.f32.mrf.mxu0 }
 0x952   :  { %v2200_v43 = vpop.f32.mrf.mxu0 }
 0x953   :  { %v11618_v9 = vadd.f32 %v2200_v43, %v1581_v13 }
 0x95a   :  { %v11620_v61 = vpop.f32.mrf.mxu0 }
 0x962   :  { %v2205_v31 = vpop.f32.mrf.mxu0 }
 0x963   :  { %v11624_v24 = vadd.f32 %v2205_v31, %v1586_v12 }
 0x96a   :  { %v11626_v27 = vpop.f32.mrf.mxu0 }
 0x972   :  { %v2210_v20 = vpop.f32.mrf.mxu0 }
 0x973   :  { %v11630_v3 = vadd.f32 %v2210_v20, %v1591_v60 }
 0x97a   :  { %v11632_v10 = vpop.f32.mrf.mxu0 }
 0x982   :  { %v2400_v36 = vpop.f32.mrf.mxu0  ;;  %v2419_v34 = vpop.f32.mrf.mxu1 }
 0x983   :  { %v2537_v17 = vmul.f32 0.35355338, %v2400_v36  ;;  %v2538_v0 = vmul.f32 0.35355338, %v2419_v34 }
 0x985   :  { %v2545_v21 = vsel %vm516_vm8, %v2537_v17, -inf  ;;  %v2548_v14 = vsel %vm516_vm8, %v2538_v0, -inf }
 0x986   :  { %2546 = vmax.xlane.f32.xlu1 %v2545_v21  ;;  %2549 = vmax.xlane.f32.xlu2 %v2548_v14 }
 0x98a   :  { %v2402_v41 = vpop.f32.mrf.mxu0  ;;  %v2421_v22 = vpop.f32.mrf.mxu1 }
 0x990   :  { %v2438_v35 = vpop.f32.mrf.mxu2 }
 0x991   :  { %v2539_v44 = vmul.f32 0.35355338, %v2438_v35 }
 0x993   :  { %v2551_v19 = vsel %vm516_vm8, %v2539_v44, -inf }
 0x994   :  { %2552 = vmax.xlane.f32.xlu0 %v2551_v19 }
 0x998   :  { %v2440_v59 = vpop.f32.mrf.mxu2  ;;  %v2457_v30 = vpop.f32.mrf.mxu3 }
 0x999   :  { %v2540_v45 = vmul.f32 0.35355338, %v2457_v30 }
 0x99a   :  { %v2476_v56 = vpop.f32.mrf.mxu0 }
 0x99b   :  { %v2541_v29 = vmul.f32 0.35355338, %v2476_v56  ;;  %v2554_v51 = vsel %vm516_vm8, %v2540_v45, -inf }
 0x99c   :  { %2555 = vmax.xlane.f32.xlu1 %v2554_v51 }
 0x99d   :  { %v2557_v52 = vsel %vm516_vm8, %v2541_v29, -inf }
 0x99e   :  { %2558 = vmax.xlane.f32.xlu2 %v2557_v52 }
 0x9a0   :  { %v2459_v42 = vpop.f32.mrf.mxu3 }
 0x9a2   :  { %v2478_v6 = vpop.f32.mrf.mxu0  ;;  %v2495_v32 = vpop.f32.mrf.mxu1 }
 0x9a3   :  { %v2542_v23 = vmul.f32 0.35355338, %v2495_v32 }
 0x9a5   :  { %v2560_v1 = vsel %vm516_vm8, %v2542_v23, -inf }
 0x9a6   :  { %2561 = vmax.xlane.f32.xlu0 %v2560_v1 }
 0x9aa   :  { %v2497_v25 = vpop.f32.mrf.mxu1 }
 0x9b0   :  { %v2514_v58 = vpop.f32.mrf.mxu2 }
 0x9b1   :  { %v2543_v15 = vmul.f32 0.35355338, %v2514_v58 }
 0x9b3   :  { %v2563_v16 = vsel %vm516_vm8, %v2543_v15, -inf }
 0x9b4   :  { %2564 = vmax.xlane.f32.xlu1 %v2563_v16 }
 0x9b8   :  { %v2516_v57 = vpop.f32.mrf.mxu2  ;;  %v2533_v62 = vpop.f32.mrf.mxu3 }
 0x9b9   :  { %v2544_v47 = vmul.f32 0.35355338, %v2533_v62 }
 0x9bb   :  { %v2566_v49 = vsel %vm516_vm8, %v2544_v47, -inf }
 0x9bc   :  { %2567 = vmax.xlane.f32.xlu2 %v2566_v49 }
 0x9c0   :  { %v2535_v53 = vpop.f32.mrf.mxu3 }
 0x9f9   :  { %v2547_v54 = vpop.xlane.xlu1 %2546  ;;  %v2550_v2 = vpop.xlane.xlu2 %2549 }
 0x9fa   :  { %v2569_v46 = vsub.f32 %v2537_v17, %v2547_v54  ;;  %v2570_v7 = vsub.f32 %v2538_v0, %v2550_v2 }
 0x9fc   :  { %v2577_v28 = vmul.f32 1.442695, %v2569_v46  ;;  %v2579_v8 = vmul.f32 1.442695, %v2570_v7 }
 0x9fe   :  { %10382 = vpow2.f32 %v2577_v28 }
 0x9ff   :  { %10384 = vpow2.f32 %v2579_v8 }
 0xa04   :  { %v10383_v26 = vpop.eup %10382 }
 0xa05   :  { %v10385_v37 = vpop.eup %10384  ;;  %v2593_v55 = vsel %vm516_vm8, %v10383_v26, 0.0 }
 0xa06   :  { %2594 = vadd.xlane.f32.xlu0 %v2593_v55  ;;  %v2596_v13 = vsel %vm516_vm8, %v10385_v37, 0.0 }
 0xa07   :  { %2597 = vadd.xlane.f32.xlu1 %v2596_v13  ;;  %v2553_v43 = vpop.xlane.xlu0 %2552 }
 0xa08   :  { %v2571_v12 = vsub.f32 %v2539_v44, %v2553_v43 }
 0xa0a   :  { %v2581_v31 = vmul.f32 1.442695, %v2571_v12 }
 0xa0c   :  { %10386 = vpow2.f32 %v2581_v31 }
 0xa0f   :  { %v2556_v60 = vpop.xlane.xlu1 %2555 }
 0xa10   :  { %v2572_v20 = vsub.f32 %v2540_v45, %v2556_v60 }
 0xa11   :  { %v2559_v36 = vpop.xlane.xlu2 %2558 }
 0xa12   :  { %v10387_v34 = vpop.eup %10386  ;;  %v2583_v17 = vmul.f32 1.442695, %v2572_v20  ;;  %v2573_v0 = vsub.f32 %v2541_v29, %v2559_v36 }
 0xa13   :  { %v2599_v21 = vsel %vm516_vm8, %v10387_v34, 0.0 }
 0xa14   :  { %10388 = vpow2.f32 %v2583_v17  ;;  %v2585_v14 = vmul.f32 1.442695, %v2573_v0  ;;  %2600 = vadd.xlane.f32.xlu2 %v2599_v21 }
 0xa16   :  { %10390 = vpow2.f32 %v2585_v14 }
 0xa19   :  { %v2562_v41 = vpop.xlane.xlu0 %2561 }
 0xa1a   :  { %v10389_v22 = vpop.eup %10388  ;;  %v2574_v35 = vsub.f32 %v2542_v23, %v2562_v41 }
 0xa1b   :  { %v2602_v19 = vsel %vm516_vm8, %v10389_v22, 0.0 }
 0xa1c   :  { %v10391_v44 = vpop.eup %10390  ;;  %v2587_v59 = vmul.f32 1.442695, %v2574_v35  ;;  %2603 = vadd.xlane.f32.xlu0 %v2602_v19 }
 0xa1d   :  { %v2605_v30 = vsel %vm516_vm8, %v10391_v44, 0.0 }
 0xa1e   :  { %10392 = vpow2.f32 %v2587_v59  ;;  %2606 = vadd.xlane.f32.xlu1 %v2605_v30 }
 0xa24   :  { %v10393_v45 = vpop.eup %10392 }
 0xa25   :  { %v2608_v56 = vsel %vm516_vm8, %v10393_v45, 0.0 }
 0xa26   :  { %2609 = vadd.xlane.f32.xlu2 %v2608_v56 }
 0xa27   :  { %v2565_v29 = vpop.xlane.xlu1 %2564 }
 0xa28   :  { %v2575_v51 = vsub.f32 %v2543_v15, %v2565_v29 }
 0xa2a   :  { %v2589_v52 = vmul.f32 1.442695, %v2575_v51 }
 0xa2c   :  { %10394 = vpow2.f32 %v2589_v52 }
 0xa2f   :  { %v2568_v42 = vpop.xlane.xlu2 %2567 }
 0xa30   :  { %v2576_v6 = vsub.f32 %v2544_v47, %v2568_v42 }
 0xa32   :  { %v10395_v32 = vpop.eup %10394  ;;  %v2591_v23 = vmul.f32 1.442695, %v2576_v6 }
 0xa33   :  { %v2611_v1 = vsel %vm516_vm8, %v10395_v32, 0.0 }
 0xa34   :  { %10396 = vpow2.f32 %v2591_v23  ;;  %2612 = vadd.xlane.f32.xlu0 %v2611_v1 }
 0xa3a   :  { %v10397_v25 = vpop.eup %10396 }
 0xa3b   :  { %v2614_v58 = vsel %vm516_vm8, %v10397_v25, 0.0 }
 0xa3c   :  { %2615 = vadd.xlane.f32.xlu1 %v2614_v58 }
 0xa79   :  { %v2595_v16 = vpop.xlane.xlu0 %2594 }
 0xa7a   :  { %10398 = vrcp.f32 %v2595_v16  ;;  %v2598_v57 = vpop.xlane.xlu1 %2597 }
 0xa7b   :  { %10400 = vrcp.f32 %v2598_v57 }
 0xa80   :  { %v10399_v62 = vpop.eup %10398 }
 0xa81   :  { %v10401_v15 = vpop.eup %10400  ;;  %v2625_v49 = vmul.f32 %v10399_v62, %v10383_v26 }
 0xa82   :  { %v2626_v53 = vmul.f32 %v10401_v15, %v10385_v37 }
 0xa83   :  { %v2633_v54 = vpack.c.bf16 %v2625_v49, %v2625_v49 }
 0xa84   :  { %v2634_v47 = vpack.c.bf16 %v2626_v53, %v2626_v53 }
 0xa85   :  { %9693 = vmatmul.msk.bf16.vlgmr.msra.gmra.mxu0 %vm516_vm8, %v2633_v54 }
 0xa86   :  { %9694 = vmatmul.msk.bf16.vlgmr.msrb.gmra.mxu1 %vm516_vm8, %v2634_v47 }
 0xa87   :  { %v2601_v2 = vpop.xlane.xlu2 %2600 }
 0xa88   :  { %10402 = vrcp.f32 %v2601_v2 }
 0xa8e   :  { %v10403_v46 = vpop.eup %10402 }
 0xa8f   :  { %v2627_v7 = vmul.f32 %v10403_v46, %v10387_v34  ;;  %v2604_v28 = vpop.xlane.xlu0 %2603  ;;  %v11666_v46 = vld [vmem:[%s10902_s14] ss:$0 sm:$0xff]  ;;  %s13841_s14 = sld [smem:[#allocation16_spill]] }
 0xa90   :  { %10404 = vrcp.f32 %v2604_v28 }
 0xa91   :  { %v2635_v8 = vpack.c.bf16 %v2627_v7, %v2627_v7  ;;  %v2607_v55 = vpop.xlane.xlu1 %2606  ;;  %v10782_v7 = vld [vmem:[%s10857_s5] sm:$0xff] }
 0xa92   :  { %10406 = vrcp.f32 %v2607_v55 }
 0xa93   :  { %9695 = vmatmul.msk.bf16.vlgmr.msrb.gmra.mxu2 %vm516_vm8, %v2635_v8  ;;  %v1578_v8 = vadd.f32 %v11428_v48, %v11477_v50 }
 0xa96   :  { %v10405_v13 = vpop.eup %10404 }
 0xa97   :  { %v2628_v26 = vmul.f32 %v10405_v13, %v10389_v22  ;;  %v2216_v13 = vadd.f32 %v11614_v33, %v1578_v8  ;;  %v10784_v33 = vld [vmem:[%s10857_s5 + $0x10] sm:$0xff] }
 0xa98   :  { %v10407_v37 = vpop.eup %10406 }
 0xa99   :  { %v2636_v43 = vpack.c.bf16 %v2628_v26, %v2628_v26  ;;  %v2629_v12 = vmul.f32 %v10407_v37, %v10391_v44  ;;  %v2610_v31 = vpop.xlane.xlu2 %2609  ;;  %v9701_v44 = vld [vmem:[%s10897_s8 + $0xc] sm:$0xf]  ;;  %s13840_s8 = sld [smem:[#allocation13_spill]] }
 0xa9a   :  { %10408 = vrcp.f32 %v2610_v31  ;;  %v2812_v59 = vsel %vm776_vm12, %v9701_v44, 0  ;;  %v1588_v44 = vadd.f32 %v11444_v38, %v11487_v63 }
 0xa9b   :  { %v2637_v60 = vpack.c.bf16 %v2629_v12, %v2629_v12  ;;  %9696 = vmatmul.msk.bf16.vlgmr.msrb.gmra.mxu3 %vm516_vm8, %v2636_v43  ;;  %2821 = vmatpush.bf16.msra.mxu0 %v2812_v59 }
 0xa9d   :  { %9697 = vmatmul.msk.bf16.vlgmr.msrb.gmra.mxu0 %vm516_vm8, %v2637_v60 }
 0xaa0   :  { %v10409_v20 = vpop.eup %10408 }
 0xaa1   :  { %v2630_v36 = vmul.f32 %v10409_v20, %v10393_v45 }
 0xaa3   :  { %v2638_v34 = vpack.c.bf16 %v2630_v36, %v2630_v36  ;;  %v1583_v36 = vadd.f32 %v11438_v11, %v11483_v40 }
 0xaa5   :  { %9698 = vmatmul.msk.bf16.vlgmr.msra.gmra.mxu1 %vm516_vm8, %v2638_v34 }
 0xaa7   :  { %v2613_v17 = vpop.xlane.xlu0 %2612 }
 0xaa8   :  { %10410 = vrcp.f32 %v2613_v17  ;;  %v2218_v17 = vadd.f32 %v11620_v61, %v1583_v36  ;;  %v10786_v61 = vld [vmem:[%s10857_s5 + $0x20] sm:$0xff] }
 0xaae   :  { %v10411_v0 = vpop.eup %10410 }
 0xaaf   :  { %v2631_v21 = vmul.f32 %v10411_v0, %v10395_v32  ;;  %v2616_v14 = vpop.xlane.xlu1 %2615 }
 0xab0   :  { %10412 = vrcp.f32 %v2616_v14 }
 0xab1   :  { %v2639_v41 = vpack.c.bf16 %v2631_v21, %v2631_v21 }
 0xab3   :  { %9699 = vmatmul.msk.bf16.vlgmr.msra.gmra.mxu2 %vm516_vm8, %v2639_v41  ;;  %v10785_v41 = vld [vmem:[%s10857_s5 + $0x18] sm:$0xff] }
 0xab6   :  { %v10413_v22 = vpop.eup %10412 }
 0xab7   :  { %v2632_v35 = vmul.f32 %v10413_v22, %v10397_v25 }
 0xab9   :  { %v2640_v19 = vpack.c.bf16 %v2632_v35, %v2632_v35 }
 0xabb   :  { %9700 = vmatmul.msk.bf16.vlgmr.msra.gmra.mxu3 %vm516_vm8, %v2640_v19 }
 0xb02   :  { %v2656_v30 = vpop.f32.mrf.mxu0 }
 0xb03   :  { %v2675_v45 = vpop.f32.mrf.mxu1 }
 0xb04   :  { %v2793_v56 = vpack.c.bf16 %v2675_v45, %v2656_v30  ;;  %v2220_v30 = vadd.f32 %v11626_v27, %v1588_v44  ;;  %v10788_v27 = vld [vmem:[%s10857_s5 + $0x30] sm:$0xff] }
 0xb06   :  { %9702 = vmatmul.msk.bf16.vlgmr.msra.gmra.mxu0 %vm516_vm8, %v2793_v56 }
 0xb0a   :  { %v2658_v29 = vpop.f32.mrf.mxu0 }
 0xb0b   :  { %v2677_v51 = vpop.f32.mrf.mxu1 }
 0xb0c   :  { %v10787_v51 = vld [vmem:[%s10857_s5 + $0x28] sm:$0xff] }
 0xb16   :  { %v2694_v52 = vpop.f32.mrf.mxu2 }
 0xb1a   :  { %v2732_v42 = vpop.f32.mrf.mxu0 }
 0xb1e   :  { %v2696_v6 = vpop.f32.mrf.mxu2  ;;  %v2713_v32 = vpop.f32.mrf.mxu3 }
 0xb1f   :  { %v2794_v23 = vpack.c.bf16 %v2713_v32, %v2694_v52 }
 0xb21   :  { %9703 = vmatmul.msk.bf16.gmra.mxu0 %vm516_vm8, %v2794_v23 }
 0xb22   :  { %v2734_v1 = vpop.f32.mrf.mxu0  ;;  %v2751_v25 = vpop.f32.mrf.mxu1 }
 0xb23   :  { %v2795_v57 = vpack.c.bf16 %v2751_v25, %v2732_v42  ;;  %v1593_v1 = vadd.f32 %v11451_v39, %v11499_v5 }
 0xb26   :  { %v2715_v58 = vpop.f32.mrf.mxu3 }
 0xb2a   :  { %v2753_v16 = vpop.f32.mrf.mxu1 }
 0xb2b   :  { %v2222_v16 = vadd.f32 %v11632_v10, %v1593_v1 }
 0xb31   :  { %9704 = vmatmul.msk.bf16.gmra.mxu0 %vm516_vm8, %v2795_v57 }
 0xb36   :  { %v2770_v62 = vpop.f32.mrf.mxu2 }
 0xb3e   :  { %v2772_v15 = vpop.f32.mrf.mxu2  ;;  %v2789_v49 = vpop.f32.mrf.mxu3 }
 0xb3f   :  { %v2796_v53 = vpack.c.bf16 %v2789_v49, %v2770_v62  ;;  %v10789_v49 = vld [vmem:[%s10857_s5 + $0x38] sm:$0xff] }
 0xb41   :  { %9705 = vmatmul.msk.bf16.gmra.mxu0 %vm516_vm8, %v2796_v53 }
 0xb46   :  { %v2791_v54 = vpop.f32.mrf.mxu3 }
 0xb83   :  { %v2823_v47 = vpop.f32.mrf.mxu0 }
 0xb84   :  { %v2843_v2 = vadd.f32 %v2823_v47, %v11612_v4  ;;  %v10783_v4 = vld [vmem:[%s10857_s5 + $0x8] sm:$0xff]  ;;  %s13834_s5 = sld [smem:[#allocation9_spill]] }
 0xb86   :  { %v2851_v28 = vadd.f32 %v10782_v7, %v2843_v2 }
 0xb88   :  { %v11672_v55 = vadd.f32 %v11666_v46, %v2851_v28 }
 0xb8a   :  { %v2894_v26 = vsel %vm135_vm0, %v11672_v55, 0.0 }
 0xb8b   :  { %v2825_v37 = vpop.f32.mrf.mxu0  ;;  %2895 = vadd.xlane.f32.xlu2 %v2894_v26 }
 0xb8c   :  { %v2844_v43 = vadd.f32 %v2825_v37, %v2216_v13 }
 0xb8e   :  { %v2852_v12 = vadd.f32 %v10783_v4, %v2844_v43 }
 0xb90   :  { %v11679_v31 = vadd.f32 %v11666_v46, %v2852_v12 }
 0xb92   :  { %v2897_v48 = vsel %vm135_vm0, %v11679_v31, 0.0 }
 0xb93   :  { %2898 = vadd.xlane.f32.xlu0 %v2897_v48 }
 0xb9e   :  { %v2828_v50 = vpop.f32.mrf.mxu0 }
 0xb9f   :  { %v2845_v60 = vadd.f32 %v2828_v50, %v11618_v9 }
 0xba1   :  { %v2853_v20 = vadd.f32 %v10784_v33, %v2845_v60 }
 0xba3   :  { %v11688_v34 = vadd.f32 %v11666_v46, %v2853_v20 }
 0xba5   :  { %v2900_v0 = vsel %vm135_vm0, %v11688_v34, 0.0 }
 0xba6   :  { %2901 = vadd.xlane.f32.xlu1 %v2900_v0  ;;  %v2830_v21 = vpop.f32.mrf.mxu0 }
 0xba7   :  { %v2846_v14 = vadd.f32 %v2830_v21, %v2218_v17 }
 0xba9   :  { %v2854_v9 = vadd.f32 %v10785_v41, %v2846_v14 }
 0xbab   :  { %v11695_v22 = vadd.f32 %v11666_v46, %v2854_v9 }
 0xbad   :  { %v2903_v11 = vsel %vm135_vm0, %v11695_v22, 0.0 }
 0xbae   :  { %2904 = vadd.xlane.f32.xlu2 %v2903_v11  ;;  %v2833_v40 = vpop.f32.mrf.mxu0 }
 0xbaf   :  { %v2847_v35 = vadd.f32 %v2833_v40, %v11624_v24 }
 0xbb1   :  { %v2855_v19 = vadd.f32 %v10786_v61, %v2847_v35 }
 0xbb3   :  { %v11704_v59 = vadd.f32 %v11666_v46, %v2855_v19 }
 0xbb5   :  { %v2906_v45 = vsel %vm135_vm0, %v11704_v59, 0.0 }
 0xbb6   :  { %2907 = vadd.xlane.f32.xlu0 %v2906_v45  ;;  %v2835_v56 = vpop.f32.mrf.mxu0 }
 0xbb7   :  { %v2848_v29 = vadd.f32 %v2835_v56, %v2220_v30  ;;  %v10162_v30 = vld [vmem:[%s10917_s30 + $0x8] sm:$0xff] }
 0xbb8   :  { %3129 = vmatpush.bf16.msrb.mxu1 %v10162_v30 }
 0xbb9   :  { %v2856_v52 = vadd.f32 %v10787_v51, %v2848_v29  ;;  %v10161_v29 = vld [vmem:[%s10917_s30] sm:$0xff] }
 0xbbb   :  { %v11711_v24 = vadd.f32 %v11666_v46, %v2856_v52 }
 0xbbc   :  { %3130 = vmatpush.bf16.msrb.mxu1 %v10161_v29 }
 0xbbd   :  { %v2909_v42 = vsel %vm135_vm0, %v11711_v24, 0.0 }
 0xbbe   :  { %2910 = vadd.xlane.f32.xlu1 %v2909_v42  ;;  %v2838_v38 = vpop.f32.mrf.mxu0 }
 0xbbf   :  { %v2849_v63 = vadd.f32 %v2838_v38, %v11630_v3 }
 0xbc1   :  { %v2857_v6 = vadd.f32 %v10788_v27, %v2849_v63 }
 0xbc3   :  { %v11718_v32 = vadd.f32 %v11666_v46, %v2857_v6 }
 0xbc5   :  { %v2912_v23 = vsel %vm135_vm0, %v11718_v32, 0.0 }
 0xbc6   :  { %2913 = vadd.xlane.f32.xlu1 %v2912_v23  ;;  %v2840_v25 = vpop.f32.mrf.mxu0 }
 0xbc7   :  { %v2850_v62 = vadd.f32 %v2840_v25, %v2222_v16 }
 0xbc9   :  { %v2858_v53 = vadd.f32 %v10789_v49, %v2850_v62 }
 0xbcb   :  { %v11738_v10 = vadd.f32 %v11666_v46, %v2858_v53 }
 0xbcd   :  { %v2915_v28 = vsel %vm135_vm0, %v11738_v10, 0.0 }
 0xbfe   :  { %v2896_v58 = vpop.xlane.xlu2 %2895 }
 0xbff   :  { %v2918_v57 = vmul.f32 %v2896_v58, %v11016_v18 }
 0xc01   :  { %v11727_v3 = vsub.f32 %v11672_v55, %v2918_v57 }
 0xc03   :  { %v2934_v15 = vmul.f32 %v11727_v3, %v11727_v3 }
 0xc05   :  { %v2942_v54 = vsel %vm135_vm0, %v2934_v15, 0.0 }
 0xc06   :  { %v2899_v47 = vpop.xlane.xlu0 %2898  ;;  %2943 = vadd.xlane.f32.xlu2 %v2942_v54 }
 0xc07   :  { %v2919_v39 = vmul.f32 %v2899_v47, %v11016_v18 }
 0xc09   :  { %v11735_v5 = vsub.f32 %v11679_v31, %v2919_v39 }
 0xc0b   :  { %v2935_v2 = vmul.f32 %v11735_v5, %v11735_v5 }
 0xc0d   :  { %v2945_v7 = vsel %vm135_vm0, %v2935_v2, 0.0  ;;  %v11792_v2 = vld [vmem:[%s10907_s19] ss:$0 sm:$0xff]  ;;  %s13842_s19 = sld [smem:[#allocation14_spill]] }
 0xc0e   :  { %2946 = vadd.xlane.f32.xlu0 %v2945_v7  ;;  %2916 = vadd.xlane.f32.xlu2 %v2915_v28 }
 0xc19   :  { %v2902_v8 = vpop.xlane.xlu1 %2901 }
 0xc1a   :  { %v2920_v13 = vmul.f32 %v2902_v8, %v11016_v18 }
 0xc1c   :  { %v11747_v26 = vsub.f32 %v11688_v34, %v2920_v13 }
 0xc1e   :  { %v2936_v46 = vmul.f32 %v11747_v26, %v11747_v26 }
 0xc20   :  { %v2948_v37 = vsel %vm135_vm0, %v2936_v46, 0.0 }
 0xc21   :  { %v2905_v43 = vpop.xlane.xlu2 %2904  ;;  %2949 = vadd.xlane.f32.xlu0 %v2948_v37 }
 0xc22   :  { %v2921_v4 = vmul.f32 %v2905_v43, %v11016_v18  ;;  %v11797_v43 = vld [vmem:[%s10912_s24] ss:$0 sm:$0xff]  ;;  %s13843_s24 = sld [smem:[#allocation15_spill]] }
 0xc24   :  { %v11754_v12 = vsub.f32 %v11695_v22, %v2921_v4 }
 0xc26   :  { %v2937_v48 = vmul.f32 %v11754_v12, %v11754_v12 }
 0xc28   :  { %v2951_v50 = vsel %vm135_vm0, %v2937_v48, 0.0 }
 0xc29   :  { %v2908_v60 = vpop.xlane.xlu0 %2907  ;;  %2952 = vadd.xlane.f32.xlu1 %v2951_v50 }
 0xc2a   :  { %v2922_v33 = vmul.f32 %v2908_v60, %v11016_v18 }
 0xc2c   :  { %v11761_v20 = vsub.f32 %v11704_v59, %v2922_v33 }
 0xc2e   :  { %v2938_v36 = vmul.f32 %v11761_v20, %v11761_v20 }
 0xc30   :  { %v2954_v17 = vsel %vm135_vm0, %v2938_v36, 0.0 }
 0xc31   :  { %v2911_v0 = vpop.xlane.xlu1 %2910  ;;  %2955 = vadd.xlane.f32.xlu2 %v2954_v17 }
 0xc32   :  { %v2923_v21 = vmul.f32 %v2911_v0, %v11016_v18 }
 0xc34   :  { %v11768_v14 = vsub.f32 %v11711_v24, %v2923_v21 }
 0xc36   :  { %v2939_v41 = vmul.f32 %v11768_v14, %v11768_v14 }
 0xc38   :  { %v2957_v9 = vsel %vm135_vm0, %v2939_v41, 0.0 }
 0xc39   :  { %2958 = vadd.xlane.f32.xlu0 %v2957_v9  ;;  %v2914_v11 = vpop.xlane.xlu1 %2913 }
 0xc3a   :  { %v2924_v40 = vmul.f32 %v2914_v11, %v11016_v18 }
 0xc3c   :  { %v11775_v35 = vsub.f32 %v11718_v32, %v2924_v40 }
 0xc3e   :  { %v2940_v61 = vmul.f32 %v11775_v35, %v11775_v35 }
 0xc40   :  { %v2960_v19 = vsel %vm135_vm0, %v2940_v61, 0.0 }
 0xc41   :  { %2961 = vadd.xlane.f32.xlu1 %v2960_v19 }
 0xc79   :  { %v2944_v44 = vpop.xlane.xlu2 %2943 }
 0xc7a   :  { %v2966_v45 = vmul.f32 %v2944_v44, %v11016_v18 }
 0xc7c   :  { %v2974_v56 = vadd.f32 1e-05, %v2966_v45 }
 0xc7e   :  { %10414 = vrsqrt.f32 %v2974_v56  ;;  %vm2988_vm14 = vweird.f32 %v2974_v56 }
 0xc81   :  { %v2947_v51 = vpop.xlane.xlu0 %2946  ;;  %v2917_v52 = vpop.xlane.xlu2 %2916 }
 0xc82   :  { %v2967_v42 = vmul.f32 %v2947_v51, %v11016_v18  ;;  %v2925_v38 = vmul.f32 %v2917_v52, %v11016_v18 }
 0xc84   :  { %v10415_v63 = vpop.eup %10414  ;;  %v2975_v27 = vadd.f32 1e-05, %v2967_v42  ;;  %v11786_v6 = vsub.f32 %v11738_v10, %v2925_v38 }
 0xc85   :  { %v2983_v23 = vmul.f32 %v10415_v63, %v2974_v56  ;;  %vm2989_vm13 = vweird.f32 %v10415_v63 }
 0xc86   :  { %10416 = vrsqrt.f32 %v2975_v27  ;;  %v2941_v1 = vmul.f32 %v11786_v6, %v11786_v6  ;;  %vm2990_vm15 = vmor %vm2988_vm14, %vm2989_vm13  ;;  %vm2998_vm2 = vweird.f32 %v2975_v27 }
 0xc87   :  { %v2984_v25 = vmul.f32 %v10415_v63, %v2983_v23 }
 0xc88   :  { %v2963_v58 = vsel %vm135_vm0, %v2941_v1, 0.0 }
 0xc89   :  { %v2985_v16 = vmul.f32 0.5, %v2984_v25  ;;  %2964 = vadd.xlane.f32.xlu2 %v2963_v58 }
 0xc8b   :  { %v2986_v57 = vsub.f32 1.5, %v2985_v16 }
 0xc8c   :  { %v10417_v62 = vpop.eup %10416 }
 0xc8d   :  { %v2987_v15 = vmul.f32 %v10415_v63, %v2986_v57  ;;  %v2993_v49 = vmul.f32 %v10417_v62, %v2975_v27  ;;  %vm2999_vm1 = vweird.f32 %v10417_v62 }
 0xc8e   :  { %vm3000_vm3 = vmor %vm2998_vm2, %vm2999_vm1 }
 0xc8f   :  { %v2994_v53 = vmul.f32 %v10417_v62, %v2993_v49  ;;  %v2991_v54 = vsel %vm2990_vm15, %v10415_v63, %v2987_v15 }
 0xc90   :  { %v3062_v7 = vmul.f32 %v2991_v54, %v11727_v3 }
 0xc91   :  { %v2995_v47 = vmul.f32 0.5, %v2994_v53 }
 0xc92   :  { %v3073_v4 = vmul.f32 %v11792_v2, %v3062_v7 }
 0xc93   :  { %v2996_v39 = vsub.f32 1.5, %v2995_v47 }
 0xc94   :  { %v2950_v28 = vpop.xlane.xlu0 %2949  ;;  %v3084_v60 = vadd.f32 %v11797_v43, %v3073_v4 }
 0xc95   :  { %v2997_v8 = vmul.f32 %v10417_v62, %v2996_v39  ;;  %v2968_v13 = vmul.f32 %v2950_v28, %v11016_v18 }
 0xc97   :  { %v3001_v46 = vsel %vm3000_vm3, %v10417_v62, %v2997_v8  ;;  %v2976_v37 = vadd.f32 1e-05, %v2968_v13 }
 0xc98   :  { %v3063_v48 = vmul.f32 %v3001_v46, %v11735_v5 }
 0xc99   :  { %10418 = vrsqrt.f32 %v2976_v37  ;;  %vm3008_vm5 = vweird.f32 %v2976_v37 }
 0xc9a   :  { %v3074_v50 = vmul.f32 %v11792_v2, %v3063_v48 }
 0xc9c   :  { %v3085_v3 = vadd.f32 %v11797_v43, %v3074_v50  ;;  %v2953_v33 = vpop.xlane.xlu1 %2952 }
 0xc9d   :  { %v2969_v36 = vmul.f32 %v2953_v33, %v11016_v18 }
 0xc9e   :  { %v3092_v17 = vpack.c.bf16 %v3085_v3, %v3084_v60 }
 0xc9f   :  { %v10419_v0 = vpop.eup %10418  ;;  %v2977_v21 = vadd.f32 1e-05, %v2969_v36 }
 0xca0   :  { %v3003_v41 = vmul.f32 %v10419_v0, %v2976_v37  ;;  %9714 = vmatmul.msk.bf16.vlgmr.msrb.gmra.mxu1 %vm135_vm0, %v3092_v17  ;;  %vm3009_vm4 = vweird.f32 %v10419_v0 }
 0xca1   :  { %10420 = vrsqrt.f32 %v2977_v21  ;;  %vm3010_vm6 = vmor %vm3008_vm5, %vm3009_vm4  ;;  %vm3018_vm9 = vweird.f32 %v2977_v21 }
 0xca2   :  { %v3004_v9 = vmul.f32 %v10419_v0, %v3003_v41 }
 0xca4   :  { %v3005_v11 = vmul.f32 0.5, %v3004_v9  ;;  %v2956_v5 = vpop.xlane.xlu2 %2955 }
 0xca5   :  { %v2970_v40 = vmul.f32 %v2956_v5, %v11016_v18 }
 0xca6   :  { %v3006_v61 = vsub.f32 1.5, %v3005_v11 }
 0xca7   :  { %v10421_v19 = vpop.eup %10420  ;;  %v2978_v44 = vadd.f32 1e-05, %v2970_v40 }
 0xca8   :  { %v3007_v30 = vmul.f32 %v10419_v0, %v3006_v61  ;;  %v3013_v45 = vmul.f32 %v10421_v19, %v2977_v21  ;;  %vm3019_vm7 = vweird.f32 %v10421_v19 }
 0xca9   :  { %10422 = vrsqrt.f32 %v2978_v44  ;;  %vm3020_vm10 = vmor %vm3018_vm9, %vm3019_vm7  ;;  %vm3028_vm13 = vweird.f32 %v2978_v44 }
 0xcaa   :  { %v3014_v56 = vmul.f32 %v10421_v19, %v3013_v45  ;;  %v3011_v29 = vsel %vm3010_vm6, %v10419_v0, %v3007_v30 }
 0xcab   :  { %v3064_v27 = vmul.f32 %v3011_v29, %v11747_v26 }
 0xcac   :  { %v3015_v51 = vmul.f32 0.5, %v3014_v56  ;;  %v2959_v52 = vpop.xlane.xlu0 %2958 }
 0xcad   :  { %v2971_v42 = vmul.f32 %v2959_v52, %v11016_v18  ;;  %v3075_v62 = vmul.f32 %v11792_v2, %v3064_v27 }
 0xcae   :  { %v3016_v38 = vsub.f32 1.5, %v3015_v51 }
 0xcaf   :  { %v10423_v63 = vpop.eup %10422  ;;  %v2979_v23 = vadd.f32 1e-05, %v2971_v42  ;;  %v3086_v47 = vadd.f32 %v11797_v43, %v3075_v62 }
 0xcb0   :  { %v3017_v1 = vmul.f32 %v10421_v19, %v3016_v38  ;;  %v3023_v25 = vmul.f32 %v10423_v63, %v2978_v44  ;;  %vm3029_vm11 = vweird.f32 %v10423_v63 }
 0xcb1   :  { %10424 = vrsqrt.f32 %v2979_v23  ;;  %vm3030_vm14 = vmor %vm3028_vm13, %vm3029_vm11  ;;  %vm3038_vm1 = vweird.f32 %v2979_v23 }
 0xcb2   :  { %v3021_v58 = vsel %vm3020_vm10, %v10421_v19, %v3017_v1  ;;  %v3024_v16 = vmul.f32 %v10423_v63, %v3023_v25 }
 0xcb3   :  { %v3065_v57 = vmul.f32 %v3021_v58, %v11754_v12 }
 0xcb4   :  { %v3025_v15 = vmul.f32 0.5, %v3024_v16  ;;  %v2962_v0 = vpop.xlane.xlu1 %2961 }
 0xcb5   :  { %v3076_v49 = vmul.f32 %v11792_v2, %v3065_v57  ;;  %v11831_v57 = vld [vmem:[%s10922_s6] ss:$0 sm:$0xff]  ;;  %s9402_s6 = sshll.u32 %s11002_s4, 4  ;;  %s9403_s6 = int_to_ptr.hbm [resolvable:$true] %s9402_s6 }
 0xcb6   :  { %v3026_v53 = vsub.f32 1.5, %v3025_v15  ;;  %v10170_v15 = vld [vmem:[%s10927_s12 + $0x38] sm:$0xff] }
 0xcb7   :  { %v10425_v54 = vpop.eup %10424  ;;  %v3087_v26 = vadd.f32 %v11797_v43, %v3076_v49  ;;  %3535 = vmatpush.bf16.msrb.mxu2 %v10170_v15 }
 0xcb8   :  { %v3027_v39 = vmul.f32 %v10423_v63, %v3026_v53  ;;  %v3033_v7 = vmul.f32 %v10425_v54, %v2979_v23  ;;  %vm3039_vm15 = vweird.f32 %v10425_v54 }
 0xcb9   :  { %v3093_v28 = vpack.c.bf16 %v3087_v26, %v3086_v47  ;;  %vm3040_vm2 = vmor %vm3038_vm1, %vm3039_vm15  ;;  %v10169_v47 = vld [vmem:[%s10927_s12 + $0x30] sm:$0xff] }
 0xcba   :  { %v3034_v8 = vmul.f32 %v10425_v54, %v3033_v7  ;;  %v3031_v12 = vsel %vm3030_vm14, %v10423_v63, %v3027_v39 }
 0xcbb   :  { %9715 = vmatmul.msk.bf16.gmra.mxu1 %vm135_vm0, %v3093_v28  ;;  %v3066_v37 = vmul.f32 %v3031_v12, %v11761_v20  ;;  %v2972_v20 = vmul.f32 %v2962_v0, %v11016_v18  ;;  %3536 = vmatpush.bf16.msrb.mxu2 %v10169_v47  ;;  %v10168_v28 = vld [vmem:[%s10927_s12 + $0x28] sm:$0xff] }
 0xcbc   :  { %v3035_v13 = vmul.f32 0.5, %v3034_v8 }
 0xcbd   :  { %v3077_v60 = vmul.f32 %v11792_v2, %v3066_v37  ;;  %v2980_v21 = vadd.f32 1e-05, %v2972_v20  ;;  %v10167_v37 = vld [vmem:[%s10927_s12 + $0x20] sm:$0xff] }
 0xcbe   :  { %v3036_v46 = vsub.f32 1.5, %v3035_v13 }
 0xcbf   :  { %v3088_v33 = vadd.f32 %v11797_v43, %v3077_v60  ;;  %10426 = vrsqrt.f32 %v2980_v21  ;;  %vm3048_vm4 = vweird.f32 %v2980_v21  ;;  %3537 = vmatpush.bf16.msrb.mxu2 %v10168_v28 }
 0xcc0   :  { %v3037_v4 = vmul.f32 %v10425_v54, %v3036_v46 }
 0xcc2   :  { %v3041_v48 = vsel %vm3040_vm2, %v10425_v54, %v3037_v4 }
 0xcc3   :  { %v3067_v50 = vmul.f32 %v3041_v48, %v11768_v14  ;;  %3538 = vmatpush.bf16.msrb.mxu2 %v10167_v37 }
 0xcc5   :  { %v3078_v3 = vmul.f32 %v11792_v2, %v3067_v50  ;;  %v10427_v41 = vpop.eup %10426 }
 0xcc6   :  { %v3043_v9 = vmul.f32 %v10427_v41, %v2980_v21  ;;  %vm3049_vm3 = vweird.f32 %v10427_v41 }
 0xcc7   :  { %v3089_v36 = vadd.f32 %v11797_v43, %v3078_v3  ;;  %vm3050_vm5 = vmor %vm3048_vm4, %vm3049_vm3 }
 0xcc8   :  { %v3044_v11 = vmul.f32 %v10427_v41, %v3043_v9  ;;  %v10165_v9 = vld [vmem:[%s10927_s12 + $0x10] sm:$0xff] }
 0xcc9   :  { %v3094_v17 = vpack.c.bf16 %v3089_v36, %v3088_v33  ;;  %v10166_v33 = vld [vmem:[%s10927_s12 + $0x18] sm:$0xff] }
 0xcca   :  { %v3045_v61 = vmul.f32 0.5, %v3044_v11  ;;  %3539 = vmatpush.bf16.msrb.mxu2 %v10166_v33 }
 0xccb   :  { %9716 = vmatmul.msk.bf16.gmra.mxu1 %vm135_vm0, %v3094_v17 }
 0xccc   :  { %v3046_v19 = vsub.f32 1.5, %v3045_v61 }
 0xcce   :  { %v3047_v30 = vmul.f32 %v10427_v41, %v3046_v19  ;;  %3540 = vmatpush.bf16.msrb.mxu2 %v10165_v9 }
 0xcd0   :  { %v3051_v29 = vsel %vm3050_vm5, %v10427_v41, %v3047_v30 }
 0xcd1   :  { %v3068_v42 = vmul.f32 %v3051_v29, %v11775_v35  ;;  %v10164_v29 = vld [vmem:[%s10927_s12 + $0x8] sm:$0xff] }
 0xcd2   :  { %3541 = vmatpush.bf16.msrb.mxu2 %v10164_v29 }
 0xcd3   :  { %v3079_v23 = vmul.f32 %v11792_v2, %v3068_v42 }
 0xcd5   :  { %v3090_v25 = vadd.f32 %v11797_v43, %v3079_v23 }
 0xcfc   :  { %v2965_v14 = vpop.xlane.xlu2 %2964 }
 0xcfd   :  { %v2973_v5 = vmul.f32 %v2965_v14, %v11016_v18 }
 0xcff   :  { %v2981_v40 = vadd.f32 1e-05, %v2973_v5 }
 0xd01   :  { %10428 = vrsqrt.f32 %v2981_v40  ;;  %vm3058_vm7 = vweird.f32 %v2981_v40 }
 0xd07   :  { %v10429_v44 = vpop.eup %10428 }
 0xd08   :  { %v3053_v45 = vmul.f32 %v10429_v44, %v2981_v40  ;;  %vm3059_vm6 = vweird.f32 %v10429_v44 }
 0xd09   :  { %vm3060_vm9 = vmor %vm3058_vm7, %vm3059_vm6 }
 0xd0a   :  { %v3054_v56 = vmul.f32 %v10429_v44, %v3053_v45 }
 0xd0c   :  { %v3055_v51 = vmul.f32 0.5, %v3054_v56 }
 0xd0e   :  { %v3056_v52 = vsub.f32 1.5, %v3055_v51 }
 0xd10   :  { %v3057_v38 = vmul.f32 %v10429_v44, %v3056_v52 }
 0xd12   :  { %v3061_v63 = vsel %vm3060_vm9, %v10429_v44, %v3057_v38 }
 0xd13   :  { %v3069_v27 = vmul.f32 %v3061_v63, %v11786_v6 }
 0xd15   :  { %v3080_v1 = vmul.f32 %v11792_v2, %v3069_v27 }
 0xd17   :  { %v3091_v58 = vadd.f32 %v11797_v43, %v3080_v1 }
 0xd19   :  { %v3095_v16 = vpack.c.bf16 %v3091_v58, %v3090_v25 }
 0xd1b   :  { %9717 = vmatmul.msk.bf16.gmra.mxu1 %vm135_vm0, %v3095_v16 }
 0xd1d   :  { %v3132_v35 = vpop.f32.mrf.mxu1 }
 0xd1e   :  { %v11835_v62 = vadd.f32 %v11831_v57, %v3132_v35  ;;  %v10163_v35 = vld [vmem:[%s10927_s12] sm:$0xff]  ;;  %s10802_s12 = sshra.s32 %s9403_s6, 4  ;;  %s10803_s12 = int_to_ptr.hbm [resolvable:$true] %s10802_s12 }
 0xd1f   :  { %3542 = vmatpush.bf16.msrb.mxu2 %v10163_v35  ;;  %p10807_p1 = scmp.lt.s32.totalorder %s10803_s12, %s11002_s4 }
 0xd20   :  { %v11838_v6 = vmul.f32 0.70710677, %v11835_v62 }
 0xd22   :  { %vm3168_vm10 = vcmp.ge.f32.partialorder %v11838_v6, 0.0  ;;  %v3176_v2 = vsub.f32 0.0, %v11838_v6 }
 0xd24   :  { %v3184_v43 = vsel %vm3168_vm10, %v11838_v6, %v3176_v2 }
 0xd25   :  { %v3192_v49 = vmul.f32 0.3275911, %v3184_v43  ;;  %v3134_v53 = vpop.f32.mrf.mxu1  ;;  %v3400_v14 = vsub.f32 0.0, %v3184_v43 }
 0xd26   :  { %v11847_v54 = vadd.f32 %v11831_v57, %v3134_v53 }
 0xd27   :  { %v3200_v26 = vadd.f32 1.0, %v3192_v49  ;;  %v3408_v51 = vmul.f32 %v3400_v14, %v3184_v43 }
 0xd28   :  { %v11851_v39 = vmul.f32 0.70710677, %v11847_v54 }
 0xd29   :  { %10430 = vrcp.f32 %v3200_v26  ;;  %v3219_v50 = vand.u32 2147483648, %v3200_v26  ;;  %v3217_v3 = vand.u32 2147483647, %v3200_v26  ;;  %vm3213_vm14 = vweird.f32 %v3200_v26 }
 0xd2a   :  { %vm3169_vm11 = vcmp.ge.f32.partialorder %v11851_v39, 0.0  ;;  %v3177_v7 = vsub.f32 0.0, %v11851_v39  ;;  %v3416_v2 = vmul.f32 1.442695, %v3408_v51 }
 0xd2b   :  { %v3220_v0 = vor.u32 1.1754944e-38, %v3219_v50  ;;  %vm3218_vm1 = vcmp.eq.f32.partialorder %v3217_v3, 8.507059e+37 }
 0xd2c   :  { %v11859_v8 = vsel %vm3169_vm11, %v11851_v39, %v3177_v7 }
 0xd2d   :  { %v3193_v12 = vmul.f32 0.3275911, %v11859_v8  ;;  %v3401_v27 = vsub.f32 0.0, %v11859_v8 }
 0xd2f   :  { %v10431_v13 = vpop.eup %10430  ;;  %v3201_v46 = vadd.f32 1.0, %v3193_v12  ;;  %v3409_v12 = vmul.f32 %v3401_v27, %v11859_v8 }
 0xd30   :  { %v3209_v4 = vmul.f32 %v10431_v13, %v3200_v26  ;;  %vm3214_vm13 = vweird.f32 %v10431_v13 }
 0xd31   :  { %10432 = vrcp.f32 %v3201_v46  ;;  %vm3215_vm15 = vmor %vm3213_vm14, %vm3214_vm13  ;;  %v3234_v19 = vand.u32 2147483648, %v3201_v46  ;;  %v3232_v56 = vand.u32 2147483647, %v3201_v46  ;;  %vm3228_vm4 = vweird.f32 %v3201_v46 }
 0xd32   :  { %v3210_v48 = vsub.f32 1.0, %v3209_v4  ;;  %v3418_v50 = vmul.f32 1.442695, %v3409_v12 }
 0xd33   :  { %v3235_v63 = vor.u32 1.1754944e-38, %v3234_v19  ;;  %vm3233_vm6 = vcmp.eq.f32.partialorder %v3232_v56, 8.507059e+37 }
 0xd34   :  { %v3211_v60 = vmul.f32 %v10431_v13, %v3210_v48 }
 0xd36   :  { %v3212_v36 = vadd.f32 %v10431_v13, %v3211_v60 }
 0xd37   :  { %v10433_v17 = vpop.eup %10432 }
 0xd38   :  { %v3216_v20 = vsel %vm3215_vm15, %v10431_v13, %v3212_v36  ;;  %v3224_v21 = vmul.f32 %v10433_v17, %v3201_v46  ;;  %v3137_v41 = vpop.f32.mrf.mxu1  ;;  %vm3229_vm2 = vweird.f32 %v10433_v17 }
 0xd39   :  { %v3221_v11 = vsel %vm3218_vm1, %v3220_v0, %v3216_v20  ;;  %v11866_v5 = vadd.f32 %v11831_v57, %v3137_v41  ;;  %vm3230_vm5 = vmor %vm3228_vm4, %vm3229_vm2 }
 0xd3a   :  { %v3328_v40 = vmul.f32 1.0614054, %v3221_v11  ;;  %v3225_v61 = vsub.f32 1.0, %v3224_v21 }
 0xd3b   :  { %v11869_v44 = vmul.f32 0.70710677, %v11866_v5 }
 0xd3c   :  { %v3336_v30 = vadd.f32 -1.4531521, %v3328_v40  ;;  %v3226_v45 = vmul.f32 %v10433_v17, %v3225_v61 }
 0xd3d   :  { %vm3170_vm3 = vcmp.ge.f32.partialorder %v11869_v44, 0.0  ;;  %v3178_v52 = vsub.f32 0.0, %v11869_v44 }
 0xd3e   :  { %v3344_v42 = vmul.f32 %v3336_v30, %v3221_v11  ;;  %v3227_v38 = vadd.f32 %v10433_v17, %v3226_v45 }
 0xd3f   :  { %v11878_v23 = vsel %vm3170_vm3, %v11869_v44, %v3178_v52 }
 0xd40   :  { %v3352_v1 = vadd.f32 1.4214138, %v3344_v42  ;;  %v3231_v25 = vsel %vm3230_vm5, %v10433_v17, %v3227_v38  ;;  %v3194_v58 = vmul.f32 0.3275911, %v11878_v23  ;;  %v3139_v16 = vpop.f32.mrf.mxu1  ;;  %v3402_v52 = vsub.f32 0.0, %v11878_v23 }
 0xd41   :  { %v3236_v15 = vsel %vm3233_vm6, %v3235_v63, %v3231_v25  ;;  %v11883_v43 = vadd.f32 %v11831_v57, %v3139_v16 }
 0xd42   :  { %v3360_v49 = vmul.f32 %v3352_v1, %v3221_v11  ;;  %v3329_v53 = vmul.f32 1.0614054, %v3236_v15  ;;  %v3202_v47 = vadd.f32 1.0, %v3194_v58 }
 0xd43   :  { %v11886_v26 = vmul.f32 0.70710677, %v11883_v43  ;;  %v3155_v44 = vmul.f32 0.5, %v11883_v43 }
 0xd44   :  { %v3368_v7 = vadd.f32 -0.28449672, %v3360_v49  ;;  %v3337_v28 = vadd.f32 -1.4531521, %v3329_v53  ;;  %10434 = vrcp.f32 %v3202_v47  ;;  %v3247_v45 = vand.u32 2147483647, %v3202_v47 }
 0xd45   :  { %10436 = vpow2.f32 %v3416_v2  ;;  %vm3171_vm7 = vcmp.ge.f32.partialorder %v11886_v26, 0.0  ;;  %v3179_v37 = vsub.f32 0.0, %v11886_v26  ;;  %v3249_v56 = vand.u32 2147483648, %v3202_v47 }
 0xd46   :  { %v3376_v13 = vmul.f32 %v3368_v7, %v3221_v11  ;;  %v3345_v46 = vmul.f32 %v3337_v28, %v3236_v15  ;;  %10438 = vpow2.f32 %v3418_v50  ;;  %vm3243_vm14 = vweird.f32 %v3202_v47 }
 0xd47   :  { %v11894_v60 = vsel %vm3171_vm7, %v11886_v26, %v3179_v37  ;;  %v3250_v16 = vor.u32 1.1754944e-38, %v3249_v56  ;;  %vm3248_vm1 = vcmp.eq.f32.partialorder %v3247_v45, 8.507059e+37 }
 0xd48   :  { %v3384_v4 = vadd.f32 0.2548296, %v3376_v13  ;;  %v3353_v48 = vadd.f32 1.4214138, %v3345_v46  ;;  %v3142_v3 = vpop.f32.mrf.mxu1  ;;  %v3195_v33 = vmul.f32 0.3275911, %v11894_v60 }
 0xd49   :  { %v11898_v8 = vadd.f32 %v11831_v57, %v3142_v3 }
 0xd4a   :  { %v10435_v36 = vpop.eup %10434  ;;  %v3392_v17 = vmul.f32 %v3384_v4, %v3221_v11  ;;  %v3361_v0 = vmul.f32 %v3353_v48, %v3236_v15  ;;  %v11900_v41 = vadd.f32 1.0, %v3195_v33 }
 0xd4b   :  { %v10437_v20 = vpop.eup %10436  ;;  %v3239_v21 = vmul.f32 %v10435_v36, %v3202_v47  ;;  %v11903_v40 = vmul.f32 0.70710677, %v11898_v8  ;;  %vm3244_vm9 = vweird.f32 %v10435_v36 }
 0xd4c   :  { %v3432_v9 = vmul.f32 %v10437_v20, %v3392_v17  ;;  %v3369_v14 = vadd.f32 -0.28449672, %v3361_v0  ;;  %10440 = vrcp.f32 %v11900_v41  ;;  %v10439_v25 = vpop.eup %10438  ;;  %vm3245_vm15 = vmor %vm3243_vm14, %vm3244_vm9  ;;  %v3262_v3 = vand.u32 2147483647, %v11900_v41 }
 0xd4d   :  { %v3240_v61 = vsub.f32 1.0, %v3239_v21  ;;  %vm3172_vm13 = vcmp.ge.f32.partialorder %v11903_v40, 0.0  ;;  %v3180_v11 = vsub.f32 0.0, %v11903_v40  ;;  %v3264_v33 = vand.u32 2147483648, %v11900_v41 }
 0xd4e   :  { %v3440_v19 = vsub.f32 1.0, %v3432_v9  ;;  %v3377_v30 = vmul.f32 %v3369_v14, %v3236_v15  ;;  %v3153_v0 = vmul.f32 0.5, %v11847_v54  ;;  %vm3258_vm4 = vweird.f32 %v11900_v41 }
 0xd4f   :  { %v3241_v29 = vmul.f32 %v10435_v36, %v3240_v61  ;;  %v11912_v27 = vsel %vm3172_vm13, %v11903_v40, %v3180_v11  ;;  %v3265_v45 = vor.u32 1.1754944e-38, %v3264_v33  ;;  %vm3263_vm6 = vcmp.eq.f32.partialorder %v3262_v3, 8.507059e+37 }
 0xd50   :  { %v3385_v51 = vadd.f32 0.2548296, %v3377_v30  ;;  %v3144_v42 = vpop.f32.mrf.mxu1  ;;  %v3448_v38 = vsub.f32 0.0, %v3440_v19  ;;  %v3196_v35 = vmul.f32 0.3275911, %v11912_v27 }
 0xd51   :  { %v3242_v63 = vadd.f32 %v10435_v36, %v3241_v29  ;;  %v11915_v1 = vadd.f32 %v11831_v57, %v3144_v42  ;;  %v3403_v29 = vsub.f32 0.0, %v11894_v60 }
 0xd52   :  { %v3393_v58 = vmul.f32 %v3385_v51, %v3236_v15  ;;  %v10441_v2 = vpop.eup %10440  ;;  %v3456_v12 = vsel %vm3168_vm10, %v3440_v19, %v3448_v38  ;;  %v3410_v15 = vmul.f32 %v3402_v52, %v11878_v23  ;;  %v11925_v46 = vadd.f32 1.0, %v3196_v35 }
 0xd53   :  { %v3246_v49 = vsel %vm3245_vm15, %v10435_v36, %v3242_v63  ;;  %v11919_v53 = vmul.f32 0.70710677, %v11915_v1  ;;  %v3254_v28 = vmul.f32 %v10441_v2, %v11900_v41  ;;  %v3464_v6 = vadd.f32 1.0, %v3456_v12 }
 0xd54   :  { %v3433_v47 = vmul.f32 %v10439_v25, %v3393_v58  ;;  %v3251_v7 = vsel %vm3248_vm1, %v3250_v16, %v3246_v49  ;;  %10442 = vrcp.f32 %v11925_v46  ;;  %vm3259_vm10 = vweird.f32 %v10441_v2 }
 0xd55   :  { %v3330_v13 = vmul.f32 1.0614054, %v3251_v7  ;;  %v3255_v4 = vsub.f32 1.0, %v3254_v28  ;;  %vm3173_vm2 = vcmp.ge.f32.partialorder %v11919_v53, 0.0  ;;  %v3181_v48 = vsub.f32 0.0, %v11919_v53  ;;  %vm3260_vm5 = vmor %vm3258_vm4, %vm3259_vm10 }
 0xd56   :  { %v3441_v37 = vsub.f32 1.0, %v3433_v47  ;;  %v3152_v23 = vmul.f32 0.5, %v11835_v62  ;;  %v3420_v14 = vmul.f32 1.442695, %v3410_v15  ;;  %v3279_v49 = vand.u32 2147483648, %v11925_v46 }
 0xd57   :  { %v3338_v50 = vadd.f32 -1.4531521, %v3330_v13  ;;  %v3256_v17 = vmul.f32 %v10441_v2, %v3255_v4  ;;  %v11937_v21 = vsel %vm3173_vm2, %v11919_v53, %v3181_v48  ;;  %v3277_v12 = vand.u32 2147483647, %v11925_v46 }
 0xd58   :  { %v3449_v36 = vsub.f32 0.0, %v3441_v37  ;;  %v3197_v62 = vmul.f32 0.3275911, %v11937_v21  ;;  %v3472_v54 = vmul.f32 %v3464_v6, %v3152_v23  ;;  %vm3273_vm9 = vweird.f32 %v11925_v46 }
 0xd59   :  { %v3346_v20 = vmul.f32 %v3338_v50, %v3251_v7  ;;  %v3257_v61 = vadd.f32 %v10441_v2, %v3256_v17  ;;  %v3280_v3 = vor.u32 1.1754944e-38, %v3279_v49  ;;  %vm3278_vm15 = vcmp.eq.f32.partialorder %v3277_v12, 8.507059e+37 }
 0xd5a   :  { %v3457_v9 = vsel %vm3169_vm11, %v3441_v37, %v3449_v36  ;;  %v10443_v11 = vpop.eup %10442  ;;  %v3205_v42 = vadd.f32 1.0, %v3197_v62 }
 0xd5b   :  { %v3465_v19 = vadd.f32 1.0, %v3457_v9  ;;  %v3354_v30 = vadd.f32 1.4214138, %v3346_v20  ;;  %v3261_v56 = vsel %vm3260_vm5, %v10441_v2, %v3257_v61  ;;  %v3269_v63 = vmul.f32 %v10443_v11, %v11925_v46 }
 0xd5c   :  { %v3266_v39 = vsel %vm3263_vm6, %v3265_v45, %v3261_v56  ;;  %10444 = vrcp.f32 %v3205_v42  ;;  %v3411_v2 = vmul.f32 %v3403_v29, %v11894_v60  ;;  %vm3274_vm11 = vweird.f32 %v10443_v11 }
 0xd5d   :  { %v3473_v51 = vmul.f32 %v3465_v19, %v3153_v0  ;;  %v3362_v52 = vmul.f32 %v3354_v30, %v3251_v7  ;;  %v3331_v38 = vmul.f32 1.0614054, %v3266_v39  ;;  %10446 = vpow2.f32 %v3420_v14  ;;  %vm3275_vm14 = vmor %vm3273_vm9, %vm3274_vm11 }
 0xd5e   :  { %v3270_v16 = vsub.f32 1.0, %v3269_v63  ;;  %v3422_v50 = vmul.f32 1.442695, %v3411_v2  ;;  %v3404_v0 = vsub.f32 0.0, %v11912_v27  ;;  %v3292_v46 = vand.u32 2147483647, %v3205_v42 }
 0xd5f   :  { %v3480_v41 = vpack.c.bf16 %v3473_v51, %v3472_v54  ;;  %v3370_v25 = vadd.f32 -0.28449672, %v3362_v52  ;;  %v3339_v58 = vadd.f32 -1.4531521, %v3331_v38  ;;  %v3294_v61 = vand.u32 2147483648, %v3205_v42 }
 0xd60   :  { %v3271_v28 = vmul.f32 %v10443_v11, %v3270_v16  ;;  %10448 = vpow2.f32 %v3422_v50  ;;  %v3412_v62 = vmul.f32 %v3404_v0, %v11912_v27  ;;  %vm3288_vm10 = vweird.f32 %v3205_v42 }
 0xd61   :  { %v3378_v35 = vmul.f32 %v3370_v25, %v3251_v7  ;;  %3543 = vmatmul.bf16.vlgmr.msrb.gmra.mxu2 %v3480_v41  ;;  %v3347_v47 = vmul.f32 %v3339_v58, %v3266_v39  ;;  %vm3293_vm5 = vcmp.eq.f32.partialorder %v3292_v46, 8.507059e+37  ;;  %v3405_v16 = vsub.f32 0.0, %v11937_v21 }
 0xd62   :  { %v3272_v37 = vadd.f32 %v10443_v11, %v3271_v28  ;;  %v10445_v4 = vpop.eup %10444  ;;  %v3424_v25 = vmul.f32 1.442695, %v3412_v62 }
 0xd63   :  { %v3386_v13 = vadd.f32 0.2548296, %v3378_v35  ;;  %v3355_v15 = vadd.f32 1.4214138, %v3347_v47  ;;  %v10447_v33 = vpop.eup %10446  ;;  %v3284_v36 = vmul.f32 %v10445_v4, %v3205_v42  ;;  %vm3289_vm1 = vweird.f32 %v10445_v4 }
 0xd64   :  { %v3276_v6 = vsel %vm3275_vm14, %v10443_v11, %v3272_v37  ;;  %vm3290_vm4 = vmor %vm3288_vm10, %vm3289_vm1  ;;  %v3295_v11 = vor.u32 1.1754944e-38, %v3294_v61  ;;  %10450 = vpow2.f32 %v3424_v25  ;;  %v3413_v12 = vmul.f32 %v3405_v16, %v11937_v21 }
 0xd65   :  { %v3394_v48 = vmul.f32 %v3386_v13, %v3251_v7  ;;  %v3363_v60 = vmul.f32 %v3355_v15, %v3266_v39  ;;  %v3281_v23 = vsel %vm3278_vm15, %v3280_v3, %v3276_v6  ;;  %v3285_v14 = vsub.f32 1.0, %v3284_v36 }
 0xd66   :  { %v3332_v9 = vmul.f32 1.0614054, %v3281_v23  ;;  %v10449_v41 = vpop.eup %10448  ;;  %v3154_v3 = vmul.f32 0.5, %v11866_v5  ;;  %vm3580_vm10 = vcmask 523264  }
 0xd67   :  { %v3434_v17 = vmul.f32 %v10447_v33, %v3394_v48  ;;  %v3371_v20 = vadd.f32 -0.28449672, %v3363_v60  ;;  %v3286_v45 = vmul.f32 %v10445_v4, %v3285_v14  ;;  %v3426_v60 = vmul.f32 1.442695, %v3413_v12 }
 0xd68   :  { %v3340_v30 = vadd.f32 -1.4531521, %v3332_v9 }
 0xd69   :  { %v3442_v7 = vsub.f32 1.0, %v3434_v17  ;;  %v3379_v19 = vmul.f32 %v3371_v20, %v3266_v39  ;;  %v3287_v29 = vadd.f32 %v10445_v4, %v3286_v45  ;;  %10452 = vpow2.f32 %v3426_v60 }
 0xd6a   :  { %v3348_v56 = vmul.f32 %v3340_v30, %v3281_v23  ;;  %v10451_v17 = vpop.eup %10450 }
 0xd6b   :  { %v3387_v54 = vadd.f32 0.2548296, %v3379_v19  ;;  %v3450_v51 = vsub.f32 0.0, %v3442_v7  ;;  %v3291_v63 = vsel %vm3290_vm4, %v10445_v4, %v3287_v29  ;;  %v3157_v29 = vmul.f32 0.5, %v11915_v1 }
 0xd6c   :  { %v3356_v38 = vadd.f32 1.4214138, %v3348_v56  ;;  %v3296_v58 = vsel %vm3293_vm5, %v3295_v11, %v3291_v63  ;;  %v3156_v56 = vmul.f32 0.5, %v11898_v8 }
 0xd6d   :  { %v3395_v52 = vmul.f32 %v3387_v54, %v3266_v39  ;;  %v3333_v49 = vmul.f32 1.0614054, %v3296_v58  ;;  %v3458_v27 = vsel %vm3170_vm3, %v3442_v7, %v3450_v51 }
 0xd6e   :  { %v3364_v2 = vmul.f32 %v3356_v38, %v3281_v23  ;;  %v3466_v37 = vadd.f32 1.0, %v3458_v27 }
 0xd6f   :  { %v3435_v35 = vmul.f32 %v10449_v41, %v3395_v52  ;;  %v3341_v28 = vadd.f32 -1.4531521, %v3333_v49  ;;  %v10453_v5 = vpop.eup %10452 }
 0xd70   :  { %v3372_v42 = vadd.f32 -0.28449672, %v3364_v2  ;;  %v3474_v0 = vmul.f32 %v3466_v37, %v3154_v3 }
 0xd71   :  { %v3443_v47 = vsub.f32 1.0, %v3435_v35  ;;  %v3349_v15 = vmul.f32 %v3341_v28, %v3296_v58 }
 0xd72   :  { %v3380_v13 = vmul.f32 %v3372_v42, %v3281_v23 }
 0xd73   :  { %v3451_v39 = vsub.f32 0.0, %v3443_v47  ;;  %v3357_v50 = vadd.f32 1.4214138, %v3349_v15 }
 0xd74   :  { %v3388_v48 = vadd.f32 0.2548296, %v3380_v13 }
 0xd75   :  { %v3459_v4 = vsel %vm3171_vm7, %v3443_v47, %v3451_v39  ;;  %v3365_v36 = vmul.f32 %v3357_v50, %v3296_v58 }
 0xd76   :  { %v3467_v33 = vadd.f32 1.0, %v3459_v4  ;;  %v3396_v6 = vmul.f32 %v3388_v48, %v3281_v23 }
 0xd77   :  { %v3373_v9 = vadd.f32 -0.28449672, %v3365_v36 }
 0xd78   :  { %v3475_v21 = vmul.f32 %v3467_v33, %v3155_v44  ;;  %v3436_v20 = vmul.f32 %v10451_v17, %v3396_v6 }
 0xd79   :  { %v3381_v26 = vmul.f32 %v3373_v9, %v3296_v58 }
 0xd7a   :  { %v3481_v14 = vpack.c.bf16 %v3475_v21, %v3474_v0  ;;  %v3444_v46 = vsub.f32 1.0, %v3436_v20 }
 0xd7b   :  { %v3389_v61 = vadd.f32 0.2548296, %v3381_v26 }
 0xd7c   :  { %3548 = vmatmul.bf16.gmra.mxu2 %v3481_v14  ;;  %v3452_v7 = vsub.f32 0.0, %v3444_v46 }
 0xd7d   :  { %v3397_v19 = vmul.f32 %v3389_v61, %v3296_v58 }
 0xd7e   :  { %v3460_v43 = vsel %vm3172_vm13, %v3444_v46, %v3452_v7 }
 0xd7f   :  { %v3437_v30 = vmul.f32 %v10453_v5, %v3397_v19  ;;  %v3468_v62 = vadd.f32 1.0, %v3460_v43 }
 0xd81   :  { %v3445_v23 = vsub.f32 1.0, %v3437_v30  ;;  %v3476_v51 = vmul.f32 %v3468_v62, %v3156_v56 }
 0xd83   :  { %v3453_v45 = vsub.f32 0.0, %v3445_v23 }
 0xd85   :  { %v3461_v54 = vsel %vm3173_vm2, %v3445_v23, %v3453_v45 }
 0xd86   :  { %v3469_v11 = vadd.f32 1.0, %v3461_v54 }
 0xd88   :  { %v3477_v52 = vmul.f32 %v3469_v11, %v3157_v29 }
 0xd8a   :  { %v3482_v38 = vpack.c.bf16 %v3477_v52, %v3476_v51 }
 0xd8c   :  { %3553 = vmatmul.bf16.gmra.mxu2 %v3482_v38 }
 0xd98   :  { %v3147_v63 = vpop.f32.mrf.mxu1 }
 0xd99   :  { %v11966_v41 = vadd.f32 %v11831_v57, %v3147_v63 }
 0xd9b   :  { %v11969_v40 = vmul.f32 0.70710677, %v11966_v41 }
 0xd9d   :  { %vm3174_vm3 = vcmp.ge.f32.partialorder %v11969_v40, 0.0  ;;  %v3182_v53 = vsub.f32 0.0, %v11969_v40 }
 0xd9f   :  { %v3190_v8 = vsel %vm3174_vm3, %v11969_v40, %v3182_v53 }
 0xda0   :  { %v3198_v1 = vmul.f32 0.3275911, %v3190_v8  ;;  %v3149_v25 = vpop.f32.mrf.mxu1  ;;  %v3406_v44 = vsub.f32 0.0, %v3190_v8 }
 0xda1   :  { %v11977_v58 = vadd.f32 %v11831_v57, %v3149_v25 }
 0xda2   :  { %v3206_v16 = vadd.f32 1.0, %v3198_v1  ;;  %v3414_v21 = vmul.f32 %v3406_v44, %v3190_v8 }
 0xda3   :  { %v11980_v35 = vmul.f32 0.70710677, %v11977_v58 }
 0xda4   :  { %10454 = vrcp.f32 %v3206_v16  ;;  %v3309_v12 = vand.u32 2147483648, %v3206_v16  ;;  %v3307_v13 = vand.u32 2147483647, %v3206_v16  ;;  %vm3303_vm2 = vweird.f32 %v3206_v16 }
 0xda5   :  { %vm3175_vm7 = vcmp.ge.f32.partialorder %v11980_v35, 0.0  ;;  %v3183_v2 = vsub.f32 0.0, %v11980_v35  ;;  %v3428_v61 = vmul.f32 1.442695, %v3414_v21 }
 0xda6   :  { %v3310_v4 = vor.u32 1.1754944e-38, %v3309_v12  ;;  %vm3308_vm11 = vcmp.eq.f32.partialorder %v3307_v13, 8.507059e+37  ;;  %v3159_v13 = vmul.f32 0.5, %v11977_v58 }
 0xda7   :  { %v3191_v49 = vsel %vm3175_vm7, %v11980_v35, %v3183_v2 }
 0xda8   :  { %v3199_v27 = vmul.f32 0.3275911, %v3191_v49  ;;  %v3407_v19 = vsub.f32 0.0, %v3191_v49 }
 0xdaa   :  { %v10455_v47 = vpop.eup %10454  ;;  %v3207_v42 = vadd.f32 1.0, %v3199_v27  ;;  %v3415_v45 = vmul.f32 %v3407_v19, %v3191_v49  ;;  %v3573_v19 = vld [vmem:[%s13833_s0 + $0x8] sm:$0xff] }
 0xdab   :  { %v3299_v28 = vmul.f32 %v10455_v47, %v3206_v16  ;;  %vm3304_vm13 = vweird.f32 %v10455_v47 }
 0xdac   :  { %10456 = vrcp.f32 %v3207_v42  ;;  %vm3305_vm6 = vmor %vm3303_vm2, %vm3304_vm13  ;;  %v3324_v6 = vand.u32 2147483648, %v3207_v42  ;;  %v3322_v0 = vand.u32 2147483647, %v3207_v42  ;;  %vm3318_vm14 = vweird.f32 %v3207_v42 }
 0xdad   :  { %v3300_v57 = vsub.f32 1.0, %v3299_v28  ;;  %10458 = vpow2.f32 %v3428_v61  ;;  %v3430_v11 = vmul.f32 1.442695, %v3415_v45 }
 0xdae   :  { %v3325_v14 = vor.u32 1.1754944e-38, %v3324_v6  ;;  %vm3323_vm1 = vcmp.eq.f32.partialorder %v3322_v0, 8.507059e+37 }
 0xdaf   :  { %v3301_v39 = vmul.f32 %v10455_v47, %v3300_v57  ;;  %10460 = vpow2.f32 %v3430_v11 }
 0xdb1   :  { %v3302_v15 = vadd.f32 %v10455_v47, %v3301_v39  ;;  %v3158_v39 = vmul.f32 0.5, %v11966_v41 }
 0xdb2   :  { %v10457_v37 = vpop.eup %10456 }
 0xdb3   :  { %v3306_v48 = vsel %vm3305_vm6, %v10455_v47, %v3302_v15  ;;  %v3314_v50 = vmul.f32 %v10457_v37, %v3207_v42  ;;  %vm3319_vm9 = vweird.f32 %v10457_v37  ;;  %v10459_v38 = vpop.eup %10458 }
 0xdb4   :  { %v3311_v3 = vsel %vm3308_vm11, %v3310_v4, %v3306_v48  ;;  %vm3320_vm15 = vmor %vm3318_vm14, %vm3319_vm9 }
 0xdb5   :  { %v3334_v33 = vmul.f32 1.0614054, %v3311_v3  ;;  %v3315_v60 = vsub.f32 1.0, %v3314_v50  ;;  %v10461_v27 = vpop.eup %10460 }
 0xdb7   :  { %v3342_v36 = vadd.f32 -1.4531521, %v3334_v33  ;;  %v3316_v17 = vmul.f32 %v10457_v37, %v3315_v60 }
 0xdb9   :  { %v3350_v20 = vmul.f32 %v3342_v36, %v3311_v3  ;;  %v3317_v9 = vadd.f32 %v10457_v37, %v3316_v17  ;;  %v10260_v36 = vld [vmem:[%s10932_s20] ss:$0 sm:$0xff]  ;;  %s10804_s20 = scalar_lea.hbm %s10803_s12, 64 }
 0xdba   :  { %p10805_p0 = scmp.ne.s32.totalorder %s10803_s12, %s10804_s20 }
 0xdbb   :  { %v3358_v46 = vadd.f32 1.4214138, %v3350_v20  ;;  %v3321_v26 = vsel %vm3320_vm15, %v10457_v37, %v3317_v9 }
 0xdbc   :  { %v3326_v7 = vsel %vm3323_vm1, %v3325_v14, %v3321_v26 }
 0xdbd   :  { %v3366_v5 = vmul.f32 %v3358_v46, %v3311_v3  ;;  %v3335_v30 = vmul.f32 1.0614054, %v3326_v7 }
 0xdbf   :  { %v3374_v43 = vadd.f32 -0.28449672, %v3366_v5  ;;  %v3343_v23 = vadd.f32 -1.4531521, %v3335_v30  ;;  %v3577_v5 = vld [vmem:[%s13833_s0 + $0x28] sm:$0xff]  ;;  %v3578_v30 = vld [vmem:[%s13833_s0 + $0x30] sm:$0xff] }
 0xdc1   :  { %v3382_v62 = vmul.f32 %v3374_v43, %v3311_v3  ;;  %v3351_v54 = vmul.f32 %v3343_v23, %v3326_v7  ;;  %v3579_v43 = vld [vmem:[%s13833_s0 + $0x38] sm:$0xff] }
 0xdc3   :  { %v3390_v56 = vadd.f32 0.2548296, %v3382_v62  ;;  %v3359_v29 = vadd.f32 1.4214138, %v3351_v54 }
 0xdc5   :  { %v3398_v51 = vmul.f32 %v3390_v56, %v3311_v3  ;;  %v3367_v52 = vmul.f32 %v3359_v29, %v3326_v7 }
 0xdc7   :  { %v3438_v63 = vmul.f32 %v10459_v38, %v3398_v51  ;;  %v3375_v53 = vadd.f32 -0.28449672, %v3367_v52 }
 0xdc9   :  { %v3446_v8 = vsub.f32 1.0, %v3438_v63  ;;  %v3383_v1 = vmul.f32 %v3375_v53, %v3326_v7 }
 0xdcb   :  { %v3391_v25 = vadd.f32 0.2548296, %v3383_v1  ;;  %v3454_v16 = vsub.f32 0.0, %v3446_v8 }
 0xdcd   :  { %v3399_v2 = vmul.f32 %v3391_v25, %v3326_v7  ;;  %v3462_v49 = vsel %vm3174_vm3, %v3446_v8, %v3454_v16 }
 0xdce   :  { %v3470_v57 = vadd.f32 1.0, %v3462_v49 }
 0xdcf   :  { %v3439_v47 = vmul.f32 %v10461_v27, %v3399_v2 }
 0xdd0   :  { %v3478_v37 = vmul.f32 %v3470_v57, %v3158_v39 }
 0xdd1   :  { %v3447_v42 = vsub.f32 1.0, %v3439_v47 }
 0xdd3   :  { %v3455_v28 = vsub.f32 0.0, %v3447_v42 }
 0xdd5   :  { %v3463_v12 = vsel %vm3175_vm7, %v3447_v42, %v3455_v28 }
 0xdd6   :  { %v3471_v15 = vadd.f32 1.0, %v3463_v12 }
 0xdd8   :  { %v3479_v4 = vmul.f32 %v3471_v15, %v3159_v13 }
 0xdda   :  { %v3483_v48 = vpack.c.bf16 %v3479_v4, %v3478_v37 }
 0xddc   :  { %3558 = vmatmul.bf16.gmra.mxu2 %v3483_v48 }
 0xde4   :  { %v3544_v50 = vpop.f32.mrf.mxu2 }
 0xdec   :  { %v3546_v3 = vpop.f32.mrf.mxu2 }
 0xded   :  { %v3547_v61 = vadd.f32 %v10260_v36, %v3546_v3 }
 0xdff   :  { %v3549_v40 = vpop.f32.mrf.mxu2 }
 0xe00   :  { %v3550_v46 = vadd.f32 %v10260_v36, %v3549_v40 }
 0xe02   :  { %v3566_v7 = vadd.f32 %v3550_v46, %v11688_v34  ;;  %v3575_v34 = vld [vmem:[%s13833_s0 + $0x18] sm:$0xff]  ;;  %v10174_v46 = vld [vmem:[%s13835_s17 + $0x8] sm:$0xff] }
 0xe03   :  { %3930 = vmatpush.bf16.msra.mxu1 %v10174_v46 }
 0xe07   :  { %v3551_v44 = vpop.f32.mrf.mxu2 }
 0xe08   :  { %v3552_v9 = vadd.f32 %v10260_v36, %v3551_v44 }
 0xe0f   :  { %v3554_v33 = vpop.f32.mrf.mxu2 }
 0xe10   :  { %v3555_v58 = vadd.f32 %v10260_v36, %v3554_v33 }
 0xe12   :  { %v3568_v26 = vadd.f32 %v3555_v58, %v11704_v59 }
 0xe17   :  { %v3556_v60 = vpop.f32.mrf.mxu2 }
 0xe18   :  { %v3557_v21 = vadd.f32 %v10260_v36, %v3556_v60 }
 0xe1a   :  { %v3569_v14 = vadd.f32 %v3557_v21, %v11711_v24  ;;  %v3565_v24 = vadd.f32 %v3547_v61, %v11679_v31  ;;  %v3574_v31 = vld [vmem:[%s13833_s0 + $0x10] sm:$0xff]  ;;  %v10171_v61 = vld [vmem:[%s13834_s5] sm:$0xff] }
 0xe5f   :  { %v3559_v6 = vpop.f32.mrf.mxu2 }
 0xe60   :  { %v3560_v17 = vadd.f32 %v10260_v36, %v3559_v6 }
 0xe62   :  { %v3570_v20 = vadd.f32 %v3560_v17, %v11718_v32  ;;  %v3545_v32 = vadd.f32 %v10260_v36, %v3544_v50 }
 0xe64   :  { %v3564_v59 = vadd.f32 %v3545_v32, %v11672_v55  ;;  %v3576_v55 = vld [vmem:[%s13833_s0 + $0x20] sm:$0xff] }
 0xe65   :  { %v10175_v32 = vld [vmem:[%s13836_s21] sm:$0xff] }
 0xe67   :  { %v3561_v35 = vpop.f32.mrf.mxu2 }
 0xe68   :  { %v3562_v0 = vadd.f32 %v10260_v36, %v3561_v35 }
 0xe6a   :  { %v3571_v41 = vadd.f32 %v3562_v0, %v11738_v10  ;;  %v3567_v10 = vadd.f32 %v3552_v9, %v11695_v22  ;;  %v3572_v22 = vld [vmem:[%s13833_s0] sm:$0xff] }
 0xe6c   :  { %3613 = vmatpush.msra.mxu2 %v3571_v41  ;;  %10205 = vmatpush.msrb.mxu3 %v3571_v41 }
 0xe6e   :  { %3614 = vmatpush.msra.mxu2 %v3570_v20  ;;  %10206 = vmatpush.msrb.mxu3 %v3570_v20 }
 0xe70   :  { %3615 = vmatpush.msra.mxu2 %v3569_v14  ;;  %10207 = vmatpush.msrb.mxu3 %v3569_v14  ;;  %v10172_v14 = vld [vmem:[%s13834_s5 + $0x8] sm:$0xff] }
 0xe71   :  { %3885 = vmatpush.bf16.msrb.mxu0 %v10172_v14 }
 0xe72   :  { %3616 = vmatpush.msra.mxu2 %v3568_v26  ;;  %10208 = vmatpush.msrb.mxu3 %v3568_v26  ;;  %v10176_v26 = vld [vmem:[%s13836_s21 + $0x8] sm:$0xff] }
 0xe74   :  { %3617 = vmatpush.msra.mxu2 %v3567_v10  ;;  %10209 = vmatpush.msrb.mxu3 %v3567_v10  ;;  %v10173_v10 = vld [vmem:[%s13835_s17] sm:$0xff] }
 0xe75   :  { %3886 = vmatpush.bf16.msrb.mxu0 %v10171_v61  ;;  %3931 = vmatpush.bf16.msra.mxu1 %v10173_v10 }
 0xe76   :  { %3618 = vmatpush.msra.mxu2 %v3566_v7  ;;  %10210 = vmatpush.msrb.mxu3 %v3566_v7 }
 0xe78   :  { %3619 = vmatpush.msra.mxu2 %v3565_v24  ;;  %10211 = vmatpush.msrb.mxu3 %v3565_v24 }
 0xe7a   :  { %3620 = vmatpush.msra.mxu2 %v3564_v59  ;;  %10212 = vmatpush.msrb.mxu3 %v3564_v59 }
 0xe7b   :  { %9750 = vmatmul.msk.f32.vlgmr.msra.gmra.mxu2 %vm3580_vm10, %v3572_v22  ;;  %9751 = vmatmul.msk.f32.vlgmr.msrb.gmra.mxu3 %vm3580_vm10, %v3573_v19 }
 0xe7c   :  { %3975 = vmatpush.bf16.msra.mxu3 %v10176_v26 }
 0xe80   :  { %3976 = vmatpush.bf16.msra.mxu3 %v10175_v32 }
 0xe83   :  { %9752 = vmatmul.msk.f32.gmra.mxu3 %vm3580_vm10, %v3574_v31 }
 0xe8b   :  { %9753 = vmatmul.msk.f32.gmra.mxu3 %vm3580_vm10, %v3575_v34 }
 0xe93   :  { %9754 = vmatmul.msk.f32.gmra.mxu3 %vm3580_vm10, %v3576_v55 }
 0xe9b   :  { %9755 = vmatmul.msk.f32.gmra.mxu3 %vm3580_vm10, %v3577_v5 }
 0xea3   :  { %9756 = vmatmul.msk.f32.gmra.mxu3 %vm3580_vm10, %v3578_v30 }
 0xeab   :  { %9757 = vmatmul.msk.f32.gmra.mxu3 %vm3580_vm10, %v3579_v43 }
 0xefe   :  { %v12018_v23 = vpop.f32.mrf.mxu2  ;;  %v12020_v45 = vpop.f32.mrf.mxu3 }
 0xeff   :  { %v3649_v62 = vsel %vm135_vm0, %v12018_v23, 0.0  ;;  %v3652_v54 = vsel %vm135_vm0, %v12020_v45, 0.0 }
 0xf00   :  { %3650 = vadd.xlane.f32.xlu0 %v3649_v62  ;;  %3653 = vadd.xlane.f32.xlu1 %v3652_v54 }
 0xf06   :  { %v12026_v56 = vpop.f32.mrf.mxu3 }
 0xf07   :  { %v3655_v29 = vsel %vm135_vm0, %v12026_v56, 0.0 }
 0xf08   :  { %3656 = vadd.xlane.f32.xlu2 %v3655_v29 }
 0xf0e   :  { %v12030_v11 = vpop.f32.mrf.mxu3 }
 0xf0f   :  { %v3658_v51 = vsel %vm135_vm0, %v12030_v11, 0.0 }
 0xf10   :  { %3659 = vadd.xlane.f32.xlu0 %v3658_v51 }
 0xf16   :  { %v12034_v52 = vpop.f32.mrf.mxu3 }
 0xf17   :  { %v3661_v38 = vsel %vm135_vm0, %v12034_v52, 0.0 }
 0xf18   :  { %3662 = vadd.xlane.f32.xlu0 %v3661_v38 }
 0xf1e   :  { %v12038_v63 = vpop.f32.mrf.mxu3 }
 0xf1f   :  { %v3664_v15 = vsel %vm135_vm0, %v12038_v63, 0.0 }
 0xf26   :  { %v12040_v53 = vpop.f32.mrf.mxu3 }
 0xf27   :  { %v3667_v37 = vsel %vm135_vm0, %v12040_v53, 0.0 }
 0xf2e   :  { %v12042_v8 = vpop.f32.mrf.mxu3 }
 0xf2f   :  { %v3670_v1 = vsel %vm135_vm0, %v12042_v8, 0.0 }
 0xf30   :  { %3671 = vadd.xlane.f32.xlu0 %v3670_v1 }
 0xf73   :  { %v3651_v25 = vpop.xlane.xlu0 %3650  ;;  %v3654_v16 = vpop.xlane.xlu1 %3653 }
 0xf74   :  { %v3673_v2 = vmul.f32 %v3651_v25, %v11016_v18  ;;  %v3674_v27 = vmul.f32 %v3654_v16, %v11016_v18 }
 0xf76   :  { %v12049_v47 = vsub.f32 %v12018_v23, %v3673_v2  ;;  %v12052_v49 = vsub.f32 %v12020_v45, %v3674_v27 }
 0xf78   :  { %v3689_v42 = vmul.f32 %v12049_v47, %v12049_v47  ;;  %v3690_v28 = vmul.f32 %v12052_v49, %v12052_v49 }
 0xf7a   :  { %v3697_v57 = vsel %vm135_vm0, %v3689_v42, 0.0  ;;  %v3700_v12 = vsel %vm135_vm0, %v3690_v28, 0.0 }
 0xf7b   :  { %3698 = vadd.xlane.f32.xlu1 %v3697_v57  ;;  %3701 = vadd.xlane.f32.xlu2 %v3700_v12  ;;  %v3657_v39 = vpop.xlane.xlu2 %3656 }
 0xf7c   :  { %v3675_v13 = vmul.f32 %v3657_v39, %v11016_v18 }
 0xf7e   :  { %v12066_v4 = vsub.f32 %v12026_v56, %v3675_v13 }
 0xf80   :  { %v3691_v40 = vmul.f32 %v12066_v4, %v12066_v4 }
 0xf82   :  { %v3703_v33 = vsel %vm135_vm0, %v3691_v40, 0.0 }
 0xf83   :  { %v3660_v48 = vpop.xlane.xlu0 %3659  ;;  %3665 = vadd.xlane.f32.xlu1 %v3664_v15  ;;  %3668 = vadd.xlane.f32.xlu2 %v3667_v37 }
 0xf84   :  { %v3676_v50 = vmul.f32 %v3660_v48, %v11016_v18 }
 0xf86   :  { %v12070_v3 = vsub.f32 %v12030_v11, %v3676_v50 }
 0xf88   :  { %v3692_v44 = vmul.f32 %v12070_v3, %v12070_v3 }
 0xf8a   :  { %v3706_v60 = vsel %vm135_vm0, %v3692_v44, 0.0 }
 0xf8b   :  { %v3663_v6 = vpop.xlane.xlu0 %3662  ;;  %3704 = vadd.xlane.f32.xlu1 %v3703_v33  ;;  %3707 = vadd.xlane.f32.xlu2 %v3706_v60  ;;  %v12117_v33 = vld [vmem:[%s13837_s25] ss:$0 sm:$0xff] }
 0xf8c   :  { %v3677_v36 = vmul.f32 %v3663_v6, %v11016_v18 }
 0xf8e   :  { %v12080_v35 = vsub.f32 %v12034_v52, %v3677_v36  ;;  %v12120_v36 = vld [vmem:[%s13838_s29] ss:$0 sm:$0xff] }
 0xf90   :  { %v3693_v17 = vmul.f32 %v12080_v35, %v12080_v35 }
 0xf92   :  { %v3709_v0 = vsel %vm135_vm0, %v3693_v17, 0.0 }
 0xf93   :  { %3710 = vadd.xlane.f32.xlu0 %v3709_v0 }
 0xfa3   :  { %v3672_v21 = vpop.xlane.xlu0 %3671 }
 0xfa4   :  { %v3680_v41 = vmul.f32 %v3672_v21, %v11016_v18 }
 0xfa6   :  { %v12087_v58 = vsub.f32 %v12042_v8, %v3680_v41 }
 0xfa8   :  { %v3696_v20 = vmul.f32 %v12087_v58, %v12087_v58 }
 0xfaa   :  { %v3718_v9 = vsel %vm135_vm0, %v3696_v20, 0.0 }
 0xfab   :  { %3719 = vadd.xlane.f32.xlu0 %v3718_v9 }
 0xfee   :  { %v3699_v7 = vpop.xlane.xlu1 %3698  ;;  %v3702_v24 = vpop.xlane.xlu2 %3701 }
 0xfef   :  { %v3721_v59 = vmul.f32 %v3699_v7, %v11016_v18  ;;  %v3722_v22 = vmul.f32 %v3702_v24, %v11016_v18 }
 0xff1   :  { %v3729_v19 = vadd.f32 1e-05, %v3721_v59  ;;  %v3730_v31 = vadd.f32 1e-05, %v3722_v22 }
 0xff3   :  { %10462 = vrsqrt.f32 %v3729_v19  ;;  %vm3743_vm3 = vweird.f32 %v3729_v19  ;;  %vm3753_vm13 = vweird.f32 %v3730_v31 }
 0xff4   :  { %10464 = vrsqrt.f32 %v3730_v31 }
 0xff6   :  { %v3666_v34 = vpop.xlane.xlu1 %3665  ;;  %v3669_v55 = vpop.xlane.xlu2 %3668 }
 0xff7   :  { %v3678_v5 = vmul.f32 %v3666_v34, %v11016_v18  ;;  %v3679_v30 = vmul.f32 %v3669_v55, %v11016_v18 }
 0xff9   :  { %v10463_v43 = vpop.eup %10462  ;;  %v12103_v62 = vsub.f32 %v12038_v63, %v3678_v5  ;;  %v12106_v54 = vsub.f32 %v12040_v53, %v3679_v30 }
 0xffa   :  { %v10465_v29 = vpop.eup %10464  ;;  %v3738_v51 = vmul.f32 %v10463_v43, %v3729_v19  ;;  %vm3744_vm4 = vweird.f32 %v10463_v43 }
 0xffb   :  { %v3748_v38 = vmul.f32 %v10465_v29, %v3730_v31  ;;  %v3694_v1 = vmul.f32 %v12103_v62, %v12103_v62  ;;  %v3695_v25 = vmul.f32 %v12106_v54, %v12106_v54  ;;  %vm3754_vm5 = vweird.f32 %v10465_v29  ;;  %vm3745_vm7 = vmor %vm3743_vm3, %vm3744_vm4 }
 0xffc   :  { %v3739_v16 = vmul.f32 %v10463_v43, %v3738_v51  ;;  %vm3755_vm2 = vmor %vm3753_vm13, %vm3754_vm5 }
 0xffd   :  { %v3749_v2 = vmul.f32 %v10465_v29, %v3748_v38  ;;  %v3712_v27 = vsel %vm135_vm0, %v3694_v1, 0.0  ;;  %v3715_v42 = vsel %vm135_vm0, %v3695_v25, 0.0 }
 0xffe   :  { %v3740_v28 = vmul.f32 0.5, %v3739_v16  ;;  %3713 = vadd.xlane.f32.xlu1 %v3712_v27  ;;  %v3705_v57 = vpop.xlane.xlu1 %3704  ;;  %3716 = vadd.xlane.f32.xlu2 %v3715_v42  ;;  %v3708_v12 = vpop.xlane.xlu2 %3707 }
 0xfff   :  { %v3750_v39 = vmul.f32 0.5, %v3749_v2  ;;  %v3723_v13 = vmul.f32 %v3705_v57, %v11016_v18  ;;  %v3724_v15 = vmul.f32 %v3708_v12, %v11016_v18 }
0x1000   :  { %v3741_v37 = vsub.f32 1.5, %v3740_v28 }
0x1001   :  { %v3751_v48 = vsub.f32 1.5, %v3750_v39  ;;  %v3731_v50 = vadd.f32 1e-05, %v3723_v13  ;;  %v3732_v40 = vadd.f32 1e-05, %v3724_v15 }
0x1002   :  { %v3742_v44 = vmul.f32 %v10463_v43, %v3741_v37 }
0x1003   :  { %v3752_v60 = vmul.f32 %v10465_v29, %v3751_v48  ;;  %10466 = vrsqrt.f32 %v3731_v50  ;;  %vm3763_vm9 = vweird.f32 %v3731_v50  ;;  %vm3773_vm15 = vweird.f32 %v3732_v40 }
0x1004   :  { %v3746_v6 = vsel %vm3745_vm7, %v10463_v43, %v3742_v44  ;;  %10468 = vrsqrt.f32 %v3732_v40 }
0x1005   :  { %v3817_v17 = vmul.f32 %v3746_v6, %v12049_v47  ;;  %v3756_v0 = vsel %vm3755_vm2, %v10465_v29, %v3752_v60 }
0x1006   :  { %v3818_v21 = vmul.f32 %v3756_v0, %v12052_v49 }
0x1007   :  { %v3828_v41 = vmul.f32 %v12117_v33, %v3817_v17 }
0x1008   :  { %v3829_v20 = vmul.f32 %v12117_v33, %v3818_v21 }
0x1009   :  { %v10467_v9 = vpop.eup %10466  ;;  %v3839_v14 = vadd.f32 %v12120_v36, %v3828_v41 }
0x100a   :  { %v10469_v46 = vpop.eup %10468  ;;  %v3840_v26 = vadd.f32 %v12120_v36, %v3829_v20  ;;  %v3758_v61 = vmul.f32 %v10467_v9, %v3731_v50  ;;  %vm3764_vm6 = vweird.f32 %v10467_v9 }
0x100b   :  { %v3768_v10 = vmul.f32 %v10469_v46, %v3732_v40  ;;  %vm3774_vm11 = vweird.f32 %v10469_v46  ;;  %vm3765_vm14 = vmor %vm3763_vm9, %vm3764_vm6 }
0x100c   :  { %v12128_v32 = vpack.c.bf16 %v3840_v26, %v3839_v14  ;;  %v3759_v7 = vmul.f32 %v10467_v9, %v3758_v61  ;;  %vm3775_vm1 = vmor %vm3773_vm15, %vm3774_vm11 }
0x100d   :  { %v3769_v24 = vmul.f32 %v10469_v46, %v3768_v10 }
0x100e   :  { %v3760_v47 = vmul.f32 0.5, %v3759_v7  ;;  %9766 = vmatmul.msk.bf16.vlgmr.msrb.gmra.mxu0 %vm135_vm0, %v12128_v32  ;;  %9778 = vmatmul.msk.bf16.vlgmr.msra.gmra.mxu1 %vm135_vm0, %v12128_v32 }
0x100f   :  { %v3770_v49 = vmul.f32 0.5, %v3769_v24  ;;  %9790 = vmatmul.msk.bf16.vlgmr.msra.gmra.mxu3 %vm135_vm0, %v12128_v32 }
0x1010   :  { %v3761_v59 = vsub.f32 1.5, %v3760_v47 }
0x1011   :  { %v3771_v22 = vsub.f32 1.5, %v3770_v49 }
0x1012   :  { %v3762_v19 = vmul.f32 %v10467_v9, %v3761_v59 }
0x1013   :  { %v3772_v31 = vmul.f32 %v10469_v46, %v3771_v22 }
0x1014   :  { %v3766_v34 = vsel %vm3765_vm14, %v10467_v9, %v3762_v19 }
0x1015   :  { %v3819_v55 = vmul.f32 %v3766_v34, %v12066_v4  ;;  %v3776_v5 = vsel %vm3775_vm1, %v10469_v46, %v3772_v31  ;;  %v3711_v4 = vpop.xlane.xlu0 %3710 }
0x1016   :  { %v3820_v30 = vmul.f32 %v3776_v5, %v12070_v3  ;;  %v3725_v3 = vmul.f32 %v3711_v4, %v11016_v18 }
0x1017   :  { %v3830_v43 = vmul.f32 %v12117_v33, %v3819_v55 }
0x1018   :  { %v3831_v29 = vmul.f32 %v12117_v33, %v3820_v30  ;;  %v3733_v25 = vadd.f32 1e-05, %v3725_v3 }
0x1019   :  { %v3841_v51 = vadd.f32 %v12120_v36, %v3830_v43 }
0x101a   :  { %v3842_v38 = vadd.f32 %v12120_v36, %v3831_v29  ;;  %10470 = vrsqrt.f32 %v3733_v25  ;;  %vm3783_vm5 = vweird.f32 %v3733_v25 }
0x101c   :  { %v12142_v1 = vpack.c.bf16 %v3842_v38, %v3841_v51 }
0x101e   :  { %9767 = vmatmul.msk.bf16.gmra.mxu0 %vm135_vm0, %v12142_v1  ;;  %9779 = vmatmul.msk.bf16.gmra.mxu1 %vm135_vm0, %v12142_v1  ;;  %v3720_v16 = vpop.xlane.xlu0 %3719 }
0x101f   :  { %9791 = vmatmul.msk.bf16.gmra.mxu3 %vm135_vm0, %v12142_v1  ;;  %v3728_v27 = vmul.f32 %v3720_v16, %v11016_v18 }
0x1020   :  { %v10471_v2 = vpop.eup %10470 }
0x1021   :  { %v3778_v42 = vmul.f32 %v10471_v2, %v3733_v25  ;;  %v3736_v28 = vadd.f32 1e-05, %v3728_v27  ;;  %vm3784_vm4 = vweird.f32 %v10471_v2 }
0x1022   :  { %vm3785_vm3 = vmor %vm3783_vm5, %vm3784_vm4  ;;  %vm4438_vm4 = vcmask 27648   ;;  %vm4635_vm5 = vcmask 1041408  }
0x1023   :  { %v3779_v57 = vmul.f32 %v10471_v2, %v3778_v42  ;;  %10472 = vrsqrt.f32 %v3736_v28  ;;  %vm3813_vm15 = vweird.f32 %v3736_v28 }
0x1025   :  { %v3780_v50 = vmul.f32 0.5, %v3779_v57 }
0x1027   :  { %v3781_v40 = vsub.f32 1.5, %v3780_v50 }
0x1029   :  { %v10473_v44 = vpop.eup %10472  ;;  %v3782_v17 = vmul.f32 %v10471_v2, %v3781_v40 }
0x102a   :  { %v3808_v0 = vmul.f32 %v10473_v44, %v3736_v28  ;;  %vm3814_vm11 = vweird.f32 %v10473_v44 }
0x102b   :  { %v3786_v14 = vsel %vm3785_vm3, %v10471_v2, %v3782_v17  ;;  %vm3815_vm1 = vmor %vm3813_vm15, %vm3814_vm11  ;;  %vm4631_vm3 = vcmask 31744  }
0x102c   :  { %v3809_v46 = vmul.f32 %v10473_v44, %v3808_v0  ;;  %v3821_v7 = vmul.f32 %v3786_v14, %v12080_v35 }
0x102e   :  { %v3810_v24 = vmul.f32 0.5, %v3809_v46  ;;  %v3832_v22 = vmul.f32 %v12117_v33, %v3821_v7 }
0x1030   :  { %v3811_v31 = vsub.f32 1.5, %v3810_v24  ;;  %v3843_v30 = vadd.f32 %v12120_v36, %v3832_v22 }
0x1032   :  { %v3812_v29 = vmul.f32 %v10473_v44, %v3811_v31 }
0x1034   :  { %v3816_v2 = vsel %vm3815_vm1, %v10473_v44, %v3812_v29 }
0x1035   :  { %v3824_v28 = vmul.f32 %v3816_v2, %v12087_v58 }
0x1071   :  { %v3714_v12 = vpop.xlane.xlu1 %3713  ;;  %v3717_v39 = vpop.xlane.xlu2 %3716 }
0x1072   :  { %v3726_v13 = vmul.f32 %v3714_v12, %v11016_v18  ;;  %v3727_v15 = vmul.f32 %v3717_v39, %v11016_v18 }
0x1074   :  { %v3734_v37 = vadd.f32 1e-05, %v3726_v13  ;;  %v3735_v48 = vadd.f32 1e-05, %v3727_v15 }
0x1076   :  { %10474 = vrsqrt.f32 %v3734_v37  ;;  %vm3793_vm13 = vweird.f32 %v3734_v37  ;;  %vm3803_vm9 = vweird.f32 %v3735_v48 }
0x1077   :  { %10476 = vrsqrt.f32 %v3735_v48 }
0x107c   :  { %v10475_v60 = vpop.eup %10474 }
0x107d   :  { %v10477_v6 = vpop.eup %10476  ;;  %v3788_v21 = vmul.f32 %v10475_v60, %v3734_v37  ;;  %vm3794_vm7 = vweird.f32 %v10475_v60 }
0x107e   :  { %v3798_v41 = vmul.f32 %v10477_v6, %v3735_v48  ;;  %vm3795_vm2 = vmor %vm3793_vm13, %vm3794_vm7  ;;  %vm3804_vm6 = vweird.f32 %v10477_v6  ;;  %v3835_v48 = vmul.f32 %v12117_v33, %v3824_v28 }
0x107f   :  { %v3789_v20 = vmul.f32 %v10475_v60, %v3788_v21  ;;  %vm3805_vm14 = vmor %vm3803_vm9, %vm3804_vm6 }
0x1080   :  { %v3799_v9 = vmul.f32 %v10477_v6, %v3798_v41  ;;  %v3846_v44 = vadd.f32 %v12120_v36, %v3835_v48 }
0x1081   :  { %v3790_v26 = vmul.f32 0.5, %v3789_v20 }
0x1082   :  { %v3800_v10 = vmul.f32 0.5, %v3799_v9 }
0x1083   :  { %v3791_v61 = vsub.f32 1.5, %v3790_v26 }
0x1084   :  { %v3801_v59 = vsub.f32 1.5, %v3800_v10 }
0x1085   :  { %v3792_v47 = vmul.f32 %v10475_v60, %v3791_v61 }
0x1086   :  { %v3802_v55 = vmul.f32 %v10477_v6, %v3801_v59 }
0x1087   :  { %v3796_v49 = vsel %vm3795_vm2, %v10475_v60, %v3792_v47 }
0x1088   :  { %v3822_v19 = vmul.f32 %v3796_v49, %v12103_v62  ;;  %v3806_v3 = vsel %vm3805_vm14, %v10477_v6, %v3802_v55 }
0x1089   :  { %v3823_v27 = vmul.f32 %v3806_v3, %v12106_v54 }
0x108a   :  { %v3833_v34 = vmul.f32 %v12117_v33, %v3822_v19 }
0x108b   :  { %v3933_v5 = vpop.f32.mrf.mxu1  ;;  %v3888_v4 = vpop.f32.mrf.mxu0  ;;  %v3834_v13 = vmul.f32 %v12117_v33, %v3823_v27 }
0x108c   :  { %v3844_v35 = vadd.f32 %v12120_v36, %v3833_v34  ;;  %v4046_v43 = vrot.slane %v3933_v5, 4  ;;  %v4062_v51 = vpack.c.bf16 %v3933_v5, %v3933_v5  ;;  %v4022_v39 = vpack.c.bf16 %v3888_v4, %v3888_v4 }
0x108d   :  { %v3845_v40 = vadd.f32 %v12120_v36, %v3834_v13  ;;  %v4006_v33 = vrot.slane %v3888_v4, 4 }
0x108e   :  { %v12160_v38 = vpack.c.bf16 %v3844_v35, %v3843_v30  ;;  %v4063_v62 = vpack.c.bf16 %v4046_v43, %v4046_v43  ;;  %v4122_v25 = vsel %vm516_vm8, %v4062_v51, 0 }
0x108f   :  { %4131 = vmatpush.bf16.xpose.msrb.mxu2 %v4122_v25  ;;  %v12179_v6 = vpack.c.bf16 %v3846_v44, %v3845_v40  ;;  %v4023_v14 = vpack.c.bf16 %v4006_v33, %v4006_v33 }
0x1090   :  { %9768 = vmatmul.msk.bf16.gmra.mxu0 %vm135_vm0, %v12160_v38  ;;  %v4141_v16 = vsel %vm516_vm8, %v4063_v62, 0  ;;  %9780 = vmatmul.msk.bf16.gmra.mxu1 %vm135_vm0, %v12160_v38 }
0x1091   :  { %9792 = vmatmul.msk.bf16.gmra.mxu3 %vm135_vm0, %v12160_v38 }
0x1092   :  { %v3978_v5 = vpop.f32.mrf.mxu3 }
0x1093   :  { %v3935_v42 = vpop.f32.mrf.mxu1  ;;  %v3890_v50 = vpop.f32.mrf.mxu0  ;;  %v4086_v40 = vrot.slane %v3978_v5, 4 }
0x1094   :  { %v4047_v57 = vrot.slane %v3935_v42, 4  ;;  %v4064_v12 = vpack.c.bf16 %v3935_v42, %v3935_v42  ;;  %v4007_v7 = vrot.slane %v3890_v50, 4  ;;  %v4024_v22 = vpack.c.bf16 %v3890_v50, %v3890_v50 }
0x1096   :  { %v4065_v15 = vpack.c.bf16 %v4047_v57, %v4047_v57  ;;  %v4160_v37 = vsel %vm516_vm8, %v4064_v12, 0  ;;  %9794 = vmatmul.msk.bf16.vlgmr.msrb.gmra.mxu2 %vm516_vm8, %v4022_v39  ;;  %v4025_v47 = vpack.c.bf16 %v4007_v7, %v4007_v7 }
0x1097   :  { %4150 = vmatpush.bf16.xpose.msra.mxu2 %v4141_v16 }
0x1098   :  { %v4179_v54 = vsel %vm516_vm8, %v4065_v15, 0 }
0x1099   :  { %4188 = vmatpush.bf16.xpose.msra.mxu0 %v4179_v54 }
0x109a   :  { %v12198_v30 = vpop.f32.mrf.mxu3 }
0x109b   :  { %v3938_v58 = vpop.f32.mrf.mxu1  ;;  %v3893_v21 = vpop.f32.mrf.mxu0 }
0x109c   :  { %v4066_v60 = vpack.c.bf16 %v3938_v58, %v3938_v58  ;;  %v4048_v0 = vrot.slane %v3938_v58, 4  ;;  %v4026_v49 = vpack.c.bf16 %v3893_v21, %v3893_v21  ;;  %v4008_v34 = vrot.slane %v3893_v21, 4 }
0x109e   :  { %v4198_v17 = vsel %vm516_vm8, %v4066_v60, 0  ;;  %v4067_v41 = vpack.c.bf16 %v4048_v0, %v4048_v0  ;;  %v4027_v55 = vpack.c.bf16 %v4008_v34, %v4008_v34  ;;  %v4102_v0 = vpack.c.bf16 %v3978_v5, %v3978_v5 }
0x109f   :  { %4169 = vmatpush.bf16.xpose.msrb.mxu2 %v4160_v37  ;;  %4207 = vmatpush.bf16.xpose.msrb.mxu1 %v4198_v17 }
0x10a0   :  { %9769 = vmatmul.msk.bf16.gmra.mxu0 %vm135_vm0, %v12179_v6  ;;  %9781 = vmatmul.msk.bf16.gmra.mxu1 %vm135_vm0, %v12179_v6  ;;  %v4217_v61 = vsel %vm516_vm8, %v4067_v41, 0 }
0x10a1   :  { %9793 = vmatmul.msk.bf16.gmra.mxu3 %vm135_vm0, %v12179_v6 }
0x10a2   :  { %v12200_v35 = vpop.f32.mrf.mxu3 }
0x10a3   :  { %v3940_v36 = vpop.f32.mrf.mxu1  ;;  %v3895_v24 = vpop.f32.mrf.mxu0 }
0x10a4   :  { %v4049_v20 = vrot.slane %v3940_v36, 4  ;;  %v4068_v9 = vpack.c.bf16 %v3940_v36, %v3940_v36  ;;  %v4028_v59 = vpack.c.bf16 %v3895_v24, %v3895_v24  ;;  %v4009_v19 = vrot.slane %v3895_v24, 4 }
0x10a5   :  { %v4087_v24 = vrot.slane %v12198_v30, 4 }
0x10a6   :  { %v4069_v46 = vpack.c.bf16 %v4049_v20, %v4049_v20  ;;  %v4236_v26 = vsel %vm516_vm8, %v4068_v9, 0  ;;  %9795 = vmatmul.msk.bf16.vlgmr.msra.gmra.mxu2 %vm516_vm8, %v4023_v14  ;;  %v4029_v31 = vpack.c.bf16 %v4009_v19, %v4009_v19  ;;  %v4103_v20 = vpack.c.bf16 %v4086_v40, %v4086_v40 }
0x10a7   :  { %4245 = vmatpush.bf16.xpose.msrb.mxu3 %v4236_v26  ;;  %4226 = vmatpush.bf16.xpose.msra.mxu2 %v4217_v61  ;;  %v4637_v61 = vsel %vm4635_vm5, %v4102_v0, 0 }
0x10a8   :  { %v4255_v10 = vsel %vm516_vm8, %v4069_v46, 0 }
0x10a9   :  { %4264 = vmatpush.bf16.xpose.msrb.mxu0 %v4255_v10  ;;  %v4088_v10 = vrot.slane %v12200_v35, 4 }
0x10aa   :  { %v12202_v43 = vpop.f32.mrf.mxu3 }
0x10b0   :  { %9797 = vmatmul.msk.bf16.vlgmr.msra.gmra.mxu0 %vm516_vm8, %v4025_v47  ;;  %9798 = vmatmul.msk.bf16.vlgmr.msrb.gmra.mxu1 %vm516_vm8, %v4026_v49  ;;  %v4656_v49 = vsel %vm4635_vm5, %v4103_v20, 0 }
0x10b1   :  { %9800 = vmatmul.msk.bf16.vlgmr.msrb.gmra.mxu3 %vm516_vm8, %v4028_v59  ;;  %v4106_v59 = vpack.c.bf16 %v12200_v35, %v12200_v35 }
0x10b3   :  { %v4713_v35 = vsel %vm4635_vm5, %v4106_v59, 0 }
0x10b6   :  { %9796 = vmatmul.msk.bf16.vlgmr.msrb.gmra.mxu2 %vm516_vm8, %v4024_v22 }
0x10c0   :  { %9801 = vmatmul.msk.bf16.vlgmr.msrb.gmra.mxu0 %vm516_vm8, %v4029_v31  ;;  %v4104_v31 = vpack.c.bf16 %v12198_v30, %v12198_v30  ;;  %v4089_v30 = vrot.slane %v12202_v43, 4 }
0x10c2   :  { %v4109_v40 = vpack.c.bf16 %v4089_v30, %v4089_v30 }
0x10c6   :  { %9799 = vmatmul.msk.bf16.vlgmr.msra.gmra.mxu2 %vm516_vm8, %v4027_v55  ;;  %v4107_v55 = vpack.c.bf16 %v4088_v10, %v4088_v10 }
0x110d   :  { %v3898_v29 = vpop.f32.mrf.mxu0  ;;  %v3943_v51 = vpop.f32.mrf.mxu1 }
0x110e   :  { %v4050_v4 = vrot.slane %v3943_v51, 4  ;;  %v4070_v62 = vpack.c.bf16 %v3943_v51, %v3943_v51  ;;  %v4010_v27 = vrot.slane %v3898_v29, 4  ;;  %v4030_v57 = vpack.c.bf16 %v3898_v29, %v3898_v29 }
0x1110   :  { %v4071_v3 = vpack.c.bf16 %v4050_v4, %v4050_v4  ;;  %v4274_v25 = vsel %vm516_vm8, %v4070_v62, 0  ;;  %v4031_v13 = vpack.c.bf16 %v4010_v27, %v4010_v27  ;;  %v4105_v4 = vpack.c.bf16 %v4087_v24, %v4087_v24 }
0x1111   :  { %4283 = vmatpush.bf16.xpose.msra.mxu1 %v4274_v25  ;;  %v4675_v27 = vsel %vm4635_vm5, %v4104_v31, 0 }
0x1112   :  { %v4293_v16 = vsel %vm516_vm8, %v4071_v3, 0 }
0x1113   :  { %4302 = vmatpush.bf16.xpose.msrb.mxu2 %v4293_v16 }
0x1114   :  { %v12206_v2 = vpop.f32.mrf.mxu3 }
0x1115   :  { %v3900_v42 = vpop.f32.mrf.mxu0  ;;  %v3945_v28 = vpop.f32.mrf.mxu1 }
0x1116   :  { %v4051_v12 = vrot.slane %v3945_v28, 4  ;;  %v4072_v39 = vpack.c.bf16 %v3945_v28, %v3945_v28  ;;  %v4011_v44 = vrot.slane %v3900_v42, 4  ;;  %v4032_v21 = vpack.c.bf16 %v3900_v42, %v3900_v42 }
0x1118   :  { %v4073_v15 = vpack.c.bf16 %v4051_v12, %v4051_v12  ;;  %9802 = vmatmul.msk.bf16.vlgmr.msra.gmra.mxu1 %vm516_vm8, %v4030_v57  ;;  %v4312_v37 = vsel %vm516_vm8, %v4072_v39, 0  ;;  %v4033_v9 = vpack.c.bf16 %v4011_v44, %v4011_v44  ;;  %v4732_v57 = vsel %vm4635_vm5, %v4107_v55, 0 }
0x1119   :  { %v4133_v48 = vpop.f32.mrf.mxu2  ;;  %4321 = vmatpush.bf16.xpose.msra.mxu3 %v4312_v37  ;;  %v4694_v39 = vsel %vm4635_vm5, %v4105_v4, 0 }
0x111a   :  { %v12210_v50 = vmul.f32 0.35355338, %v4133_v48  ;;  %9803 = vmatmul.msk.bf16.vlgmr.msrb.gmra.mxu2 %vm516_vm8, %v4031_v13  ;;  %v4331_v54 = vsel %vm516_vm8, %v4073_v15, 0  ;;  %v4108_v13 = vpack.c.bf16 %v12202_v43, %v12202_v43  ;;  %v4770_v43 = vsel %vm4635_vm5, %v4109_v40, 0 }
0x111b   :  { %4340 = vmatpush.bf16.xpose.msra.mxu0 %v4331_v54 }
0x111c   :  { %v12214_v58 = vpop.f32.mrf.mxu3  ;;  %v4439_v60 = vsel %vm4438_vm4, %v12210_v50, -inf  ;;  %v4751_v0 = vsel %vm4635_vm5, %v4108_v13, 0 }
0x111d   :  { %v3903_v17 = vpop.f32.mrf.mxu0  ;;  %4440 = vmax.xlane.f32.xlu2 %v4439_v60  ;;  %v3948_v33 = vpop.f32.mrf.mxu1 }
0x111e   :  { %v4052_v41 = vrot.slane %v3948_v33, 4  ;;  %v4074_v36 = vpack.c.bf16 %v3948_v33, %v3948_v33  ;;  %v4012_v22 = vrot.slane %v3903_v17, 4  ;;  %v4034_v5 = vpack.c.bf16 %v3903_v17, %v3903_v17 }
0x1120   :  { %v4075_v14 = vpack.c.bf16 %v4052_v41, %v4052_v41  ;;  %9804 = vmatmul.msk.bf16.vlgmr.msra.gmra.mxu3 %vm516_vm8, %v4032_v21  ;;  %v4350_v46 = vsel %vm516_vm8, %v4074_v36, 0  ;;  %v4035_v62 = vpack.c.bf16 %v4012_v22, %v4012_v22 }
0x1121   :  { %v4135_v26 = vpop.f32.mrf.mxu2  ;;  %4359 = vmatpush.bf16.xpose.msrb.mxu1 %v4350_v46 }
0x1122   :  { %9805 = vmatmul.msk.bf16.vlgmr.msra.gmra.mxu0 %vm516_vm8, %v4033_v9  ;;  %v4369_v7 = vsel %vm516_vm8, %v4075_v14, 0 }
0x1123   :  { %4378 = vmatpush.bf16.xpose.msra.mxu2 %v4369_v7 }
0x1124   :  { %v12225_v47 = vpop.f32.mrf.mxu3 }
0x1125   :  { %v3905_v19 = vpop.f32.mrf.mxu0  ;;  %v3950_v34 = vpop.f32.mrf.mxu1 }
0x1126   :  { %v4053_v29 = vrot.slane %v3950_v34, 4  ;;  %v4076_v51 = vpack.c.bf16 %v3950_v34, %v3950_v34  ;;  %v4013_v15 = vrot.slane %v3905_v19, 4  ;;  %v4036_v44 = vpack.c.bf16 %v3905_v19, %v3905_v19 }
0x1128   :  { %v4077_v3 = vpack.c.bf16 %v4053_v29, %v4053_v29  ;;  %9806 = vmatmul.msk.bf16.vlgmr.msrb.gmra.mxu1 %vm516_vm8, %v4034_v5  ;;  %v4388_v25 = vsel %vm516_vm8, %v4076_v51, 0  ;;  %v4037_v60 = vpack.c.bf16 %v4013_v15, %v4013_v15 }
0x1129   :  { %4646 = vmatpush.bf16.msra.mxu1 %v4637_v61  ;;  %v4152_v16 = vpop.f32.mrf.mxu2  ;;  %4397 = vmatpush.bf16.xpose.msrb.mxu3 %v4388_v25 }
0x112a   :  { %v4423_v42 = vmul.f32 0.35355338, %v4152_v16  ;;  %9807 = vmatmul.msk.bf16.vlgmr.msra.gmra.mxu2 %vm516_vm8, %v4035_v62  ;;  %v4407_v28 = vsel %vm516_vm8, %v4077_v3, 0 }
0x112b   :  { %4665 = vmatpush.bf16.msrb.mxu2 %v4656_v49  ;;  %4416 = vmatpush.bf16.xpose.msrb.mxu0 %v4407_v28 }
0x112c   :  { %v12240_v12 = vpop.f32.mrf.mxu3  ;;  %v4442_v37 = vsel %vm4438_vm4, %v4423_v42, -inf }
0x112d   :  { %4722 = vmatpush.bf16.msrb.mxu1 %v4713_v35  ;;  %v12246_v48 = vpop.f32.mrf.mxu0  ;;  %4443 = vmax.xlane.f32.xlu1 %v4442_v37  ;;  %v4209_v54 = vpop.f32.mrf.mxu1 }
0x112e   :  { %v4426_v17 = vmul.f32 0.35355338, %v4209_v54 }
0x112f   :  { %4741 = vmatpush.bf16.msra.mxu2 %v4732_v57 }
0x1130   :  { %9808 = vmatmul.msk.bf16.vlgmr.msrb.gmra.mxu3 %vm516_vm8, %v4036_v44  ;;  %v4451_v41 = vsel %vm4438_vm4, %v4426_v17, -inf }
0x1131   :  { %4684 = vmatpush.bf16.msra.mxu3 %v4675_v27  ;;  %v4154_v33 = vpop.f32.mrf.mxu2 }
0x1132   :  { %9809 = vmatmul.msk.bf16.vlgmr.msrb.gmra.mxu0 %vm516_vm8, %v4037_v60 }
0x1133   :  { %4703 = vmatpush.bf16.msra.mxu0 %v4694_v39 }
0x1134   :  { %v12252_v21 = vpop.f32.mrf.mxu3 }
0x1135   :  { %4760 = vmatpush.bf16.msrb.mxu3 %v4751_v0  ;;  %v4192_v36 = vpop.f32.mrf.mxu0  ;;  %4452 = vmax.xlane.f32.xlu1 %v4451_v41  ;;  %v4211_v20 = vpop.f32.mrf.mxu1 }
0x1137   :  { %4779 = vmatpush.bf16.msrb.mxu0 %v4770_v43 }
0x1139   :  { %v12255_v9 = vpop.f32.mrf.mxu2 }
0x113c   :  { %v4249_v14 = vpop.f32.mrf.mxu3 }
0x113d   :  { %v12257_v46 = vpop.f32.mrf.mxu0 }
0x1141   :  { %v4173_v26 = vpop.f32.mrf.mxu2 }
0x1145   :  { %v4268_v61 = vpop.f32.mrf.mxu0 }
0x1149   :  { %v4228_v10 = vpop.f32.mrf.mxu2 }
0x114a   :  { %v4427_v7 = vmul.f32 0.35355338, %v4228_v10 }
0x114c   :  { %v4454_v24 = vsel %vm4438_vm4, %v4427_v7, -inf }
0x114d   :  { %4455 = vmax.xlane.f32.xlu0 %v4454_v24 }
0x1151   :  { %v4230_v49 = vpop.f32.mrf.mxu2 }
0x1190   :  { %v4441_v25 = vpop.xlane.xlu2 %4440 }
0x1191   :  { %v4487_v30 = vsub.f32 %v12210_v50, %v4441_v25 }
0x1195   :  { %v4285_v59 = vpop.f32.mrf.mxu1 }
0x1196   :  { %v4430_v22 = vmul.f32 0.35355338, %v4285_v59 }
0x1198   :  { %v4463_v19 = vsel %vm4438_vm4, %v4430_v22, -inf }
0x1199   :  { %4464 = vmax.xlane.f32.xlu0 %v4463_v19 }
0x119d   :  { %v4287_v31 = vpop.f32.mrf.mxu1  ;;  %v4304_v34 = vpop.f32.mrf.mxu2 }
0x119e   :  { %v4431_v55 = vmul.f32 0.35355338, %v4304_v34 }
0x119f   :  { %v12261_v5 = vpop.f32.mrf.mxu0 }
0x11a0   :  { %v4444_v29 = vpop.xlane.xlu1 %4443  ;;  %v4466_v51 = vsel %vm4438_vm4, %v4431_v55, -inf }
0x11a1   :  { %v4488_v4 = vsub.f32 %v4423_v42, %v4444_v29  ;;  %4467 = vmax.xlane.f32.xlu2 %v4466_v51  ;;  %v4503_v42 = vmul.f32 1.442695, %v4487_v30 }
0x11a3   :  { %v4505_v62 = vmul.f32 1.442695, %v4488_v4  ;;  %v12264_v3 = vpop.f32.mrf.mxu3 }
0x11a5   :  { %10478 = vpow2.f32 %v4505_v62  ;;  %v4306_v35 = vpop.f32.mrf.mxu2  ;;  %v4361_v16 = vpop.f32.mrf.mxu1 }
0x11a6   :  { %v4434_v27 = vmul.f32 0.35355338, %v4361_v16  ;;  %v12292_v35 = vmul.f32 0.35355338, %v12255_v9 }
0x11a7   :  { %v4344_v28 = vpop.f32.mrf.mxu0 }
0x11a8   :  { %v4453_v57 = vpop.xlane.xlu1 %4452  ;;  %v4475_v39 = vsel %vm4438_vm4, %v4434_v27, -inf }
0x11a9   :  { %v4491_v13 = vsub.f32 %v4426_v17, %v4453_v57  ;;  %4476 = vmax.xlane.f32.xlu0 %v4475_v39  ;;  %v4445_v39 = vsel %vm4438_vm4, %v12292_v35, -inf }
0x11ab   :  { %v12268_v15 = vpop.eup %10478  ;;  %v4511_v37 = vmul.f32 1.442695, %v4491_v13  ;;  %v4325_v54 = vpop.f32.mrf.mxu3  ;;  %v12301_v13 = vmul.f32 0.35355338, %v12257_v46 }
0x11ac   :  { %v4538_v40 = vsel %vm4438_vm4, %v12268_v15, 0.0 }
0x11ad   :  { %10480 = vpow2.f32 %v4511_v37  ;;  %4539 = vadd.xlane.f32.xlu2 %v4538_v40  ;;  %v4363_v44 = vpop.f32.mrf.mxu1  ;;  %v4380_v60 = vpop.f32.mrf.mxu2 }
0x11ae   :  { %v4435_v0 = vmul.f32 0.35355338, %v4380_v60  ;;  %10482 = vpow2.f32 %v4503_v42  ;;  %v4460_v44 = vsel %vm4438_vm4, %v12301_v13, -inf }
0x11af   :  { %v12272_v50 = vpop.f32.mrf.mxu0 }
0x11b0   :  { %v4478_v33 = vsel %vm4438_vm4, %v4435_v0, -inf }
0x11b1   :  { %4479 = vmax.xlane.f32.xlu1 %v4478_v33 }
0x11b3   :  { %v12275_v17 = vpop.eup %10480  ;;  %v4399_v43 = vpop.f32.mrf.mxu3 }
0x11b4   :  { %v4547_v41 = vsel %vm4438_vm4, %v12275_v17, 0.0  ;;  %v12279_v36 = vpop.eup %10482 }
0x11b5   :  { %4548 = vadd.xlane.f32.xlu0 %v4547_v41  ;;  %v4382_v20 = vpop.f32.mrf.mxu2  ;;  %v4535_v26 = vsel %vm4438_vm4, %v12279_v36, 0.0 }
0x11b6   :  { %v12311_v20 = vmul.f32 0.35355338, %v4399_v43 }
0x11b7   :  { %v4420_v14 = vpop.f32.mrf.mxu0 }
0x11b8   :  { %v12314_v14 = vmul.f32 0.35355338, %v12252_v21 }
0x11b9   :  { %4536 = vadd.xlane.f32.xlu1 %v4535_v26 }
0x11ba   :  { %v4457_v21 = vsel %vm4438_vm4, %v12314_v14, -inf }
0x11bb   :  { %v4401_v61 = vpop.f32.mrf.mxu3 }
0x11c0   :  { %v4456_v10 = vpop.xlane.xlu0 %4455 }
0x11c1   :  { %v4492_v24 = vsub.f32 %v4427_v7, %v4456_v10  ;;  %v4481_v10 = vsel %vm4438_vm4, %v12311_v20, -inf }
0x11c3   :  { %v4513_v49 = vmul.f32 1.442695, %v4492_v24  ;;  %v4110_v24 = vpack.c.bf16 %v12206_v2, %v12206_v2 }
0x11c5   :  { %10484 = vpow2.f32 %v4513_v49  ;;  %v12329_v49 = vmul.f32 0.35355338, %v12246_v48  ;;  %v12342_v48 = vmul.f32 0.35355338, %v12264_v3 }
0x11cb   :  { %v12283_v59 = vpop.eup %10484 }
0x11cc   :  { %v4550_v19 = vsel %vm4438_vm4, %v12283_v59, 0.0 }
0x11cd   :  { %4551 = vadd.xlane.f32.xlu2 %v4550_v19 }
0x120c   :  { %v4465_v31 = vpop.xlane.xlu0 %4464 }
0x120d   :  { %v4495_v34 = vsub.f32 %v4430_v22, %v4465_v31  ;;  %v12333_v31 = vmul.f32 0.35355338, %v12261_v5 }
0x120f   :  { %v4519_v29 = vmul.f32 1.442695, %v4495_v34 }
0x1211   :  { %10486 = vpow2.f32 %v4519_v29 }
0x1214   :  { %v4468_v51 = vpop.xlane.xlu2 %4467 }
0x1215   :  { %v4496_v4 = vsub.f32 %v4431_v55, %v4468_v51  ;;  %v4789_v51 = vsel %vm4635_vm5, %v4110_v24, 0 }
0x1217   :  { %v12287_v62 = vpop.eup %10486  ;;  %v4521_v25 = vmul.f32 1.442695, %v4496_v4  ;;  %v4448_v4 = vsel %vm4438_vm4, %v12329_v49, -inf }
0x1218   :  { %v4559_v7 = vsel %vm4438_vm4, %v12287_v62, 0.0 }
0x1219   :  { %10488 = vpow2.f32 %v4521_v25  ;;  %4560 = vadd.xlane.f32.xlu2 %v4559_v7  ;;  %v4469_v25 = vsel %vm4438_vm4, %v12342_v48, -inf }
0x121c   :  { %v4477_v16 = vpop.xlane.xlu0 %4476 }
0x121d   :  { %v4499_v30 = vsub.f32 %v4434_v27, %v4477_v16  ;;  %v4090_v27 = vrot.slane %v12206_v2, 4  ;;  %v4472_v2 = vsel %vm4438_vm4, %v12333_v31, -inf  ;;  %v4092_v16 = vrot.slane %v12225_v47, 4 }
0x121f   :  { %v12294_v28 = vpop.eup %10488  ;;  %v4527_v22 = vmul.f32 1.442695, %v4499_v30  ;;  %v4111_v33 = vpack.c.bf16 %v4090_v27, %v4090_v27  ;;  %v4114_v30 = vpack.c.bf16 %v12225_v47, %v12225_v47 }
0x1220   :  { %v4540_v57 = vpop.xlane.xlu2 %4539  ;;  %v4562_v55 = vsel %vm4438_vm4, %v12294_v28, 0.0 }
0x1221   :  { %10490 = vpow2.f32 %v4527_v22  ;;  %4563 = vadd.xlane.f32.xlu1 %v4562_v55  ;;  %4446 = vmax.xlane.f32.xlu2 %v4445_v39  ;;  %v4808_v26 = vsel %vm4635_vm5, %v4111_v33, 0  ;;  %v12351_v22 = vmul.f32 0.35355338, %v12272_v50  ;;  %v4115_v55 = vpack.c.bf16 %v4092_v16, %v4092_v16 }
0x1222   :  { %10492 = vrcp.f32 %v4540_v57 }
0x1223   :  { %v4884_v47 = vsel %vm4635_vm5, %v4115_v55, 0 }
0x1224   :  { %v4480_v9 = vpop.xlane.xlu1 %4479 }
0x1225   :  { %v4500_v42 = vsub.f32 %v4435_v0, %v4480_v9  ;;  %v4865_v9 = vsel %vm4635_vm5, %v4114_v30, 0 }
0x1227   :  { %v12304_v37 = vpop.eup %10490  ;;  %v4529_v54 = vmul.f32 1.442695, %v4500_v42 }
0x1228   :  { %v10493_v40 = vpop.eup %10492  ;;  %v4571_v60 = vsel %vm4438_vm4, %v12304_v37, 0.0  ;;  %v4549_v34 = vpop.xlane.xlu0 %4548 }
0x1229   :  { %v4600_v41 = vmul.f32 %v10493_v40, %v12268_v15  ;;  %10494 = vpow2.f32 %v4529_v54  ;;  %4461 = vmax.xlane.f32.xlu2 %v4460_v44  ;;  %4572 = vadd.xlane.f32.xlu1 %v4571_v60  ;;  %v10178_v60 = vld [vmem:[%s13834_s5 + $0x18] sm:$0xff] }
0x122b   :  { %v4616_v46 = vpack.c.bf16 %v4600_v41, %v4600_v41 }
0x122c   :  { %v4537_v0 = vpop.xlane.xlu1 %4536 }
0x122d   :  { %9811 = vmatmul.msk.bf16.vlgmr.msrb.gmra.mxu2 %vm4631_vm3, %v4616_v46  ;;  %10496 = vrcp.f32 %v4537_v0  ;;  %v10177_v46 = vld [vmem:[%s13834_s5 + $0x10] sm:$0xff] }
0x122e   :  { %4817 = vmatpush.bf16.msrb.mxu2 %v4808_v26  ;;  %10498 = vrcp.f32 %v4549_v34 }
0x122f   :  { %v12318_v61 = vpop.eup %10494 }
0x1230   :  { %v4574_v15 = vsel %vm4438_vm4, %v12318_v61, 0.0 }
0x1231   :  { %4575 = vadd.xlane.f32.xlu0 %v4574_v15  ;;  %4482 = vmax.xlane.f32.xlu2 %v4481_v10 }
0x1232   :  { %4458 = vmax.xlane.f32.xlu1 %v4457_v21  ;;  %v10180_v21 = vld [vmem:[%s13835_s17 + $0x18] sm:$0xff] }
0x1233   :  { %v10497_v43 = vpop.eup %10496 }
0x1234   :  { %v4599_v19 = vmul.f32 %v10497_v43, %v12279_v36  ;;  %v10499_v5 = vpop.eup %10498 }
0x1235   :  { %v4603_v7 = vmul.f32 %v10499_v5, %v12275_v17  ;;  %v4484_v17 = vsel %vm4438_vm4, %v12351_v22, -inf }
0x1236   :  { %v4615_v29 = vpack.c.bf16 %v4599_v19, %v4599_v19 }
0x1237   :  { %v4619_v57 = vpack.c.bf16 %v4603_v7, %v4603_v7 }
0x1238   :  { %9810 = vmatmul.msk.bf16.vlgmr.msra.gmra.mxu1 %vm4631_vm3, %v4615_v29 }
0x1239   :  { %4798 = vmatpush.bf16.msra.mxu1 %v4789_v51  ;;  %4449 = vmax.xlane.f32.xlu0 %v4448_v4 }
0x123a   :  { %4473 = vmax.xlane.f32.xlu1 %v4472_v2 }
0x1240   :  { %v4552_v36 = vpop.xlane.xlu2 %4551 }
0x1241   :  { %10500 = vrcp.f32 %v4552_v36  ;;  %4470 = vmax.xlane.f32.xlu0 %v4469_v25 }
0x1247   :  { %v10501_v3 = vpop.eup %10500 }
0x1248   :  { %v4604_v39 = vmul.f32 %v10501_v3, %v12283_v59  ;;  %9814 = vmatmul.msk.bf16.vlgmr.msrb.gmra.mxu1 %vm4631_vm3, %v4619_v57 }
0x1249   :  { %4874 = vmatpush.bf16.msrb.mxu1 %v4865_v9  ;;  %4485 = vmax.xlane.f32.xlu0 %v4484_v17 }
0x124a   :  { %v4620_v27 = vpack.c.bf16 %v4604_v39, %v4604_v39 }
0x124c   :  { %9815 = vmatmul.msk.bf16.vlgmr.msra.gmra.mxu2 %vm4631_vm3, %v4620_v27 }
0x124d   :  { %4893 = vmatpush.bf16.msra.mxu2 %v4884_v47 }
0x128c   :  { %v4561_v50 = vpop.xlane.xlu2 %4560 }
0x128d   :  { %10502 = vrcp.f32 %v4561_v50 }
0x1293   :  { %v10503_v59 = vpop.eup %10502 }
0x1294   :  { %v4607_v42 = vmul.f32 %v10503_v59, %v12287_v62  ;;  %v4564_v54 = vpop.xlane.xlu1 %4563  ;;  %v4447_v40 = vpop.xlane.xlu2 %4446 }
0x1295   :  { %10504 = vrcp.f32 %v4564_v54  ;;  %v4489_v44 = vsub.f32 %v12292_v35, %v4447_v40 }
0x1296   :  { %v4623_v33 = vpack.c.bf16 %v4607_v42, %v4607_v42 }
0x1297   :  { %v4507_v41 = vmul.f32 1.442695, %v4489_v44 }
0x1298   :  { %9818 = vmatmul.msk.bf16.vlgmr.msra.gmra.mxu1 %vm4631_vm3, %v4623_v33 }
0x1299   :  { %10506 = vpow2.f32 %v4507_v41  ;;  %5020 = vmatpush.bf16.msra.mxu1 %v10178_v60 }
0x129b   :  { %v10505_v0 = vpop.eup %10504 }
0x129c   :  { %v4608_v26 = vmul.f32 %v10505_v0, %v12294_v28  ;;  %v4462_v15 = vpop.xlane.xlu2 %4461  ;;  %v4573_v62 = vpop.xlane.xlu1 %4572  ;;  %v10179_v28 = vld [vmem:[%s13835_s17 + $0x10] sm:$0xff] }
0x129d   :  { %v4494_v10 = vsub.f32 %v12301_v13, %v4462_v15  ;;  %10508 = vrcp.f32 %v4573_v62  ;;  %5021 = vmatpush.bf16.msra.mxu1 %v10177_v46 }
0x129e   :  { %v4624_v35 = vpack.c.bf16 %v4608_v26, %v4608_v26 }
0x129f   :  { %v12368_v43 = vpop.eup %10506  ;;  %v4517_v24 = vmul.f32 1.442695, %v4494_v10 }
0x12a0   :  { %9819 = vmatmul.msk.bf16.vlgmr.msrb.gmra.mxu2 %vm4631_vm3, %v4624_v35  ;;  %v4541_v19 = vsel %vm4438_vm4, %v12368_v43, 0.0 }
0x12a1   :  { %10510 = vpow2.f32 %v4517_v24  ;;  %4542 = vadd.xlane.f32.xlu1 %v4541_v19  ;;  %5066 = vmatpush.bf16.msrb.mxu2 %v10180_v21 }
0x12a3   :  { %v10509_v34 = vpop.eup %10508 }
0x12a4   :  { %v4611_v29 = vmul.f32 %v10509_v34, %v12304_v37  ;;  %v4483_v13 = vpop.xlane.xlu2 %4482  ;;  %v4576_v51 = vpop.xlane.xlu0 %4575 }
0x12a5   :  { %v4501_v4 = vsub.f32 %v12311_v20, %v4483_v13  ;;  %v4459_v2 = vpop.xlane.xlu1 %4458  ;;  %10512 = vrcp.f32 %v4576_v51  ;;  %5067 = vmatpush.bf16.msrb.mxu2 %v10179_v28  ;;  %v4112_v51 = vpack.c.bf16 %v12214_v58, %v12214_v58 }
0x12a6   :  { %v4627_v5 = vpack.c.bf16 %v4611_v29, %v4611_v29  ;;  %v4493_v36 = vsub.f32 %v12314_v14, %v4459_v2 }
0x12a7   :  { %v12377_v25 = vpop.eup %10510  ;;  %v4531_v7 = vmul.f32 1.442695, %v4501_v4 }
0x12a8   :  { %v4515_v16 = vmul.f32 1.442695, %v4493_v36  ;;  %9822 = vmatmul.msk.bf16.vlgmr.msrb.gmra.mxu1 %vm4631_vm3, %v4627_v5  ;;  %v4556_v30 = vsel %vm4438_vm4, %v12377_v25, 0.0  ;;  %v4827_v36 = vsel %vm4635_vm5, %v4112_v51, 0 }
0x12a9   :  { %10514 = vpow2.f32 %v4531_v7  ;;  %4557 = vadd.xlane.f32.xlu1 %v4556_v30 }
0x12aa   :  { %10516 = vpow2.f32 %v4515_v16 }
0x12ab   :  { %v10513_v37 = vpop.eup %10512 }
0x12ac   :  { %v4612_v20 = vmul.f32 %v10513_v37, %v12318_v61  ;;  %v4450_v57 = vpop.xlane.xlu0 %4449 }
0x12ad   :  { %v4474_v3 = vpop.xlane.xlu1 %4473  ;;  %v4490_v55 = vsub.f32 %v12329_v49, %v4450_v57 }
0x12ae   :  { %v4628_v14 = vpack.c.bf16 %v4612_v20, %v4612_v20  ;;  %v4498_v39 = vsub.f32 %v12333_v31, %v4474_v3 }
0x12af   :  { %v12385_v9 = vpop.eup %10514  ;;  %v4509_v17 = vmul.f32 1.442695, %v4490_v55 }
0x12b0   :  { %v12387_v27 = vpop.eup %10516  ;;  %v4525_v47 = vmul.f32 1.442695, %v4498_v39  ;;  %v4667_v50 = vpop.f32.mrf.mxu2  ;;  %9823 = vmatmul.msk.bf16.vlgmr.msra.gmra.mxu2 %vm4631_vm3, %v4628_v14  ;;  %v4577_v59 = vsel %vm4438_vm4, %v12385_v9, 0.0 }
0x12b1   :  { %10518 = vpow2.f32 %v4509_v17  ;;  %4955 = vst [vmem:[#allocation1 + $0x1] ss:$2 sm:$0xff] %v4667_v50  ;;  %4578 = vadd.xlane.f32.xlu1 %v4577_v59  ;;  %v4553_v61 = vsel %vm4438_vm4, %v12387_v27, 0.0  ;;  %v4091_v17 = vrot.slane %v12214_v58, 4 }
0x12b2   :  { %10520 = vpow2.f32 %v4525_v47  ;;  %4554 = vadd.xlane.f32.xlu0 %v4553_v61 }
0x12b3   :  { %v4113_v61 = vpack.c.bf16 %v4091_v17, %v4091_v17 }
0x12b4   :  { %v4471_v49 = vpop.xlane.xlu0 %4470 }
0x12b5   :  { %v4497_v31 = vsub.f32 %v12342_v48, %v4471_v49  ;;  %v4648_v42 = vpop.f32.mrf.mxu1  ;;  %v4846_v58 = vsel %vm4635_vm5, %v4113_v61, 0 }
0x12b6   :  { %4953 = vst [vmem:[#allocation1] ss:$2 sm:$0xff] %v4648_v42 }
0x12b7   :  { %v12395_v54 = vpop.eup %10518  ;;  %v4523_v40 = vmul.f32 1.442695, %v4497_v31 }
0x12b8   :  { %v12397_v44 = vpop.eup %10520  ;;  %v4669_v60 = vpop.f32.mrf.mxu2  ;;  %9838 = vmatmul.msk.bf16.vlgmr.msra.gmra.mxu1 %vm135_vm0, %v12128_v32  ;;  %v4544_v33 = vsel %vm4438_vm4, %v12395_v54, 0.0 }
0x12b9   :  { %10522 = vpow2.f32 %v4523_v40  ;;  %v4568_v41 = vsel %vm4438_vm4, %v12397_v44, 0.0  ;;  %4545 = vadd.xlane.f32.xlu2 %v4544_v33 }
0x12ba   :  { %4569 = vadd.xlane.f32.xlu0 %v4568_v41 }
0x12bc   :  { %v4486_v48 = vpop.xlane.xlu0 %4485 }
0x12bd   :  { %v4502_v46 = vsub.f32 %v12351_v22, %v4486_v48  ;;  %v4650_v0 = vpop.f32.mrf.mxu1  ;;  %v12428_v34 = vld.sshfl [vmem:[#allocation1] sm:$0xff pattern:$0x75316420] }
0x12bf   :  { %v12406_v26 = vpop.eup %10522  ;;  %v4533_v15 = vmul.f32 1.442695, %v4502_v46 }
0x12c0   :  { %9854 = vmatmul.msk.bf16.vlgmr.msrb.gmra.mxu2 %vm135_vm0, %v12128_v32  ;;  %v4565_v62 = vsel %vm4438_vm4, %v12406_v26, 0.0 }
0x12c1   :  { %10524 = vpow2.f32 %v4533_v15  ;;  %4566 = vadd.xlane.f32.xlu2 %v4565_v62  ;;  %v4093_v15 = vrot.slane %v12240_v12, 4 }
0x12c5   :  { %v4724_v10 = vpop.f32.mrf.mxu1 }
0x12c6   :  { %4961 = vst [vmem:[#allocation1 + $0x20] ss:$2 sm:$0xff] %v4724_v10  ;;  %v10181_v10 = vld [vmem:[%s13836_s21 + $0x10] sm:$0xff] }
0x12c7   :  { %v12412_v21 = vpop.eup %10524 }
0x12c8   :  { %9839 = vmatmul.msk.bf16.gmra.mxu1 %vm135_vm0, %v12142_v1  ;;  %v4580_v22 = vsel %vm4438_vm4, %v12412_v21, 0.0 }
0x12c9   :  { %4581 = vadd.xlane.f32.xlu2 %v4580_v22 }
0x12cd   :  { %v4726_v35 = vpop.f32.mrf.mxu1 }
0x12ce   :  { %v4117_v35 = vpack.c.bf16 %v4093_v15, %v4093_v15 }
0x12cf   :  { %v4743_v24 = vpop.f32.mrf.mxu2 }
0x12d0   :  { %4963 = vst [vmem:[#allocation1 + $0x21] ss:$2 sm:$0xff] %v4743_v24  ;;  %9855 = vmatmul.msk.bf16.gmra.mxu2 %vm135_vm0, %v12142_v1 }
0x12d7   :  { %v4745_v19 = vpop.f32.mrf.mxu2  ;;  %v12435_v16 = vld.sshfl [vmem:[#allocation1 + $0x20] sm:$0xff pattern:$0x75316420] }
0x12d8   :  { %9840 = vmatmul.msk.bf16.gmra.mxu1 %vm135_vm0, %v12160_v38 }
0x12e0   :  { %9856 = vmatmul.msk.bf16.gmra.mxu2 %vm135_vm0, %v12160_v38 }
0x12e8   :  { %9841 = vmatmul.msk.bf16.gmra.mxu1 %vm135_vm0, %v12179_v6 }
0x12f0   :  { %9857 = vmatmul.msk.bf16.gmra.mxu2 %vm135_vm0, %v12179_v6 }
0x1314   :  { %v4543_v28 = vpop.xlane.xlu1 %4542 }
0x1315   :  { %10526 = vrcp.f32 %v4543_v28  ;;  %v4800_v29 = vpop.f32.mrf.mxu1 }
0x1316   :  { %4972 = vst [vmem:[#allocation1] ss:$2 sm:$0xff] %v4800_v29  ;;  %v4922_v29 = vsel %vm4635_vm5, %v4117_v35, 0 }
0x131b   :  { %v10527_v13 = vpop.eup %10526 }
0x131c   :  { %v4601_v4 = vmul.f32 %v10527_v13, %v12368_v43  ;;  %v4116_v43 = vpack.c.bf16 %v12240_v12, %v12240_v12  ;;  %v4558_v42 = vpop.xlane.xlu1 %4557 }
0x131d   :  { %v4802_v2 = vpop.f32.mrf.mxu1 }
0x131e   :  { %v4617_v5 = vpack.c.bf16 %v4601_v4, %v4601_v4  ;;  %v4903_v47 = vsel %vm4635_vm5, %v4116_v43, 0 }
0x1320   :  { %9812 = vmatmul.msk.bf16.vlgmr.msra.gmra.mxu3 %vm4631_vm3, %v4617_v5 }
0x1321   :  { %4836 = vmatpush.bf16.msra.mxu3 %v4827_v36 }
0x1323   :  { %v4819_v7 = vpop.f32.mrf.mxu2 }
0x1324   :  { %4973 = vst [vmem:[#allocation1 + $0x1] ss:$2 sm:$0xff] %v4819_v7  ;;  %v4579_v0 = vpop.xlane.xlu1 %4578 }
0x1325   :  { %v4555_v30 = vpop.xlane.xlu0 %4554  ;;  %v4876_v37 = vpop.f32.mrf.mxu1 }
0x1326   :  { %10528 = vrcp.f32 %v4555_v30  ;;  %4976 = vst [vmem:[#allocation1 + $0x20] ss:$2 sm:$0xff] %v4876_v37 }
0x132b   :  { %v4821_v20 = vpop.f32.mrf.mxu2 }
0x132c   :  { %v10529_v57 = vpop.eup %10528  ;;  %v4546_v3 = vpop.xlane.xlu2 %4545 }
0x132d   :  { %v4605_v55 = vmul.f32 %v10529_v57, %v12387_v27  ;;  %10530 = vrcp.f32 %v4546_v3  ;;  %v4878_v14 = vpop.f32.mrf.mxu1  ;;  %v4570_v28 = vpop.xlane.xlu0 %4569 }
0x132f   :  { %v4621_v39 = vpack.c.bf16 %v4605_v55, %v4605_v55 }
0x1331   :  { %9816 = vmatmul.msk.bf16.vlgmr.msrb.gmra.mxu3 %vm4631_vm3, %v4621_v39 }
0x1332   :  { %4912 = vmatpush.bf16.msrb.mxu3 %v4903_v47 }
0x1333   :  { %v10531_v50 = vpop.eup %10530  ;;  %v4895_v59 = vpop.f32.mrf.mxu2 }
0x1334   :  { %v4602_v49 = vmul.f32 %v10531_v50, %v12395_v54  ;;  %4977 = vst [vmem:[#allocation1 + $0x21] ss:$2 sm:$0xff] %v4895_v59  ;;  %v4567_v31 = vpop.xlane.xlu2 %4566  ;;  %v10182_v54 = vld [vmem:[%s13836_s21 + $0x18] sm:$0xff] }
0x1335   :  { %10532 = vrcp.f32 %v4567_v31  ;;  %v12446_v60 = vpop.f32.mrf.mxu1 }
0x1336   :  { %v4618_v27 = vpack.c.bf16 %v4602_v49, %v4602_v49  ;;  %10534 = vrcp.f32 %v4558_v42 }
0x1337   :  { %10536 = vrcp.f32 %v4579_v0 }
0x1338   :  { %9813 = vmatmul.msk.bf16.vlgmr.msra.gmra.mxu0 %vm4631_vm3, %v4618_v27  ;;  %10538 = vrcp.f32 %v4570_v28 }
0x1339   :  { %4855 = vmatpush.bf16.msra.mxu0 %v4846_v58 }
0x133b   :  { %v10533_v40 = vpop.eup %10532  ;;  %v4897_v33 = vpop.f32.mrf.mxu2 }
0x133c   :  { %v4609_v41 = vmul.f32 %v10533_v40, %v12406_v26  ;;  %v10535_v46 = vpop.eup %10534  ;;  %v4582_v20 = vpop.xlane.xlu2 %4581 }
0x133d   :  { %v4606_v62 = vmul.f32 %v10535_v46, %v12377_v25  ;;  %v12454_v24 = vpop.f32.mrf.mxu1  ;;  %v10537_v26 = vpop.eup %10536  ;;  %10540 = vrcp.f32 %v4582_v20  ;;  %v5143_v20 = vrot.slane %v12446_v60, 4 }
0x133e   :  { %v4625_v48 = vpack.c.bf16 %v4609_v41, %v4609_v41  ;;  %v4613_v12 = vmul.f32 %v10537_v26, %v12385_v9  ;;  %v10539_v13 = vpop.eup %10538 }
0x133f   :  { %v4622_v19 = vpack.c.bf16 %v4606_v62, %v4606_v62  ;;  %v4610_v2 = vmul.f32 %v10539_v13, %v12397_v44 }
0x1340   :  { %v4629_v51 = vpack.c.bf16 %v4613_v12, %v4613_v12  ;;  %v5159_v12 = vpack.c.bf16 %v12446_v60, %v12446_v60 }
0x1341   :  { %9820 = vmatmul.msk.bf16.vlgmr.msra.gmra.mxu3 %vm4631_vm3, %v4625_v48  ;;  %v4626_v37 = vpack.c.bf16 %v4610_v2, %v4610_v2 }
0x1342   :  { %5112 = vmatpush.bf16.msra.mxu3 %v10182_v54 }
0x1343   :  { %v5069_v22 = vpop.f32.mrf.mxu2  ;;  %v10541_v59 = vpop.eup %10540 }
0x1344   :  { %v5199_v36 = vpack.c.bf16 %v5069_v22, %v5069_v22  ;;  %v5183_v61 = vrot.slane %v5069_v22, 4  ;;  %v4614_v49 = vmul.f32 %v10541_v59, %v12412_v21  ;;  %v5144_v59 = vrot.slane %v12454_v24, 4 }
0x1345   :  { %v5028_v4 = vpop.f32.mrf.mxu1 }
0x1346   :  { %5113 = vmatpush.bf16.msra.mxu3 %v10181_v10  ;;  %v5259_v9 = vsel %vm516_vm8, %v5199_v36, 0  ;;  %v5145_v44 = vrot.slane %v5028_v4, 4  ;;  %v5163_v39 = vpack.c.bf16 %v5028_v4, %v5028_v4  ;;  %v5200_v27 = vpack.c.bf16 %v5183_v61, %v5183_v61 }
0x1347   :  { %v4630_v33 = vpack.c.bf16 %v4614_v49, %v4614_v49 }
0x1348   :  { %9817 = vmatmul.msk.bf16.vlgmr.msrb.gmra.mxu0 %vm4631_vm3, %v4622_v19  ;;  %v5164_v47 = vpack.c.bf16 %v5145_v44, %v5145_v44  ;;  %v5278_v54 = vsel %vm516_vm8, %v5200_v27, 0  ;;  %v5161_v44 = vpack.c.bf16 %v12454_v24, %v12454_v24 }
0x1349   :  { %4931 = vmatpush.bf16.msrb.mxu0 %v4922_v29 }
0x134b   :  { %v12459_v25 = vpop.f32.mrf.mxu2 }
0x134c   :  { %v5201_v28 = vpack.c.bf16 %v12459_v25, %v12459_v25 }
0x134d   :  { %v12467_v55 = vpop.f32.mrf.mxu1 }
0x134e   :  { %v5297_v2 = vsel %vm516_vm8, %v5201_v28, 0 }
0x1351   :  { %9824 = vmatmul.msk.bf16.vlgmr.msrb.gmra.mxu3 %vm4631_vm3, %v4629_v51 }
0x1353   :  { %v5074_v5 = vpop.f32.mrf.mxu2 }
0x1354   :  { %v5185_v7 = vrot.slane %v5074_v5, 4  ;;  %v5203_v30 = vpack.c.bf16 %v5074_v5, %v5074_v5 }
0x1355   :  { %v5033_v31 = vpop.f32.mrf.mxu1 }
0x1356   :  { %v5204_v57 = vpack.c.bf16 %v5185_v7, %v5185_v7  ;;  %v5335_v3 = vsel %vm516_vm8, %v5203_v30, 0  ;;  %v5147_v0 = vrot.slane %v5033_v31, 4  ;;  %v5167_v15 = vpack.c.bf16 %v5033_v31, %v5033_v31 }
0x1357   :  { %5344 = vmatpush.bf16.xpose.msrb.mxu1 %v5335_v3  ;;  %v5160_v3 = vpack.c.bf16 %v5143_v20, %v5143_v20  ;;  %v5162_v31 = vpack.c.bf16 %v5144_v59, %v5144_v59 }
0x1358   :  { %9821 = vmatmul.msk.bf16.vlgmr.msra.gmra.mxu0 %vm4631_vm3, %v4626_v37  ;;  %v5354_v43 = vsel %vm516_vm8, %v5204_v57, 0  ;;  %v5168_v22 = vpack.c.bf16 %v5147_v0, %v5147_v0  ;;  %v5184_v37 = vrot.slane %v12459_v25, 4 }
0x1359   :  { %5268 = vmatpush.bf16.xpose.msra.mxu0 %v5259_v9  ;;  %5363 = vmatpush.bf16.xpose.msra.mxu2 %v5354_v43 }
0x135a   :  { %v5202_v57 = vpack.c.bf16 %v5184_v37, %v5184_v37 }
0x135b   :  { %v12469_v14 = vpop.f32.mrf.mxu2 }
0x135c   :  { %v5205_v17 = vpack.c.bf16 %v12469_v14, %v12469_v14  ;;  %v5316_v9 = vsel %vm516_vm8, %v5202_v57, 0  ;;  %v5186_v43 = vrot.slane %v12469_v14, 4 }
0x135d   :  { %v12483_v10 = vpop.f32.mrf.mxu1 }
0x135e   :  { %9878 = vmatmul.msk.bf16.vlgmr.msrb.gmra.mxu1 %vm516_vm8, %v5163_v39  ;;  %v5373_v50 = vsel %vm516_vm8, %v5205_v17, 0  ;;  %v5206_v25 = vpack.c.bf16 %v5186_v43, %v5186_v43 }
0x135f   :  { %5382 = vmatpush.bf16.xpose.msrb.mxu3 %v5373_v50 }
0x1360   :  { %9879 = vmatmul.msk.bf16.vlgmr.msra.gmra.mxu2 %vm516_vm8, %v5164_v47  ;;  %v5392_v60 = vsel %vm516_vm8, %v5206_v25, 0  ;;  %v5165_v47 = vpack.c.bf16 %v12467_v55, %v12467_v55 }
0x1361   :  { %9870 = vmatmul.msk.bf16.vlgmr.msra.gmra.mxu3 %vm135_vm0, %v12128_v32 }
0x1363   :  { %v5079_v42 = vpop.f32.mrf.mxu2 }
0x1364   :  { %v5187_v58 = vrot.slane %v5079_v42, 4  ;;  %v5207_v40 = vpack.c.bf16 %v5079_v42, %v5079_v42 }
0x1365   :  { %v5038_v4 = vpop.f32.mrf.mxu1 }
0x1366   :  { %v5208_v41 = vpack.c.bf16 %v5187_v58, %v5187_v58  ;;  %v5411_v48 = vsel %vm516_vm8, %v5207_v40, 0  ;;  %v5149_v36 = vrot.slane %v5038_v4, 4  ;;  %v5171_v7 = vpack.c.bf16 %v5038_v4, %v5038_v4 }
0x1367   :  { %5420 = vmatpush.bf16.xpose.msra.mxu1 %v5411_v48  ;;  %v5169_v58 = vpack.c.bf16 %v12483_v10, %v12483_v10 }
0x1368   :  { %9825 = vmatmul.msk.bf16.vlgmr.msrb.gmra.mxu0 %vm4631_vm3, %v4630_v33  ;;  %v5430_v46 = vsel %vm516_vm8, %v5208_v41, 0  ;;  %v5172_v30 = vpack.c.bf16 %v5149_v36, %v5149_v36  ;;  %v5146_v33 = vrot.slane %v12467_v55, 4 }
0x1369   :  { %5287 = vmatpush.bf16.xpose.msrb.mxu0 %v5278_v54  ;;  %5439 = vmatpush.bf16.xpose.msrb.mxu2 %v5430_v46 }
0x136a   :  { %v5166_v54 = vpack.c.bf16 %v5146_v33, %v5146_v33 }
0x136b   :  { %v5081_v21 = vpop.f32.mrf.mxu2 }
0x136c   :  { %v5209_v62 = vpack.c.bf16 %v5081_v21, %v5081_v21  ;;  %v5188_v50 = vrot.slane %v5081_v21, 4 }
0x136d   :  { %v5040_v0 = vpop.f32.mrf.mxu1 }
0x136e   :  { %9882 = vmatmul.msk.bf16.vlgmr.msra.gmra.mxu1 %vm516_vm8, %v5167_v15  ;;  %v5449_v35 = vsel %vm516_vm8, %v5209_v62, 0  ;;  %v5210_v49 = vpack.c.bf16 %v5188_v50, %v5188_v50  ;;  %v5173_v62 = vpack.c.bf16 %v5040_v0, %v5040_v0 }
0x136f   :  { %5458 = vmatpush.bf16.xpose.msra.mxu3 %v5449_v35 }
0x1370   :  { %9883 = vmatmul.msk.bf16.vlgmr.msrb.gmra.mxu2 %vm516_vm8, %v5168_v22  ;;  %v5468_v42 = vsel %vm516_vm8, %v5210_v49, 0  ;;  %v5148_v22 = vrot.slane %v12483_v10, 4 }
0x1371   :  { %9871 = vmatmul.msk.bf16.gmra.mxu3 %vm135_vm0, %v12142_v1 }
0x1372   :  { %v5170_v28 = vpack.c.bf16 %v5148_v22, %v5148_v22 }
0x1373   :  { %v5084_v19 = vpop.f32.mrf.mxu2 }
0x1374   :  { %v5189_v26 = vrot.slane %v5084_v19, 4  ;;  %v5211_v29 = vpack.c.bf16 %v5084_v19, %v5084_v19 }
0x1376   :  { %v5212_v13 = vpack.c.bf16 %v5189_v26, %v5189_v26  ;;  %v5487_v51 = vsel %vm516_vm8, %v5211_v29, 0 }
0x1377   :  { %5496 = vmatpush.bf16.xpose.msrb.mxu1 %v5487_v51 }
0x1378   :  { %9874 = vmatmul.msk.bf16.vlgmr.msra.gmra.mxu0 %vm516_vm8, %v5159_v12  ;;  %v5506_v5 = vsel %vm516_vm8, %v5212_v13, 0  ;;  %v5150_v12 = vrot.slane %v5040_v0, 4 }
0x1379   :  { %5306 = vmatpush.bf16.xpose.msra.mxu0 %v5297_v2  ;;  %5515 = vmatpush.bf16.xpose.msra.mxu2 %v5506_v5 }
0x137a   :  { %v5174_v2 = vpack.c.bf16 %v5150_v12, %v5150_v12 }
0x137b   :  { %v5086_v39 = vpop.f32.mrf.mxu2 }
0x137c   :  { %v5213_v17 = vpack.c.bf16 %v5086_v39, %v5086_v39  ;;  %v5190_v40 = vrot.slane %v5086_v39, 4 }
0x137e   :  { %9886 = vmatmul.msk.bf16.vlgmr.msrb.gmra.mxu1 %vm516_vm8, %v5171_v7  ;;  %v5525_v14 = vsel %vm516_vm8, %v5213_v17, 0  ;;  %v5214_v24 = vpack.c.bf16 %v5190_v40, %v5190_v40 }
0x1380   :  { %9887 = vmatmul.msk.bf16.vlgmr.msra.gmra.mxu2 %vm516_vm8, %v5172_v30  ;;  %v5544_v46 = vsel %vm516_vm8, %v5214_v24, 0 }
0x1381   :  { %9872 = vmatmul.msk.bf16.gmra.mxu3 %vm135_vm0, %v12160_v38 }
0x1388   :  { %9875 = vmatmul.msk.bf16.vlgmr.msrb.gmra.mxu0 %vm516_vm8, %v5160_v3 }
0x1389   :  { %5325 = vmatpush.bf16.xpose.msrb.mxu0 %v5316_v9 }
0x1391   :  { %9873 = vmatmul.msk.bf16.gmra.mxu3 %vm135_vm0, %v12179_v6 }
0x1398   :  { %9876 = vmatmul.msk.bf16.vlgmr.msra.gmra.mxu0 %vm516_vm8, %v5161_v44 }
0x1399   :  { %5401 = vmatpush.bf16.xpose.msra.mxu0 %v5392_v60 }
0x13a1   :  { %9880 = vmatmul.msk.bf16.vlgmr.msrb.gmra.mxu3 %vm516_vm8, %v5165_v47 }
0x13a2   :  { %5534 = vmatpush.bf16.xpose.msrb.mxu3 %v5525_v14 }
0x13a3   :  { %v4686_v61 = vpop.f32.mrf.mxu3 }
0x13a4   :  { %4957 = vst [vmem:[#allocation1 + $0x10] ss:$2 sm:$0xff] %v4686_v61 }
0x13a8   :  { %9877 = vmatmul.msk.bf16.vlgmr.msrb.gmra.mxu0 %vm516_vm8, %v5162_v31 }
0x13a9   :  { %5477 = vmatpush.bf16.xpose.msrb.mxu0 %v5468_v42 }
0x13ab   :  { %v4688_v27 = vpop.f32.mrf.mxu3 }
0x13b1   :  { %9884 = vmatmul.msk.bf16.vlgmr.msra.gmra.mxu3 %vm516_vm8, %v5169_v58 }
0x13b4   :  { %v4762_v41 = vpop.f32.mrf.mxu3 }
0x13b5   :  { %4965 = vst [vmem:[#allocation1 + $0x30] ss:$2 sm:$0xff] %v4762_v41  ;;  %v4705_v48 = vpop.f32.mrf.mxu0 }
0x13b6   :  { %4959 = vst [vmem:[#allocation1 + $0x11] ss:$2 sm:$0xff] %v4705_v48 }
0x13b8   :  { %9881 = vmatmul.msk.bf16.vlgmr.msra.gmra.mxu0 %vm516_vm8, %v5166_v54 }
0x13b9   :  { %5553 = vmatpush.bf16.xpose.msra.mxu0 %v5544_v46 }
0x13bc   :  { %v4764_v21 = vpop.f32.mrf.mxu3 }
0x13bd   :  { %v4707_v15 = vpop.f32.mrf.mxu0  ;;  %v12528_v55 = vld.sshfl [vmem:[#allocation1 + $0x10] sm:$0xff pattern:$0x75316420] }
0x13c1   :  { %9888 = vmatmul.msk.bf16.vlgmr.msrb.gmra.mxu3 %vm516_vm8, %v5173_v62 }
0x13c4   :  { %v4838_v35 = vpop.f32.mrf.mxu3 }
0x13c5   :  { %4974 = vst [vmem:[#allocation1 + $0x10] ss:$2 sm:$0xff] %v4838_v35  ;;  %v4781_v19 = vpop.f32.mrf.mxu0 }
0x13c6   :  { %4967 = vst [vmem:[#allocation1 + $0x31] ss:$2 sm:$0xff] %v4781_v19 }
0x13c8   :  { %9885 = vmatmul.msk.bf16.vlgmr.msrb.gmra.mxu0 %vm516_vm8, %v5170_v28 }
0x13cc   :  { %v4840_v26 = vpop.f32.mrf.mxu3 }
0x13cd   :  { %v4783_v29 = vpop.f32.mrf.mxu0  ;;  %v12531_v13 = vld.sshfl [vmem:[#allocation1 + $0x30] sm:$0xff pattern:$0x75316420] }
0x13d4   :  { %v4914_v51 = vpop.f32.mrf.mxu3 }
0x13d5   :  { %4978 = vst [vmem:[#allocation1 + $0x30] ss:$2 sm:$0xff] %v4914_v51  ;;  %v4857_v4 = vpop.f32.mrf.mxu0 }
0x13d6   :  { %4975 = vst [vmem:[#allocation1 + $0x11] ss:$2 sm:$0xff] %v4857_v4 }
0x13d8   :  { %9889 = vmatmul.msk.bf16.vlgmr.msra.gmra.mxu0 %vm516_vm8, %v5174_v2 }
0x13db   :  { %v12534_v10 = vpop.f32.mrf.mxu1 }
0x13dc   :  { %v4916_v5 = vpop.f32.mrf.mxu3 }
0x13dd   :  { %v4859_v36 = vpop.f32.mrf.mxu0 }
0x13e3   :  { %v5348_v7 = vpop.f32.mrf.mxu1  ;;  %v12536_v30 = vpop.f32.mrf.mxu2 }
0x13e4   :  { %v5115_v37 = vpop.f32.mrf.mxu3 }
0x13e5   :  { %v5223_v20 = vrot.slane %v5115_v37, 4  ;;  %v5239_v57 = vpack.c.bf16 %v5115_v37, %v5115_v37  ;;  %v4933_v3 = vpop.f32.mrf.mxu0 }
0x13e6   :  { %4979 = vst [vmem:[#allocation1 + $0x31] ss:$2 sm:$0xff] %v4933_v3 }
0x13e7   :  { %v5240_v9 = vpack.c.bf16 %v5223_v20, %v5223_v20  ;;  %v5771_v43 = vsel %vm4635_vm5, %v5239_v57, 0 }
0x13e8   :  { %5780 = vmatpush.bf16.msra.mxu1 %v5771_v43 }
0x13e9   :  { %v5790_v25 = vsel %vm4635_vm5, %v5240_v9, 0 }
0x13ea   :  { %5799 = vmatpush.bf16.msrb.mxu2 %v5790_v25 }
0x13eb   :  { %v5367_v44 = vpop.f32.mrf.mxu2  ;;  %v12540_v60 = vpop.f32.mrf.mxu1 }
0x13ec   :  { %v5117_v39 = vpop.f32.mrf.mxu3 }
0x13ed   :  { %v5224_v17 = vrot.slane %v5117_v39, 4  ;;  %v5241_v47 = vpack.c.bf16 %v5117_v39, %v5117_v39  ;;  %v4935_v50 = vpop.f32.mrf.mxu0 }
0x13ef   :  { %v5242_v14 = vpack.c.bf16 %v5224_v17, %v5224_v17  ;;  %v5809_v59 = vsel %vm4635_vm5, %v5241_v47, 0 }
0x13f0   :  { %5818 = vmatpush.bf16.msra.mxu3 %v5809_v59 }
0x13f1   :  { %v5828_v61 = vsel %vm4635_vm5, %v5242_v14, 0 }
0x13f2   :  { %5837 = vmatpush.bf16.msrb.mxu0 %v5828_v61 }
0x13f3   :  { %v5424_v49 = vpop.f32.mrf.mxu1  ;;  %v12544_v31 = vpop.f32.mrf.mxu2 }
0x13f4   :  { %v5120_v42 = vpop.f32.mrf.mxu3 }
0x13f5   :  { %v5225_v27 = vrot.slane %v5120_v42, 4  ;;  %v5243_v58 = vpack.c.bf16 %v5120_v42, %v5120_v42  ;;  %v5270_v40 = vpop.f32.mrf.mxu0 }
0x13f6   :  { %v12569_v14 = vmul.f32 0.35355338, %v5270_v40 }
0x13f7   :  { %v5244_v33 = vpack.c.bf16 %v5225_v27, %v5225_v27  ;;  %v5847_v24 = vsel %vm4635_vm5, %v5243_v58, 0 }
0x13f8   :  { %5856 = vmatpush.bf16.msrb.mxu1 %v5847_v24  ;;  %v5575_v58 = vsel %vm4438_vm4, %v12569_v14, -inf  ;;  %v12579_v24 = vmul.f32 0.35355338, %v12534_v10 }
0x13f9   :  { %v5866_v41 = vsel %vm4635_vm5, %v5244_v33, 0 }
0x13fa   :  { %5875 = vmatpush.bf16.msra.mxu2 %v5866_v41 }
0x13fb   :  { %v5443_v48 = vpop.f32.mrf.mxu2  ;;  %v12548_v54 = vpop.f32.mrf.mxu1 }
0x13fc   :  { %v5122_v46 = vpop.f32.mrf.mxu3  ;;  %v5587_v48 = vsel %vm4438_vm4, %v12579_v24, -inf }
0x13fd   :  { %v5226_v0 = vrot.slane %v5122_v46, 4  ;;  %v5245_v21 = vpack.c.bf16 %v5122_v46, %v5122_v46  ;;  %v5272_v15 = vpop.f32.mrf.mxu0 }
0x13ff   :  { %v5246_v62 = vpack.c.bf16 %v5226_v0, %v5226_v0  ;;  %v5885_v22 = vsel %vm4635_vm5, %v5245_v21, 0 }
0x1400   :  { %5894 = vmatpush.bf16.msrb.mxu3 %v5885_v22 }
0x1401   :  { %v5904_v35 = vsel %vm4635_vm5, %v5246_v62, 0  ;;  %v12588_v62 = vmul.f32 0.35355338, %v12536_v30  ;;  %v12601_v30 = vmul.f32 0.35355338, %v12544_v31 }
0x1402   :  { %5913 = vmatpush.bf16.msra.mxu0 %v5904_v35 }
0x1403   :  { %v5500_v19 = vpop.f32.mrf.mxu1  ;;  %v12552_v28 = vpop.f32.mrf.mxu2  ;;  %v5590_v35 = vsel %vm4438_vm4, %v12588_v62, -inf }
0x1404   :  { %v12554_v26 = vpop.f32.mrf.mxu3 }
0x1405   :  { %v5289_v29 = vpop.f32.mrf.mxu0 }
0x1406   :  { %v12561_v37 = vmul.f32 0.35355338, %v5289_v29 }
0x1408   :  { %v5578_v3 = vsel %vm4438_vm4, %v12561_v37, -inf }
0x140b   :  { %v5519_v12 = vpop.f32.mrf.mxu2 }
0x140c   :  { %v12556_v51 = vpop.f32.mrf.mxu3 }
0x140d   :  { %v5291_v4 = vpop.f32.mrf.mxu0 }
0x1414   :  { %v12558_v2 = vpop.f32.mrf.mxu3 }
0x1415   :  { %v5308_v5 = vpop.f32.mrf.mxu0 }
0x1416   :  { %v5561_v36 = vmul.f32 0.35355338, %v5308_v5 }
0x1418   :  { %v5581_v7 = vsel %vm4438_vm4, %v5561_v36, -inf }
0x1419   :  { %5582 = vmax.xlane.f32.xlu1 %v5581_v7 }
0x141c   :  { %v12563_v20 = vpop.f32.mrf.mxu3 }
0x141d   :  { %v5310_v57 = vpop.f32.mrf.mxu0 }
0x141e   :  { %v5602_v57 = vsel %vm4438_vm4, %v12601_v30, -inf }
0x1421   :  { %5579 = vmax.xlane.f32.xlu1 %v5578_v3 }
0x1424   :  { %v5384_v9 = vpop.f32.mrf.mxu3 }
0x1425   :  { %v5327_v43 = vpop.f32.mrf.mxu0  ;;  %v5565_v39 = vmul.f32 0.35355338, %v5384_v9 }
0x1426   :  { %v5562_v25 = vmul.f32 0.35355338, %v5327_v43 }
0x1427   :  { %v5593_v50 = vsel %vm4438_vm4, %v5565_v39, -inf }
0x1428   :  { %v5584_v44 = vsel %vm4438_vm4, %v5562_v25, -inf }
0x1429   :  { %5585 = vmax.xlane.f32.xlu0 %v5584_v44 }
0x142c   :  { %v5386_v17 = vpop.f32.mrf.mxu3 }
0x142d   :  { %v5329_v47 = vpop.f32.mrf.mxu0 }
0x1431   :  { %5594 = vmax.xlane.f32.xlu0 %v5593_v50 }
0x1434   :  { %v5460_v59 = vpop.f32.mrf.mxu3 }
0x1435   :  { %v12571_v61 = vmul.f32 0.35355338, %v5460_v59  ;;  %v5403_v49 = vpop.f32.mrf.mxu0 }
0x1436   :  { %v5566_v42 = vmul.f32 0.35355338, %v5403_v49 }
0x1437   :  { %v5605_v27 = vsel %vm4438_vm4, %v12571_v61, -inf }
0x1438   :  { %5606 = vmax.xlane.f32.xlu1 %v5605_v27  ;;  %v5596_v33 = vsel %vm4438_vm4, %v5566_v42, -inf }
0x1439   :  { %5576 = vmax.xlane.f32.xlu0 %v5575_v58  ;;  %5597 = vmax.xlane.f32.xlu2 %v5596_v33 }
0x143c   :  { %v5462_v40 = vpop.f32.mrf.mxu3 }
0x143d   :  { %v5405_v41 = vpop.f32.mrf.mxu0 }
0x143e   :  { %v12614_v41 = vmul.f32 0.35355338, %v12540_v60 }
0x1440   :  { %5588 = vmax.xlane.f32.xlu1 %v5587_v48 }
0x1444   :  { %v5536_v46 = vpop.f32.mrf.mxu3 }
0x1445   :  { %v5479_v0 = vpop.f32.mrf.mxu0  ;;  %v12592_v19 = vmul.f32 0.35355338, %v5536_v46 }
0x1446   :  { %v12583_v21 = vmul.f32 0.35355338, %v5479_v0 }
0x1447   :  { %v5617_v4 = vsel %vm4438_vm4, %v12592_v19, -inf }
0x1448   :  { %v5608_v15 = vsel %vm4438_vm4, %v12583_v21, -inf }
0x1449   :  { %5609 = vmax.xlane.f32.xlu2 %v5608_v15 }
0x144c   :  { %v5538_v22 = vpop.f32.mrf.mxu3 }
0x144d   :  { %v5481_v10 = vpop.f32.mrf.mxu0 }
0x144e   :  { %v5599_v10 = vsel %vm4438_vm4, %v12614_v41, -inf }
0x1451   :  { %5591 = vmax.xlane.f32.xlu2 %v5590_v35  ;;  %v12625_v35 = vmul.f32 0.35355338, %v12548_v54 }
0x1455   :  { %v5555_v29 = vpop.f32.mrf.mxu0 }
0x1456   :  { %v12594_v12 = vmul.f32 0.35355338, %v5555_v29 }
0x1458   :  { %v5620_v5 = vsel %vm4438_vm4, %v12594_v12, -inf }
0x1459   :  { %5618 = vmax.xlane.f32.xlu2 %v5617_v4  ;;  %5621 = vmax.xlane.f32.xlu0 %v5620_v5 }
0x145d   :  { %v5557_v7 = vpop.f32.mrf.mxu0 }
0x1461   :  { %5603 = vmax.xlane.f32.xlu2 %v5602_v57  ;;  %v5611_v57 = vsel %vm4438_vm4, %v12625_v35, -inf }
0x148c   :  { %v5583_v3 = vpop.xlane.xlu1 %5582 }
0x148d   :  { %v5625_v9 = vsub.f32 %v5561_v36, %v5583_v3 }
0x148f   :  { %v5643_v43 = vmul.f32 1.442695, %v5625_v9 }
0x1491   :  { %10542 = vpow2.f32 %v5643_v43 }
0x1494   :  { %v5580_v31 = vpop.xlane.xlu1 %5579 }
0x1497   :  { %v12605_v44 = vpop.eup %10542 }
0x1498   :  { %v5677_v17 = vsel %vm4438_vm4, %v12605_v44, 0.0 }
0x1499   :  { %5678 = vadd.xlane.f32.xlu1 %v5677_v17 }
0x149c   :  { %v5586_v47 = vpop.xlane.xlu0 %5585 }
0x149d   :  { %v5626_v50 = vsub.f32 %v5562_v25, %v5586_v47 }
0x149f   :  { %v5645_v59 = vmul.f32 1.442695, %v5626_v50 }
0x14a1   :  { %10544 = vpow2.f32 %v5645_v59 }
0x14a4   :  { %v5595_v49 = vpop.xlane.xlu0 %5594 }
0x14a5   :  { %v5629_v27 = vsub.f32 %v5565_v39, %v5595_v49  ;;  %v5624_v39 = vsub.f32 %v12561_v37, %v5580_v31 }
0x14a7   :  { %v12609_v58 = vpop.eup %10544  ;;  %v5651_v33 = vmul.f32 1.442695, %v5629_v27 }
0x14a8   :  { %v5680_v36 = vsel %vm4438_vm4, %v12609_v58, 0.0 }
0x14a9   :  { %10546 = vpow2.f32 %v5651_v33  ;;  %5681 = vadd.xlane.f32.xlu0 %v5680_v36 }
0x14ab   :  { %v5607_v40 = vpop.xlane.xlu1 %5606 }
0x14ac   :  { %v5598_v48 = vpop.xlane.xlu2 %5597  ;;  %v5633_v0 = vsub.f32 %v12571_v61, %v5607_v40  ;;  %v5641_v61 = vmul.f32 1.442695, %v5624_v39  ;;  %v5577_v4 = vpop.xlane.xlu0 %5576 }
0x14ad   :  { %v5630_v46 = vsub.f32 %v5566_v42, %v5598_v48  ;;  %v12628_v42 = vmul.f32 0.35355338, %v12552_v28  ;;  %v5623_v7 = vsub.f32 %v12569_v14, %v5577_v4 }
0x14ae   :  { %v5659_v60 = vmul.f32 1.442695, %v5633_v0 }
0x14af   :  { %v12616_v25 = vpop.eup %10546  ;;  %v5653_v15 = vmul.f32 1.442695, %v5630_v46  ;;  %v5614_v54 = vsel %vm4438_vm4, %v12628_v42, -inf  ;;  %v5639_v9 = vmul.f32 1.442695, %v5623_v7 }
0x14b0   :  { %v5689_v22 = vsel %vm4438_vm4, %v12616_v25, 0.0 }
0x14b1   :  { %5690 = vadd.xlane.f32.xlu2 %v5689_v22  ;;  %5600 = vmax.xlane.f32.xlu0 %v5599_v10  ;;  %10548 = vpow2.f32 %v5653_v15 }
0x14b2   :  { %10550 = vpow2.f32 %v5659_v60 }
0x14b3   :  { %v5589_v29 = vpop.xlane.xlu1 %5588  ;;  %10552 = vpow2.f32 %v5641_v61 }
0x14b4   :  { %v5627_v37 = vsub.f32 %v12579_v24, %v5589_v29 }
0x14b6   :  { %v5647_v3 = vmul.f32 1.442695, %v5627_v37 }
0x14b7   :  { %v12631_v5 = vpop.eup %10548 }
0x14b8   :  { %v5692_v28 = vsel %vm4438_vm4, %v12631_v5, 0.0  ;;  %v12640_v43 = vpop.eup %10550  ;;  %10554 = vpow2.f32 %v5647_v3 }
0x14b9   :  { %5612 = vmax.xlane.f32.xlu2 %v5611_v57  ;;  %5615 = vmax.xlane.f32.xlu0 %v5614_v54  ;;  %v12643_v14 = vpop.eup %10552  ;;  %10556 = vpow2.f32 %v5639_v9  ;;  %v5701_v50 = vsel %vm4438_vm4, %v12640_v43, 0.0  ;;  %v5249_v9 = vpack.c.bf16 %v12556_v51, %v12556_v51 }
0x14ba   :  { %5693 = vadd.xlane.f32.xlu1 %v5692_v28  ;;  %v5674_v59 = vsel %vm4438_vm4, %v12643_v14, 0.0 }
0x14bc   :  { %v5610_v24 = vpop.xlane.xlu2 %5609 }
0x14bd   :  { %v5634_v17 = vsub.f32 %v12583_v21, %v5610_v24 }
0x14be   :  { %v12649_v49 = vpop.eup %10554 }
0x14bf   :  { %v5661_v47 = vmul.f32 1.442695, %v5634_v17  ;;  %v12652_v21 = vpop.eup %10556  ;;  %v5683_v40 = vsel %vm4438_vm4, %v12649_v49, 0.0 }
0x14c0   :  { %v5671_v46 = vsel %vm4438_vm4, %v12652_v21, 0.0 }
0x14c1   :  { %10558 = vpow2.f32 %v5661_v47  ;;  %5702 = vadd.xlane.f32.xlu2 %v5701_v50  ;;  %v5961_v47 = vsel %vm4635_vm5, %v5249_v9, 0 }
0x14c2   :  { %5675 = vadd.xlane.f32.xlu1 %v5674_v59  ;;  %v5228_v59 = vrot.slane %v12556_v51, 4  ;;  %v5253_v51 = vpack.c.bf16 %v12563_v20, %v12563_v20 }
0x14c4   :  { %v5592_v31 = vpop.xlane.xlu2 %5591 }
0x14c5   :  { %v5628_v27 = vsub.f32 %v12588_v62, %v5592_v31 }
0x14c7   :  { %v12654_v33 = vpop.eup %10558  ;;  %v5649_v36 = vmul.f32 1.442695, %v5628_v27  ;;  %v5250_v27 = vpack.c.bf16 %v5228_v59, %v5228_v59 }
0x14c8   :  { %v5704_v48 = vsel %vm4438_vm4, %v12654_v33, 0.0 }
0x14c9   :  { %10560 = vpow2.f32 %v5649_v36  ;;  %5684 = vadd.xlane.f32.xlu2 %v5683_v40  ;;  %5705 = vadd.xlane.f32.xlu0 %v5704_v48 }
0x14ca   :  { %5672 = vadd.xlane.f32.xlu1 %v5671_v46 }
0x14cc   :  { %v5619_v0 = vpop.xlane.xlu2 %5618  ;;  %v5622_v62 = vpop.xlane.xlu0 %5621 }
0x14cd   :  { %v5637_v15 = vsub.f32 %v12592_v19, %v5619_v0  ;;  %v5638_v39 = vsub.f32 %v12594_v12, %v5622_v62  ;;  %v5980_v62 = vsel %vm4635_vm5, %v5250_v27, 0 }
0x14cf   :  { %v12664_v22 = vpop.eup %10560  ;;  %v5667_v10 = vmul.f32 1.442695, %v5637_v15  ;;  %v5669_v60 = vmul.f32 1.442695, %v5638_v39 }
0x14d0   :  { %v5686_v61 = vsel %vm4438_vm4, %v12664_v22, 0.0 }
0x14d1   :  { %10562 = vpow2.f32 %v5667_v10  ;;  %5687 = vadd.xlane.f32.xlu0 %v5686_v61 }
0x14d2   :  { %10564 = vpow2.f32 %v5669_v60 }
0x14d4   :  { %v5604_v29 = vpop.xlane.xlu2 %5603 }
0x14d5   :  { %v5632_v4 = vsub.f32 %v12601_v30, %v5604_v29 }
0x14d7   :  { %v12669_v37 = vpop.eup %10562  ;;  %v5657_v7 = vmul.f32 1.442695, %v5632_v4 }
0x14d8   :  { %v12671_v57 = vpop.eup %10564  ;;  %v5713_v19 = vsel %vm4438_vm4, %v12669_v37, 0.0 }
0x14d9   :  { %10566 = vpow2.f32 %v5657_v7  ;;  %5714 = vadd.xlane.f32.xlu0 %v5713_v19  ;;  %v5716_v12 = vsel %vm4438_vm4, %v12671_v57, 0.0 }
0x14da   :  { %5717 = vadd.xlane.f32.xlu1 %v5716_v12  ;;  %v6037_v12 = vsel %vm4635_vm5, %v5253_v51, 0  ;;  %v10184_v51 = vld [vmem:[%s13834_s5 + $0x28] sm:$0xff] }
0x14df   :  { %v12677_v54 = vpop.eup %10566 }
0x14e0   :  { %v5698_v28 = vsel %vm4438_vm4, %v12677_v54, 0.0 }
0x14e2   :  { %5699 = vadd.xlane.f32.xlu1 %v5698_v28  ;;  %v5230_v28 = vrot.slane %v12563_v20, 4 }
0x150c   :  { %v5679_v30 = vpop.xlane.xlu1 %5678 }
0x150d   :  { %10568 = vrcp.f32 %v5679_v30  ;;  %v5254_v30 = vpack.c.bf16 %v5230_v28, %v5230_v28 }
0x150f   :  { %v6056_v59 = vsel %vm4635_vm5, %v5254_v30, 0 }
0x1513   :  { %v10569_v3 = vpop.eup %10568 }
0x1514   :  { %v5737_v24 = vmul.f32 %v10569_v3, %v12605_v44 }
0x1516   :  { %v5753_v17 = vpack.c.bf16 %v5737_v24, %v5737_v24 }
0x1518   :  { %9892 = vmatmul.msk.bf16.vlgmr.msra.gmra.mxu3 %vm4631_vm3, %v5753_v17 }
0x1519   :  { %5970 = vmatpush.bf16.msra.mxu3 %v5961_v47 }
0x151c   :  { %v5682_v50 = vpop.xlane.xlu0 %5681 }
0x151d   :  { %10570 = vrcp.f32 %v5682_v50  ;;  %v5227_v50 = vrot.slane %v12554_v26, 4 }
0x1523   :  { %v10571_v31 = vpop.eup %10570 }
0x1524   :  { %v5738_v36 = vmul.f32 %v10571_v31, %v12609_v58  ;;  %v5691_v40 = vpop.xlane.xlu2 %5690  ;;  %v5601_v48 = vpop.xlane.xlu0 %5600 }
0x1525   :  { %10572 = vrcp.f32 %v5691_v40  ;;  %v5631_v46 = vsub.f32 %v12614_v41, %v5601_v48  ;;  %v5248_v48 = vpack.c.bf16 %v5227_v50, %v5227_v50 }
0x1526   :  { %v5754_v44 = vpack.c.bf16 %v5738_v36, %v5738_v36 }
0x1527   :  { %v5655_v0 = vmul.f32 1.442695, %v5631_v46 }
0x1528   :  { %9893 = vmatmul.msk.bf16.vlgmr.msrb.gmra.mxu0 %vm4631_vm3, %v5754_v44 }
0x1529   :  { %10574 = vpow2.f32 %v5655_v0  ;;  %5989 = vmatpush.bf16.msrb.mxu0 %v5980_v62 }
0x152b   :  { %v10573_v15 = vpop.eup %10572 }
0x152c   :  { %v5741_v39 = vmul.f32 %v10573_v15, %v12616_v25  ;;  %v5613_v58 = vpop.xlane.xlu2 %5612  ;;  %v5616_v10 = vpop.xlane.xlu0 %5615  ;;  %v5942_v15 = vsel %vm4635_vm5, %v5248_v48, 0 }
0x152d   :  { %v5694_v60 = vpop.xlane.xlu1 %5693  ;;  %v5635_v61 = vsub.f32 %v12625_v35, %v5613_v58  ;;  %v5636_v41 = vsub.f32 %v12628_v42, %v5616_v10 }
0x152e   :  { %v5757_v29 = vpack.c.bf16 %v5741_v39, %v5741_v39  ;;  %10576 = vrcp.f32 %v5694_v60 }
0x152f   :  { %v12696_v4 = vpop.eup %10574  ;;  %v5663_v7 = vmul.f32 1.442695, %v5635_v61  ;;  %v5665_v19 = vmul.f32 1.442695, %v5636_v41 }
0x1530   :  { %9896 = vmatmul.msk.bf16.vlgmr.msrb.gmra.mxu3 %vm4631_vm3, %v5757_v29  ;;  %v5695_v25 = vsel %vm4438_vm4, %v12696_v4, 0.0 }
0x1531   :  { %10578 = vpow2.f32 %v5663_v7  ;;  %6046 = vmatpush.bf16.msrb.mxu3 %v6037_v12  ;;  %5696 = vadd.xlane.f32.xlu2 %v5695_v25  ;;  %v10186_v7 = vld [vmem:[%s13835_s17 + $0x28] sm:$0xff]  ;;  %v5229_v12 = vrot.slane %v12558_v2, 4 }
0x1532   :  { %10580 = vpow2.f32 %v5665_v19 }
0x1534   :  { %v10577_v35 = vpop.eup %10576  ;;  %v5703_v42 = vpop.xlane.xlu2 %5702 }
0x1535   :  { %v5742_v3 = vmul.f32 %v10577_v35, %v12631_v5  ;;  %v5676_v9 = vpop.xlane.xlu1 %5675  ;;  %10582 = vrcp.f32 %v5703_v42  ;;  %v5252_v35 = vpack.c.bf16 %v5229_v12, %v5229_v12 }
0x1536   :  { %10584 = vrcp.f32 %v5676_v9 }
0x1537   :  { %v12704_v24 = vpop.eup %10578  ;;  %v5758_v17 = vpack.c.bf16 %v5742_v3, %v5742_v3  ;;  %v6018_v9 = vsel %vm4635_vm5, %v5252_v35, 0 }
0x1538   :  { %v12706_v47 = vpop.eup %10580  ;;  %v5707_v20 = vsel %vm4438_vm4, %v12704_v24, 0.0 }
0x1539   :  { %9897 = vmatmul.msk.bf16.vlgmr.msra.gmra.mxu0 %vm4631_vm3, %v5758_v17  ;;  %5708 = vadd.xlane.f32.xlu1 %v5707_v20  ;;  %v5710_v5 = vsel %vm4438_vm4, %v12706_v47, 0.0 }
0x153a   :  { %6065 = vmatpush.bf16.msra.mxu0 %v6056_v59  ;;  %5711 = vadd.xlane.f32.xlu0 %v5710_v5 }
0x153b   :  { %v10583_v31 = vpop.eup %10582 }
0x153c   :  { %v10585_v27 = vpop.eup %10584  ;;  %v5745_v36 = vmul.f32 %v10583_v31, %v12640_v43  ;;  %v5706_v40 = vpop.xlane.xlu0 %5705  ;;  %v10183_v43 = vld [vmem:[%s13834_s5 + $0x20] sm:$0xff] }
0x153d   :  { %v5736_v46 = vmul.f32 %v10585_v27, %v12643_v14  ;;  %v5673_v44 = vpop.xlane.xlu1 %5672  ;;  %v5247_v14 = vpack.c.bf16 %v12554_v26, %v12554_v26  ;;  %v5685_v29 = vpop.xlane.xlu2 %5684 }
0x153e   :  { %v5761_v0 = vpack.c.bf16 %v5745_v36, %v5745_v36  ;;  %10586 = vrcp.f32 %v5673_v44 }
0x153f   :  { %v5752_v62 = vpack.c.bf16 %v5736_v46, %v5736_v46  ;;  %10588 = vrcp.f32 %v5706_v40  ;;  %v5923_v25 = vsel %vm4635_vm5, %v5247_v14, 0 }
0x1540   :  { %9900 = vmatmul.msk.bf16.vlgmr.msra.gmra.mxu3 %vm4631_vm3, %v5761_v0 }
0x1541   :  { %9891 = vmatmul.msk.bf16.vlgmr.msrb.gmra.mxu2 %vm4631_vm3, %v5752_v62  ;;  %6243 = vmatpush.bf16.msra.mxu3 %v10184_v51  ;;  %v4996_v62 = vld [vmem:[%s13839_s3] sm:$0xf] }
0x1542   :  { %5951 = vmatpush.bf16.msrb.mxu2 %v5942_v15  ;;  %v6189_v15 = vsel %vm776_vm12, %v4996_v62, 0 }
0x1544   :  { %v10587_v39 = vpop.eup %10586  ;;  %v5688_v58 = vpop.xlane.xlu0 %5687 }
0x1545   :  { %v10589_v10 = vpop.eup %10588  ;;  %v5735_v60 = vmul.f32 %v10587_v39, %v12652_v21  ;;  %10590 = vrcp.f32 %v5688_v58  ;;  %6244 = vmatpush.bf16.msra.mxu3 %v10183_v43  ;;  %v10185_v21 = vld [vmem:[%s13835_s17 + $0x20] sm:$0xff] }
0x1546   :  { %v5746_v61 = vmul.f32 %v10589_v10, %v12654_v33  ;;  %10592 = vrcp.f32 %v5685_v29 }
0x1547   :  { %v5751_v41 = vpack.c.bf16 %v5735_v60, %v5735_v60  ;;  %v9906_v60 = vld [vmem:[%s13839_s3 + $0x4] sm:$0xf] }
0x1548   :  { %v5762_v19 = vpack.c.bf16 %v5746_v61, %v5746_v61  ;;  %v6145_v61 = vsel %vm776_vm12, %v9906_v60, 0 }
0x1549   :  { %9890 = vmatmul.msk.bf16.vlgmr.msra.gmra.mxu1 %vm4631_vm3, %v5751_v41  ;;  %v12770_v41 = vld.sshfl [vmem:[#allocation1 + $0x30] sm:$0xff pattern:$0x75316420] }
0x154a   :  { %5932 = vmatpush.bf16.msra.mxu1 %v5923_v25  ;;  %9901 = vmatmul.msk.bf16.vlgmr.msrb.gmra.mxu0 %vm4631_vm3, %v5762_v19 }
0x154b   :  { %v10591_v26 = vpop.eup %10590  ;;  %6289 = vmatpush.bf16.msrb.mxu0 %v10186_v7 }
0x154c   :  { %v5740_v33 = vmul.f32 %v10591_v26, %v12664_v22  ;;  %v5715_v28 = vpop.xlane.xlu0 %5714  ;;  %v10593_v3 = vpop.eup %10592  ;;  %v5251_v22 = vpack.c.bf16 %v12558_v2, %v12558_v2 }
0x154d   :  { %v5718_v42 = vpop.xlane.xlu1 %5717  ;;  %10594 = vrcp.f32 %v5715_v28  ;;  %v5739_v20 = vmul.f32 %v10593_v3, %v12649_v49 }
0x154e   :  { %v5756_v30 = vpack.c.bf16 %v5740_v33, %v5740_v33  ;;  %10596 = vrcp.f32 %v5718_v42  ;;  %v5999_v48 = vsel %vm4635_vm5, %v5251_v22, 0 }
0x154f   :  { %6290 = vmatpush.bf16.msrb.mxu0 %v10185_v21  ;;  %v5755_v36 = vpack.c.bf16 %v5739_v20, %v5739_v20 }
0x1551   :  { %9895 = vmatmul.msk.bf16.vlgmr.msra.gmra.mxu2 %vm4631_vm3, %v5756_v30  ;;  %v4980_v30 = vld.sshfl [vmem:[#allocation1] sm:$0xff pattern:$0x75316420] }
0x1552   :  { %6027 = vmatpush.bf16.msra.mxu2 %v6018_v9 }
0x1553   :  { %v10595_v17 = vpop.eup %10594 }
0x1554   :  { %v10597_v50 = vpop.eup %10596  ;;  %v5749_v59 = vmul.f32 %v10595_v17, %v12669_v37  ;;  %v4992_v17 = vpack.c.bf16 %v12528_v55, %v12428_v34  ;;  %v4993_v34 = vpack.c.bf16 %v12531_v13, %v12435_v16 }
0x1555   :  { %v5750_v5 = vmul.f32 %v10597_v50, %v12671_v57  ;;  %v5700_v31 = vpop.xlane.xlu1 %5699  ;;  %v12762_v57 = vld.sshfl [vmem:[#allocation1 + $0x10] sm:$0xff pattern:$0x75316420] }
0x1556   :  { %v5765_v27 = vpack.c.bf16 %v5749_v59, %v5749_v59  ;;  %10598 = vrcp.f32 %v5700_v31  ;;  %v4982_v31 = vld.sshfl [vmem:[#allocation1 + $0x20] sm:$0xff pattern:$0x75316420] }
0x1557   :  { %v5766_v40 = vpack.c.bf16 %v5750_v5, %v5750_v5 }
0x1558   :  { %9904 = vmatmul.msk.bf16.vlgmr.msrb.gmra.mxu3 %vm4631_vm3, %v5765_v27 }
0x1559   :  { %9894 = vmatmul.msk.bf16.vlgmr.msrb.gmra.mxu1 %vm4631_vm3, %v5755_v36 }
0x155a   :  { %6008 = vmatpush.bf16.msrb.mxu1 %v5999_v48  ;;  %9905 = vmatmul.msk.bf16.vlgmr.msra.gmra.mxu0 %vm4631_vm3, %v5766_v40 }
0x155c   :  { %v10599_v49 = vpop.eup %10598 }
0x155d   :  { %v5744_v37 = vmul.f32 %v10599_v49, %v12677_v54 }
0x155f   :  { %v5760_v2 = vpack.c.bf16 %v5744_v37, %v5744_v37 }
0x1561   :  { %9899 = vmatmul.msk.bf16.vlgmr.msrb.gmra.mxu2 %vm4631_vm3, %v5760_v2 }
0x1562   :  { %6198 = vmatpush.bf16.msrb.mxu2 %v6189_v15  ;;  %v4994_v15 = vpack.c.bf16 %v12762_v57, %v4980_v30 }
0x1568   :  { %9927 = vmatmul.msk.bf16.vlgmr.msra.gmra.mxu3 %vm135_vm0, %v12128_v32 }
0x156a   :  { %9943 = vmatmul.msk.bf16.vlgmr.msrb.gmra.mxu0 %vm135_vm0, %v12128_v32 }
0x1578   :  { %9928 = vmatmul.msk.bf16.gmra.mxu3 %vm135_vm0, %v12142_v1 }
0x157a   :  { %9944 = vmatmul.msk.bf16.gmra.mxu0 %vm135_vm0, %v12142_v1 }
0x1588   :  { %9929 = vmatmul.msk.bf16.gmra.mxu3 %vm135_vm0, %v12160_v38 }
0x158a   :  { %9945 = vmatmul.msk.bf16.gmra.mxu0 %vm135_vm0, %v12160_v38 }
0x1598   :  { %9930 = vmatmul.msk.bf16.gmra.mxu3 %vm135_vm0, %v12179_v6 }
0x159a   :  { %9946 = vmatmul.msk.bf16.gmra.mxu0 %vm135_vm0, %v12179_v6 }
0x159b   :  { %v5820_v54 = vpop.f32.mrf.mxu3 }
0x159c   :  { %6091 = vst [vmem:[#allocation1 + $0x10] ss:$2 sm:$0xff] %v5820_v54 }
0x15a3   :  { %v5822_v46 = vpop.f32.mrf.mxu3 }
0x15a4   :  { %v5697_v44 = vpop.xlane.xlu2 %5696 }
0x15a5   :  { %10600 = vrcp.f32 %v5697_v44  ;;  %v5839_v0 = vpop.f32.mrf.mxu0 }
0x15a6   :  { %6093 = vst [vmem:[#allocation1 + $0x11] ss:$2 sm:$0xff] %v5839_v0 }
0x15ab   :  { %v10601_v51 = vpop.eup %10600 }
0x15ac   :  { %v5743_v43 = vmul.f32 %v10601_v51, %v12696_v4  ;;  %v5709_v14 = vpop.xlane.xlu1 %5708 }
0x15ad   :  { %v5712_v39 = vpop.xlane.xlu0 %5711  ;;  %v5841_v58 = vpop.f32.mrf.mxu0  ;;  %v6103_v35 = vld.sshfl [vmem:[#allocation1 + $0x10] sm:$0xff pattern:$0x75316420] }
0x15ae   :  { %v5759_v10 = vpack.c.bf16 %v5743_v43, %v5743_v43  ;;  %10602 = vrcp.f32 %v5712_v39 }
0x15af   :  { %10604 = vrcp.f32 %v5709_v14 }
0x15b0   :  { %9898 = vmatmul.msk.bf16.vlgmr.msra.gmra.mxu1 %vm4631_vm3, %v5759_v10 }
0x15b1   :  { %6154 = vmatpush.bf16.msra.mxu1 %v6145_v61 }
0x15b3   :  { %v5896_v29 = vpop.f32.mrf.mxu3 }
0x15b4   :  { %v10603_v7 = vpop.eup %10602  ;;  %6099 = vst [vmem:[#allocation1 + $0x30] ss:$2 sm:$0xff] %v5896_v29 }
0x15b5   :  { %v5748_v19 = vmul.f32 %v10603_v7, %v12706_v47  ;;  %v10605_v12 = vpop.eup %10604 }
0x15b6   :  { %v5915_v4 = vpop.f32.mrf.mxu0  ;;  %v5747_v26 = vmul.f32 %v10605_v12, %v12704_v24 }
0x15b7   :  { %v5764_v25 = vpack.c.bf16 %v5748_v19, %v5748_v19  ;;  %6101 = vst [vmem:[#allocation1 + $0x31] ss:$2 sm:$0xff] %v5915_v4 }
0x15b8   :  { %v5763_v33 = vpack.c.bf16 %v5747_v26, %v5747_v26 }
0x15b9   :  { %9903 = vmatmul.msk.bf16.vlgmr.msra.gmra.mxu2 %vm4631_vm3, %v5764_v25  ;;  %v10188_v25 = vld [vmem:[%s13836_s21 + $0x28] sm:$0xff] }
0x15bb   :  { %v5898_v21 = vpop.f32.mrf.mxu3 }
0x15bc   :  { %v4995_v21 = vpack.c.bf16 %v12770_v41, %v4982_v31 }
0x15be   :  { %v5917_v28 = vpop.f32.mrf.mxu0  ;;  %v6105_v40 = vld.sshfl [vmem:[#allocation1 + $0x30] sm:$0xff pattern:$0x75316420] }
0x15c0   :  { %9902 = vmatmul.msk.bf16.vlgmr.msrb.gmra.mxu1 %vm4631_vm3, %v5763_v33 }
0x15c1   :  { %6335 = vmatpush.bf16.msrb.mxu1 %v10188_v25 }
0x15c3   :  { %v5972_v42 = vpop.f32.mrf.mxu3 }
0x15c4   :  { %v5801_v3 = vpop.f32.mrf.mxu2  ;;  %6108 = vst [vmem:[#allocation1 + $0x10] ss:$2 sm:$0xff] %v5972_v42  ;;  %v10187_v42 = vld [vmem:[%s13836_s21 + $0x20] sm:$0xff] }
0x15c5   :  { %6089 = vst [vmem:[#allocation1 + $0x1] ss:$2 sm:$0xff] %v5801_v3  ;;  %6336 = vmatpush.bf16.msrb.mxu1 %v10187_v42 }
0x15c6   :  { %v5782_v47 = vpop.f32.mrf.mxu1 }
0x15c7   :  { %6087 = vst [vmem:[#allocation1] ss:$2 sm:$0xff] %v5782_v47  ;;  %v5991_v9 = vpop.f32.mrf.mxu0 }
0x15c8   :  { %6109 = vst [vmem:[#allocation1 + $0x11] ss:$2 sm:$0xff] %v5991_v9 }
0x15c9   :  { %9911 = vmatmul.msk.bf16.vlgmr.msrb.gmra.mxu2 %vm516_vm8, %v4992_v17 }
0x15cb   :  { %v5974_v24 = vpop.f32.mrf.mxu3 }
0x15cc   :  { %v5803_v20 = vpop.f32.mrf.mxu2 }
0x15ce   :  { %v6102_v50 = vld.sshfl [vmem:[#allocation1] sm:$0xff pattern:$0x75316420]  ;;  %v5784_v59 = vpop.f32.mrf.mxu1 }
0x15cf   :  { %v5993_v22 = vpop.f32.mrf.mxu0  ;;  %v6126_v5 = vpack.c.bf16 %v6103_v35, %v6102_v50 }
0x15d1   :  { %9907 = vmatmul.msk.bf16.vlgmr.msra.gmra.mxu1 %vm516_vm8, %v6126_v5 }
0x15d4   :  { %v5877_v27 = vpop.f32.mrf.mxu2 }
0x15d5   :  { %6097 = vst [vmem:[#allocation1 + $0x21] ss:$2 sm:$0xff] %v5877_v27 }
0x15d6   :  { %v5858_v36 = vpop.f32.mrf.mxu1 }
0x15d7   :  { %6095 = vst [vmem:[#allocation1 + $0x20] ss:$2 sm:$0xff] %v5858_v36  ;;  %v6067_v48 = vpop.f32.mrf.mxu0 }
0x15d8   :  { %6113 = vst [vmem:[#allocation1 + $0x31] ss:$2 sm:$0xff] %v6067_v48 }
0x15d9   :  { %9912 = vmatmul.msk.bf16.gmra.mxu2 %vm516_vm8, %v4993_v34 }
0x15db   :  { %v6048_v55 = vpop.f32.mrf.mxu3 }
0x15dc   :  { %v5879_v49 = vpop.f32.mrf.mxu2  ;;  %6112 = vst [vmem:[#allocation1 + $0x30] ss:$2 sm:$0xff] %v6048_v55 }
0x15de   :  { %v6104_v37 = vld.sshfl [vmem:[#allocation1 + $0x20] sm:$0xff pattern:$0x75316420]  ;;  %v5860_v2 = vpop.f32.mrf.mxu1 }
0x15df   :  { %v6069_v54 = vpop.f32.mrf.mxu0  ;;  %v6127_v46 = vpack.c.bf16 %v6105_v40, %v6104_v37 }
0x15e1   :  { %9908 = vmatmul.msk.bf16.gmra.mxu1 %vm516_vm8, %v6127_v46 }
0x15e3   :  { %v6050_v44 = vpop.f32.mrf.mxu3 }
0x15e4   :  { %v5953_v0 = vpop.f32.mrf.mxu2 }
0x15e5   :  { %6107 = vst [vmem:[#allocation1 + $0x1] ss:$2 sm:$0xff] %v5953_v0 }
0x15e7   :  { %v6292_v62 = vpop.f32.mrf.mxu0 }
0x15e8   :  { %v6406_v51 = vrot.slane %v6292_v62, 4  ;;  %v6422_v16 = vpack.c.bf16 %v6292_v62, %v6292_v62 }
0x15e9   :  { %9913 = vmatmul.msk.bf16.gmra.mxu2 %vm516_vm8, %v4994_v15 }
0x15ea   :  { %v6423_v13 = vpack.c.bf16 %v6406_v51, %v6406_v51  ;;  %v6482_v43 = vsel %vm516_vm8, %v6422_v16, 0 }
0x15eb   :  { %6491 = vmatpush.bf16.xpose.msra.mxu2 %v6482_v43  ;;  %v6246_v39 = vpop.f32.mrf.mxu3 }
0x15ec   :  { %v5955_v58 = vpop.f32.mrf.mxu2  ;;  %v6501_v10 = vsel %vm516_vm8, %v6423_v13, 0  ;;  %v6366_v14 = vrot.slane %v6246_v39, 4  ;;  %v6382_v5 = vpack.c.bf16 %v6246_v39, %v6246_v39 }
0x15ed   :  { %6510 = vmatpush.bf16.xpose.msrb.mxu3 %v6501_v10 }
0x15ee   :  { %v6383_v7 = vpack.c.bf16 %v6366_v14, %v6366_v14 }
0x15ef   :  { %v6294_v60 = vpop.f32.mrf.mxu0 }
0x15f0   :  { %v6407_v61 = vrot.slane %v6294_v60, 4  ;;  %v6424_v29 = vpack.c.bf16 %v6294_v60, %v6294_v60 }
0x15f2   :  { %v6425_v57 = vpack.c.bf16 %v6407_v61, %v6407_v61  ;;  %v6520_v19 = vsel %vm516_vm8, %v6424_v29, 0 }
0x15f3   :  { %6529 = vmatpush.bf16.xpose.msra.mxu0 %v6520_v19  ;;  %v6248_v4 = vpop.f32.mrf.mxu3 }
0x15f4   :  { %9964 = vmatmul.msk.bf16.vlgmr.msrb.gmra.mxu3 %vm516_vm8, %v6383_v7  ;;  %v6539_v12 = vsel %vm516_vm8, %v6425_v57, 0  ;;  %v6384_v33 = vpack.c.bf16 %v6248_v4, %v6248_v4  ;;  %v6367_v15 = vrot.slane %v6248_v4, 4 }
0x15f5   :  { %6548 = vmatpush.bf16.xpose.msrb.mxu2 %v6539_v12 }
0x15f6   :  { %v6385_v13 = vpack.c.bf16 %v6367_v15, %v6367_v15 }
0x15f7   :  { %v6297_v26 = vpop.f32.mrf.mxu0 }
0x15f8   :  { %v6408_v28 = vrot.slane %v6297_v26, 4  ;;  %v6426_v35 = vpack.c.bf16 %v6297_v26, %v6297_v26 }
0x15f9   :  { %9914 = vmatmul.msk.bf16.gmra.mxu2 %vm516_vm8, %v4995_v21 }
0x15fa   :  { %v6427_v30 = vpack.c.bf16 %v6408_v28, %v6408_v28  ;;  %9965 = vmatmul.msk.bf16.vlgmr.msra.gmra.mxu0 %vm516_vm8, %v6384_v33  ;;  %v6558_v3 = vsel %vm516_vm8, %v6426_v35, 0 }
0x15fb   :  { %6567 = vmatpush.bf16.xpose.msra.mxu3 %v6558_v3  ;;  %v6251_v9 = vpop.f32.mrf.mxu3 }
0x15fc   :  { %v6577_v47 = vsel %vm516_vm8, %v6427_v30, 0  ;;  %v6386_v24 = vpack.c.bf16 %v6251_v9, %v6251_v9  ;;  %v6368_v50 = vrot.slane %v6251_v9, 4 }
0x15fd   :  { %6586 = vmatpush.bf16.xpose.msrb.mxu0 %v6577_v47 }
0x15fe   :  { %v6387_v36 = vpack.c.bf16 %v6368_v50, %v6368_v50 }
0x15ff   :  { %v6299_v17 = vpop.f32.mrf.mxu0 }
0x1600   :  { %v6409_v41 = vrot.slane %v6299_v17, 4  ;;  %v6428_v22 = vpack.c.bf16 %v6299_v17, %v6299_v17 }
0x1602   :  { %v6429_v20 = vpack.c.bf16 %v6409_v41, %v6409_v41  ;;  %v6596_v48 = vsel %vm516_vm8, %v6428_v22, 0 }
0x1603   :  { %v6253_v31 = vpop.f32.mrf.mxu3 }
0x1604   :  { %9967 = vmatmul.msk.bf16.vlgmr.msra.gmra.mxu3 %vm516_vm8, %v6386_v24  ;;  %v6615_v59 = vsel %vm516_vm8, %v6429_v20, 0  ;;  %v6369_v55 = vrot.slane %v6253_v31, 4  ;;  %v6388_v28 = vpack.c.bf16 %v6253_v31, %v6253_v31  ;;  %v6115_v20 = vld.sshfl [vmem:[#allocation1 + $0x10] sm:$0xff pattern:$0x75316420] }
0x1605   :  { %6624 = vmatpush.bf16.xpose.msrb.mxu3 %v6615_v59 }
0x1606   :  { %v6389_v44 = vpack.c.bf16 %v6369_v55, %v6369_v55 }
0x1607   :  { %v6302_v27 = vpop.f32.mrf.mxu0 }
0x1608   :  { %v6430_v40 = vpack.c.bf16 %v6302_v27, %v6302_v27  ;;  %v6410_v54 = vrot.slane %v6302_v27, 4 }
0x1609   :  { %9963 = vmatmul.msk.bf16.vlgmr.msra.gmra.mxu2 %vm516_vm8, %v6382_v5 }
0x160a   :  { %9968 = vmatmul.msk.bf16.vlgmr.msrb.gmra.mxu0 %vm516_vm8, %v6387_v36  ;;  %6605 = vmatpush.bf16.xpose.msra.mxu2 %v6596_v48  ;;  %v6634_v34 = vsel %vm516_vm8, %v6430_v40, 0  ;;  %v6431_v16 = vpack.c.bf16 %v6410_v54, %v6410_v54 }
0x160b   :  { %6643 = vmatpush.bf16.xpose.msra.mxu0 %v6634_v34  ;;  %v6256_v46 = vpop.f32.mrf.mxu3  ;;  %v6117_v34 = vld.sshfl [vmem:[#allocation1 + $0x30] sm:$0xff pattern:$0x75316420] }
0x160c   :  { %v6390_v39 = vpack.c.bf16 %v6256_v46, %v6256_v46  ;;  %v6653_v10 = vsel %vm516_vm8, %v6431_v16, 0  ;;  %v6370_v9 = vrot.slane %v6256_v46, 4 }
0x160e   :  { %v6391_v59 = vpack.c.bf16 %v6370_v9, %v6370_v9 }
0x160f   :  { %v6304_v49 = vpop.f32.mrf.mxu0 }
0x1610   :  { %v6411_v37 = vrot.slane %v6304_v49, 4  ;;  %v6432_v2 = vpack.c.bf16 %v6304_v49, %v6304_v49 }
0x1612   :  { %v6433_v0 = vpack.c.bf16 %v6411_v37, %v6411_v37  ;;  %v6672_v62 = vsel %vm516_vm8, %v6432_v2, 0 }
0x1613   :  { %6681 = vmatpush.bf16.xpose.msra.mxu3 %v6672_v62  ;;  %v6258_v60 = vpop.f32.mrf.mxu3 }
0x1614   :  { %9970 = vmatmul.msk.bf16.vlgmr.msrb.gmra.mxu3 %vm516_vm8, %v6389_v44  ;;  %v6691_v51 = vsel %vm516_vm8, %v6433_v0, 0  ;;  %v6392_v19 = vpack.c.bf16 %v6258_v60, %v6258_v60  ;;  %v6371_v25 = vrot.slane %v6258_v60, 4 }
0x1615   :  { %6700 = vmatpush.bf16.xpose.msrb.mxu0 %v6691_v51 }
0x1616   :  { %v6393_v35 = vpack.c.bf16 %v6371_v25, %v6371_v25 }
0x1617   :  { %v6307_v43 = vpop.f32.mrf.mxu0 }
0x1618   :  { %v6434_v58 = vpack.c.bf16 %v6307_v43, %v6307_v43  ;;  %v6412_v57 = vrot.slane %v6307_v43, 4 }
0x1619   :  { %9966 = vmatmul.msk.bf16.vlgmr.msrb.gmra.mxu2 %vm516_vm8, %v6385_v13 }
0x161a   :  { %9971 = vmatmul.msk.bf16.vlgmr.msra.gmra.mxu0 %vm516_vm8, %v6390_v39  ;;  %6662 = vmatpush.bf16.xpose.msrb.mxu2 %v6653_v10  ;;  %v6710_v14 = vsel %vm516_vm8, %v6434_v58, 0  ;;  %v6435_v21 = vpack.c.bf16 %v6412_v57, %v6412_v57 }
0x161b   :  { %6719 = vmatpush.bf16.xpose.msra.mxu1 %v6710_v14  ;;  %v12814_v33 = vpop.f32.mrf.mxu3 }
0x161c   :  { %v6729_v42 = vsel %vm516_vm8, %v6435_v21, 0  ;;  %v6372_v27 = vrot.slane %v12814_v33, 4 }
0x161e   :  { %v6395_v49 = vpack.c.bf16 %v6372_v27, %v6372_v27 }
0x161f   :  { %v6309_v61 = vpop.f32.mrf.mxu0 }
0x1620   :  { %v6413_v29 = vrot.slane %v6309_v61, 4  ;;  %v6436_v7 = vpack.c.bf16 %v6309_v61, %v6309_v61 }
0x1622   :  { %v6437_v4 = vpack.c.bf16 %v6413_v29, %v6413_v29  ;;  %v6748_v12 = vsel %vm516_vm8, %v6436_v7, 0 }
0x1623   :  { %6757 = vmatpush.bf16.xpose.msrb.mxu3 %v6748_v12  ;;  %v6263_v3 = vpop.f32.mrf.mxu3 }
0x1624   :  { %9973 = vmatmul.msk.bf16.vlgmr.msra.gmra.mxu3 %vm516_vm8, %v6392_v19  ;;  %v6767_v26 = vsel %vm516_vm8, %v6437_v4, 0  ;;  %v6396_v47 = vpack.c.bf16 %v6263_v3, %v6263_v3  ;;  %v6373_v17 = vrot.slane %v6263_v3, 4  ;;  %v6394_v3 = vpack.c.bf16 %v12814_v33, %v12814_v33 }
0x1625   :  { %6776 = vmatpush.bf16.xpose.msra.mxu0 %v6767_v26 }
0x1626   :  { %v6397_v22 = vpack.c.bf16 %v6373_v17, %v6373_v17 }
0x1629   :  { %9969 = vmatmul.msk.bf16.vlgmr.msra.gmra.mxu2 %vm516_vm8, %v6388_v28 }
0x162a   :  { %9974 = vmatmul.msk.bf16.vlgmr.msrb.gmra.mxu0 %vm516_vm8, %v6393_v35  ;;  %6738 = vmatpush.bf16.xpose.msra.mxu2 %v6729_v42 }
0x162d   :  { %v5934_v30 = vpop.f32.mrf.mxu1 }
0x162e   :  { %6106 = vst [vmem:[#allocation1] ss:$2 sm:$0xff] %v5934_v30 }
0x1634   :  { %9977 = vmatmul.msk.bf16.vlgmr.msrb.gmra.mxu3 %vm516_vm8, %v6396_v47 }
0x1635   :  { %v5936_v41 = vpop.f32.mrf.mxu1  ;;  %v6114_v24 = vld.sshfl [vmem:[#allocation1] sm:$0xff pattern:$0x75316420] }
0x1636   :  { %v6128_v50 = vpack.c.bf16 %v6115_v20, %v6114_v24 }
0x1638   :  { %9909 = vmatmul.msk.bf16.gmra.mxu1 %vm516_vm8, %v6128_v50 }
0x1639   :  { %9972 = vmatmul.msk.bf16.vlgmr.msrb.gmra.mxu2 %vm516_vm8, %v6391_v59 }
0x163a   :  { %9978 = vmatmul.msk.bf16.vlgmr.msra.gmra.mxu0 %vm516_vm8, %v6397_v22 }
0x163c   :  { %v6029_v5 = vpop.f32.mrf.mxu2 }
0x163d   :  { %6111 = vst [vmem:[#allocation1 + $0x21] ss:$2 sm:$0xff] %v6029_v5  ;;  %v6010_v31 = vpop.f32.mrf.mxu1 }
0x163e   :  { %6110 = vst [vmem:[#allocation1 + $0x20] ss:$2 sm:$0xff] %v6010_v31 }
0x1644   :  { %v6031_v36 = vpop.f32.mrf.mxu2 }
0x1645   :  { %v6012_v40 = vpop.f32.mrf.mxu1  ;;  %v6116_v48 = vld.sshfl [vmem:[#allocation1 + $0x20] sm:$0xff pattern:$0x75316420] }
0x1646   :  { %v6129_v55 = vpack.c.bf16 %v6117_v34, %v6116_v48 }
0x1648   :  { %9910 = vmatmul.msk.bf16.gmra.mxu1 %vm516_vm8, %v6129_v55 }
0x1649   :  { %9976 = vmatmul.msk.bf16.vlgmr.msra.gmra.mxu2 %vm516_vm8, %v6395_v49 }
0x164c   :  { %v6200_v37 = vpop.f32.mrf.mxu2 }
0x164e   :  { %v6156_v2 = vpop.f32.mrf.mxu1 }
0x164f   :  { %v12826_v54 = vadd.f32 %v6200_v37, %v6156_v2 }
0x1654   :  { %v12828_v46 = vpop.f32.mrf.mxu2 }
0x1656   :  { %v12830_v44 = vpop.f32.mrf.mxu1 }
0x1658   :  { %9959 = vmatmul.msk.bf16.vlgmr.msrb.gmra.mxu1 %vm135_vm0, %v12128_v32 }
0x165c   :  { %v6205_v0 = vpop.f32.mrf.mxu2 }
0x165e   :  { %v6161_v62 = vpop.f32.mrf.mxu1 }
0x165f   :  { %v12834_v15 = vadd.f32 %v6205_v0, %v6161_v62 }
0x1664   :  { %v12836_v51 = vpop.f32.mrf.mxu2 }
0x1666   :  { %v12877_v27 = vpop.f32.mrf.mxu1 }
0x1668   :  { %9960 = vmatmul.msk.bf16.gmra.mxu1 %vm135_vm0, %v12142_v1 }
0x166c   :  { %v12840_v16 = vpop.f32.mrf.mxu2 }
0x1674   :  { %v12842_v13 = vpop.f32.mrf.mxu2 }
0x1677   :  { %v6512_v43 = vpop.f32.mrf.mxu3  ;;  %v6531_v39 = vpop.f32.mrf.mxu0 }
0x1678   :  { %v12844_v58 = vmul.f32 0.35355338, %v6512_v43  ;;  %v12846_v10 = vmul.f32 0.35355338, %v6531_v39  ;;  %9961 = vmatmul.msk.bf16.gmra.mxu1 %vm135_vm0, %v12160_v38 }
0x167a   :  { %v6801_v14 = vsel %vm4438_vm4, %v12844_v58, -inf  ;;  %v6804_v60 = vsel %vm4438_vm4, %v12846_v10, -inf }
0x167b   :  { %6802 = vmax.xlane.f32.xlu0 %v6801_v14  ;;  %6805 = vmax.xlane.f32.xlu2 %v6804_v60 }
0x167c   :  { %v12854_v61 = vpop.f32.mrf.mxu2 }
0x167f   :  { %v6514_v29 = vpop.f32.mrf.mxu3  ;;  %v6533_v7 = vpop.f32.mrf.mxu0 }
0x1684   :  { %v12856_v57 = vpop.f32.mrf.mxu2 }
0x1687   :  { %v6569_v19 = vpop.f32.mrf.mxu3  ;;  %v6588_v4 = vpop.f32.mrf.mxu0 }
0x1688   :  { %v12858_v12 = vmul.f32 0.35355338, %v6588_v4  ;;  %9962 = vmatmul.msk.bf16.gmra.mxu1 %vm135_vm0, %v12179_v6  ;;  %v12895_v39 = vmul.f32 0.35355338, %v6569_v19 }
0x168a   :  { %v6813_v25 = vsel %vm4438_vm4, %v12858_v12, -inf }
0x168b   :  { %6814 = vmax.xlane.f32.xlu2 %v6813_v25  ;;  %v6810_v25 = vsel %vm4438_vm4, %v12895_v39, -inf }
0x168c   :  { %v6493_v26 = vpop.f32.mrf.mxu2 }
0x168d   :  { %v12864_v21 = vmul.f32 0.35355338, %v6493_v26 }
0x168f   :  { %v6571_v28 = vpop.f32.mrf.mxu3  ;;  %v6590_v35 = vpop.f32.mrf.mxu0  ;;  %v6798_v42 = vsel %vm4438_vm4, %v12864_v21, -inf }
0x1690   :  { %6799 = vmax.xlane.f32.xlu0 %v6798_v42 }
0x1694   :  { %v6495_v30 = vpop.f32.mrf.mxu2 }
0x1697   :  { %v6626_v47 = vpop.f32.mrf.mxu3  ;;  %v6645_v9 = vpop.f32.mrf.mxu0 }
0x1698   :  { %9975 = vmatmul.msk.bf16.vlgmr.msra.gmra.mxu1 %vm516_vm8, %v6394_v3  ;;  %v12881_v36 = vmul.f32 0.35355338, %v6626_v47  ;;  %v12911_v30 = vmul.f32 0.35355338, %v6645_v9 }
0x169a   :  { %v6819_v55 = vsel %vm4438_vm4, %v12881_v36, -inf }
0x169c   :  { %v6550_v17 = vpop.f32.mrf.mxu2 }
0x169d   :  { %v12887_v49 = vmul.f32 0.35355338, %v6550_v17 }
0x169f   :  { %v6628_v41 = vpop.f32.mrf.mxu3  ;;  %v6647_v24 = vpop.f32.mrf.mxu0  ;;  %v6807_v43 = vsel %vm4438_vm4, %v12887_v49, -inf }
0x16a0   :  { %v6822_v24 = vsel %vm4438_vm4, %v12911_v30, -inf }
0x16a4   :  { %v6552_v20 = vpop.f32.mrf.mxu2 }
0x16a7   :  { %v6683_v50 = vpop.f32.mrf.mxu3  ;;  %v12871_v59 = vpop.f32.mrf.mxu0 }
0x16a8   :  { %v12873_v22 = vmul.f32 0.35355338, %v6683_v50 }
0x16aa   :  { %v6828_v5 = vsel %vm4438_vm4, %v12873_v22, -inf }
0x16ab   :  { %6829 = vmax.xlane.f32.xlu2 %v6828_v5 }
0x16ac   :  { %v6607_v31 = vpop.f32.mrf.mxu2 }
0x16ad   :  { %v12879_v33 = vmul.f32 0.35355338, %v6607_v31 }
0x16af   :  { %v6685_v40 = vpop.f32.mrf.mxu3  ;;  %v6704_v48 = vpop.f32.mrf.mxu0  ;;  %v6816_v34 = vsel %vm4438_vm4, %v12879_v33, -inf }
0x16b0   :  { %6817 = vmax.xlane.f32.xlu1 %v6816_v34 }
0x16b3   :  { %6820 = vmax.xlane.f32.xlu2 %v6819_v55 }
0x16b4   :  { %v6609_v37 = vpop.f32.mrf.mxu2 }
0x16b5   :  { %v12889_v2 = vpop.f32.mrf.mxu1 }
0x16b7   :  { %v6759_v0 = vpop.f32.mrf.mxu3  ;;  %v12891_v62 = vpop.f32.mrf.mxu0 }
0x16b8   :  { %6808 = vmax.xlane.f32.xlu1 %v6807_v43  ;;  %v12905_v28 = vmul.f32 0.35355338, %v6759_v0 }
0x16ba   :  { %v6840_v42 = vsel %vm4438_vm4, %v12905_v28, -inf }
0x16bc   :  { %v6664_v14 = vpop.f32.mrf.mxu2 }
0x16bd   :  { %v12897_v60 = vmul.f32 0.35355338, %v6664_v14  ;;  %v12899_v29 = vpop.f32.mrf.mxu1 }
0x16bf   :  { %v6761_v7 = vpop.f32.mrf.mxu3  ;;  %v6780_v4 = vpop.f32.mrf.mxu0  ;;  %v6825_v26 = vsel %vm4438_vm4, %v12897_v60, -inf }
0x16c0   :  { %6811 = vmax.xlane.f32.xlu1 %v6810_v25  ;;  %6826 = vmax.xlane.f32.xlu0 %v6825_v26 }
0x16c4   :  { %v6666_v35 = vpop.f32.mrf.mxu2 }
0x16c5   :  { %v12907_v19 = vpop.f32.mrf.mxu1 }
0x16c8   :  { %6841 = vmax.xlane.f32.xlu0 %v6840_v42 }
0x16cc   :  { %v6740_v3 = vpop.f32.mrf.mxu2 }
0x16cd   :  { %v12913_v47 = vmul.f32 0.35355338, %v6740_v3  ;;  %v12915_v17 = vpop.f32.mrf.mxu1 }
0x16cf   :  { %v6837_v41 = vsel %vm4438_vm4, %v12913_v47, -inf }
0x16d0   :  { %6838 = vmax.xlane.f32.xlu2 %v6837_v41  ;;  %6823 = vmax.xlane.f32.xlu0 %v6822_v24 }
0x16d4   :  { %v6742_v20 = vpop.f32.mrf.mxu2 }
0x16d5   :  { %v6338_v50 = vpop.f32.mrf.mxu1 }
0x16d6   :  { %v6446_v5 = vrot.slane %v6338_v50, 4  ;;  %v6462_v31 = vpack.c.bf16 %v6338_v50, %v6338_v50 }
0x16d8   :  { %v6463_v40 = vpack.c.bf16 %v6446_v5, %v6446_v5  ;;  %v6994_v9 = vsel %vm4635_vm5, %v6462_v31, 0 }
0x16d9   :  { %7003 = vmatpush.bf16.msrb.mxu1 %v6994_v9 }
0x16da   :  { %v7013_v48 = vsel %vm4635_vm5, %v6463_v40, 0 }
0x16db   :  { %7022 = vmatpush.bf16.msrb.mxu2 %v7013_v48 }
0x16dd   :  { %v6340_v34 = vpop.f32.mrf.mxu1 }
0x16de   :  { %v6447_v55 = vrot.slane %v6340_v34, 4  ;;  %v6464_v37 = vpack.c.bf16 %v6340_v34, %v6340_v34 }
0x16e0   :  { %v6465_v0 = vpack.c.bf16 %v6447_v55, %v6447_v55  ;;  %v7032_v43 = vsel %vm4635_vm5, %v6464_v37, 0 }
0x16e1   :  { %7041 = vmatpush.bf16.msra.mxu3 %v7032_v43 }
0x16e2   :  { %v7051_v14 = vsel %vm4635_vm5, %v6465_v0, 0 }
0x16e3   :  { %7060 = vmatpush.bf16.msrb.mxu0 %v7051_v14 }
0x16e5   :  { %v6343_v7 = vpop.f32.mrf.mxu1 }
0x16e6   :  { %v6448_v4 = vrot.slane %v6343_v7, 4  ;;  %v6466_v25 = vpack.c.bf16 %v6343_v7, %v6343_v7  ;;  %v12944_v7 = vmul.f32 0.35355338, %v12891_v62 }
0x16e8   :  { %v6467_v26 = vpack.c.bf16 %v6448_v4, %v6448_v4  ;;  %v7070_v35 = vsel %vm4635_vm5, %v6466_v25, 0  ;;  %v12947_v4 = vmul.f32 0.35355338, %v12871_v59  ;;  %v6843_v25 = vsel %vm4438_vm4, %v12944_v7, -inf }
0x16e9   :  { %7079 = vmatpush.bf16.msra.mxu1 %v7070_v35 }
0x16ea   :  { %v7089_v42 = vsel %vm4635_vm5, %v6467_v26, 0  ;;  %v6831_v26 = vsel %vm4438_vm4, %v12947_v4, -inf }
0x16eb   :  { %7098 = vmatpush.bf16.msra.mxu2 %v7089_v42 }
0x16ed   :  { %v6345_v3 = vpop.f32.mrf.mxu1 }
0x16ee   :  { %v6803_v41 = vpop.xlane.xlu0 %6802  ;;  %v6806_v24 = vpop.xlane.xlu2 %6805  ;;  %v6449_v20 = vrot.slane %v6345_v3, 4  ;;  %v6468_v50 = vpack.c.bf16 %v6345_v3, %v6345_v3 }
0x16ef   :  { %v6847_v5 = vsub.f32 %v12844_v58, %v6803_v41  ;;  %v6848_v31 = vsub.f32 %v12846_v10, %v6806_v24 }
0x16f0   :  { %v6469_v40 = vpack.c.bf16 %v6449_v20, %v6449_v20  ;;  %v7108_v9 = vsel %vm4635_vm5, %v6468_v50, 0 }
0x16f1   :  { %v6864_v48 = vmul.f32 1.442695, %v6847_v5  ;;  %v6866_v34 = vmul.f32 1.442695, %v6848_v31  ;;  %7117 = vmatpush.bf16.msrb.mxu3 %v7108_v9 }
0x16f2   :  { %v7127_v55 = vsel %vm4635_vm5, %v6469_v40, 0 }
0x16f3   :  { %10606 = vpow2.f32 %v6864_v48  ;;  %7136 = vmatpush.bf16.msra.mxu0 %v7127_v55 }
0x16f4   :  { %10608 = vpow2.f32 %v6866_v34 }
0x16f5   :  { %v12931_v37 = vpop.f32.mrf.mxu1 }
0x16f9   :  { %v12933_v0 = vpop.eup %10606 }
0x16fa   :  { %v12935_v43 = vpop.eup %10608  ;;  %v6897_v58 = vsel %vm4438_vm4, %v12933_v0, 0.0 }
0x16fb   :  { %v6900_v10 = vsel %vm4438_vm4, %v12935_v43, 0.0  ;;  %6898 = vadd.xlane.f32.xlu2 %v6897_v58 }
0x16fc   :  { %6901 = vadd.xlane.f32.xlu1 %v6900_v10 }
0x16fd   :  { %v12941_v14 = vpop.f32.mrf.mxu1 }
0x16fe   :  { %v6815_v31 = vpop.xlane.xlu2 %6814 }
0x16ff   :  { %v6851_v48 = vsub.f32 %v12858_v12, %v6815_v31 }
0x1701   :  { %v6872_v58 = vmul.f32 1.442695, %v6851_v48 }
0x1703   :  { %6844 = vmax.xlane.f32.xlu2 %v6843_v25  ;;  %v6800_v42 = vpop.xlane.xlu0 %6799 }
0x1704   :  { %6832 = vmax.xlane.f32.xlu1 %v6831_v26  ;;  %v6846_v41 = vsub.f32 %v12864_v21, %v6800_v42 }
0x1705   :  { %v12953_v35 = vpop.f32.mrf.mxu1 }
0x1706   :  { %v6862_v62 = vmul.f32 1.442695, %v6846_v41 }
0x1708   :  { %10610 = vpow2.f32 %v6862_v62 }
0x170d   :  { %v12955_v3 = vpop.f32.mrf.mxu1 }
0x170e   :  { %v12962_v50 = vpop.eup %10610 }
0x170f   :  { %v6894_v40 = vsel %vm4438_vm4, %v12962_v50, 0.0 }
0x1715   :  { %v6721_v24 = vpop.f32.mrf.mxu1 }
0x1716   :  { %v12958_v20 = vmul.f32 0.35355338, %v6721_v24 }
0x1718   :  { %v6834_v59 = vsel %vm4438_vm4, %v12958_v20, -inf }
0x1719   :  { %6835 = vmax.xlane.f32.xlu1 %v6834_v59 }
0x171d   :  { %v6723_v5 = vpop.f32.mrf.mxu1 }
0x171e   :  { %v6830_v55 = vpop.xlane.xlu2 %6829 }
0x171f   :  { %v6856_v42 = vsub.f32 %v12873_v22, %v6830_v55 }
0x1721   :  { %6895 = vadd.xlane.f32.xlu1 %v6894_v40 }
0x1723   :  { %v6818_v9 = vpop.xlane.xlu1 %6817 }
0x1724   :  { %v6852_v21 = vsub.f32 %v12879_v33, %v6818_v9  ;;  %v6882_v33 = vmul.f32 1.442695, %v6856_v42 }
0x1726   :  { %v6874_v34 = vmul.f32 1.442695, %v6852_v21  ;;  %v6821_v12 = vpop.xlane.xlu2 %6820 }
0x1727   :  { %v6853_v22 = vsub.f32 %v12881_v36, %v6821_v12 }
0x1728   :  { %10612 = vpow2.f32 %v6874_v34 }
0x1729   :  { %10614 = vpow2.f32 %v6872_v58 }
0x172b   :  { %v6809_v10 = vpop.xlane.xlu1 %6808 }
0x172c   :  { %v6849_v25 = vsub.f32 %v12887_v49, %v6809_v10 }
0x172e   :  { %v12969_v26 = vpop.eup %10612  ;;  %v6868_v41 = vmul.f32 1.442695, %v6849_v25 }
0x172f   :  { %v6912_v62 = vsel %vm4438_vm4, %v12969_v26, 0.0  ;;  %v12974_v5 = vpop.eup %10614 }
0x1730   :  { %10616 = vpow2.f32 %v6868_v41  ;;  %6913 = vadd.xlane.f32.xlu0 %v6912_v62  ;;  %v6909_v48 = vsel %vm4438_vm4, %v12974_v5, 0.0 }
0x1731   :  { %10618 = vpow2.f32 %v6882_v33 }
0x1733   :  { %v6812_v24 = vpop.xlane.xlu1 %6811  ;;  %v6827_v59 = vpop.xlane.xlu0 %6826 }
0x1734   :  { %v6850_v31 = vsub.f32 %v12895_v39, %v6812_v24  ;;  %v6855_v49 = vsub.f32 %v12897_v60, %v6827_v59  ;;  %v6876_v39 = vmul.f32 1.442695, %v6853_v22 }
0x1736   :  { %v12978_v40 = vpop.eup %10616  ;;  %v6870_v9 = vmul.f32 1.442695, %v6850_v31  ;;  %v6880_v21 = vmul.f32 1.442695, %v6855_v49 }
0x1737   :  { %v6903_v34 = vsel %vm4438_vm4, %v12978_v40, 0.0  ;;  %v12985_v60 = vpop.eup %10618 }
0x1738   :  { %10620 = vpow2.f32 %v6870_v9  ;;  %6910 = vadd.xlane.f32.xlu0 %v6909_v48  ;;  %6904 = vadd.xlane.f32.xlu2 %v6903_v34  ;;  %v6924_v42 = vsel %vm4438_vm4, %v12985_v60, 0.0 }
0x1739   :  { %10622 = vpow2.f32 %v6880_v21 }
0x173a   :  { %10624 = vpow2.f32 %v6876_v39 }
0x173b   :  { %v6842_v55 = vpop.xlane.xlu0 %6841 }
0x173c   :  { %v6860_v58 = vsub.f32 %v12905_v28, %v6842_v55 }
0x173e   :  { %v12988_v10 = vpop.eup %10620  ;;  %v6890_v36 = vmul.f32 1.442695, %v6860_v58  ;;  %v6450_v58 = vrot.slane %v12931_v37, 4 }
0x173f   :  { %v12990_v25 = vpop.eup %10622  ;;  %v6906_v41 = vsel %vm4438_vm4, %v12988_v10, 0.0 }
0x1740   :  { %10626 = vpow2.f32 %v6890_v36  ;;  %v6921_v62 = vsel %vm4438_vm4, %v12990_v25, 0.0  ;;  %6925 = vadd.xlane.f32.xlu0 %v6924_v42  ;;  %6907 = vadd.xlane.f32.xlu2 %v6906_v41  ;;  %v12998_v12 = vpop.eup %10624  ;;  %v6471_v41 = vpack.c.bf16 %v6450_v58, %v6450_v58 }
0x1741   :  { %6922 = vadd.xlane.f32.xlu1 %v6921_v62  ;;  %v6915_v9 = vsel %vm4438_vm4, %v12998_v12, 0.0 }
0x1743   :  { %v6839_v28 = vpop.xlane.xlu2 %6838  ;;  %v6824_v33 = vpop.xlane.xlu0 %6823 }
0x1744   :  { %v6859_v24 = vsub.f32 %v12913_v47, %v6839_v28  ;;  %v6854_v59 = vsub.f32 %v12911_v30, %v6824_v33  ;;  %v6472_v33 = vpack.c.bf16 %v12941_v14, %v12941_v14 }
0x1746   :  { %v13002_v31 = vpop.eup %10626  ;;  %v6888_v49 = vmul.f32 1.442695, %v6859_v24  ;;  %v6878_v22 = vmul.f32 1.442695, %v6854_v59 }
0x1747   :  { %v6936_v21 = vsel %vm4438_vm4, %v13002_v31, 0.0 }
0x1748   :  { %10628 = vpow2.f32 %v6888_v49  ;;  %6916 = vadd.xlane.f32.xlu0 %v6915_v9 }
0x1749   :  { %10630 = vpow2.f32 %v6878_v22  ;;  %6937 = vadd.xlane.f32.xlu1 %v6936_v21 }
0x174e   :  { %v13008_v48 = vpop.eup %10628 }
0x174f   :  { %v13010_v34 = vpop.eup %10630  ;;  %v6933_v30 = vsel %vm4438_vm4, %v13008_v48, 0.0 }
0x1750   :  { %v6918_v47 = vsel %vm4438_vm4, %v13010_v34, 0.0  ;;  %6934 = vadd.xlane.f32.xlu2 %v6933_v30 }
0x1751   :  { %6919 = vadd.xlane.f32.xlu0 %v6918_v47 }
0x176e   :  { %v6899_v39 = vpop.xlane.xlu2 %6898 }
0x176f   :  { %v6902_v55 = vpop.xlane.xlu1 %6901  ;;  %10632 = vrcp.f32 %v6899_v39  ;;  %v7165_v39 = vsel %vm4635_vm5, %v6471_v41, 0 }
0x1770   :  { %10634 = vrcp.f32 %v6902_v55 }
0x1775   :  { %v10633_v36 = vpop.eup %10632 }
0x1776   :  { %v10635_v42 = vpop.eup %10634  ;;  %v6959_v62 = vmul.f32 %v10633_v36, %v12933_v0  ;;  %v6845_v28 = vpop.xlane.xlu2 %6844  ;;  %v7184_v0 = vsel %vm4635_vm5, %v6472_v33, 0 }
0x1777   :  { %v6960_v24 = vmul.f32 %v10635_v42, %v12935_v43  ;;  %v6833_v59 = vpop.xlane.xlu1 %6832  ;;  %v6861_v49 = vsub.f32 %v12944_v7, %v6845_v28 }
0x1778   :  { %v6975_v22 = vpack.c.bf16 %v6959_v62, %v6959_v62  ;;  %v6857_v9 = vsub.f32 %v12947_v4, %v6833_v59 }
0x1779   :  { %v6976_v21 = vpack.c.bf16 %v6960_v24, %v6960_v24  ;;  %v6892_v30 = vmul.f32 1.442695, %v6861_v49  ;;  %v6470_v24 = vpack.c.bf16 %v12931_v37, %v12931_v37 }
0x177a   :  { %v6884_v47 = vmul.f32 1.442695, %v6857_v9  ;;  %9980 = vmatmul.msk.bf16.vlgmr.msrb.gmra.mxu2 %vm4631_vm3, %v6975_v22 }
0x177b   :  { %10636 = vpow2.f32 %v6892_v30  ;;  %9981 = vmatmul.msk.bf16.vlgmr.msra.gmra.mxu3 %vm4631_vm3, %v6976_v21  ;;  %7174 = vmatpush.bf16.msrb.mxu2 %v7165_v39  ;;  %v6476_v21 = vpack.c.bf16 %v12955_v3, %v12955_v3 }
0x177c   :  { %10638 = vpow2.f32 %v6884_v47  ;;  %7193 = vmatpush.bf16.msra.mxu3 %v7184_v0 }
0x177d   :  { %v7260_v0 = vsel %vm4635_vm5, %v6476_v21, 0  ;;  %v10192_v21 = vld [vmem:[%s13835_s17 + $0x38] sm:$0xff] }
0x1781   :  { %v13027_v43 = vpop.eup %10636 }
0x1782   :  { %v13029_v7 = vpop.eup %10638  ;;  %v6939_v4 = vsel %vm4438_vm4, %v13027_v43, 0.0 }
0x1783   :  { %v6927_v55 = vsel %vm4438_vm4, %v13029_v7, 0.0  ;;  %6940 = vadd.xlane.f32.xlu0 %v6939_v4  ;;  %v6451_v4 = vrot.slane %v12941_v14, 4 }
0x1784   :  { %6928 = vadd.xlane.f32.xlu1 %v6927_v55 }
0x178c   :  { %v6836_v58 = vpop.xlane.xlu1 %6835 }
0x178d   :  { %v6858_v36 = vsub.f32 %v12958_v20, %v6836_v58  ;;  %v7146_v20 = vsel %vm4635_vm5, %v6470_v24, 0 }
0x178f   :  { %v6886_v42 = vmul.f32 1.442695, %v6858_v36 }
0x1791   :  { %10640 = vpow2.f32 %v6886_v42 }
0x1794   :  { %v6896_v41 = vpop.xlane.xlu1 %6895 }
0x1795   :  { %10642 = vrcp.f32 %v6896_v41 }
0x1797   :  { %v13036_v62 = vpop.eup %10640 }
0x1798   :  { %v6930_v28 = vsel %vm4438_vm4, %v13036_v62, 0.0 }
0x1799   :  { %6931 = vadd.xlane.f32.xlu2 %v6930_v28  ;;  %v6473_v28 = vpack.c.bf16 %v6451_v4, %v6451_v4  ;;  %v6453_v4 = vrot.slane %v12955_v3, 4 }
0x179b   :  { %v10643_v33 = vpop.eup %10642 }
0x179c   :  { %v6958_v59 = vmul.f32 %v10643_v33, %v12962_v50  ;;  %v6452_v50 = vrot.slane %v12953_v35, 4 }
0x179e   :  { %v6974_v49 = vpack.c.bf16 %v6958_v59, %v6958_v59  ;;  %v6475_v36 = vpack.c.bf16 %v6452_v50, %v6452_v50 }
0x17a0   :  { %9979 = vmatmul.msk.bf16.vlgmr.msrb.gmra.mxu1 %vm4631_vm3, %v6974_v49  ;;  %v7241_v14 = vsel %vm4635_vm5, %v6475_v36, 0  ;;  %v6477_v36 = vpack.c.bf16 %v6453_v4, %v6453_v4 }
0x17a1   :  { %7155 = vmatpush.bf16.msrb.mxu1 %v7146_v20 }
0x17a3   :  { %v6914_v22 = vpop.xlane.xlu0 %6913 }
0x17a4   :  { %10644 = vrcp.f32 %v6914_v22 }
0x17aa   :  { %v10645_v9 = vpop.eup %10644 }
0x17ab   :  { %v6964_v30 = vmul.f32 %v10645_v9, %v12969_v26  ;;  %v6911_v47 = vpop.xlane.xlu0 %6910  ;;  %v6905_v39 = vpop.xlane.xlu2 %6904 }
0x17ac   :  { %10646 = vrcp.f32 %v6911_v47 }
0x17ad   :  { %v6980_v37 = vpack.c.bf16 %v6964_v30, %v6964_v30  ;;  %10648 = vrcp.f32 %v6905_v39  ;;  %v6474_v30 = vpack.c.bf16 %v12953_v35, %v12953_v35 }
0x17af   :  { %9985 = vmatmul.msk.bf16.vlgmr.msrb.gmra.mxu3 %vm4631_vm3, %v6980_v37  ;;  %v7222_v35 = vsel %vm4635_vm5, %v6474_v30, 0  ;;  %v10194_v30 = vld [vmem:[%s13836_s21 + $0x38] sm:$0xff] }
0x17b0   :  { %7269 = vmatpush.bf16.msrb.mxu3 %v7260_v0 }
0x17b2   :  { %v10647_v55 = vpop.eup %10646 }
0x17b3   :  { %v10649_v58 = vpop.eup %10648  ;;  %v6963_v42 = vmul.f32 %v10647_v55, %v12974_v5  ;;  %v6926_v26 = vpop.xlane.xlu0 %6925  ;;  %v7203_v5 = vsel %vm4635_vm5, %v6473_v28, 0 }
0x17b4   :  { %v6908_v41 = vpop.xlane.xlu2 %6907  ;;  %v6961_v33 = vmul.f32 %v10649_v58, %v12978_v40  ;;  %v6923_v24 = vpop.xlane.xlu1 %6922  ;;  %10650 = vrcp.f32 %v6926_v26  ;;  %v10190_v26 = vld [vmem:[%s13834_s5 + $0x38] sm:$0xff] }
0x17b5   :  { %v6979_v59 = vpack.c.bf16 %v6963_v42, %v6963_v42  ;;  %10652 = vrcp.f32 %v6908_v41 }
0x17b6   :  { %v6977_v49 = vpack.c.bf16 %v6961_v33, %v6961_v33  ;;  %10654 = vrcp.f32 %v6923_v24  ;;  %v10189_v24 = vld [vmem:[%s13834_s5 + $0x30] sm:$0xff] }
0x17b7   :  { %9984 = vmatmul.msk.bf16.vlgmr.msra.gmra.mxu2 %vm4631_vm3, %v6979_v59 }
0x17b8   :  { %9982 = vmatmul.msk.bf16.vlgmr.msrb.gmra.mxu0 %vm4631_vm3, %v6977_v49  ;;  %7250 = vmatpush.bf16.msra.mxu2 %v7241_v14 }
0x17b9   :  { %7212 = vmatpush.bf16.msrb.mxu0 %v7203_v5 }
0x17ba   :  { %v10651_v20 = vpop.eup %10650 }
0x17bb   :  { %v6968_v40 = vmul.f32 %v10651_v20, %v12985_v60  ;;  %v6917_v22 = vpop.xlane.xlu0 %6916  ;;  %v10653_v9 = vpop.eup %10652  ;;  %v10191_v60 = vld [vmem:[%s13835_s17 + $0x30] sm:$0xff] }
0x17bc   :  { %10656 = vrcp.f32 %v6917_v22  ;;  %v6962_v39 = vmul.f32 %v10653_v9, %v12988_v10  ;;  %v6938_v37 = vpop.xlane.xlu1 %6937  ;;  %v10655_v50 = vpop.eup %10654 }
0x17bd   :  { %v6984_v47 = vpack.c.bf16 %v6968_v40, %v6968_v40  ;;  %10658 = vrcp.f32 %v6938_v37  ;;  %v6967_v55 = vmul.f32 %v10655_v50, %v12990_v25  ;;  %v7279_v25 = vsel %vm4635_vm5, %v6477_v36, 0  ;;  %v10193_v37 = vld [vmem:[%s13836_s21 + $0x30] sm:$0xff] }
0x17be   :  { %v6978_v0 = vpack.c.bf16 %v6962_v39, %v6962_v39 }
0x17bf   :  { %9989 = vmatmul.msk.bf16.vlgmr.msra.gmra.mxu3 %vm4631_vm3, %v6984_v47  ;;  %v6983_v41 = vpack.c.bf16 %v6967_v55, %v6967_v55 }
0x17c0   :  { %7476 = vmatpush.bf16.msra.mxu3 %v10192_v21  ;;  %9983 = vmatmul.msk.bf16.vlgmr.msra.gmra.mxu1 %vm4631_vm3, %v6978_v0 }
0x17c1   :  { %7231 = vmatpush.bf16.msra.mxu1 %v7222_v35 }
0x17c2   :  { %v10657_v58 = vpop.eup %10656 }
0x17c3   :  { %v6965_v10 = vmul.f32 %v10657_v58, %v12998_v12  ;;  %v6935_v28 = vpop.xlane.xlu2 %6934  ;;  %v10659_v33 = vpop.eup %10658 }
0x17c4   :  { %v6920_v42 = vpop.xlane.xlu0 %6919  ;;  %7477 = vmatpush.bf16.msra.mxu3 %v10191_v60  ;;  %v6972_v12 = vmul.f32 %v10659_v33, %v13002_v31 }
0x17c5   :  { %v6981_v3 = vpack.c.bf16 %v6965_v10, %v6965_v10  ;;  %10660 = vrcp.f32 %v6920_v42  ;;  %v9995_v42 = vld [vmem:[%s13839_s3 + $0x8] sm:$0xf] }
0x17c6   :  { %10662 = vrcp.f32 %v6935_v28  ;;  %v6988_v14 = vpack.c.bf16 %v6972_v12, %v6972_v12 }
0x17c7   :  { %9988 = vmatmul.msk.bf16.vlgmr.msrb.gmra.mxu2 %vm4631_vm3, %v6983_v41 }
0x17c8   :  { %9986 = vmatmul.msk.bf16.vlgmr.msra.gmra.mxu0 %vm4631_vm3, %v6981_v3  ;;  %7430 = vmatpush.bf16.msrb.mxu2 %v10190_v26 }
0x17c9   :  { %7288 = vmatpush.bf16.msra.mxu0 %v7279_v25 }
0x17cb   :  { %v10661_v59 = vpop.eup %10660 }
0x17cc   :  { %v6966_v49 = vmul.f32 %v10661_v59, %v13010_v34  ;;  %7431 = vmatpush.bf16.msrb.mxu2 %v10189_v24  ;;  %v10663_v5 = vpop.eup %10662 }
0x17cd   :  { %v6971_v40 = vmul.f32 %v10663_v5, %v13008_v48 }
0x17ce   :  { %v6982_v20 = vpack.c.bf16 %v6966_v49, %v6966_v49 }
0x17cf   :  { %9993 = vmatmul.msk.bf16.vlgmr.msrb.gmra.mxu3 %vm4631_vm3, %v6988_v14  ;;  %v6987_v22 = vpack.c.bf16 %v6971_v40, %v6971_v40 }
0x17d0   :  { %9987 = vmatmul.msk.bf16.vlgmr.msrb.gmra.mxu1 %vm4631_vm3, %v6982_v20 }
0x17d7   :  { %9992 = vmatmul.msk.bf16.vlgmr.msra.gmra.mxu2 %vm4631_vm3, %v6987_v22 }
0x17df   :  { %10028 = vmatmul.msk.bf16.vlgmr.msra.gmra.mxu3 %vm135_vm0, %v12128_v32 }
0x17e7   :  { %10012 = vmatmul.msk.bf16.vlgmr.msrb.gmra.mxu2 %vm135_vm0, %v12128_v32 }
0x17ef   :  { %10029 = vmatmul.msk.bf16.gmra.mxu3 %vm135_vm0, %v12142_v1 }
0x17f6   :  { %v6941_v39 = vpop.xlane.xlu0 %6940 }
0x17f7   :  { %v6929_v31 = vpop.xlane.xlu1 %6928  ;;  %10013 = vmatmul.msk.bf16.gmra.mxu2 %vm135_vm0, %v12142_v1 }
0x17f8   :  { %10664 = vrcp.f32 %v6929_v31 }
0x17f9   :  { %10666 = vrcp.f32 %v6941_v39 }
0x17fd   :  { %v7024_v48 = vpop.f32.mrf.mxu2 }
0x17fe   :  { %v10665_v34 = vpop.eup %10664  ;;  %7312 = vst [vmem:[#allocation1 + $0x1] ss:$2 sm:$0xff] %v7024_v48  ;;  %v7043_v9 = vpop.f32.mrf.mxu3 }
0x17ff   :  { %v6969_v21 = vmul.f32 %v10665_v34, %v13029_v7  ;;  %7314 = vst [vmem:[#allocation1 + $0x10] ss:$2 sm:$0xff] %v7043_v9  ;;  %10030 = vmatmul.msk.bf16.gmra.mxu3 %vm135_vm0, %v12160_v38  ;;  %v10667_v7 = vpop.eup %10666 }
0x1800   :  { %v6973_v60 = vmul.f32 %v10667_v7, %v13027_v43  ;;  %v7368_v43 = vsel %vm776_vm12, %v9995_v42, 0 }
0x1801   :  { %v6985_v47 = vpack.c.bf16 %v6969_v21, %v6969_v21  ;;  %7377 = vmatpush.bf16.msrb.mxu1 %v7368_v43 }
0x1802   :  { %v6989_v55 = vpack.c.bf16 %v6973_v60, %v6973_v60 }
0x1803   :  { %9990 = vmatmul.msk.bf16.vlgmr.msrb.gmra.mxu0 %vm4631_vm3, %v6985_v47 }
0x1804   :  { %7522 = vmatpush.bf16.msrb.mxu0 %v10194_v30 }
0x1805   :  { %v7026_v50 = vpop.f32.mrf.mxu2 }
0x1806   :  { %v7045_v0 = vpop.f32.mrf.mxu3 }
0x1807   :  { %10014 = vmatmul.msk.bf16.gmra.mxu2 %vm135_vm0, %v12160_v38 }
0x1808   :  { %7523 = vmatpush.bf16.msrb.mxu0 %v10193_v37 }
0x180c   :  { %v6932_v4 = vpop.xlane.xlu2 %6931 }
0x180d   :  { %10668 = vrcp.f32 %v6932_v4 }
0x180f   :  { %10031 = vmatmul.msk.bf16.gmra.mxu3 %vm135_vm0, %v12179_v6 }
0x1813   :  { %v10669_v35 = vpop.eup %10668  ;;  %9994 = vmatmul.msk.bf16.vlgmr.msra.gmra.mxu0 %vm4631_vm3, %v6989_v55 }
0x1814   :  { %v6970_v58 = vmul.f32 %v10669_v35, %v13036_v62 }
0x1816   :  { %v6986_v10 = vpack.c.bf16 %v6970_v58, %v6970_v58 }
0x1817   :  { %10015 = vmatmul.msk.bf16.gmra.mxu2 %vm135_vm0, %v12179_v6 }
0x1818   :  { %9991 = vmatmul.msk.bf16.vlgmr.msra.gmra.mxu1 %vm4631_vm3, %v6986_v10 }
0x181d   :  { %v7005_v36 = vpop.f32.mrf.mxu1 }
0x181e   :  { %7310 = vst [vmem:[#allocation1] ss:$2 sm:$0xff] %v7005_v36 }
0x1823   :  { %10044 = vmatmul.msk.bf16.vlgmr.msrb.gmra.mxu0 %vm135_vm0, %v12128_v32 }
0x1825   :  { %v7007_v26 = vpop.f32.mrf.mxu1  ;;  %v7325_v25 = vld.sshfl [vmem:[#allocation1] sm:$0xff pattern:$0x75316420] }
0x1832   :  { %v7119_v41 = vpop.f32.mrf.mxu3 }
0x1833   :  { %10045 = vmatmul.msk.bf16.gmra.mxu0 %vm135_vm0, %v12142_v1  ;;  %7322 = vst [vmem:[#allocation1 + $0x30] ss:$2 sm:$0xff] %v7119_v41 }
0x1835   :  { %v7062_v62 = vpop.f32.mrf.mxu0 }
0x1836   :  { %7316 = vst [vmem:[#allocation1 + $0x11] ss:$2 sm:$0xff] %v7062_v62 }
0x183a   :  { %v7100_v3 = vpop.f32.mrf.mxu2  ;;  %v7121_v28 = vpop.f32.mrf.mxu3 }
0x183b   :  { %7320 = vst [vmem:[#allocation1 + $0x21] ss:$2 sm:$0xff] %v7100_v3 }
0x183d   :  { %v7064_v33 = vpop.f32.mrf.mxu0  ;;  %v7326_v24 = vld.sshfl [vmem:[#allocation1 + $0x10] sm:$0xff pattern:$0x75316420]  ;;  %v7081_v12 = vpop.f32.mrf.mxu1 }
0x183e   :  { %v7349_v59 = vpack.c.bf16 %v7326_v24, %v7325_v25  ;;  %7318 = vst [vmem:[#allocation1 + $0x20] ss:$2 sm:$0xff] %v7081_v12 }
0x1840   :  { %9996 = vmatmul.msk.bf16.vlgmr.msrb.gmra.mxu1 %vm516_vm8, %v7349_v59 }
0x1842   :  { %v7102_v32 = vpop.f32.mrf.mxu2  ;;  %v7195_v49 = vpop.f32.mrf.mxu3 }
0x1843   :  { %10046 = vmatmul.msk.bf16.gmra.mxu0 %vm135_vm0, %v12160_v38  ;;  %7331 = vst [vmem:[#allocation1 + $0x10] ss:$2 sm:$0xff] %v7195_v49 }
0x1845   :  { %v7138_v1 = vpop.f32.mrf.mxu0  ;;  %v7083_v14 = vpop.f32.mrf.mxu1  ;;  %v7327_v22 = vld.sshfl [vmem:[#allocation1 + $0x20] sm:$0xff pattern:$0x75316420] }
0x1846   :  { %7324 = vst [vmem:[#allocation1 + $0x31] ss:$2 sm:$0xff] %v7138_v1 }
0x184a   :  { %v7176_v5 = vpop.f32.mrf.mxu2  ;;  %v7197_v20 = vpop.f32.mrf.mxu3 }
0x184b   :  { %7330 = vst [vmem:[#allocation1 + $0x1] ss:$2 sm:$0xff] %v7176_v5 }
0x184d   :  { %v7140_v40 = vpop.f32.mrf.mxu0  ;;  %v7328_v31 = vld.sshfl [vmem:[#allocation1 + $0x30] sm:$0xff pattern:$0x75316420]  ;;  %v7157_v48 = vpop.f32.mrf.mxu1 }
0x184e   :  { %v7350_v34 = vpack.c.bf16 %v7328_v31, %v7327_v22  ;;  %7329 = vst [vmem:[#allocation1] ss:$2 sm:$0xff] %v7157_v48 }
0x1850   :  { %9997 = vmatmul.msk.bf16.gmra.mxu1 %vm516_vm8, %v7350_v34 }
0x1852   :  { %v7178_v9 = vpop.f32.mrf.mxu2  ;;  %v7271_v21 = vpop.f32.mrf.mxu3 }
0x1853   :  { %10047 = vmatmul.msk.bf16.gmra.mxu0 %vm135_vm0, %v12179_v6  ;;  %7335 = vst [vmem:[#allocation1 + $0x30] ss:$2 sm:$0xff] %v7271_v21 }
0x1855   :  { %v7159_v38 = vpop.f32.mrf.mxu1 }
0x185a   :  { %v7252_v30 = vpop.f32.mrf.mxu2  ;;  %v7273_v47 = vpop.f32.mrf.mxu3 }
0x185b   :  { %7334 = vst [vmem:[#allocation1 + $0x21] ss:$2 sm:$0xff] %v7252_v30 }
0x1862   :  { %v7254_v39 = vpop.f32.mrf.mxu2  ;;  %v7479_v37 = vpop.f32.mrf.mxu3 }
0x1863   :  { %v7593_v50 = vrot.slane %v7479_v37, 4  ;;  %v7609_v0 = vpack.c.bf16 %v7479_v37, %v7479_v37 }
0x1865   :  { %v7610_v7 = vpack.c.bf16 %v7593_v50, %v7593_v50  ;;  %v7669_v4 = vsel %vm516_vm8, %v7609_v0, 0 }
0x1866   :  { %7678 = vmatpush.bf16.xpose.msra.mxu1 %v7669_v4 }
0x1867   :  { %v7688_v60 = vsel %vm516_vm8, %v7610_v7, 0  ;;  %v7337_v7 = vld.sshfl [vmem:[#allocation1] sm:$0xff pattern:$0x75316420] }
0x1868   :  { %7697 = vmatpush.bf16.xpose.msra.mxu2 %v7688_v60 }
0x186a   :  { %v13119_v55 = vpop.f32.mrf.mxu2  ;;  %v7481_v35 = vpop.f32.mrf.mxu3 }
0x186b   :  { %v7553_v6 = vrot.slane %v13119_v55, 4  ;;  %v7594_v58 = vrot.slane %v7481_v35, 4  ;;  %v7611_v10 = vpack.c.bf16 %v7481_v35, %v7481_v35 }
0x186d   :  { %v7570_v36 = vpack.c.bf16 %v7553_v6, %v7553_v6  ;;  %v7612_v42 = vpack.c.bf16 %v7594_v58, %v7594_v58  ;;  %v7707_v43 = vsel %vm516_vm8, %v7611_v10, 0 }
0x186e   :  { %7716 = vmatpush.bf16.xpose.msrb.mxu3 %v7707_v43 }
0x186f   :  { %10049 = vmatmul.msk.bf16.vlgmr.msra.gmra.mxu2 %vm516_vm8, %v7570_v36  ;;  %v7726_v26 = vsel %vm516_vm8, %v7612_v42, 0 }
0x1870   :  { %7735 = vmatpush.bf16.xpose.msra.mxu0 %v7726_v26 }
0x1872   :  { %v7435_v41 = vpop.f32.mrf.mxu2  ;;  %v7484_v62 = vpop.f32.mrf.mxu3 }
0x1873   :  { %v7554_v3 = vrot.slane %v7435_v41, 4  ;;  %v7571_v28 = vpack.c.bf16 %v7435_v41, %v7435_v41  ;;  %v7595_v33 = vrot.slane %v7484_v62, 4  ;;  %v7613_v25 = vpack.c.bf16 %v7484_v62, %v7484_v62 }
0x1875   :  { %v7572_v24 = vpack.c.bf16 %v7554_v3, %v7554_v3  ;;  %v7614_v12 = vpack.c.bf16 %v7595_v33, %v7595_v33  ;;  %10050 = vmatmul.msk.bf16.vlgmr.msrb.gmra.mxu3 %vm516_vm8, %v7571_v28  ;;  %v7745_v59 = vsel %vm516_vm8, %v7613_v25, 0 }
0x1876   :  { %7754 = vmatpush.bf16.xpose.msrb.mxu1 %v7745_v59 }
0x1877   :  { %10051 = vmatmul.msk.bf16.vlgmr.msra.gmra.mxu0 %vm516_vm8, %v7572_v24  ;;  %v7764_v32 = vsel %vm516_vm8, %v7614_v12, 0 }
0x1878   :  { %7773 = vmatpush.bf16.xpose.msrb.mxu2 %v7764_v32 }
0x187a   :  { %v13129_v49 = vpop.f32.mrf.mxu2  ;;  %v7486_v1 = vpop.f32.mrf.mxu3 }
0x187b   :  { %v7555_v14 = vrot.slane %v13129_v49, 4  ;;  %v7596_v5 = vrot.slane %v7486_v1, 4  ;;  %v7615_v20 = vpack.c.bf16 %v7486_v1, %v7486_v1 }
0x187d   :  { %v7574_v40 = vpack.c.bf16 %v7555_v14, %v7555_v14  ;;  %v7616_v22 = vpack.c.bf16 %v7596_v5, %v7596_v5  ;;  %v7783_v31 = vsel %vm516_vm8, %v7615_v20, 0 }
0x187e   :  { %7792 = vmatpush.bf16.xpose.msra.mxu3 %v7783_v31 }
0x187f   :  { %10053 = vmatmul.msk.bf16.vlgmr.msrb.gmra.mxu2 %vm516_vm8, %v7574_v40  ;;  %v7802_v48 = vsel %vm516_vm8, %v7616_v22, 0 }
0x1880   :  { %v7214_v34 = vpop.f32.mrf.mxu0  ;;  %7811 = vmatpush.bf16.xpose.msrb.mxu0 %v7802_v48 }
0x1881   :  { %7332 = vst [vmem:[#allocation1 + $0x11] ss:$2 sm:$0xff] %v7214_v34 }
0x1882   :  { %v7440_v9 = vpop.f32.mrf.mxu2  ;;  %v13135_v21 = vpop.f32.mrf.mxu3 }
0x1883   :  { %v7556_v38 = vrot.slane %v7440_v9, 4  ;;  %v7575_v30 = vpack.c.bf16 %v7440_v9, %v7440_v9  ;;  %v7597_v47 = vrot.slane %v13135_v21, 4 }
0x1885   :  { %v7576_v39 = vpack.c.bf16 %v7556_v38, %v7556_v38  ;;  %v7618_v37 = vpack.c.bf16 %v7597_v47, %v7597_v47  ;;  %10054 = vmatmul.msk.bf16.vlgmr.msra.gmra.mxu3 %vm516_vm8, %v7575_v30 }
0x1887   :  { %10055 = vmatmul.msk.bf16.vlgmr.msrb.gmra.mxu0 %vm516_vm8, %v7576_v39  ;;  %v7840_v50 = vsel %vm516_vm8, %v7618_v37, 0 }
0x1888   :  { %v7216_v0 = vpop.f32.mrf.mxu0  ;;  %7849 = vmatpush.bf16.xpose.msra.mxu2 %v7840_v50  ;;  %v7338_v4 = vld.sshfl [vmem:[#allocation1 + $0x10] sm:$0xff pattern:$0x75316420] }
0x1889   :  { %v7351_v60 = vpack.c.bf16 %v7338_v4, %v7337_v7 }
0x188a   :  { %v13141_v35 = vpop.f32.mrf.mxu2  ;;  %v7491_v6 = vpop.f32.mrf.mxu3 }
0x188b   :  { %9998 = vmatmul.msk.bf16.gmra.mxu1 %vm516_vm8, %v7351_v60  ;;  %v7557_v58 = vrot.slane %v13141_v35, 4  ;;  %v7598_v10 = vrot.slane %v7491_v6, 4  ;;  %v7619_v36 = vpack.c.bf16 %v7491_v6, %v7491_v6 }
0x188d   :  { %v7578_v42 = vpack.c.bf16 %v7557_v58, %v7557_v58  ;;  %v7620_v43 = vpack.c.bf16 %v7598_v10, %v7598_v10  ;;  %v7859_v26 = vsel %vm516_vm8, %v7619_v36, 0 }
0x188e   :  { %7868 = vmatpush.bf16.xpose.msrb.mxu3 %v7859_v26 }
0x188f   :  { %10057 = vmatmul.msk.bf16.vlgmr.msra.gmra.mxu2 %vm516_vm8, %v7578_v42  ;;  %v7878_v41 = vsel %vm516_vm8, %v7620_v43, 0 }
0x1890   :  { %v7290_v62 = vpop.f32.mrf.mxu0  ;;  %7887 = vmatpush.bf16.xpose.msra.mxu0 %v7878_v41 }
0x1891   :  { %7336 = vst [vmem:[#allocation1 + $0x31] ss:$2 sm:$0xff] %v7290_v62  ;;  %v7617_v62 = vpack.c.bf16 %v13135_v21, %v13135_v21 }
0x1892   :  { %v7445_v3 = vpop.f32.mrf.mxu2  ;;  %v13148_v28 = vpop.f32.mrf.mxu3 }
0x1893   :  { %v7558_v33 = vrot.slane %v7445_v3, 4  ;;  %v7579_v25 = vpack.c.bf16 %v7445_v3, %v7445_v3  ;;  %v7599_v24 = vrot.slane %v13148_v28, 4 }
0x1895   :  { %v7580_v12 = vpack.c.bf16 %v7558_v33, %v7558_v33  ;;  %v7622_v59 = vpack.c.bf16 %v7599_v24, %v7599_v24  ;;  %10058 = vmatmul.msk.bf16.vlgmr.msrb.gmra.mxu3 %vm516_vm8, %v7579_v25  ;;  %v7233_v32 = vpop.f32.mrf.mxu1  ;;  %v7569_v33 = vpack.c.bf16 %v13119_v55, %v13119_v55  ;;  %v7821_v24 = vsel %vm516_vm8, %v7617_v62, 0 }
0x1896   :  { %7333 = vst [vmem:[#allocation1 + $0x20] ss:$2 sm:$0xff] %v7233_v32  ;;  %v7621_v55 = vpack.c.bf16 %v13148_v28, %v13148_v28 }
0x1897   :  { %10059 = vmatmul.msk.bf16.vlgmr.msra.gmra.mxu0 %vm516_vm8, %v7580_v12  ;;  %v7916_v1 = vsel %vm516_vm8, %v7622_v59, 0 }
0x1898   :  { %v7292_v14 = vpop.f32.mrf.mxu0  ;;  %7925 = vmatpush.bf16.xpose.msrb.mxu2 %v7916_v1  ;;  %v7340_v48 = vld.sshfl [vmem:[#allocation1 + $0x30] sm:$0xff pattern:$0x75316420] }
0x189a   :  { %v13154_v5 = vpop.f32.mrf.mxu2  ;;  %v7496_v20 = vpop.f32.mrf.mxu3 }
0x189b   :  { %v7559_v40 = vrot.slane %v13154_v5, 4  ;;  %v7600_v22 = vrot.slane %v7496_v20, 4  ;;  %v7623_v31 = vpack.c.bf16 %v7496_v20, %v7496_v20 }
0x189d   :  { %v7582_v34 = vpack.c.bf16 %v7559_v40, %v7559_v40  ;;  %v7624_v9 = vpack.c.bf16 %v7600_v22, %v7600_v22  ;;  %v7235_v38 = vpop.f32.mrf.mxu1  ;;  %v7935_v30 = vsel %vm516_vm8, %v7623_v31, 0  ;;  %v7339_v47 = vld.sshfl [vmem:[#allocation1 + $0x20] sm:$0xff pattern:$0x75316420] }
0x189e   :  { %7944 = vmatpush.bf16.xpose.msra.mxu3 %v7935_v30  ;;  %v7352_v39 = vpack.c.bf16 %v7340_v48, %v7339_v47  ;;  %v7573_v48 = vpack.c.bf16 %v13129_v49, %v13129_v49  ;;  %v7577_v47 = vpack.c.bf16 %v13141_v35, %v13141_v35 }
0x189f   :  { %10061 = vmatmul.msk.bf16.vlgmr.msrb.gmra.mxu2 %vm516_vm8, %v7582_v34  ;;  %v7954_v37 = vsel %vm516_vm8, %v7624_v9, 0  ;;  %v7897_v9 = vsel %vm516_vm8, %v7621_v55, 0 }
0x18a0   :  { %v7525_v50 = vpop.f32.mrf.mxu0  ;;  %7963 = vmatpush.bf16.xpose.msrb.mxu0 %v7954_v37  ;;  %9999 = vmatmul.msk.bf16.gmra.mxu1 %vm516_vm8, %v7352_v39 }
0x18a1   :  { %v7633_v0 = vrot.slane %v7525_v50, 4  ;;  %v7649_v30 = vpack.c.bf16 %v7525_v50, %v7525_v50  ;;  %v7581_v50 = vpack.c.bf16 %v13154_v5, %v13154_v5 }
0x18a2   :  { %v7450_v7 = vpop.f32.mrf.mxu2 }
0x18a3   :  { %v7650_v4 = vpack.c.bf16 %v7633_v0, %v7633_v0  ;;  %v7560_v60 = vrot.slane %v7450_v7, 4  ;;  %v7583_v6 = vpack.c.bf16 %v7450_v7, %v7450_v7 }
0x18a5   :  { %v7584_v58 = vpack.c.bf16 %v7560_v60, %v7560_v60  ;;  %v8200_v10 = vsel %vm4635_vm5, %v7650_v4, 0  ;;  %10062 = vmatmul.msk.bf16.vlgmr.msra.gmra.mxu3 %vm516_vm8, %v7583_v6 }
0x18a6   :  { %8209 = vmatpush.bf16.msra.mxu2 %v8200_v10 }
0x18a7   :  { %10063 = vmatmul.msk.bf16.vlgmr.msrb.gmra.mxu0 %vm516_vm8, %v7584_v58 }
0x18a8   :  { %v7527_v36 = vpop.f32.mrf.mxu0 }
0x18a9   :  { %v7634_v42 = vrot.slane %v7527_v36, 4  ;;  %v7651_v43 = vpack.c.bf16 %v7527_v36, %v7527_v36 }
0x18ab   :  { %v7652_v26 = vpack.c.bf16 %v7634_v42, %v7634_v42  ;;  %v8219_v41 = vsel %vm4635_vm5, %v7651_v43, 0 }
0x18ac   :  { %8228 = vmatpush.bf16.msrb.mxu3 %v8219_v41 }
0x18ad   :  { %v8238_v3 = vsel %vm4635_vm5, %v7652_v26, 0 }
0x18ae   :  { %8247 = vmatpush.bf16.msra.mxu0 %v8238_v3 }
0x18b0   :  { %v7530_v25 = vpop.f32.mrf.mxu0  ;;  %10048 = vmatmul.msk.bf16.vlgmr.msra.gmra.mxu1 %vm516_vm8, %v7569_v33 }
0x18b1   :  { %v7635_v12 = vrot.slane %v7530_v25, 4  ;;  %7830 = vmatpush.bf16.xpose.msra.mxu1 %v7821_v24  ;;  %v7653_v0 = vpack.c.bf16 %v7530_v25, %v7530_v25 }
0x18b3   :  { %v7654_v59 = vpack.c.bf16 %v7635_v12, %v7635_v12  ;;  %v8257_v35 = vsel %vm4635_vm5, %v7653_v0, 0 }
0x18b5   :  { %v8276_v32 = vsel %vm4635_vm5, %v7654_v59, 0  ;;  %v6211_v59 = vadd.f32 %v12840_v16, %v12889_v2  ;;  %v6216_v16 = vadd.f32 %v12854_v61, %v12907_v19 }
0x18b6   :  { %8285 = vmatpush.bf16.msrb.mxu2 %v8276_v32 }
0x18b8   :  { %v7532_v1 = vpop.f32.mrf.mxu0 }
0x18b9   :  { %v7636_v21 = vrot.slane %v7532_v1, 4  ;;  %v7655_v14 = vpack.c.bf16 %v7532_v1, %v7532_v1 }
0x18bb   :  { %v7656_v20 = vpack.c.bf16 %v7636_v21, %v7636_v21  ;;  %v8295_v40 = vsel %vm4635_vm5, %v7655_v14, 0 }
0x18bc   :  { %8304 = vmatpush.bf16.msra.mxu3 %v8295_v40 }
0x18bd   :  { %v7379_v22 = vpop.f32.mrf.mxu1  ;;  %v8314_v31 = vsel %vm4635_vm5, %v7656_v20, 0 }
0x18be   :  { %v13180_v34 = vadd.f32 %v7379_v22, %v12826_v54  ;;  %8323 = vmatpush.bf16.msrb.mxu0 %v8314_v31  ;;  %v8181_v54 = vsel %vm4635_vm5, %v7649_v30, 0 }
0x18c0   :  { %10052 = vmatmul.msk.bf16.vlgmr.msrb.gmra.mxu1 %vm516_vm8, %v7573_v48  ;;  %v13188_v39 = vpop.f32.mrf.mxu0 }
0x18c1   :  { %7906 = vmatpush.bf16.xpose.msrb.mxu1 %v7897_v9 }
0x18c5   :  { %v13184_v38 = vpop.f32.mrf.mxu1 }
0x18c8   :  { %v13195_v37 = vpop.f32.mrf.mxu0 }
0x18cd   :  { %v7384_v28 = vpop.f32.mrf.mxu1 }
0x18ce   :  { %v13191_v49 = vadd.f32 %v7384_v28, %v12834_v15 }
0x18d0   :  { %10056 = vmatmul.msk.bf16.vlgmr.msra.gmra.mxu1 %vm516_vm8, %v7577_v47  ;;  %v13201_v7 = vpop.f32.mrf.mxu0 }
0x18d1   :  { %8190 = vmatpush.bf16.msra.mxu1 %v8181_v54 }
0x18d5   :  { %v13217_v62 = vpop.f32.mrf.mxu1 }
0x18d8   :  { %v13203_v15 = vpop.f32.mrf.mxu0 }
0x18e0   :  { %10060 = vmatmul.msk.bf16.vlgmr.msrb.gmra.mxu1 %vm516_vm8, %v7581_v50 }
0x18e1   :  { %8266 = vmatpush.bf16.msrb.mxu1 %v8257_v35 }
0x18f2   :  { %v7699_v4 = vpop.f32.mrf.mxu2 }
0x18f3   :  { %v13205_v60 = vmul.f32 0.35355338, %v7699_v4 }
0x18f4   :  { %v7737_v6 = vpop.f32.mrf.mxu0 }
0x18f5   :  { %v7988_v58 = vsel %vm4438_vm4, %v13205_v60, -inf  ;;  %v13209_v36 = vmul.f32 0.35355338, %v7737_v6 }
0x18f6   :  { %7989 = vmax.xlane.f32.xlu1 %v7988_v58 }
0x18f7   :  { %v7994_v41 = vsel %vm4438_vm4, %v13209_v36, -inf }
0x18f8   :  { %v7718_v10 = vpop.f32.mrf.mxu3 }
0x18f9   :  { %v13211_v5 = vmul.f32 0.35355338, %v7718_v10 }
0x18fa   :  { %v7701_v42 = vpop.f32.mrf.mxu2 }
0x18fb   :  { %v7991_v43 = vsel %vm4438_vm4, %v13211_v5, -inf }
0x18fc   :  { %7992 = vmax.xlane.f32.xlu2 %v7991_v43  ;;  %v7739_v26 = vpop.f32.mrf.mxu0 }
0x18fe   :  { %7995 = vmax.xlane.f32.xlu1 %v7994_v41 }
0x1900   :  { %v7720_v3 = vpop.f32.mrf.mxu3 }
0x1902   :  { %v7775_v33 = vpop.f32.mrf.mxu2 }
0x1903   :  { %v13219_v25 = vmul.f32 0.35355338, %v7775_v33 }
0x1904   :  { %v7813_v24 = vpop.f32.mrf.mxu0 }
0x1905   :  { %v8000_v12 = vsel %vm4438_vm4, %v13219_v25, -inf  ;;  %v13225_v21 = vmul.f32 0.35355338, %v7813_v24 }
0x1906   :  { %8001 = vmax.xlane.f32.xlu2 %v8000_v12 }
0x1907   :  { %v8006_v55 = vsel %vm4438_vm4, %v13225_v21, -inf }
0x1908   :  { %v7389_v32 = vpop.f32.mrf.mxu1  ;;  %v7794_v1 = vpop.f32.mrf.mxu3 }
0x1909   :  { %v13227_v14 = vadd.f32 %v7389_v32, %v6211_v59  ;;  %v13243_v61 = vmul.f32 0.35355338, %v7794_v1 }
0x190a   :  { %v7777_v20 = vpop.f32.mrf.mxu2 }
0x190b   :  { %v8003_v3 = vsel %vm4438_vm4, %v13243_v61, -inf }
0x190c   :  { %v7815_v40 = vpop.f32.mrf.mxu0 }
0x190e   :  { %8007 = vmax.xlane.f32.xlu2 %v8006_v55 }
0x1910   :  { %v7796_v22 = vpop.f32.mrf.mxu3  ;;  %v13231_v9 = vpop.f32.mrf.mxu1 }
0x1912   :  { %v7851_v31 = vpop.f32.mrf.mxu2 }
0x1913   :  { %v13247_v33 = vmul.f32 0.35355338, %v7851_v31 }
0x1914   :  { %v7889_v48 = vpop.f32.mrf.mxu0 }
0x1915   :  { %v8012_v59 = vsel %vm4438_vm4, %v13247_v33, -inf  ;;  %v13255_v1 = vmul.f32 0.35355338, %v7889_v48 }
0x1917   :  { %v8018_v22 = vsel %vm4438_vm4, %v13255_v1, -inf }
0x1918   :  { %v7870_v30 = vpop.f32.mrf.mxu3 }
0x1919   :  { %v13257_v20 = vmul.f32 0.35355338, %v7870_v30 }
0x191a   :  { %v7853_v28 = vpop.f32.mrf.mxu2 }
0x191b   :  { %v8015_v55 = vsel %vm4438_vm4, %v13257_v20, -inf }
0x191c   :  { %v7891_v2 = vpop.f32.mrf.mxu0 }
0x191d   :  { %v7394_v47 = vpop.f32.mrf.mxu1 }
0x191e   :  { %v13235_v54 = vadd.f32 %v7394_v47, %v6216_v16 }
0x1920   :  { %v7872_v0 = vpop.f32.mrf.mxu3 }
0x1922   :  { %v7927_v50 = vpop.f32.mrf.mxu2 }
0x1923   :  { %v13263_v31 = vmul.f32 0.35355338, %v7927_v50 }
0x1924   :  { %v7965_v35 = vpop.f32.mrf.mxu0 }
0x1925   :  { %v13237_v4 = vpop.f32.mrf.mxu1  ;;  %v8024_v48 = vsel %vm4438_vm4, %v13263_v31, -inf }
0x1928   :  { %v7946_v6 = vpop.f32.mrf.mxu3 }
0x1929   :  { %v13271_v2 = vmul.f32 0.35355338, %v7946_v6 }
0x192a   :  { %v7929_v58 = vpop.f32.mrf.mxu2 }
0x192b   :  { %v8027_v0 = vsel %vm4438_vm4, %v13271_v2, -inf }
0x192c   :  { %v7967_v10 = vpop.f32.mrf.mxu0 }
0x192d   :  { %v7680_v42 = vpop.f32.mrf.mxu1 }
0x192e   :  { %v13239_v43 = vmul.f32 0.35355338, %v7680_v42 }
0x1930   :  { %v7948_v26 = vpop.f32.mrf.mxu3  ;;  %v7985_v41 = vsel %vm4438_vm4, %v13239_v43, -inf }
0x1931   :  { %7986 = vmax.xlane.f32.xlu0 %v7985_v41 }
0x1935   :  { %v7682_v19 = vpop.f32.mrf.mxu1 }
0x1939   :  { %8004 = vmax.xlane.f32.xlu0 %v8003_v3 }
0x193d   :  { %v7756_v24 = vpop.f32.mrf.mxu1 }
0x193e   :  { %v13249_v12 = vmul.f32 0.35355338, %v7756_v24 }
0x1940   :  { %v7997_v32 = vsel %vm4438_vm4, %v13249_v12, -inf }
0x1941   :  { %8013 = vmax.xlane.f32.xlu0 %v8012_v59  ;;  %7998 = vmax.xlane.f32.xlu1 %v7997_v32 }
0x1945   :  { %v7758_v40 = vpop.f32.mrf.mxu1 }
0x1949   :  { %8016 = vmax.xlane.f32.xlu1 %v8015_v55  ;;  %8019 = vmax.xlane.f32.xlu0 %v8018_v22 }
0x194d   :  { %v7832_v28 = vpop.f32.mrf.mxu1 }
0x194e   :  { %v13265_v16 = vmul.f32 0.35355338, %v7832_v28  ;;  %v13286_v28 = vmul.f32 0.35355338, %v7965_v35 }
0x1950   :  { %v8009_v30 = vsel %vm4438_vm4, %v13265_v16, -inf }
0x1951   :  { %8025 = vmax.xlane.f32.xlu1 %v8024_v48  ;;  %8010 = vmax.xlane.f32.xlu2 %v8009_v30 }
0x1955   :  { %v7834_v47 = vpop.f32.mrf.mxu1 }
0x1959   :  { %8028 = vmax.xlane.f32.xlu2 %v8027_v0 }
0x195d   :  { %v7908_v50 = vpop.f32.mrf.mxu1 }
0x195e   :  { %v13275_v58 = vmul.f32 0.35355338, %v7908_v50  ;;  %v8030_v50 = vsel %vm4438_vm4, %v13286_v28, -inf }
0x1960   :  { %v8021_v10 = vsel %vm4438_vm4, %v13275_v58, -inf }
0x1961   :  { %8022 = vmax.xlane.f32.xlu2 %v8021_v10 }
0x1965   :  { %v7910_v42 = vpop.f32.mrf.mxu1 }
0x1969   :  { %v7990_v26 = vpop.xlane.xlu1 %7989 }
0x196a   :  { %v8034_v41 = vsub.f32 %v13205_v60, %v7990_v26 }
0x196c   :  { %v8051_v19 = vmul.f32 1.442695, %v8034_v41 }
0x196e   :  { %10670 = vpow2.f32 %v8051_v19 }
0x196f   :  { %v7993_v6 = vpop.xlane.xlu2 %7992 }
0x1970   :  { %v8035_v3 = vsub.f32 %v13211_v5, %v7993_v6 }
0x1971   :  { %v7996_v24 = vpop.xlane.xlu1 %7995 }
0x1972   :  { %v8053_v59 = vmul.f32 1.442695, %v8035_v3  ;;  %v8036_v32 = vsub.f32 %v13209_v36, %v7996_v24 }
0x1974   :  { %v13282_v40 = vpop.eup %10670  ;;  %10672 = vpow2.f32 %v8053_v59  ;;  %v8055_v55 = vmul.f32 1.442695, %v8036_v32 }
0x1975   :  { %v8084_v22 = vsel %vm4438_vm4, %v13282_v40, 0.0 }
0x1976   :  { %10674 = vpow2.f32 %v8055_v55  ;;  %8085 = vadd.xlane.f32.xlu0 %v8084_v22 }
0x1979   :  { %v8002_v60 = vpop.xlane.xlu2 %8001 }
0x197a   :  { %v13288_v48 = vpop.eup %10672  ;;  %v8038_v5 = vsub.f32 %v13219_v25, %v8002_v60 }
0x197b   :  { %v8087_v30 = vsel %vm4438_vm4, %v13288_v48, 0.0 }
0x197c   :  { %v13293_v36 = vpop.eup %10674  ;;  %v8059_v47 = vmul.f32 1.442695, %v8038_v5  ;;  %8088 = vadd.xlane.f32.xlu1 %v8087_v30 }
0x197d   :  { %v8090_v0 = vsel %vm4438_vm4, %v13293_v36, 0.0 }
0x197e   :  { %10676 = vpow2.f32 %v8059_v47  ;;  %8091 = vadd.xlane.f32.xlu2 %v8090_v0  ;;  %8031 = vmax.xlane.f32.xlu0 %v8030_v50 }
0x1981   :  { %v8008_v35 = vpop.xlane.xlu2 %8007 }
0x1982   :  { %v8040_v10 = vsub.f32 %v13225_v21, %v8008_v35 }
0x1984   :  { %v13300_v25 = vpop.eup %10676  ;;  %v8063_v42 = vmul.f32 1.442695, %v8040_v10 }
0x1985   :  { %v8096_v26 = vsel %vm4438_vm4, %v13300_v25, 0.0 }
0x1986   :  { %10678 = vpow2.f32 %v8063_v42  ;;  %8097 = vadd.xlane.f32.xlu0 %v8096_v26 }
0x198c   :  { %v13304_v41 = vpop.eup %10678 }
0x198d   :  { %v8102_v19 = vsel %vm4438_vm4, %v13304_v41, 0.0 }
0x198e   :  { %8103 = vadd.xlane.f32.xlu0 %v8102_v19 }
0x19a4   :  { %v7987_v6 = vpop.xlane.xlu0 %7986 }
0x19a5   :  { %v8033_v3 = vsub.f32 %v13239_v43, %v7987_v6 }
0x19a7   :  { %v8049_v24 = vmul.f32 1.442695, %v8033_v3 }
0x19a9   :  { %10680 = vpow2.f32 %v8049_v24 }
0x19ac   :  { %v8005_v21 = vpop.xlane.xlu0 %8004 }
0x19ad   :  { %v8039_v59 = vsub.f32 %v13243_v61, %v8005_v21 }
0x19af   :  { %v13310_v32 = vpop.eup %10680  ;;  %v8061_v55 = vmul.f32 1.442695, %v8039_v59 }
0x19b0   :  { %v8081_v22 = vsel %vm4438_vm4, %v13310_v32, 0.0 }
0x19b1   :  { %10682 = vpow2.f32 %v8061_v55  ;;  %8082 = vadd.xlane.f32.xlu1 %v8081_v22 }
0x19b4   :  { %v8014_v60 = vpop.xlane.xlu0 %8013  ;;  %v7999_v5 = vpop.xlane.xlu1 %7998 }
0x19b5   :  { %v8042_v30 = vsub.f32 %v13247_v33, %v8014_v60  ;;  %v8037_v47 = vsub.f32 %v13249_v12, %v7999_v5 }
0x19b7   :  { %v13316_v43 = vpop.eup %10682  ;;  %v8067_v0 = vmul.f32 1.442695, %v8042_v30  ;;  %v8057_v50 = vmul.f32 1.442695, %v8037_v47 }
0x19b8   :  { %v8099_v61 = vsel %vm4438_vm4, %v13316_v43, 0.0 }
0x19b9   :  { %10684 = vpow2.f32 %v8067_v0  ;;  %8100 = vadd.xlane.f32.xlu1 %v8099_v61 }
0x19ba   :  { %10686 = vpow2.f32 %v8057_v50 }
0x19bc   :  { %v8017_v35 = vpop.xlane.xlu1 %8016  ;;  %v8020_v10 = vpop.xlane.xlu0 %8019 }
0x19bd   :  { %v8043_v42 = vsub.f32 %v13257_v20, %v8017_v35  ;;  %v8044_v26 = vsub.f32 %v13255_v1, %v8020_v10 }
0x19bf   :  { %v13322_v19 = vpop.eup %10684  ;;  %v8069_v33 = vmul.f32 1.442695, %v8043_v42  ;;  %v8071_v12 = vmul.f32 1.442695, %v8044_v26 }
0x19c0   :  { %v13324_v6 = vpop.eup %10686  ;;  %v8108_v3 = vsel %vm4438_vm4, %v13322_v19, 0.0 }
0x19c1   :  { %10688 = vpow2.f32 %v8069_v33  ;;  %8109 = vadd.xlane.f32.xlu1 %v8108_v3  ;;  %v8093_v24 = vsel %vm4438_vm4, %v13324_v6, 0.0 }
0x19c2   :  { %10690 = vpow2.f32 %v8071_v12  ;;  %8094 = vadd.xlane.f32.xlu2 %v8093_v24 }
0x19c4   :  { %v8026_v21 = vpop.xlane.xlu1 %8025  ;;  %v8011_v20 = vpop.xlane.xlu2 %8010 }
0x19c5   :  { %v8046_v1 = vsub.f32 %v13263_v31, %v8026_v21  ;;  %v8041_v59 = vsub.f32 %v13265_v16, %v8011_v20  ;;  %v7637_v20 = vrot.slane %v13188_v39, 4 }
0x19c7   :  { %v13332_v55 = vpop.eup %10688  ;;  %v8075_v22 = vmul.f32 1.442695, %v8046_v1  ;;  %v8065_v60 = vmul.f32 1.442695, %v8041_v59  ;;  %v7658_v59 = vpack.c.bf16 %v7637_v20, %v7637_v20 }
0x19c8   :  { %v13334_v5 = vpop.eup %10690  ;;  %v8111_v30 = vsel %vm4438_vm4, %v13332_v55, 0.0 }
0x19c9   :  { %10692 = vpow2.f32 %v8075_v22  ;;  %v8114_v47 = vsel %vm4438_vm4, %v13334_v5, 0.0 }
0x19ca   :  { %10694 = vpow2.f32 %v8065_v60  ;;  %8112 = vadd.xlane.f32.xlu2 %v8111_v30  ;;  %8115 = vadd.xlane.f32.xlu1 %v8114_v47 }
0x19cc   :  { %v8029_v0 = vpop.xlane.xlu2 %8028 }
0x19cd   :  { %v8047_v31 = vsub.f32 %v13271_v2, %v8029_v0 }
0x19cf   :  { %v13341_v16 = vpop.eup %10692  ;;  %v8077_v50 = vmul.f32 1.442695, %v8047_v31 }
0x19d0   :  { %v13343_v61 = vpop.eup %10694  ;;  %v8120_v35 = vsel %vm4438_vm4, %v13341_v16, 0.0 }
0x19d1   :  { %10696 = vpow2.f32 %v8077_v50  ;;  %v8105_v10 = vsel %vm4438_vm4, %v13343_v61, 0.0  ;;  %v7638_v50 = vrot.slane %v13195_v37, 4 }
0x19d2   :  { %8121 = vadd.xlane.f32.xlu2 %v8120_v35  ;;  %8106 = vadd.xlane.f32.xlu0 %v8105_v10  ;;  %v8352_v35 = vsel %vm4635_vm5, %v7658_v59, 0 }
0x19d4   :  { %v8023_v42 = vpop.xlane.xlu2 %8022 }
0x19d5   :  { %v8045_v26 = vsub.f32 %v13275_v58, %v8023_v42  ;;  %v7659_v42 = vpack.c.bf16 %v13195_v37, %v13195_v37 }
0x19d7   :  { %v13350_v33 = vpop.eup %10696  ;;  %v8073_v2 = vmul.f32 1.442695, %v8045_v26  ;;  %v8371_v20 = vsel %vm4635_vm5, %v7659_v42, 0 }
0x19d8   :  { %v8123_v12 = vsel %vm4438_vm4, %v13350_v33, 0.0 }
0x19d9   :  { %10698 = vpow2.f32 %v8073_v2  ;;  %v7660_v2 = vpack.c.bf16 %v7638_v50, %v7638_v50 }
0x19da   :  { %8124 = vadd.xlane.f32.xlu0 %v8123_v12 }
0x19db   :  { %v8390_v37 = vsel %vm4635_vm5, %v7660_v2, 0 }
0x19df   :  { %v13354_v3 = vpop.eup %10698 }
0x19e0   :  { %v8117_v24 = vsel %vm4438_vm4, %v13354_v3, 0.0 }
0x19e1   :  { %8118 = vadd.xlane.f32.xlu1 %v8117_v24 }
0x19e9   :  { %v8086_v21 = vpop.xlane.xlu0 %8085 }
0x19ea   :  { %10700 = vrcp.f32 %v8086_v21 }
0x19ef   :  { %v8089_v1 = vpop.xlane.xlu1 %8088 }
0x19f0   :  { %v10701_v58 = vpop.eup %10700  ;;  %10702 = vrcp.f32 %v8089_v1 }
0x19f1   :  { %v8146_v22 = vmul.f32 %v10701_v58, %v13282_v40  ;;  %v8092_v60 = vpop.xlane.xlu2 %8091  ;;  %v8032_v30 = vpop.xlane.xlu0 %8031  ;;  %v7639_v58 = vrot.slane %v13201_v7, 4 }
0x19f2   :  { %10704 = vrcp.f32 %v8092_v60  ;;  %v8048_v47 = vsub.f32 %v13286_v28, %v8032_v30 }
0x19f3   :  { %v8162_v0 = vpack.c.bf16 %v8146_v22, %v8146_v22  ;;  %v7662_v59 = vpack.c.bf16 %v7639_v58, %v7639_v58 }
0x19f4   :  { %v8079_v31 = vmul.f32 1.442695, %v8048_v47  ;;  %v7640_v47 = vrot.slane %v13203_v15, 4 }
0x19f5   :  { %10065 = vmatmul.msk.bf16.vlgmr.msra.gmra.mxu2 %vm4631_vm3, %v8162_v0  ;;  %v8428_v0 = vsel %vm4635_vm5, %v7662_v59, 0 }
0x19f6   :  { %v10703_v10 = vpop.eup %10702  ;;  %10706 = vpow2.f32 %v8079_v31  ;;  %8361 = vmatpush.bf16.msra.mxu2 %v8352_v35  ;;  %v7664_v50 = vpack.c.bf16 %v7640_v47, %v7640_v47 }
0x19f7   :  { %v8147_v40 = vmul.f32 %v10703_v10, %v13288_v48 }
0x19f8   :  { %v10705_v26 = vpop.eup %10704  ;;  %v8466_v42 = vsel %vm4635_vm5, %v7664_v50, 0 }
0x19f9   :  { %v8163_v12 = vpack.c.bf16 %v8147_v40, %v8147_v40  ;;  %v8148_v28 = vmul.f32 %v10705_v26, %v13293_v36  ;;  %v8098_v24 = vpop.xlane.xlu0 %8097  ;;  %v7657_v26 = vpack.c.bf16 %v13188_v39, %v13188_v39 }
0x19fa   :  { %10708 = vrcp.f32 %v8098_v24 }
0x19fb   :  { %v8164_v21 = vpack.c.bf16 %v8148_v28, %v8148_v28  ;;  %10066 = vmatmul.msk.bf16.vlgmr.msrb.gmra.mxu3 %vm4631_vm3, %v8163_v12 }
0x19fc   :  { %v13370_v1 = vpop.eup %10706  ;;  %8380 = vmatpush.bf16.msrb.mxu3 %v8371_v20 }
0x19fd   :  { %10067 = vmatmul.msk.bf16.vlgmr.msra.gmra.mxu0 %vm4631_vm3, %v8164_v21  ;;  %v8126_v48 = vsel %vm4438_vm4, %v13370_v1, 0.0  ;;  %v7663_v21 = vpack.c.bf16 %v13203_v15, %v13203_v15 }
0x19fe   :  { %8399 = vmatpush.bf16.msra.mxu0 %v8390_v37  ;;  %8127 = vadd.xlane.f32.xlu2 %v8126_v48 }
0x1a00   :  { %v10709_v36 = vpop.eup %10708 }
0x1a01   :  { %v8150_v22 = vmul.f32 %v10709_v36, %v13300_v25  ;;  %v8104_v60 = vpop.xlane.xlu0 %8103 }
0x1a02   :  { %10710 = vrcp.f32 %v8104_v60 }
0x1a03   :  { %v8166_v30 = vpack.c.bf16 %v8150_v22, %v8150_v22  ;;  %v7661_v22 = vpack.c.bf16 %v13201_v7, %v13201_v7 }
0x1a05   :  { %10069 = vmatmul.msk.bf16.vlgmr.msrb.gmra.mxu2 %vm4631_vm3, %v8166_v30 }
0x1a06   :  { %8437 = vmatpush.bf16.msrb.mxu2 %v8428_v0  ;;  %v8409_v0 = vsel %vm4635_vm5, %v7661_v22, 0 }
0x1a08   :  { %v10711_v31 = vpop.eup %10710 }
0x1a09   :  { %v8152_v35 = vmul.f32 %v10711_v31, %v13304_v41  ;;  %v8333_v41 = vsel %vm4635_vm5, %v7657_v26, 0 }
0x1a0b   :  { %v8168_v10 = vpack.c.bf16 %v8152_v35, %v8152_v35 }
0x1a0d   :  { %10071 = vmatmul.msk.bf16.vlgmr.msrb.gmra.mxu0 %vm4631_vm3, %v8168_v10 }
0x1a0e   :  { %8475 = vmatpush.bf16.msrb.mxu0 %v8466_v42 }
0x1a24   :  { %v8083_v25 = vpop.xlane.xlu1 %8082 }
0x1a25   :  { %10712 = vrcp.f32 %v8083_v25 }
0x1a2b   :  { %v10713_v40 = vpop.eup %10712 }
0x1a2c   :  { %v8145_v2 = vmul.f32 %v10713_v40, %v13310_v32  ;;  %v8101_v12 = vpop.xlane.xlu1 %8100  ;;  %v8447_v32 = vsel %vm4635_vm5, %v7663_v21, 0 }
0x1a2d   :  { %10714 = vrcp.f32 %v8101_v12 }
0x1a2e   :  { %v8161_v28 = vpack.c.bf16 %v8145_v2, %v8145_v2 }
0x1a30   :  { %10064 = vmatmul.msk.bf16.vlgmr.msra.gmra.mxu1 %vm4631_vm3, %v8161_v28 }
0x1a31   :  { %8342 = vmatpush.bf16.msra.mxu1 %v8333_v41 }
0x1a33   :  { %v10715_v24 = vpop.eup %10714 }
0x1a34   :  { %v8151_v20 = vmul.f32 %v10715_v24, %v13316_v43  ;;  %v8110_v58 = vpop.xlane.xlu1 %8109 }
0x1a35   :  { %10716 = vrcp.f32 %v8110_v58  ;;  %v8095_v37 = vpop.xlane.xlu2 %8094 }
0x1a36   :  { %v8167_v39 = vpack.c.bf16 %v8151_v20, %v8151_v20  ;;  %10718 = vrcp.f32 %v8095_v37 }
0x1a38   :  { %10070 = vmatmul.msk.bf16.vlgmr.msra.gmra.mxu3 %vm4631_vm3, %v8167_v39 }
0x1a39   :  { %8456 = vmatpush.bf16.msra.mxu3 %v8447_v32 }
0x1a3b   :  { %v10717_v48 = vpop.eup %10716 }
0x1a3c   :  { %v10719_v36 = vpop.eup %10718  ;;  %v8154_v59 = vmul.f32 %v10717_v48, %v13322_v19 }
0x1a3d   :  { %v8149_v15 = vmul.f32 %v10719_v36, %v13324_v6  ;;  %v8113_v43 = vpop.xlane.xlu2 %8112  ;;  %v8116_v60 = vpop.xlane.xlu1 %8115 }
0x1a3e   :  { %v8170_v30 = vpack.c.bf16 %v8154_v59, %v8154_v59  ;;  %10720 = vrcp.f32 %v8113_v43 }
0x1a3f   :  { %v8165_v47 = vpack.c.bf16 %v8149_v15, %v8149_v15  ;;  %10722 = vrcp.f32 %v8116_v60 }
0x1a40   :  { %10073 = vmatmul.msk.bf16.vlgmr.msra.gmra.mxu2 %vm4631_vm3, %v8170_v30 }
0x1a41   :  { %10068 = vmatmul.msk.bf16.vlgmr.msrb.gmra.mxu1 %vm4631_vm3, %v8165_v47  ;;  %v10080_v47 = vld [vmem:[%s13839_s3 + $0xc] sm:$0xf] }
0x1a42   :  { %8418 = vmatpush.bf16.msrb.mxu1 %v8409_v0 }
0x1a44   :  { %v10721_v31 = vpop.eup %10720 }
0x1a45   :  { %v10723_v19 = vpop.eup %10722  ;;  %v8155_v50 = vmul.f32 %v10721_v31, %v13332_v55  ;;  %v8122_v7 = vpop.xlane.xlu2 %8121 }
0x1a46   :  { %v8107_v35 = vpop.xlane.xlu0 %8106  ;;  %v8156_v6 = vmul.f32 %v10723_v19, %v13334_v5  ;;  %10724 = vrcp.f32 %v8122_v7 }
0x1a47   :  { %v8171_v10 = vpack.c.bf16 %v8155_v50, %v8155_v50  ;;  %10726 = vrcp.f32 %v8107_v35 }
0x1a48   :  { %v8172_v42 = vpack.c.bf16 %v8156_v6, %v8156_v6 }
0x1a49   :  { %10074 = vmatmul.msk.bf16.vlgmr.msrb.gmra.mxu3 %vm4631_vm3, %v8171_v10 }
0x1a4a   :  { %10075 = vmatmul.msk.bf16.vlgmr.msra.gmra.mxu0 %vm4631_vm3, %v8172_v42 }
0x1a4c   :  { %v10725_v25 = vpop.eup %10724 }
0x1a4d   :  { %v10727_v40 = vpop.eup %10726  ;;  %v8158_v26 = vmul.f32 %v10725_v25, %v13341_v16 }
0x1a4e   :  { %v8125_v2 = vpop.xlane.xlu0 %8124  ;;  %v8153_v12 = vmul.f32 %v10727_v40, %v13343_v61 }
0x1a4f   :  { %10728 = vrcp.f32 %v8125_v2  ;;  %v8174_v55 = vpack.c.bf16 %v8158_v26, %v8158_v26 }
0x1a50   :  { %v8169_v28 = vpack.c.bf16 %v8153_v12, %v8153_v12 }
0x1a51   :  { %10077 = vmatmul.msk.bf16.vlgmr.msrb.gmra.mxu2 %vm4631_vm3, %v8174_v55 }
0x1a52   :  { %10072 = vmatmul.msk.bf16.vlgmr.msra.gmra.mxu1 %vm4631_vm3, %v8169_v28 }
0x1a54   :  { %v8119_v41 = vpop.xlane.xlu1 %8118 }
0x1a55   :  { %v10729_v5 = vpop.eup %10728  ;;  %10730 = vrcp.f32 %v8119_v41 }
0x1a56   :  { %v8159_v24 = vmul.f32 %v10729_v5, %v13350_v33 }
0x1a58   :  { %v8175_v21 = vpack.c.bf16 %v8159_v24, %v8159_v24 }
0x1a5a   :  { %10078 = vmatmul.msk.bf16.vlgmr.msra.gmra.mxu3 %vm4631_vm3, %v8175_v21 }
0x1a5b   :  { %v10731_v20 = vpop.eup %10730 }
0x1a5c   :  { %v8157_v16 = vmul.f32 %v10731_v20, %v13354_v3 }
0x1a5e   :  { %v8173_v58 = vpack.c.bf16 %v8157_v16, %v8157_v16 }
0x1a62   :  { %10076 = vmatmul.msk.bf16.vlgmr.msrb.gmra.mxu1 %vm4631_vm3, %v8173_v58 }
0x1a71   :  { %v8128_v61 = vpop.xlane.xlu2 %8127 }
0x1a72   :  { %10732 = vrcp.f32 %v8128_v61 }
0x1a78   :  { %v10733_v37 = vpop.eup %10732  ;;  %v8211_v39 = vpop.f32.mrf.mxu2 }
0x1a79   :  { %v8160_v32 = vmul.f32 %v10733_v37, %v13370_v1  ;;  %8499 = vst [vmem:[#allocation1 + $0x1] ss:$2 sm:$0xff] %v8211_v39  ;;  %v8555_v1 = vsel %vm776_vm12, %v10080_v47, 0 }
0x1a7a   :  { %v8249_v48 = vpop.f32.mrf.mxu0  ;;  %8564 = vmatpush.bf16.msra.mxu1 %v8555_v1  ;;  %v6203_v1 = vadd.f32 %v12828_v46, %v12830_v44 }
0x1a7b   :  { %v8176_v33 = vpack.c.bf16 %v8160_v32, %v8160_v32  ;;  %8503 = vst [vmem:[#allocation1 + $0x11] ss:$2 sm:$0xff] %v8249_v48 }
0x1a7d   :  { %10079 = vmatmul.msk.bf16.vlgmr.msrb.gmra.mxu0 %vm4631_vm3, %v8176_v33 }
0x1a7e   :  { %v8230_v36 = vpop.f32.mrf.mxu3 }
0x1a7f   :  { %8501 = vst [vmem:[#allocation1 + $0x10] ss:$2 sm:$0xff] %v8230_v36 }
0x1a80   :  { %v8213_v59 = vpop.f32.mrf.mxu2 }
0x1a82   :  { %v8251_v3 = vpop.f32.mrf.mxu0 }
0x1a86   :  { %v8232_v22 = vpop.f32.mrf.mxu3  ;;  %v8513_v50 = vld.sshfl [vmem:[#allocation1 + $0x10] sm:$0xff pattern:$0x75316420] }
0x1a88   :  { %v8287_v15 = vpop.f32.mrf.mxu2 }
0x1a89   :  { %8507 = vst [vmem:[#allocation1 + $0x21] ss:$2 sm:$0xff] %v8287_v15 }
0x1a8a   :  { %v8325_v43 = vpop.f32.mrf.mxu0 }
0x1a8b   :  { %8511 = vst [vmem:[#allocation1 + $0x31] ss:$2 sm:$0xff] %v8325_v43 }
0x1a90   :  { %v8289_v60 = vpop.f32.mrf.mxu2 }
0x1a92   :  { %v8327_v30 = vpop.f32.mrf.mxu0 }
0x1a93   :  { %v10263_v30 = vld [vmem:[%s13840_s8] ss:$0 sm:$0xff] }
0x1aad   :  { %v8192_v0 = vpop.f32.mrf.mxu1 }
0x1aae   :  { %8497 = vst [vmem:[#allocation1] ss:$2 sm:$0xff] %v8192_v0 }
0x1ab5   :  { %v8194_v31 = vpop.f32.mrf.mxu1  ;;  %v8512_v19 = vld.sshfl [vmem:[#allocation1] sm:$0xff pattern:$0x75316420] }
0x1ab6   :  { %v8536_v7 = vpack.c.bf16 %v8513_v50, %v8512_v19  ;;  %v7400_v31 = vadd.f32 %v13184_v38, %v6203_v1  ;;  %v6208_v38 = vadd.f32 %v12836_v51, %v12877_v27 }
0x1ab8   :  { %10081 = vmatmul.msk.bf16.vlgmr.msra.gmra.mxu1 %vm516_vm8, %v8536_v7 }
0x1abb   :  { %v8306_v35 = vpop.f32.mrf.mxu3 }
0x1abc   :  { %8509 = vst [vmem:[#allocation1 + $0x30] ss:$2 sm:$0xff] %v8306_v35 }
0x1abe   :  { %v8268_v6 = vpop.f32.mrf.mxu1 }
0x1abf   :  { %8505 = vst [vmem:[#allocation1 + $0x20] ss:$2 sm:$0xff] %v8268_v6 }
0x1ac3   :  { %v8308_v10 = vpop.f32.mrf.mxu3  ;;  %v8363_v42 = vpop.f32.mrf.mxu2  ;;  %v8515_v26 = vld.sshfl [vmem:[#allocation1 + $0x30] sm:$0xff pattern:$0x75316420] }
0x1ac4   :  { %8517 = vst [vmem:[#allocation1 + $0x1] ss:$2 sm:$0xff] %v8363_v42  ;;  %v7402_v42 = vadd.f32 %v13217_v62, %v6208_v38  ;;  %v6213_v62 = vadd.f32 %v12842_v13, %v12899_v29 }
0x1ac6   :  { %v8270_v25 = vpop.f32.mrf.mxu1  ;;  %v8514_v40 = vld.sshfl [vmem:[#allocation1 + $0x20] sm:$0xff pattern:$0x75316420] }
0x1ac7   :  { %v8401_v2 = vpop.f32.mrf.mxu0  ;;  %v8537_v12 = vpack.c.bf16 %v8515_v26, %v8514_v40 }
0x1ac8   :  { %8519 = vst [vmem:[#allocation1 + $0x11] ss:$2 sm:$0xff] %v8401_v2 }
0x1ac9   :  { %10082 = vmatmul.msk.bf16.gmra.mxu1 %vm516_vm8, %v8537_v12 }
0x1acb   :  { %v8365_v55 = vpop.f32.mrf.mxu2 }
0x1acc   :  { %v8382_v28 = vpop.f32.mrf.mxu3  ;;  %v7404_v55 = vadd.f32 %v13231_v9, %v6213_v62 }
0x1acd   :  { %8518 = vst [vmem:[#allocation1 + $0x10] ss:$2 sm:$0xff] %v8382_v28 }
0x1acf   :  { %v8344_v5 = vpop.f32.mrf.mxu1  ;;  %v8403_v41 = vpop.f32.mrf.mxu0 }
0x1ad0   :  { %8516 = vst [vmem:[#allocation1] ss:$2 sm:$0xff] %v8344_v5 }
0x1ad4   :  { %v8384_v24 = vpop.f32.mrf.mxu3  ;;  %v8439_v21 = vpop.f32.mrf.mxu2  ;;  %v8525_v58 = vld.sshfl [vmem:[#allocation1 + $0x10] sm:$0xff pattern:$0x75316420] }
0x1ad5   :  { %8521 = vst [vmem:[#allocation1 + $0x21] ss:$2 sm:$0xff] %v8439_v21 }
0x1ad7   :  { %v8346_v20 = vpop.f32.mrf.mxu1  ;;  %v8524_v16 = vld.sshfl [vmem:[#allocation1] sm:$0xff pattern:$0x75316420] }
0x1ad8   :  { %v8538_v61 = vpack.c.bf16 %v8525_v58, %v8524_v16 }
0x1ada   :  { %10083 = vmatmul.msk.bf16.gmra.mxu1 %vm516_vm8, %v8538_v61 }
0x1adc   :  { %v8441_v37 = vpop.f32.mrf.mxu2 }
0x1add   :  { %v8458_v39 = vpop.f32.mrf.mxu3 }
0x1ade   :  { %8522 = vst [vmem:[#allocation1 + $0x30] ss:$2 sm:$0xff] %v8458_v39 }
0x1adf   :  { %v8420_v32 = vpop.f32.mrf.mxu1 }
0x1ae0   :  { %8520 = vst [vmem:[#allocation1 + $0x20] ss:$2 sm:$0xff] %v8420_v32 }
0x1ae5   :  { %v8460_v48 = vpop.f32.mrf.mxu3 }
0x1ae7   :  { %v8422_v33 = vpop.f32.mrf.mxu1  ;;  %v8526_v3 = vld.sshfl [vmem:[#allocation1 + $0x20] sm:$0xff pattern:$0x75316420] }
0x1afa   :  { %v8477_v36 = vpop.f32.mrf.mxu0 }
0x1afb   :  { %8523 = vst [vmem:[#allocation1 + $0x31] ss:$2 sm:$0xff] %v8477_v36 }
0x1b02   :  { %v8479_v59 = vpop.f32.mrf.mxu0  ;;  %v8527_v22 = vld.sshfl [vmem:[#allocation1 + $0x30] sm:$0xff pattern:$0x75316420] }
0x1b03   :  { %v8539_v15 = vpack.c.bf16 %v8527_v22, %v8526_v3 }
0x1b05   :  { %10084 = vmatmul.msk.bf16.gmra.mxu1 %vm516_vm8, %v8539_v15 }
0x1b35   :  { %v8566_v43 = vpop.f32.mrf.mxu1 }
0x1b36   :  { %v8586_v60 = vadd.f32 %v8566_v43, %v13180_v34 }
0x1b38   :  { %v8594_v47 = vadd.f32 %v8586_v60, %v12018_v23 }
0x1b3a   :  { %v13426_v0 = vadd.f32 %v10263_v30, %v8594_v47 }
0x1b3c   :  { %v8637_v19 = vsel %vm135_vm0, %v13426_v0, 0.0 }
0x1b3d   :  { %8638 = vadd.xlane.f32.xlu0 %v8637_v19  ;;  %v8568_v50 = vpop.f32.mrf.mxu1 }
0x1b3e   :  { %v8587_v7 = vadd.f32 %v8568_v50, %v7400_v31 }
0x1b40   :  { %v8595_v35 = vadd.f32 %v8587_v7, %v12020_v45 }
0x1b42   :  { %v13432_v6 = vadd.f32 %v10263_v30, %v8595_v35 }
0x1b44   :  { %v8640_v23 = vsel %vm135_vm0, %v13432_v6, 0.0 }
0x1b45   :  { %8641 = vadd.xlane.f32.xlu1 %v8640_v23 }
0x1b46   :  { %v8571_v34 = vpop.f32.mrf.mxu1 }
0x1b47   :  { %v8588_v46 = vadd.f32 %v8571_v34, %v13191_v49 }
0x1b49   :  { %v8596_v44 = vadd.f32 %v8588_v46, %v12026_v56 }
0x1b4b   :  { %v13440_v10 = vadd.f32 %v10263_v30, %v8596_v44 }
0x1b4d   :  { %v8643_v45 = vsel %vm135_vm0, %v13440_v10, 0.0 }
0x1b4e   :  { %8644 = vadd.xlane.f32.xlu2 %v8643_v45  ;;  %v8573_v25 = vpop.f32.mrf.mxu1 }
0x1b4f   :  { %v8589_v40 = vadd.f32 %v8573_v25, %v7402_v42 }
0x1b51   :  { %v8597_v26 = vadd.f32 %v8589_v40, %v12030_v11 }
0x1b53   :  { %v13446_v2 = vadd.f32 %v10263_v30, %v8597_v26 }
0x1b55   :  { %v8646_v56 = vsel %vm135_vm0, %v13446_v2, 0.0 }
0x1b56   :  { %8647 = vadd.xlane.f32.xlu0 %v8646_v56 }
0x1b57   :  { %v8576_v49 = vpop.f32.mrf.mxu1 }
0x1b58   :  { %v8590_v51 = vadd.f32 %v8576_v49, %v13227_v14 }
0x1b5a   :  { %v8598_v27 = vadd.f32 %v8590_v51, %v12034_v52 }
0x1b5c   :  { %v13454_v12 = vadd.f32 %v10263_v30, %v8598_v27  ;;  %v10196_v27 = vld [vmem:[%s13841_s14 + $0x8] sm:$0xff] }
0x1b5d   :  { %8872 = vmatpush.bf16.msra.mxu2 %v10196_v27 }
0x1b5e   :  { %v8649_v11 = vsel %vm135_vm0, %v13454_v12, 0.0 }
0x1b5f   :  { %8650 = vadd.xlane.f32.xlu1 %v8649_v11  ;;  %v8578_v28 = vpop.f32.mrf.mxu1 }
0x1b60   :  { %v8591_v5 = vadd.f32 %v8578_v28, %v7404_v55  ;;  %v10195_v55 = vld [vmem:[%s13841_s14] sm:$0xff] }
0x1b61   :  { %8873 = vmatpush.bf16.msra.mxu2 %v10195_v55 }
0x1b62   :  { %v8599_v41 = vadd.f32 %v8591_v5, %v12038_v63  ;;  %v6218_v63 = vadd.f32 %v12856_v57, %v12915_v17 }
0x1b64   :  { %v13460_v24 = vadd.f32 %v10263_v30, %v8599_v41  ;;  %v7406_v58 = vadd.f32 %v13237_v4, %v6218_v63 }
0x1b66   :  { %v8652_v52 = vsel %vm135_vm0, %v13460_v24, 0.0 }
0x1b67   :  { %8653 = vadd.xlane.f32.xlu2 %v8652_v52 }
0x1b82   :  { %v8581_v14 = vpop.f32.mrf.mxu1 }
0x1b83   :  { %v8592_v13 = vadd.f32 %v8581_v14, %v13235_v54 }
0x1b85   :  { %v8600_v29 = vadd.f32 %v8592_v13, %v12040_v53 }
0x1b87   :  { %v13466_v9 = vadd.f32 %v10263_v30, %v8600_v29 }
0x1b89   :  { %v8655_v21 = vsel %vm135_vm0, %v13466_v9, 0.0 }
0x1b8a   :  { %8656 = vadd.xlane.f32.xlu2 %v8655_v21  ;;  %v8583_v20 = vpop.f32.mrf.mxu1 }
0x1b8b   :  { %v8593_v37 = vadd.f32 %v8583_v20, %v7406_v58 }
0x1b8d   :  { %v8601_v39 = vadd.f32 %v8593_v37, %v12042_v8 }
0x1b8f   :  { %v13482_v17 = vadd.f32 %v10263_v30, %v8601_v39 }
0x1b91   :  { %v8658_v59 = vsel %vm135_vm0, %v13482_v17, 0.0 }
0x1bb0   :  { %v8639_v16 = vpop.xlane.xlu0 %8638 }
0x1bb1   :  { %v8661_v61 = vmul.f32 %v8639_v16, %v11016_v18 }
0x1bb3   :  { %v13475_v54 = vsub.f32 %v13426_v0, %v8661_v61 }
0x1bb5   :  { %v8677_v53 = vmul.f32 %v13475_v54, %v13475_v54 }
0x1bb7   :  { %v8685_v32 = vsel %vm135_vm0, %v8677_v53, 0.0 }
0x1bb8   :  { %v8642_v48 = vpop.xlane.xlu1 %8641  ;;  %8686 = vadd.xlane.f32.xlu0 %v8685_v32 }
0x1bb9   :  { %v8662_v57 = vmul.f32 %v8642_v48, %v11016_v18 }
0x1bbb   :  { %v13485_v4 = vsub.f32 %v13432_v6, %v8662_v57 }
0x1bbd   :  { %v8678_v33 = vmul.f32 %v13485_v4, %v13485_v4 }
0x1bbf   :  { %v8688_v36 = vsel %vm135_vm0, %v8678_v33, 0.0 }
0x1bc0   :  { %8689 = vadd.xlane.f32.xlu1 %v8688_v36  ;;  %8659 = vadd.xlane.f32.xlu0 %v8658_v59 }
0x1bc1   :  { %v8645_v8 = vpop.xlane.xlu2 %8644 }
0x1bc2   :  { %v8663_v3 = vmul.f32 %v8645_v8, %v11016_v18 }
0x1bc4   :  { %v13494_v22 = vsub.f32 %v13440_v10, %v8663_v3 }
0x1bc6   :  { %v8679_v15 = vmul.f32 %v13494_v22, %v13494_v22 }
0x1bc8   :  { %v8691_v43 = vsel %vm135_vm0, %v8679_v15, 0.0  ;;  %v13541_v15 = vld [vmem:[%s13842_s19] ss:$0 sm:$0xff] }
0x1bc9   :  { %v8648_v60 = vpop.xlane.xlu0 %8647  ;;  %8692 = vadd.xlane.f32.xlu1 %v8691_v43 }
0x1bca   :  { %v8664_v30 = vmul.f32 %v8648_v60, %v11016_v18 }
0x1bcc   :  { %v13501_v47 = vsub.f32 %v13446_v2, %v8664_v30 }
0x1bce   :  { %v8680_v1 = vmul.f32 %v13501_v47, %v13501_v47 }
0x1bd0   :  { %v8694_v31 = vsel %vm135_vm0, %v8680_v1, 0.0 }
0x1bd1   :  { %8695 = vadd.xlane.f32.xlu2 %v8694_v31 }
0x1bd2   :  { %v8651_v19 = vpop.xlane.xlu1 %8650 }
0x1bd3   :  { %v8665_v50 = vmul.f32 %v8651_v19, %v11016_v18 }
0x1bd5   :  { %v13508_v7 = vsub.f32 %v13454_v12, %v8665_v50  ;;  %v13545_v50 = vld [vmem:[%s13843_s24] ss:$0 sm:$0xff] }
0x1bd7   :  { %v8681_v35 = vmul.f32 %v13508_v7, %v13508_v7 }
0x1bd9   :  { %v8697_v23 = vsel %vm135_vm0, %v8681_v35, 0.0 }
0x1bda   :  { %v8654_v34 = vpop.xlane.xlu2 %8653  ;;  %8698 = vadd.xlane.f32.xlu0 %v8697_v23 }
0x1bdb   :  { %v8666_v46 = vmul.f32 %v8654_v34, %v11016_v18 }
0x1bdd   :  { %v13515_v44 = vsub.f32 %v13460_v24, %v8666_v46 }
0x1bdf   :  { %v8682_v38 = vmul.f32 %v13515_v44, %v13515_v44 }
0x1be1   :  { %v8700_v42 = vsel %vm135_vm0, %v8682_v38, 0.0 }
0x1be2   :  { %8701 = vadd.xlane.f32.xlu1 %v8700_v42 }
0x1bfd   :  { %v8657_v45 = vpop.xlane.xlu2 %8656 }
0x1bfe   :  { %v8667_v25 = vmul.f32 %v8657_v45, %v11016_v18 }
0x1c00   :  { %v13522_v40 = vsub.f32 %v13466_v9, %v8667_v25 }
0x1c02   :  { %v8683_v26 = vmul.f32 %v13522_v40, %v13522_v40 }
0x1c04   :  { %v8703_v56 = vsel %vm135_vm0, %v8683_v26, 0.0 }
0x1c05   :  { %8704 = vadd.xlane.f32.xlu2 %v8703_v56 }
0x1c2b   :  { %v8687_v49 = vpop.xlane.xlu0 %8686 }
0x1c2c   :  { %v8709_v51 = vmul.f32 %v8687_v49, %v11016_v18 }
0x1c2e   :  { %v8717_v62 = vadd.f32 1e-05, %v8709_v51 }
0x1c30   :  { %10734 = vrsqrt.f32 %v8717_v62  ;;  %vm8731_vm12 = vweird.f32 %v8717_v62 }
0x1c33   :  { %v8690_v11 = vpop.xlane.xlu1 %8689  ;;  %v8660_v28 = vpop.xlane.xlu0 %8659 }
0x1c34   :  { %v8710_v5 = vmul.f32 %v8690_v11, %v11016_v18  ;;  %v8668_v41 = vmul.f32 %v8660_v28, %v11016_v18 }
0x1c36   :  { %v10735_v52 = vpop.eup %10734  ;;  %v8718_v14 = vadd.f32 1e-05, %v8710_v5  ;;  %v13533_v13 = vsub.f32 %v13482_v17, %v8668_v41 }
0x1c37   :  { %v8726_v29 = vmul.f32 %v10735_v52, %v8717_v62  ;;  %vm8732_vm8 = vweird.f32 %v10735_v52 }
0x1c38   :  { %10736 = vrsqrt.f32 %v8718_v14  ;;  %v8684_v21 = vmul.f32 %v13533_v13, %v13533_v13  ;;  %vm8733_vm7 = vmor %vm8731_vm12, %vm8732_vm8  ;;  %vm8741_vm2 = vweird.f32 %v8718_v14 }
0x1c39   :  { %v8727_v63 = vmul.f32 %v10735_v52, %v8726_v29 }
0x1c3a   :  { %v8706_v20 = vsel %vm135_vm0, %v8684_v21, 0.0 }
0x1c3b   :  { %v8728_v16 = vmul.f32 0.5, %v8727_v63  ;;  %8707 = vadd.xlane.f32.xlu0 %v8706_v20 }
0x1c3c   :  { %v8693_v58 = vpop.xlane.xlu1 %8692 }
0x1c3d   :  { %v8729_v61 = vsub.f32 1.5, %v8728_v16  ;;  %v8711_v37 = vmul.f32 %v8693_v58, %v11016_v18 }
0x1c3e   :  { %v10737_v53 = vpop.eup %10736 }
0x1c3f   :  { %v8730_v39 = vmul.f32 %v10735_v52, %v8729_v61  ;;  %v8736_v32 = vmul.f32 %v10737_v53, %v8718_v14  ;;  %v8719_v48 = vadd.f32 1e-05, %v8711_v37  ;;  %vm8742_vm13 = vweird.f32 %v10737_v53 }
0x1c40   :  { %vm8743_vm6 = vmor %vm8741_vm2, %vm8742_vm13 }
0x1c41   :  { %v8737_v57 = vmul.f32 %v10737_v53, %v8736_v32  ;;  %10738 = vrsqrt.f32 %v8719_v48  ;;  %v8734_v33 = vsel %vm8733_vm7, %v10735_v52, %v8730_v39  ;;  %vm8751_vm9 = vweird.f32 %v8719_v48 }
0x1c42   :  { %v8805_v43 = vmul.f32 %v8734_v33, %v13475_v54 }
0x1c43   :  { %v8738_v36 = vmul.f32 0.5, %v8737_v57 }
0x1c44   :  { %v8696_v59 = vpop.xlane.xlu2 %8695  ;;  %v8816_v35 = vmul.f32 %v13541_v15, %v8805_v43 }
0x1c45   :  { %v8739_v8 = vsub.f32 1.5, %v8738_v36  ;;  %v8712_v3 = vmul.f32 %v8696_v59, %v11016_v18 }
0x1c46   :  { %v8827_v54 = vadd.f32 %v13545_v50, %v8816_v35 }
0x1c47   :  { %v10739_v60 = vpop.eup %10738  ;;  %v8740_v30 = vmul.f32 %v10737_v53, %v8739_v8  ;;  %v8720_v1 = vadd.f32 1e-05, %v8712_v3 }
0x1c48   :  { %v8746_v31 = vmul.f32 %v10739_v60, %v8719_v48  ;;  %vm8752_vm11 = vweird.f32 %v10739_v60 }
0x1c49   :  { %v8744_v19 = vsel %vm8743_vm6, %v10737_v53, %v8740_v30  ;;  %10740 = vrsqrt.f32 %v8720_v1  ;;  %vm8753_vm14 = vmor %vm8751_vm9, %vm8752_vm11  ;;  %vm8761_vm1 = vweird.f32 %v8720_v1 }
0x1c4a   :  { %v8806_v23 = vmul.f32 %v8744_v19, %v13485_v4  ;;  %v8747_v34 = vmul.f32 %v10739_v60, %v8746_v31 }
0x1c4c   :  { %v8817_v46 = vmul.f32 %v13541_v15, %v8806_v23  ;;  %v8748_v38 = vmul.f32 0.5, %v8747_v34 }
0x1c4d   :  { %v8699_v42 = vpop.xlane.xlu0 %8698 }
0x1c4e   :  { %v8828_v45 = vadd.f32 %v13545_v50, %v8817_v46  ;;  %v8749_v25 = vsub.f32 1.5, %v8748_v38  ;;  %v8713_v26 = vmul.f32 %v8699_v42, %v11016_v18 }
0x1c4f   :  { %v10741_v56 = vpop.eup %10740 }
0x1c50   :  { %v8835_v49 = vpack.c.bf16 %v8828_v45, %v8827_v54  ;;  %v8750_v51 = vmul.f32 %v10739_v60, %v8749_v25  ;;  %v8756_v27 = vmul.f32 %v10741_v56, %v8720_v1  ;;  %v8721_v62 = vadd.f32 1e-05, %v8713_v26 }
0x1c51   :  { %vm8762_vm15 = vweird.f32 %v10741_v56 }
0x1c52   :  { %v8757_v4 = vmul.f32 %v10741_v56, %v8756_v27  ;;  %10093 = vmatmul.msk.bf16.vlgmr.msra.gmra.mxu2 %vm135_vm0, %v8835_v49  ;;  %10742 = vrsqrt.f32 %v8721_v62  ;;  %v8754_v55 = vsel %vm8753_vm14, %v10739_v60, %v8750_v51  ;;  %vm8763_vm4 = vmor %vm8761_vm1, %vm8762_vm15  ;;  %vm8771_vm3 = vweird.f32 %v8721_v62 }
0x1c53   :  { %v8807_v52 = vmul.f32 %v8754_v55, %v13494_v22 }
0x1c54   :  { %v8758_v11 = vmul.f32 0.5, %v8757_v4 }
0x1c55   :  { %v8702_v28 = vpop.xlane.xlu1 %8701  ;;  %v8818_v58 = vmul.f32 %v13541_v15, %v8807_v52 }
0x1c56   :  { %v8759_v5 = vsub.f32 1.5, %v8758_v11  ;;  %v8714_v41 = vmul.f32 %v8702_v28, %v11016_v18 }
0x1c57   :  { %v8829_v39 = vadd.f32 %v13545_v50, %v8818_v58 }
0x1c58   :  { %v8760_v14 = vmul.f32 %v10741_v56, %v8759_v5  ;;  %v8722_v29 = vadd.f32 1e-05, %v8714_v41  ;;  %v10743_v21 = vpop.eup %10742 }
0x1c59   :  { %v8766_v20 = vmul.f32 %v10743_v21, %v8721_v62  ;;  %vm8772_vm5 = vweird.f32 %v10743_v21 }
0x1c5a   :  { %v8764_v63 = vsel %vm8763_vm4, %v10741_v56, %v8760_v14  ;;  %10744 = vrsqrt.f32 %v8722_v29  ;;  %vm8773_vm8 = vmor %vm8771_vm3, %vm8772_vm5  ;;  %vm8781_vm7 = vweird.f32 %v8722_v29 }
0x1c5b   :  { %v8808_v16 = vmul.f32 %v8764_v63, %v13501_v47  ;;  %v8767_v61 = vmul.f32 %v10743_v21, %v8766_v20 }
0x1c5d   :  { %v8819_v37 = vmul.f32 %v13541_v15, %v8808_v16  ;;  %v8768_v53 = vmul.f32 0.5, %v8767_v61  ;;  %v13579_v16 = vld [vmem:[%s10987_s13] ss:$0 sm:$0xff]  ;;  %s10846_s13 = smov [#allocation2]  }
0x1c5e   :  { %s9400_s30 = sshll.u32 %s10846_s13, 4  ;;  %s9401_s30 = int_to_ptr.vmem [resolvable:$true] %s9400_s30 }
0x1c5f   :  { %v8830_v22 = vadd.f32 %v13545_v50, %v8819_v37  ;;  %v8769_v48 = vsub.f32 1.5, %v8768_v53 }
0x1c60   :  { %v10745_v32 = vpop.eup %10744 }
0x1c61   :  { %v8776_v57 = vmul.f32 %v10745_v32, %v8722_v29  ;;  %v8836_v33 = vpack.c.bf16 %v8830_v22, %v8829_v39  ;;  %v8770_v36 = vmul.f32 %v10743_v21, %v8769_v48  ;;  %vm8782_vm12 = vweird.f32 %v10745_v32 }
0x1c62   :  { %vm8783_vm13 = vmor %vm8781_vm7, %vm8782_vm12 }
0x1c63   :  { %v8777_v59 = vmul.f32 %v10745_v32, %v8776_v57  ;;  %10094 = vmatmul.msk.bf16.gmra.mxu2 %vm135_vm0, %v8836_v33  ;;  %v8774_v47 = vsel %vm8773_vm8, %v10743_v21, %v8770_v36 }
0x1c64   :  { %v8809_v43 = vmul.f32 %v8774_v47, %v13508_v7 }
0x1c65   :  { %v8778_v8 = vmul.f32 0.5, %v8777_v59  ;;  %v10203_v59 = vld [vmem:[%s10992_s9 + $0x30] sm:$0xff] }
0x1c66   :  { %v8820_v31 = vmul.f32 %v13541_v15, %v8809_v43 }
0x1c67   :  { %v8779_v3 = vsub.f32 1.5, %v8778_v8 }
0x1c68   :  { %v8831_v35 = vadd.f32 %v13545_v50, %v8820_v31 }
0x1c69   :  { %v8780_v60 = vmul.f32 %v10745_v32, %v8779_v3 }
0x1c6b   :  { %v8784_v30 = vsel %vm8783_vm13, %v10745_v32, %v8780_v60  ;;  %v10204_v32 = vld [vmem:[%s10992_s9 + $0x38] sm:$0xff] }
0x1c6c   :  { %v8810_v1 = vmul.f32 %v8784_v30, %v13515_v44  ;;  %9278 = vmatpush.bf16.msrb.mxu3 %v10204_v32 }
0x1c6e   :  { %v8821_v19 = vmul.f32 %v13541_v15, %v8810_v1 }
0x1c70   :  { %v8832_v23 = vadd.f32 %v13545_v50, %v8821_v19  ;;  %9279 = vmatpush.bf16.msrb.mxu3 %v10203_v59  ;;  %v10202_v19 = vld [vmem:[%s10992_s9 + $0x28] sm:$0xff] }
0x1c72   :  { %v8837_v34 = vpack.c.bf16 %v8832_v23, %v8831_v35 }
0x1c74   :  { %10095 = vmatmul.msk.bf16.gmra.mxu2 %vm135_vm0, %v8837_v34  ;;  %9280 = vmatpush.bf16.msrb.mxu3 %v10202_v19 }
0x1c78   :  { %v8705_v46 = vpop.xlane.xlu2 %8704 }
0x1c79   :  { %v8715_v7 = vmul.f32 %v8705_v46, %v11016_v18 }
0x1c7b   :  { %v8723_v38 = vadd.f32 1e-05, %v8715_v7 }
0x1c7d   :  { %10746 = vrsqrt.f32 %v8723_v38  ;;  %vm8791_vm6 = vweird.f32 %v8723_v38 }
0x1c83   :  { %v10747_v42 = vpop.eup %10746 }
0x1c84   :  { %v8786_v54 = vmul.f32 %v10747_v42, %v8723_v38  ;;  %vm8792_vm2 = vweird.f32 %v10747_v42  ;;  %v10201_v38 = vld [vmem:[%s10992_s9 + $0x20] sm:$0xff] }
0x1c85   :  { %vm8793_vm11 = vmor %vm8791_vm6, %vm8792_vm2  ;;  %9281 = vmatpush.bf16.msrb.mxu3 %v10201_v38 }
0x1c86   :  { %v8787_v45 = vmul.f32 %v10747_v42, %v8786_v54 }
0x1c88   :  { %v8788_v56 = vmul.f32 0.5, %v8787_v45 }
0x1c8a   :  { %v8789_v49 = vsub.f32 1.5, %v8788_v56 }
0x1c8c   :  { %v8790_v27 = vmul.f32 %v10747_v42, %v8789_v49 }
0x1c8e   :  { %v8794_v55 = vsel %vm8793_vm11, %v10747_v42, %v8790_v27 }
0x1c8f   :  { %v8811_v5 = vmul.f32 %v8794_v55, %v13522_v40  ;;  %v10200_v55 = vld [vmem:[%s10992_s9 + $0x18] sm:$0xff] }
0x1c90   :  { %9282 = vmatpush.bf16.msrb.mxu3 %v10200_v55 }
0x1c91   :  { %v8822_v14 = vmul.f32 %v13541_v15, %v8811_v5 }
0x1c93   :  { %v8833_v21 = vadd.f32 %v13545_v50, %v8822_v14 }
0x1cae   :  { %v8708_v44 = vpop.xlane.xlu0 %8707 }
0x1caf   :  { %v8716_v25 = vmul.f32 %v8708_v44, %v11016_v18 }
0x1cb1   :  { %v8724_v26 = vadd.f32 1e-05, %v8716_v25 }
0x1cb3   :  { %10748 = vrsqrt.f32 %v8724_v26  ;;  %vm8801_vm14 = vweird.f32 %v8724_v26 }
0x1cb9   :  { %v10749_v51 = vpop.eup %10748 }
0x1cba   :  { %v8796_v62 = vmul.f32 %v10749_v51, %v8724_v26  ;;  %vm8802_vm9 = vweird.f32 %v10749_v51 }
0x1cbb   :  { %vm8803_vm15 = vmor %vm8801_vm14, %vm8802_vm9 }
0x1cbc   :  { %v8797_v4 = vmul.f32 %v10749_v51, %v8796_v62 }
0x1cbe   :  { %v8798_v11 = vmul.f32 0.5, %v8797_v4 }
0x1cc0   :  { %v8799_v28 = vsub.f32 1.5, %v8798_v11 }
0x1cc2   :  { %v8800_v41 = vmul.f32 %v10749_v51, %v8799_v28 }
0x1cc4   :  { %v8804_v18 = vsel %vm8803_vm15, %v10749_v51, %v8800_v41 }
0x1cc5   :  { %v8812_v52 = vmul.f32 %v8804_v18, %v13533_v13 }
0x1cc7   :  { %v8823_v29 = vmul.f32 %v13541_v15, %v8812_v52 }
0x1cc9   :  { %v8834_v63 = vadd.f32 %v13545_v50, %v8823_v29 }
0x1ccb   :  { %v8838_v20 = vpack.c.bf16 %v8834_v63, %v8833_v21  ;;  %v10199_v21 = vld [vmem:[%s10992_s9 + $0x10] sm:$0xff] }
0x1ccc   :  { %9283 = vmatpush.bf16.msrb.mxu3 %v10199_v21 }
0x1ccd   :  { %10096 = vmatmul.msk.bf16.gmra.mxu2 %vm135_vm0, %v8838_v20 }
0x1cd5   :  { %v8875_v40 = vpop.f32.mrf.mxu2 }
0x1cd6   :  { %v13582_v58 = vadd.f32 %v13579_v16, %v8875_v40 }
0x1cd8   :  { %v13585_v13 = vmul.f32 0.70710677, %v13582_v58 }
0x1cda   :  { %vm8911_vm1 = vcmp.ge.f32.partialorder %v13585_v13, 0.0  ;;  %v8919_v15 = vsub.f32 0.0, %v13585_v13 }
0x1cdc   :  { %v8927_v50 = vsel %vm8911_vm1, %v13585_v13, %v8919_v15 }
0x1cdd   :  { %v8935_v61 = vmul.f32 0.3275911, %v8927_v50  ;;  %v8877_v37 = vpop.f32.mrf.mxu2  ;;  %v9143_v45 = vsub.f32 0.0, %v8927_v50 }
0x1cde   :  { %v13593_v53 = vadd.f32 %v13579_v16, %v8877_v37 }
0x1cdf   :  { %v8943_v39 = vadd.f32 1.0, %v8935_v61  ;;  %v9151_v11 = vmul.f32 %v9143_v45, %v8927_v50 }
0x1ce0   :  { %v13596_v22 = vmul.f32 0.70710677, %v13593_v53 }
0x1ce1   :  { %10750 = vrcp.f32 %v8943_v39  ;;  %v8960_v1 = vand.u32 2147483647, %v8943_v39  ;;  %v8962_v31 = vand.u32 2147483648, %v8943_v39  ;;  %vm8956_vm8 = vweird.f32 %v8943_v39 }
0x1ce2   :  { %vm8912_vm4 = vcmp.ge.f32.partialorder %v13596_v22, 0.0  ;;  %v8920_v48 = vsub.f32 0.0, %v13596_v22  ;;  %v9159_v63 = vmul.f32 1.442695, %v9151_v11 }
0x1ce3   :  { %v8963_v54 = vor.u32 1.1754944e-38, %v8962_v31  ;;  %vm8961_vm7 = vcmp.eq.f32.partialorder %v8960_v1, 8.507059e+37 }
0x1ce4   :  { %v13604_v57 = vsel %vm8912_vm4, %v13596_v22, %v8920_v48 }
0x1ce5   :  { %v8936_v33 = vmul.f32 0.3275911, %v13604_v57  ;;  %v9144_v40 = vsub.f32 0.0, %v13604_v57 }
0x1ce6   :  { %v8880_v36 = vpop.f32.mrf.mxu2 }
0x1ce7   :  { %v10751_v47 = vpop.eup %10750  ;;  %v8944_v8 = vadd.f32 1.0, %v8936_v33  ;;  %v13609_v3 = vadd.f32 %v13579_v16, %v8880_v36 }
0x1ce8   :  { %v8952_v43 = vmul.f32 %v10751_v47, %v8943_v39  ;;  %vm8957_vm5 = vweird.f32 %v10751_v47 }
0x1ce9   :  { %10752 = vrcp.f32 %v8944_v8  ;;  %v13612_v30 = vmul.f32 0.70710677, %v13609_v3  ;;  %vm8958_vm12 = vmor %vm8956_vm8, %vm8957_vm5  ;;  %v8975_v28 = vand.u32 2147483647, %v8944_v8  ;;  %v8977_v5 = vand.u32 2147483648, %v8944_v8 }
0x1cea   :  { %v8953_v60 = vsub.f32 1.0, %v8952_v43  ;;  %vm8971_vm6 = vweird.f32 %v8944_v8  ;;  %v9152_v43 = vmul.f32 %v9144_v40, %v13604_v57 }
0x1ceb   :  { %vm8913_vm3 = vcmp.ge.f32.partialorder %v13612_v30, 0.0  ;;  %v8921_v23 = vsub.f32 0.0, %v13612_v30  ;;  %v8978_v20 = vor.u32 1.1754944e-38, %v8977_v5  ;;  %vm8976_vm9 = vcmp.eq.f32.partialorder %v8975_v28, 8.507059e+37 }
0x1cec   :  { %v8954_v35 = vmul.f32 %v10751_v47, %v8953_v60 }
0x1ced   :  { %v13620_v46 = vsel %vm8913_vm3, %v13612_v30, %v8921_v23 }
0x1cee   :  { %v8955_v34 = vadd.f32 %v10751_v47, %v8954_v35  ;;  %v8882_v7 = vpop.f32.mrf.mxu2  ;;  %v8937_v44 = vmul.f32 0.3275911, %v13620_v46  ;;  %v9145_v45 = vsub.f32 0.0, %v13620_v46 }
0x1cef   :  { %v10753_v42 = vpop.eup %10752  ;;  %v13625_v25 = vadd.f32 %v13579_v16, %v8882_v7 }
0x1cf0   :  { %v8959_v26 = vsel %vm8958_vm12, %v10751_v47, %v8955_v34  ;;  %v8967_v56 = vmul.f32 %v10753_v42, %v8944_v8  ;;  %v13629_v51 = vadd.f32 1.0, %v8937_v44  ;;  %vm8972_vm13 = vweird.f32 %v10753_v42  ;;  %v10198_v8 = vld [vmem:[%s10992_s9 + $0x8] sm:$0xff] }
0x1cf1   :  { %v13627_v49 = vsel %vm8961_vm7, %v8963_v54, %v8959_v26  ;;  %v13633_v4 = vmul.f32 0.70710677, %v13625_v25  ;;  %vm8973_vm11 = vmor %vm8971_vm6, %vm8972_vm13  ;;  %9284 = vmatpush.bf16.msrb.mxu3 %v10198_v8  ;;  %v9161_v54 = vmul.f32 1.442695, %v9152_v43  ;;  %v8898_v30 = vmul.f32 0.5, %v13625_v25 }
0x1cf2   :  { %v9071_v27 = vmul.f32 1.0614054, %v13627_v49  ;;  %v8968_v62 = vsub.f32 1.0, %v8967_v56  ;;  %10754 = vrcp.f32 %v13629_v51  ;;  %v8990_v23 = vand.u32 2147483647, %v13629_v51 }
0x1cf3   :  { %vm8914_vm2 = vcmp.ge.f32.partialorder %v13633_v4, 0.0  ;;  %v8922_v52 = vsub.f32 0.0, %v13633_v4  ;;  %10756 = vpow2.f32 %v9159_v63  ;;  %v8992_v34 = vand.u32 2147483648, %v13629_v51 }
0x1cf4   :  { %v9079_v41 = vadd.f32 -1.4531521, %v9071_v27  ;;  %v8969_v18 = vmul.f32 %v10753_v42, %v8968_v62  ;;  %vm8986_vm5 = vweird.f32 %v13629_v51  ;;  %vm8991_vm12 = vcmp.eq.f32.partialorder %v8990_v23, 8.507059e+37 }
0x1cf5   :  { %v13645_v15 = vsel %vm8914_vm2, %v13633_v4, %v8922_v52  ;;  %v8993_v55 = vor.u32 1.1754944e-38, %v8992_v34 }
0x1cf6   :  { %v9087_v14 = vmul.f32 %v9079_v41, %v13627_v49  ;;  %v8970_v29 = vadd.f32 %v10753_v42, %v8969_v18  ;;  %v8938_v39 = vmul.f32 0.3275911, %v13645_v15 }
0x1cf7   :  { %v8885_v50 = vpop.f32.mrf.mxu2 }
0x1cf8   :  { %v9095_v61 = vadd.f32 1.4214138, %v9087_v14  ;;  %v8974_v37 = vsel %vm8973_vm11, %v10753_v42, %v8970_v29  ;;  %v10755_v32 = vpop.eup %10754  ;;  %v13651_v33 = vadd.f32 %v13579_v16, %v8885_v50  ;;  %v13658_v60 = vadd.f32 1.0, %v8938_v39  ;;  %v10197_v42 = vld [vmem:[%s10992_s9] sm:$0xff]  ;;  %s13844_s9 = sld [smem:[#allocation6_spill]] }
0x1cf9   :  { %v13648_v48 = vsel %vm8976_vm9, %v8978_v20, %v8974_v37  ;;  %v8982_v47 = vmul.f32 %v10755_v32, %v13629_v51  ;;  %vm8987_vm14 = vweird.f32 %v10755_v32  ;;  %9285 = vmatpush.bf16.msrb.mxu3 %v10197_v42  ;;  %v10757_v5 = vpop.eup %10756  ;;  %v9146_v42 = vsub.f32 0.0, %v13645_v15 }
0x1cfa   :  { %v9103_v36 = vmul.f32 %v9095_v61, %v13627_v49  ;;  %v9072_v59 = vmul.f32 1.0614054, %v13648_v48  ;;  %v13661_v1 = vmul.f32 0.70710677, %v13651_v33  ;;  %10758 = vrcp.f32 %v13658_v60  ;;  %vm8988_vm8 = vmor %vm8986_vm5, %vm8987_vm14 }
0x1cfb   :  { %v8983_v35 = vsub.f32 1.0, %v8982_v47  ;;  %10760 = vpow2.f32 %v9161_v54  ;;  %v9007_v47 = vand.u32 2147483648, %v13658_v60  ;;  %vm9001_vm6 = vweird.f32 %v13658_v60 }
0x1cfc   :  { %v9111_v31 = vadd.f32 -0.28449672, %v9103_v36  ;;  %v9080_v19 = vadd.f32 -1.4531521, %v9072_v59  ;;  %vm8915_vm15 = vcmp.ge.f32.partialorder %v13661_v1, 0.0  ;;  %v8923_v44 = vsub.f32 0.0, %v13661_v1 }
0x1cfd   :  { %v8984_v38 = vmul.f32 %v10755_v32, %v8983_v35  ;;  %v9005_v59 = vand.u32 2147483647, %v13658_v60 }
0x1cfe   :  { %v9119_v7 = vmul.f32 %v9111_v31, %v13627_v49  ;;  %v9088_v57 = vmul.f32 %v9080_v19, %v13648_v48  ;;  %v13676_v11 = vsel %vm8915_vm15, %v13661_v1, %v8923_v44 }
0x1cff   :  { %v8887_v26 = vpop.f32.mrf.mxu2  ;;  %v8985_v62 = vadd.f32 %v10755_v32, %v8984_v38  ;;  %v8939_v51 = vmul.f32 0.3275911, %v13676_v11  ;;  %vm9006_vm9 = vcmp.eq.f32.partialorder %v9005_v59, 8.507059e+37  ;;  %v9008_v38 = vor.u32 1.1754944e-38, %v9007_v47 }
0x1d00   :  { %v9127_v56 = vadd.f32 0.2548296, %v9119_v7  ;;  %v9096_v27 = vadd.f32 1.4214138, %v9088_v57  ;;  %v13679_v28 = vadd.f32 %v13579_v16, %v8887_v26  ;;  %v10759_v14 = vpop.eup %10758 }
0x1d01   :  { %v8989_v52 = vsel %vm8988_vm8, %v10755_v32, %v8985_v62  ;;  %v8997_v50 = vmul.f32 %v10759_v14, %v13658_v60  ;;  %v13692_v61 = vadd.f32 1.0, %v8939_v51  ;;  %vm9002_vm7 = vweird.f32 %v10759_v14  ;;  %v10761_v57 = vpop.eup %10760 }
0x1d02   :  { %v9135_v41 = vmul.f32 %v9127_v56, %v13627_v49  ;;  %v9104_v18 = vmul.f32 %v9096_v27, %v13648_v48  ;;  %v13684_v29 = vsel %vm8991_vm12, %v8993_v55, %v8989_v52  ;;  %v13687_v21 = vmul.f32 0.70710677, %v13679_v28  ;;  %vm9003_vm11 = vmor %vm9001_vm6, %vm9002_vm7 }
0x1d03   :  { %v9073_v40 = vmul.f32 1.0614054, %v13684_v29  ;;  %v9153_v49 = vmul.f32 %v9145_v45, %v13620_v46  ;;  %v8998_v36 = vsub.f32 1.0, %v8997_v50  ;;  %10762 = vrcp.f32 %v13692_v61 }
0x1d04   :  { %v9175_v63 = vmul.f32 %v10757_v5, %v9135_v41  ;;  %v9112_v20 = vadd.f32 -0.28449672, %v9104_v18  ;;  %vm8916_vm13 = vcmp.ge.f32.partialorder %v13687_v21, 0.0  ;;  %v8924_v35 = vsub.f32 0.0, %v13687_v21 }
0x1d05   :  { %v9081_v32 = vadd.f32 -1.4531521, %v9073_v40  ;;  %v8999_v31 = vmul.f32 %v10759_v14, %v8998_v36  ;;  %v9163_v19 = vmul.f32 1.442695, %v9153_v49  ;;  %v9154_v18 = vmul.f32 %v9146_v42, %v13645_v15 }
0x1d06   :  { %v9183_v37 = vsub.f32 1.0, %v9175_v63  ;;  %v9120_v39 = vmul.f32 %v9112_v20, %v13648_v48  ;;  %v13708_v54 = vsel %vm8916_vm13, %v13687_v21, %v8924_v35  ;;  %v9020_v52 = vand.u32 2147483647, %v13692_v61 }
0x1d07   :  { %v9089_v43 = vmul.f32 %v9081_v32, %v13684_v29  ;;  %v9000_v7 = vadd.f32 %v10759_v14, %v8999_v31  ;;  %v8940_v26 = vmul.f32 0.3275911, %v13708_v54  ;;  %10764 = vpow2.f32 %v9163_v19 }
0x1d08   :  { %v9128_v8 = vadd.f32 0.2548296, %v9120_v39  ;;  %v9191_v46 = vsub.f32 0.0, %v9183_v37  ;;  %v9022_v50 = vand.u32 2147483648, %v13692_v61  ;;  %v8895_v32 = vmul.f32 0.5, %v13582_v58 }
0x1d09   :  { %v9097_v34 = vadd.f32 1.4214138, %v9089_v43  ;;  %v10763_v56 = vpop.eup %10762  ;;  %v13717_v51 = vadd.f32 1.0, %v8940_v26  ;;  %v8896_v36 = vmul.f32 0.5, %v13593_v53  ;;  %vm9016_vm14 = vweird.f32 %v13692_v61 }
0x1d0a   :  { %v9136_v23 = vmul.f32 %v9128_v8, %v13648_v48  ;;  %v9004_v48 = vsel %vm9003_vm11, %v10759_v14, %v9000_v7  ;;  %v9199_v60 = vsel %vm8911_vm1, %v9183_v37, %v9191_v46  ;;  %v9012_v41 = vmul.f32 %v10763_v56, %v13692_v61 }
0x1d0b   :  { %v9105_v44 = vmul.f32 %v9097_v34, %v13684_v29  ;;  %v9009_v27 = vsel %vm9006_vm9, %v9008_v38, %v9004_v48  ;;  %v9207_v13 = vadd.f32 1.0, %v9199_v60  ;;  %vm9017_vm1 = vweird.f32 %v10763_v56 }
0x1d0c   :  { %v9176_v45 = vmul.f32 %v10761_v57, %v9136_v23  ;;  %v9074_v5 = vmul.f32 1.0614054, %v9009_v27  ;;  %v9013_v40 = vsub.f32 1.0, %v9012_v41  ;;  %10766 = vrcp.f32 %v13717_v51 }
0x1d0d   :  { %v9113_v55 = vadd.f32 -0.28449672, %v9105_v44  ;;  %v10765_v31 = vpop.eup %10764  ;;  %v9215_v46 = vmul.f32 %v9207_v13, %v8895_v32  ;;  %v9165_v35 = vmul.f32 1.442695, %v9154_v18  ;;  %v9023_v22 = vor.u32 1.1754944e-38, %v9022_v50 }
0x1d0e   :  { %v9184_v62 = vsub.f32 1.0, %v9176_v45  ;;  %v9082_v20 = vadd.f32 -1.4531521, %v9074_v5  ;;  %v9014_v39 = vmul.f32 %v10763_v56, %v9013_v40  ;;  %vm9021_vm5 = vcmp.eq.f32.partialorder %v9020_v52, 8.507059e+37 }
0x1d0f   :  { %v9121_v63 = vmul.f32 %v9113_v55, %v13684_v29  ;;  %10768 = vpow2.f32 %v9165_v35  ;;  %vm9031_vm12 = vweird.f32 %v13717_v51  ;;  %v8897_v35 = vmul.f32 0.5, %v13609_v3 }
0x1d10   :  { %v9192_v14 = vsub.f32 0.0, %v9184_v62  ;;  %v9090_v15 = vmul.f32 %v9082_v20, %v9009_v27  ;;  %v9015_v43 = vadd.f32 %v10763_v56, %v9014_v39 }
0x1d11   :  { %v9129_v37 = vadd.f32 0.2548296, %v9121_v63 }
0x1d12   :  { %v9200_v49 = vsel %vm8912_vm4, %v9184_v62, %v9192_v14  ;;  %v9098_v8 = vadd.f32 1.4214138, %v9090_v15  ;;  %vm9018_vm4 = vmor %vm9016_vm14, %vm9017_vm1  ;;  %v10767_v58 = vpop.eup %10766  ;;  %v9037_v62 = vand.u32 2147483648, %v13717_v51  ;;  %v9148_v15 = vsub.f32 0.0, %v13708_v54 }
0x1d13   :  { %v9208_v59 = vadd.f32 1.0, %v9200_v49  ;;  %v9137_v47 = vmul.f32 %v9129_v37, %v13684_v29  ;;  %v9019_v7 = vsel %vm9018_vm4, %v10763_v56, %v9015_v43  ;;  %v9147_v29 = vsub.f32 0.0, %v13676_v11 }
0x1d14   :  { %v9106_v34 = vmul.f32 %v9098_v8, %v9009_v27  ;;  %v9024_v57 = vsel %vm9021_vm5, %v9023_v22, %v9019_v7  ;;  %v9027_v61 = vmul.f32 %v10767_v58, %v13717_v51  ;;  %v9035_v56 = vand.u32 2147483647, %v13717_v51 }
0x1d15   :  { %v9216_v19 = vmul.f32 %v9208_v59, %v8896_v36  ;;  %v9177_v23 = vmul.f32 %v10765_v31, %v9137_v47  ;;  %v9075_v42 = vmul.f32 1.0614054, %v9024_v57  ;;  %v9155_v60 = vmul.f32 %v9147_v29, %v13676_v11  ;;  %v10769_v20 = vpop.eup %10768 }
0x1d16   :  { %v9114_v38 = vadd.f32 -0.28449672, %v9106_v34  ;;  %v9028_v26 = vsub.f32 1.0, %v9027_v61  ;;  %vm9032_vm8 = vweird.f32 %v10767_v58  ;;  %v9038_v13 = vor.u32 1.1754944e-38, %v9037_v62 }
0x1d17   :  { %v9223_v53 = vpack.c.bf16 %v9216_v19, %v9215_v46  ;;  %v9185_v45 = vsub.f32 1.0, %v9177_v23  ;;  %v9083_v48 = vadd.f32 -1.4531521, %v9075_v42  ;;  %v9167_v40 = vmul.f32 1.442695, %v9155_v60  ;;  %vm9033_vm7 = vmor %vm9031_vm12, %vm9032_vm8 }
0x1d18   :  { %v9122_v44 = vmul.f32 %v9114_v38, %v9009_v27  ;;  %v9029_v41 = vmul.f32 %v10767_v58, %v9028_v26  ;;  %vm9036_vm6 = vcmp.eq.f32.partialorder %v9035_v56, 8.507059e+37  ;;  %v9156_v43 = vmul.f32 %v9148_v15, %v13708_v54 }
0x1d19   :  { %9286 = vmatmul.bf16.vlgmr.msrb.gmra.mxu3 %v9223_v53  ;;  %v9091_v5 = vmul.f32 %v9083_v48, %v9024_v57  ;;  %v9193_v18 = vsub.f32 0.0, %v9185_v45  ;;  %10770 = vpow2.f32 %v9167_v40 }
0x1d1a   :  { %v9130_v55 = vadd.f32 0.2548296, %v9122_v44  ;;  %v9030_v63 = vadd.f32 %v10767_v58, %v9029_v41  ;;  %v9169_v29 = vmul.f32 1.442695, %v9156_v43  ;;  %v8900_v41 = vmul.f32 0.5, %v13679_v28 }
0x1d1b   :  { %v9099_v14 = vadd.f32 1.4214138, %v9091_v5  ;;  %v9201_v39 = vsel %vm8913_vm3, %v9185_v45, %v9193_v18  ;;  %v8899_v5 = vmul.f32 0.5, %v13651_v33 }
0x1d1c   :  { %v9138_v52 = vmul.f32 %v9130_v55, %v9009_v27  ;;  %v9034_v49 = vsel %vm9033_vm7, %v10767_v58, %v9030_v63  ;;  %v9209_v8 = vadd.f32 1.0, %v9201_v39  ;;  %10772 = vpow2.f32 %v9169_v29 }
0x1d1d   :  { %v9107_v11 = vmul.f32 %v9099_v14, %v9024_v57  ;;  %v9039_v37 = vsel %vm9036_vm6, %v9038_v13, %v9034_v49 }
0x1d1e   :  { %v9178_v50 = vmul.f32 %v10769_v20, %v9138_v52  ;;  %v9076_v36 = vmul.f32 1.0614054, %v9039_v37  ;;  %v9217_v58 = vmul.f32 %v9209_v8, %v8897_v35 }
0x1d1f   :  { %v9115_v51 = vadd.f32 -0.28449672, %v9107_v11  ;;  %v10771_v7 = vpop.eup %10770 }
0x1d20   :  { %v9186_v32 = vsub.f32 1.0, %v9178_v50  ;;  %v9084_v47 = vadd.f32 -1.4531521, %v9076_v36 }
0x1d21   :  { %v9123_v59 = vmul.f32 %v9115_v51, %v9024_v57 }
0x1d22   :  { %v9194_v27 = vsub.f32 0.0, %v9186_v32  ;;  %v9092_v19 = vmul.f32 %v9084_v47, %v9039_v37  ;;  %v10773_v26 = vpop.eup %10772 }
0x1d23   :  { %v9131_v46 = vadd.f32 0.2548296, %v9123_v59 }
0x1d24   :  { %v9202_v31 = vsel %vm8914_vm2, %v9186_v32, %v9194_v27  ;;  %v9100_v34 = vadd.f32 1.4214138, %v9092_v19 }
0x1d25   :  { %v9210_v22 = vadd.f32 1.0, %v9202_v31  ;;  %v9139_v23 = vmul.f32 %v9131_v46, %v9024_v57 }
0x1d26   :  { %v9108_v42 = vmul.f32 %v9100_v34, %v9039_v37 }
0x1d27   :  { %v9218_v53 = vmul.f32 %v9210_v22, %v8898_v30  ;;  %v9179_v38 = vmul.f32 %v10771_v7, %v9139_v23 }
0x1d28   :  { %v9116_v54 = vadd.f32 -0.28449672, %v9108_v42 }
0x1d29   :  { %v9224_v61 = vpack.c.bf16 %v9218_v53, %v9217_v58  ;;  %v9187_v4 = vsub.f32 1.0, %v9179_v38 }
0x1d2a   :  { %v9124_v45 = vmul.f32 %v9116_v54, %v9039_v37 }
0x1d2b   :  { %9291 = vmatmul.bf16.gmra.mxu3 %v9224_v61  ;;  %v9195_v48 = vsub.f32 0.0, %v9187_v4 }
0x1d2c   :  { %v9132_v44 = vadd.f32 0.2548296, %v9124_v45 }
0x1d2d   :  { %v9203_v57 = vsel %vm8915_vm15, %v9187_v4, %v9195_v48 }
0x1d2e   :  { %v9140_v3 = vmul.f32 %v9132_v44, %v9039_v37  ;;  %v9211_v62 = vadd.f32 1.0, %v9203_v57 }
0x1d30   :  { %v9180_v25 = vmul.f32 %v10773_v26, %v9140_v3  ;;  %v9219_v52 = vmul.f32 %v9211_v62, %v8899_v5 }
0x1d32   :  { %v9188_v60 = vsub.f32 1.0, %v9180_v25 }
0x1d34   :  { %v9196_v56 = vsub.f32 0.0, %v9188_v60 }
0x1d36   :  { %v9204_v55 = vsel %vm8916_vm13, %v9188_v60, %v9196_v56 }
0x1d37   :  { %v9212_v18 = vadd.f32 1.0, %v9204_v55 }
0x1d39   :  { %v9220_v14 = vmul.f32 %v9212_v18, %v8900_v41 }
0x1d3b   :  { %v9225_v63 = vpack.c.bf16 %v9220_v14, %v9219_v52 }
0x1d3d   :  { %9296 = vmatmul.bf16.gmra.mxu3 %v9225_v63 }
0x1d50   :  { %v8890_v20 = vpop.f32.mrf.mxu2 }
0x1d51   :  { %v13750_v40 = vadd.f32 %v13579_v16, %v8890_v20 }
0x1d53   :  { %v13753_v1 = vmul.f32 0.70710677, %v13750_v40 }
0x1d55   :  { %vm8917_vm3 = vcmp.ge.f32.partialorder %v13753_v1, 0.0  ;;  %v8925_v21 = vsub.f32 0.0, %v13753_v1 }
0x1d57   :  { %v8933_v33 = vsel %vm8917_vm3, %v13753_v1, %v8925_v21 }
0x1d58   :  { %v8941_v28 = vmul.f32 0.3275911, %v8933_v33  ;;  %v8892_v13 = vpop.f32.mrf.mxu2  ;;  %v9149_v30 = vsub.f32 0.0, %v8933_v33 }
0x1d59   :  { %v13761_v50 = vadd.f32 %v13579_v16, %v8892_v13 }
0x1d5a   :  { %v8949_v11 = vadd.f32 1.0, %v8941_v28  ;;  %v9157_v29 = vmul.f32 %v9149_v30, %v8933_v33 }
0x1d5b   :  { %v13764_v49 = vmul.f32 0.70710677, %v13761_v50 }
0x1d5c   :  { %10774 = vrcp.f32 %v8949_v11  ;;  %v9052_v27 = vand.u32 2147483648, %v8949_v11  ;;  %v9050_v47 = vand.u32 2147483647, %v8949_v11  ;;  %vm9046_vm13 = vweird.f32 %v8949_v11 }
0x1d5d   :  { %vm8918_vm2 = vcmp.ge.f32.partialorder %v13764_v49, 0.0  ;;  %v8926_v37 = vsub.f32 0.0, %v13764_v49  ;;  %v9171_v45 = vmul.f32 1.442695, %v9157_v29 }
0x1d5e   :  { %v9053_v31 = vor.u32 1.1754944e-38, %v9052_v27  ;;  %vm9051_vm9 = vcmp.eq.f32.partialorder %v9050_v47, 8.507059e+37  ;;  %v8901_v27 = vmul.f32 0.5, %v13750_v40 }
0x1d5f   :  { %v8934_v15 = vsel %vm8918_vm2, %v13764_v49, %v8926_v37 }
0x1d60   :  { %v8942_v39 = vmul.f32 0.3275911, %v8934_v15  ;;  %v9150_v48 = vsub.f32 0.0, %v8934_v15 }
0x1d62   :  { %v10775_v32 = vpop.eup %10774  ;;  %v8950_v51 = vadd.f32 1.0, %v8942_v39  ;;  %v9158_v60 = vmul.f32 %v9150_v48, %v8934_v15  ;;  %v9318_v48 = vld [vmem:[%s13844_s9 + $0x18] sm:$0xff] }
0x1d63   :  { %v9042_v36 = vmul.f32 %v10775_v32, %v8949_v11  ;;  %vm9047_vm15 = vweird.f32 %v10775_v32 }
0x1d64   :  { %10776 = vrcp.f32 %v8950_v51  ;;  %vm9048_vm11 = vmor %vm9046_vm13, %vm9047_vm15  ;;  %v9067_v34 = vand.u32 2147483648, %v8950_v51  ;;  %v9065_v53 = vand.u32 2147483647, %v8950_v51  ;;  %vm9061_vm14 = vweird.f32 %v8950_v51 }
0x1d65   :  { %v9043_v16 = vsub.f32 1.0, %v9042_v36  ;;  %10778 = vpow2.f32 %v9171_v45  ;;  %v9173_v41 = vmul.f32 1.442695, %v9158_v60 }
0x1d66   :  { %v9068_v61 = vor.u32 1.1754944e-38, %v9067_v34  ;;  %vm9066_vm5 = vcmp.eq.f32.partialorder %v9065_v53, 8.507059e+37  ;;  %v10267_v34 = vld [vmem:[%s10997_s27] ss:$0 sm:$0xff]  ;;  %s10806_s27 = scalar_lea.hbm %s11002_s4, 64 }
0x1d67   :  { %v9044_v59 = vmul.f32 %v10775_v32, %v9043_v16  ;;  %10780 = vpow2.f32 %v9173_v41  ;;  %p10808_p2 = scmp.lt.s32.totalorder %s10806_s27, %s10804_s20 }
0x1d69   :  { %v9045_v8 = vadd.f32 %v10775_v32, %v9044_v59  ;;  %v8902_v59 = vmul.f32 0.5, %v13761_v50  ;;  %p10809_p3 = por %p10808_p2, %p10807_p1 }
0x1d6a   :  { %v10777_v43 = vpop.eup %10776 }
0x1d6b   :  { %v9049_v46 = vsel %vm9048_vm11, %v10775_v32, %v9045_v8  ;;  %v9057_v19 = vmul.f32 %v10777_v43, %v8950_v51  ;;  %vm9062_vm1 = vweird.f32 %v10777_v43  ;;  %v10779_v14 = vpop.eup %10778  ;;  %p10810_p4 = pnand %p10809_p3, %p10805_p0 }
0x1d6c   :  { %v9054_v35 = vsel %vm9051_vm9, %v9053_v31, %v9049_v46  ;;  %vm9063_vm4 = vmor %vm9061_vm14, %vm9062_vm1 }
0x1d6d   :  { %v9077_v22 = vmul.f32 1.0614054, %v9054_v35  ;;  %v9058_v23 = vsub.f32 1.0, %v9057_v19  ;;  %v10781_v37 = vpop.eup %10780 }
0x1d6f   :  { %v9085_v7 = vadd.f32 -1.4531521, %v9077_v22  ;;  %v9059_v58 = vmul.f32 %v10777_v43, %v9058_v23 }
0x1d71   :  { %v9093_v38 = vmul.f32 %v9085_v7, %v9054_v35  ;;  %v9060_v42 = vadd.f32 %v10777_v43, %v9059_v58 }
0x1d73   :  { %v9101_v54 = vadd.f32 1.4214138, %v9093_v38  ;;  %v9064_v4 = vsel %vm9063_vm4, %v10777_v43, %v9060_v42 }
0x1d74   :  { %v9069_v44 = vsel %vm9066_vm5, %v9068_v61, %v9064_v4 }
0x1d75   :  { %v9109_v3 = vmul.f32 %v9101_v54, %v9054_v35  ;;  %v9078_v26 = vmul.f32 1.0614054, %v9069_v44 }
0x1d77   :  { %v9117_v25 = vadd.f32 -0.28449672, %v9109_v3  ;;  %v9086_v57 = vadd.f32 -1.4531521, %v9078_v26  ;;  %v9320_v3 = vld [vmem:[%s13844_s9 + $0x28] sm:$0xff]  ;;  %v9321_v26 = vld [vmem:[%s13844_s9 + $0x30] sm:$0xff] }
0x1d79   :  { %v9125_v56 = vmul.f32 %v9117_v25, %v9054_v35  ;;  %v9094_v62 = vmul.f32 %v9086_v57, %v9069_v44 }
0x1d7b   :  { %v9133_v55 = vadd.f32 0.2548296, %v9125_v56  ;;  %v9102_v5 = vadd.f32 1.4214138, %v9094_v62 }
0x1d7d   :  { %v9141_v18 = vmul.f32 %v9133_v55, %v9054_v35  ;;  %v9110_v52 = vmul.f32 %v9102_v5, %v9069_v44 }
0x1d7f   :  { %v9181_v63 = vmul.f32 %v10779_v14, %v9141_v18  ;;  %v9118_v20 = vadd.f32 -0.28449672, %v9110_v52 }
0x1d81   :  { %v9189_v21 = vsub.f32 1.0, %v9181_v63  ;;  %v9126_v33 = vmul.f32 %v9118_v20, %v9069_v44 }
0x1d83   :  { %v9134_v28 = vadd.f32 0.2548296, %v9126_v33  ;;  %v9197_v13 = vsub.f32 0.0, %v9189_v21 }
0x1d85   :  { %v9142_v11 = vmul.f32 %v9134_v28, %v9069_v44  ;;  %v9205_v15 = vsel %vm8917_vm3, %v9189_v21, %v9197_v13  ;;  %v9317_v44 = vld [vmem:[%s13844_s9 + $0x10] sm:$0xff] }
0x1d86   :  { %v9213_v36 = vadd.f32 1.0, %v9205_v15 }
0x1d87   :  { %v9182_v39 = vmul.f32 %v10781_v37, %v9142_v11 }
0x1d88   :  { %v9221_v8 = vmul.f32 %v9213_v36, %v8901_v27 }
0x1d89   :  { %v9190_v32 = vsub.f32 1.0, %v9182_v39 }
0x1d8b   :  { %v9198_v51 = vsub.f32 0.0, %v9190_v32 }
0x1d8d   :  { %v9206_v16 = vsel %vm8918_vm2, %v9190_v32, %v9198_v51 }
0x1d8e   :  { %v9214_v47 = vadd.f32 1.0, %v9206_v16 }
0x1d90   :  { %v9222_v43 = vmul.f32 %v9214_v47, %v8902_v59 }
0x1d92   :  { %v9226_v31 = vpack.c.bf16 %v9222_v43, %v9221_v8 }
0x1d94   :  { %9301 = vmatmul.bf16.gmra.mxu3 %v9226_v31 }
0x1d9c   :  { %v9287_v46 = vpop.f32.mrf.mxu3 }
0x1da4   :  { %v9289_v19 = vpop.f32.mrf.mxu3 }
0x1da5   :  { %v9290_v4 = vadd.f32 %v10267_v34, %v9289_v19 }
0x1dae   :  { %v9292_v1 = vpop.f32.mrf.mxu3 }
0x1daf   :  { %v9293_v61 = vadd.f32 %v10267_v34, %v9292_v1 }
0x1db6   :  { %v9294_v35 = vpop.f32.mrf.mxu3 }
0x1db7   :  { %v9295_v38 = vadd.f32 %v10267_v34, %v9294_v35 }
0x1db9   :  { %v9310_v45 = vadd.f32 %v9295_v38, %v13446_v2  ;;  %v9315_v2 = vld [vmem:[%s13844_s9] sm:$0xff] }
0x1dc0   :  { %v9297_v30 = vpop.f32.mrf.mxu3 }
0x1dc1   :  { %v9298_v50 = vadd.f32 %v10267_v34, %v9297_v30 }
0x1dc3   :  { %v9311_v54 = vadd.f32 %v9298_v50, %v13454_v12 }
0x1dc8   :  { %v9299_v22 = vpop.f32.mrf.mxu3 }
0x1dc9   :  { %v9300_v53 = vadd.f32 %v10267_v34, %v9299_v22 }
0x1dcb   :  { %v9312_v42 = vadd.f32 %v9300_v53, %v13460_v24  ;;  %v9308_v24 = vadd.f32 %v9290_v4, %v13432_v6  ;;  %v9322_v6 = vld [vmem:[%s13844_s9 + $0x38] sm:$0xff] }
0x1e17   :  { %v9302_v23 = vpop.f32.mrf.mxu3 }
0x1e18   :  { %v9303_v7 = vadd.f32 %v10267_v34, %v9302_v23 }
0x1e1a   :  { %v9313_v29 = vadd.f32 %v9303_v7, %v13466_v9  ;;  %v9288_v9 = vadd.f32 %v10267_v34, %v9287_v46 }
0x1e1c   :  { %v9307_v12 = vadd.f32 %v9288_v9, %v13426_v0  ;;  %v9319_v0 = vld [vmem:[%s13844_s9 + $0x20] sm:$0xff] }
0x1e1f   :  { %v9304_v49 = vpop.f32.mrf.mxu3 }
0x1e20   :  { %v9305_v58 = vadd.f32 %v10267_v34, %v9304_v49 }
0x1e22   :  { %v9314_v40 = vadd.f32 %v9305_v58, %v13482_v17  ;;  %v9309_v17 = vadd.f32 %v9293_v61, %v13440_v10  ;;  %v9316_v10 = vld [vmem:[%s13844_s9 + $0x8] sm:$0xff] }
0x1e24   :  { %9355 = vmatpush.msra.mxu0 %v9314_v40  ;;  %10213 = vmatpush.msrb.mxu1 %v9314_v40 }
0x1e26   :  { %9356 = vmatpush.msra.mxu0 %v9313_v29  ;;  %10214 = vmatpush.msrb.mxu1 %v9313_v29 }
0x1e28   :  { %9357 = vmatpush.msra.mxu0 %v9312_v42  ;;  %10215 = vmatpush.msrb.mxu1 %v9312_v42 }
0x1e2a   :  { %9358 = vmatpush.msra.mxu0 %v9311_v54  ;;  %10216 = vmatpush.msrb.mxu1 %v9311_v54 }
0x1e2c   :  { %9359 = vmatpush.msra.mxu0 %v9310_v45  ;;  %10217 = vmatpush.msrb.mxu1 %v9310_v45 }
0x1e2e   :  { %9360 = vmatpush.msra.mxu0 %v9309_v17  ;;  %10218 = vmatpush.msrb.mxu1 %v9309_v17 }
0x1e30   :  { %9361 = vmatpush.msra.mxu0 %v9308_v24  ;;  %10219 = vmatpush.msrb.mxu1 %v9308_v24 }
0x1e32   :  { %9362 = vmatpush.msra.mxu0 %v9307_v12  ;;  %10220 = vmatpush.msrb.mxu1 %v9307_v12 }
0x1e33   :  { %10129 = vmatmul.msk.f32.vlgmr.msra.gmra.mxu0 %vm3580_vm10, %v9315_v2  ;;  %10136 = vmatmul.msk.f32.vlgmr.msrb.gmra.mxu1 %vm3580_vm10, %v9322_v6 }
0x1e3b   :  { %10130 = vmatmul.msk.f32.gmra.mxu0 %vm3580_vm10, %v9316_v10 }
0x1e43   :  { %10131 = vmatmul.msk.f32.gmra.mxu0 %vm3580_vm10, %v9317_v44 }
0x1e4b   :  { %10132 = vmatmul.msk.f32.gmra.mxu0 %vm3580_vm10, %v9318_v48 }
0x1e53   :  { %10133 = vmatmul.msk.f32.gmra.mxu0 %vm3580_vm10, %v9319_v0 }
0x1e5b   :  { %10134 = vmatmul.msk.f32.gmra.mxu0 %vm3580_vm10, %v9320_v3 }
0x1e63   :  { %10135 = vmatmul.msk.f32.gmra.mxu0 %vm3580_vm10, %v9321_v26 }
0x1eb0   :  { %v9364_v25 = vpop.f32.mrf.mxu0  ;;  %v9385_v56 = vpop.f32.mrf.mxu1 }
0x1eb1   :  { %9388 = vst.msk [vmem:[#allocation2] sm:$0xff] %vm135_vm0, %v9364_v25 }
0x1eb2   :  { %9395 = vst.msk [vmem:[#allocation2 + $0x38] sm:$0xff] %vm135_vm0, %v9385_v56 }
0x1eb8   :  { %v9367_v57 = vpop.f32.mrf.mxu0 }
0x1eb9   :  { %9389 = vst.msk [vmem:[#allocation2 + $0x8] sm:$0xff] %vm135_vm0, %v9367_v57 }
0x1ec0   :  { %v9370_v60 = vpop.f32.mrf.mxu0 }
0x1ec1   :  { %9390 = vst.msk [vmem:[#allocation2 + $0x10] sm:$0xff] %vm135_vm0, %v9370_v60 }
0x1ec8   :  { %v9373_v62 = vpop.f32.mrf.mxu0 }
0x1ec9   :  { %9391 = vst.msk [vmem:[#allocation2 + $0x18] sm:$0xff] %vm135_vm0, %v9373_v62 }
0x1ed0   :  { %v9376_v55 = vpop.f32.mrf.mxu0 }
0x1ed1   :  { %9392 = vst.msk [vmem:[#allocation2 + $0x20] sm:$0xff] %vm135_vm0, %v9376_v55 }
0x1ed8   :  { %v9379_v5 = vpop.f32.mrf.mxu0 }
0x1ed9   :  { %9393 = vst.msk [vmem:[#allocation2 + $0x28] sm:$0xff] %vm135_vm0, %v9379_v5 }
0x1ee0   :  { %v9382_v41 = vpop.f32.mrf.mxu0 }
0x1ee1   :  { %9394 = vst.msk [vmem:[#allocation2 + $0x30] sm:$0xff] %vm135_vm0, %v9382_v41 }
0x1ee2   :  { %10813 = shalt.err (!%p10810_p4)
}
0x1ee3   :  { %s10847_s7 = smov 128   ;;  %s10848_s10 = smov 8  }
0x1ee4   :  { %9408 = dma.vmem_to_hbm [thread:$0]  %s9401_s30, 1024, %s9403_s6, [#allocation3], %s10847_s7, %s10847_s7, %s10848_s10  }
0x1ee5   :  { %10814 = dma.done.wait [#allocation3], 1024  }
0x1ee6   :  { %10815 = vsyncadd [#allocation3], 4294966272 }
0x1ee7   :  { %9413 = vsyncpa [#allocation3], 1 }

</bundles_post_ra>
